<compile_context>
chip_gen: v7x
topology: tpu7x:2x2x1
jax: 0.10.0
libtpu: 0.0.40
codegen_flags: <defaults>
</compile_context>

<pallas_src>
import functools

import jax
import jax.numpy as jnp
from jax.experimental import pallas as pl
from jax.experimental.pallas import tpu as pltpu

EPS = 1e-5  # PyTorch BatchNorm2d default eps


# ----------------------------------------------------------------------------
# helpers
# ----------------------------------------------------------------------------
def _round_up(x, m):
    return (x + m - 1) // m * m


def _pick_tile(d):
    """Pick a lane-aligned tile that divides round_up(d, 128)."""
    d128 = _round_up(d, 128)
    for cand in (512, 384, 256, 128):
        if d128 % cand == 0:
            return cand, d128
    return 128, d128


def _pad_vec(v, n):
    v = v.reshape(-1).astype(jnp.float32)
    if v.shape[0] == n:
        return v
    return jnp.pad(v, (0, n - v.shape[0]))


# ----------------------------------------------------------------------------
# Pallas kernels
# ----------------------------------------------------------------------------
def _matmul_kernel(*refs, has_bias, relu, stats):
    idx = 2
    a_ref, b_ref = refs[0], refs[1]
    bias_ref = None
    if has_bias:
        bias_ref = refs[idx]
        idx += 1
    o_ref = refs[idx]
    idx += 1
    stats_ref = None
    if stats:
        stats_ref = refs[idx]
        idx += 1
    acc_ref = refs[idx]

    k = pl.program_id(2)

    @pl.when(k == 0)
    def _init():
        acc_ref[...] = jnp.zeros_like(acc_ref)

    acc_ref[...] += jnp.dot(a_ref[...], b_ref[...],
                            preferred_element_type=jnp.float32)

    @pl.when(k == pl.num_programs(2) - 1)
    def _finalize():
        acc = acc_ref[...]
        if stats:
            # per-(M-tile) partial sum / sum-of-squares, packed into an 8-row slab
            s = jnp.sum(acc, axis=0, keepdims=True)            # (1, tn)
            ss = jnp.sum(acc * acc, axis=0, keepdims=True)     # (1, tn)
            row_idx = jax.lax.broadcasted_iota(jnp.int32, (8, acc.shape[1]), 0)
            stats_ref[...] = jnp.where(row_idx == 0, s,
                                       jnp.where(row_idx == 1, ss, 0.0))
        out = acc
        if has_bias:
            out = out + bias_ref[...]
        if relu:
            out = jnp.maximum(out, 0.0)
        o_ref[...] = out.astype(o_ref.dtype)


def _bn_apply_kernel(*refs, relu, has_res):
    if has_res:
        x_ref, r_ref, scale_ref, shift_ref, o_ref = refs
    else:
        x_ref, scale_ref, shift_ref, o_ref = refs
    # fp32 elementwise math regardless of storage dtype
    y = x_ref[...].astype(jnp.float32) * scale_ref[...] + shift_ref[...]
    if has_res:
        y = y + r_ref[...].astype(jnp.float32)
    if relu:
        y = jnp.maximum(y, 0.0)
    o_ref[...] = y.astype(o_ref.dtype)


def _gap_kernel(x_ref, o_ref):
    x = x_ref[...].astype(jnp.float32)
    o_ref[...] = (jnp.sum(x, axis=1) * (1.0 / x.shape[1])).astype(o_ref.dtype)


# ----------------------------------------------------------------------------
# Pallas wrappers
# ----------------------------------------------------------------------------
def pallas_matmul(a, b, bias=None, relu=False, compute_stats=False,
                  keep_padded_n=False, out_dtype=jnp.float32):
    """Tiled bf16 MXU matmul with fp32 accumulation.

    Optionally fuses bias+ReLU epilogue, or per-channel sum / sum-of-squares
    partial statistics (for training-mode BatchNorm). Output can be stored in a
    narrower dtype (bf16 for backbone activations) to halve HBM traffic.
    """
    M, K = a.shape
    K2, N = b.shape
    assert K == K2

    tm = min(256, _round_up(M, 8))
    tn, N_pad = _pick_tile(N)
    tk, K_pad = _pick_tile(K)
    M_pad = _round_up(M, tm)

    a_p = a.astype(jnp.bfloat16)
    if (M_pad, K_pad) != (M, K):
        a_p = jnp.pad(a_p, ((0, M_pad - M), (0, K_pad - K)))
    b_p = b.astype(jnp.bfloat16)
    if (K_pad, N_pad) != (K, N):
        b_p = jnp.pad(b_p, ((0, K_pad - K), (0, N_pad - N)))

    grid = (M_pad // tm, N_pad // tn, K_pad // tk)
    gm = grid[0]
    has_bias = bias is not None

    inputs = [a_p, b_p]
    in_specs = [
        pl.BlockSpec((tm, tk), lambda i, j, k: (i, k)),
        pl.BlockSpec((tk, tn), lambda i, j, k: (k, j)),
    ]
    if has_bias:
        bias_p = bias.reshape(1, N).astype(jnp.float32)
        if N_pad != N:
            bias_p = jnp.pad(bias_p, ((0, 0), (0, N_pad - N)))
        inputs.append(bias_p)
        in_specs.append(pl.BlockSpec((1, tn), lambda i, j, k: (0, j)))

    out_shape = [jax.ShapeDtypeStruct((M_pad, N_pad), out_dtype)]
    out_specs = [pl.BlockSpec((tm, tn), lambda i, j, k: (i, j))]
    if compute_stats:
        out_shape.append(jax.ShapeDtypeStruct((gm * 8, N_pad), jnp.float32))
        out_specs.append(pl.BlockSpec((8, tn), lambda i, j, k: (i, j)))

    flops = 2 * M_pad * K_pad * N_pad
    out_bytes = jnp.dtype(out_dtype).itemsize
    bytes_accessed = (M_pad * K_pad * 2 + K_pad * N_pad * 2
                      + M_pad * N_pad * out_bytes)

    kernel = functools.partial(_matmul_kernel, has_bias=has_bias, relu=relu,
                               stats=compute_stats)
    outs = pl.pallas_call(
        kernel,
        grid=grid,
        in_specs=in_specs,
        out_specs=tuple(out_specs) if compute_stats else out_specs[0],
        out_shape=tuple(out_shape) if compute_stats else out_shape[0],
        scratch_shapes=[pltpu.VMEM((tm, tn), jnp.float32)],
        compiler_params=pltpu.CompilerParams(
            dimension_semantics=("parallel", "parallel", "arbitrary")),
        cost_estimate=pl.CostEstimate(flops=flops, transcendentals=0,
                                      bytes_accessed=bytes_accessed),
    )(*inputs)

    if compute_stats:
        o, stats = outs
    else:
        o = outs
    o = o[:M]
    if not keep_padded_n:
        o = o[:, :N]
    if compute_stats:
        return o, stats, N_pad
    return o


def pallas_bn_apply(x_rows, scale, shift, relu, residual=None,
                    out_dtype=jnp.bfloat16):
    """Tiled scale/shift (+residual +ReLU) over (M, C_pad) rows; fp32 math."""
    M, C = x_rows.shape
    tm = min(512, _round_up(M, 8))
    M_pad = _round_up(M, tm)

    x_p = x_rows
    if M_pad != M:
        x_p = jnp.pad(x_p, ((0, M_pad - M), (0, 0)))

    has_res = residual is not None
    inputs = [x_p]
    in_specs = [pl.BlockSpec((tm, C), lambda i: (i, 0))]
    if has_res:
        r_p = residual
        if M_pad != M:
            r_p = jnp.pad(r_p, ((0, M_pad - M), (0, 0)))
        inputs.append(r_p)
        in_specs.append(pl.BlockSpec((tm, C), lambda i: (i, 0)))

    inputs += [scale.reshape(1, C).astype(jnp.float32),
               shift.reshape(1, C).astype(jnp.float32)]
    in_specs += [pl.BlockSpec((1, C), lambda i: (0, 0)),
                 pl.BlockSpec((1, C), lambda i: (0, 0))]

    kernel = functools.partial(_bn_apply_kernel, relu=relu, has_res=has_res)
    out = pl.pallas_call(
        kernel,
        grid=(M_pad // tm,),
        in_specs=in_specs,
        out_specs=pl.BlockSpec((tm, C), lambda i: (i, 0)),
        out_shape=jax.ShapeDtypeStruct((M_pad, C), out_dtype),
        compiler_params=pltpu.CompilerParams(dimension_semantics=("parallel",)),
    )(*inputs)
    return out[:M]


def pallas_global_avg_pool(x_nhwc):
    N, H, W, C = x_nhwc.shape
    L = H * W
    x3 = x_nhwc.reshape(N, L, C)
    return pl.pallas_call(
        _gap_kernel,
        grid=(1,),
        in_specs=[pl.BlockSpec((N, L, C), lambda i: (0, 0, 0))],
        out_specs=pl.BlockSpec((N, C), lambda i: (0, 0)),
        out_shape=jax.ShapeDtypeStruct((N, C), jnp.float32),
    )(x3)


# ----------------------------------------------------------------------------
# Convolution = im2col (bf16 JAX glue) + fused Pallas matmul/stats + BN-apply
# ----------------------------------------------------------------------------
def _im2col(x_nhwc, kh, kw, stride, pad):
    x = x_nhwc.astype(jnp.bfloat16)
    N, H, W, C = x.shape
    if pad:
        x = jnp.pad(x, ((0, 0), (pad, pad), (pad, pad), (0, 0)))
    Ho = (H + 2 * pad - kh) // stride + 1
    Wo = (W + 2 * pad - kw) // stride + 1
    taps = []
    for i in range(kh):
        for j in range(kw):
            taps.append(
                x[:, i: i + stride * Ho: stride, j: j + stride * Wo: stride, :])
    cols = jnp.stack(taps, axis=3)                        # (N, Ho, Wo, kh*kw, C)
    return cols.reshape(N * Ho * Wo, kh * kw * C), Ho, Wo


def conv_bn_act(x_nhwc, w_oihw, gamma, beta, stride, pad, relu,
                residual_rows=None):
    """conv (no bias) -> training-mode BatchNorm -> (+residual) -> (ReLU).

    Returns normalized bf16 rows (N*Ho*Wo, C_pad) with C padded to a 128 multiple.
    """
    N = x_nhwc.shape[0]
    c_out, c_in, kh, kw = w_oihw.shape
    c_in_avail = x_nhwc.shape[-1]
    if c_in_avail != c_in:  # activation channels are zero-padded to 128 multiples
        w_oihw = jnp.pad(w_oihw, ((0, 0), (0, c_in_avail - c_in), (0, 0), (0, 0)))

    cols, Ho, Wo = _im2col(x_nhwc, kh, kw, stride, pad)
    w_mat = jnp.transpose(w_oihw, (2, 3, 1, 0)).reshape(kh * kw * c_in_avail, c_out)

    rows, stats, c_pad = pallas_matmul(cols, w_mat, compute_stats=True,
                                       keep_padded_n=True,
                                       out_dtype=jnp.bfloat16)
    M = N * Ho * Wo

    # reduce per-M-tile partial sums (tiny) and build BN scale/shift
    st = stats.reshape(-1, 8, c_pad)
    s = jnp.sum(st[:, 0, :], axis=0)
    ss = jnp.sum(st[:, 1, :], axis=0)
    mean = s / M
    var = jnp.maximum(ss / M - mean * mean, 0.0)  # biased, training-mode BN
    g = _pad_vec(gamma, c_pad)
    b = _pad_vec(beta, c_pad)
    scale = g * jax.lax.rsqrt(var + EPS)
    shift = b - mean * scale

    out = pallas_bn_apply(rows, scale, shift, relu=relu, residual=residual_rows,
                          out_dtype=jnp.bfloat16)
    return out, Ho, Wo


# ----------------------------------------------------------------------------
# ResNet-18 BasicBlock / backbone / heads
# ----------------------------------------------------------------------------
def basic_block(x_nhwc, p, stride):
    N, H, W, Cin = x_nhwc.shape
    rows1, Ho, Wo = conv_bn_act(x_nhwc, p["conv1_w"], p["bn1_g"], p["bn1_b"],
                                stride=stride, pad=1, relu=True)
    a1 = rows1.reshape(N, Ho, Wo, rows1.shape[-1])

    if "down_w" in p:
        id_rows, _, _ = conv_bn_act(x_nhwc, p["down_w"], p["down_g"], p["down_b"],
                                    stride=stride, pad=0, relu=False)
    else:
        id_rows = x_nhwc.reshape(N * H * W, Cin)

    rows2, _, _ = conv_bn_act(a1, p["conv2_w"], p["bn2_g"], p["bn2_b"],
                              stride=1, pad=1, relu=True, residual_rows=id_rows)
    return rows2.reshape(N, Ho, Wo, rows2.shape[-1])


def _forward(params, x_nchw):
    x = jnp.transpose(x_nchw, (0, 2, 3, 1)).astype(jnp.float32)  # NCHW -> NHWC
    N = x.shape[0]

    # backbone.conv1 (3x3, stride 1, pad 1, no bias) + bn1 + relu ; maxpool = Identity
    rows, Ho, Wo = conv_bn_act(x, params["conv1_w"], params["bn1_g"],
                               params["bn1_b"], stride=1, pad=1, relu=True)
    x = rows.reshape(N, Ho, Wo, rows.shape[-1])

    # layer1..layer4 (stride 2 + downsample on the first block of layers 2-4)
    for li, layer in enumerate(params["layers"]):
        for bi, blk in enumerate(layer):
            stride = 2 if (li > 0 and bi == 0) else 1
            x = basic_block(x, blk, stride)

    # adaptive average pool to 1x1 (Pallas reduction kernel); backbone.fc = Identity
    pooled = pallas_global_avg_pool(x)                    # (N, 512)

    # ecoc_encoder: Linear(dim_mlp, code_dim) + ReLU
    h = pallas_matmul(pooled, params["ecoc_w"], bias=params["ecoc_b"], relu=True)
    # fc: Linear(code_dim, dim_mlp) + ReLU + Linear(dim_mlp, 128)
    h = pallas_matmul(h, params["fc1_w"], bias=params["fc1_b"], relu=True)
    h = pallas_matmul(h, params["fc2_w"], bias=params["fc2_b"], relu=False)
    return h


forward = jax.jit(_forward)


# ----------------------------------------------------------------------------
# Deterministic parameter initialization (synthetic weights, resnet18 shapes)
# ----------------------------------------------------------------------------
def init_params(key, code_dim=16, head_out=128):
    keys = iter(jax.random.split(key, 64))

    def conv_w(c_out, c_in, k):
        fan_in = c_in * k * k
        return jax.random.normal(next(keys), (c_out, c_in, k, k),
                                 jnp.float32) / jnp.sqrt(float(fan_in))

    def linear_t(in_f, out_f):
        # stored pre-transposed as (in, out) so forward needs no .T
        w = jax.random.normal(next(keys), (in_f, out_f),
                              jnp.float32) / jnp.sqrt(float(in_f))
        b = jnp.zeros((out_f,), jnp.float32)
        return w, b

    params = {
        "conv1_w": conv_w(64, 3, 3),  # modified conv1: Conv2d(3, 64, 3, 1, 1, bias=False)
        "bn1_g": jnp.ones((64,), jnp.float32),
        "bn1_b": jnp.zeros((64,), jnp.float32),
    }

    layers = []
    in_c = 64
    for out_c, n_blocks, first_stride in [(64, 2, 1), (128, 2, 2),
                                          (256, 2, 2), (512, 2, 2)]:
        blocks = []
        for bi in range(n_blocks):
            stride = first_stride if bi == 0 else 1
            blk = {
                "conv1_w": conv_w(out_c, in_c, 3),
                "bn1_g": jnp.ones((out_c,), jnp.float32),
                "bn1_b": jnp.zeros((out_c,), jnp.float32),
                "conv2_w": conv_w(out_c, out_c, 3),
                "bn2_g": jnp.ones((out_c,), jnp.float32),
                "bn2_b": jnp.zeros((out_c,), jnp.float32),
            }
            if stride != 1 or in_c != out_c:
                blk["down_w"] = conv_w(out_c, in_c, 1)
                blk["down_g"] = jnp.ones((out_c,), jnp.float32)
                blk["down_b"] = jnp.zeros((out_c,), jnp.float32)
            blocks.append(blk)
            in_c = out_c
        layers.append(blocks)
    params["layers"] = layers

    dim_mlp = 512  # resnet18 fc.in_features
    params["ecoc_w"], params["ecoc_b"] = linear_t(dim_mlp, code_dim)
    params["fc1_w"], params["fc1_b"] = linear_t(code_dim, dim_mlp)
    params["fc2_w"], params["fc2_b"] = linear_t(dim_mlp, head_out)
    return params


if __name__ == "__main__":
    key = jax.random.PRNGKey(0)
    pkey, xkey = jax.random.split(key)
    params = init_params(pkey, code_dim=16)

    # small input consistent with the module: NCHW, 3 channels
    x = jax.random.normal(xkey, (2, 3, 16, 16), jnp.float32)

    out = forward(params, x)
    jax.block_until_ready(out)
    assert out.shape == (2, 128), out.shape
    print("KERNEL_OK")
</pallas_src>

<mosaic_0001>
module attributes {stable_mosaic.version = 11 : i64} {
  func.func @_matmul_kernel(%arg0: i32, %arg1: i32, %arg2: i32, %arg3: memref<256x128xbf16, #tpu.memory_space<vmem>>, %arg4: memref<128x128xbf16, #tpu.memory_space<vmem>>, %arg5: memref<256x128xbf16, #tpu.memory_space<vmem>>, %arg6: memref<8x128xf32, #tpu.memory_space<vmem>>, %arg7: memref<256x128xf32, #tpu.memory_space<vmem>>) attributes {dimension_semantics = [#tpu.dimension_semantics<parallel>, #tpu.dimension_semantics<parallel>, #tpu.dimension_semantics<arbitrary>], iteration_bounds = array<i64: 2, 1, 1>, scalar_prefetch = 0 : i64, scratch_operands = 1 : i64, tpu.core_type = #tpu.core_type<tc>, window_params = [{transform_indices = @transform_0, window_bounds = array<i64: 256, 128>}, {transform_indices = @transform_1, window_bounds = array<i64: 128, 128>}, {transform_indices = @transform_2, window_bounds = array<i64: 256, 128>}, {transform_indices = @transform_3, window_bounds = array<i64: 8, 128>}]} {
    %c0_i32 = arith.constant 0 : i32
    %0 = arith.cmpi eq, %arg2, %c0_i32 : i32
    %1 = arith.extui %0 : i1 to i32
    %c0_i32_0 = arith.constant 0 : i32
    %2 = arith.cmpi ne, %1, %c0_i32_0 : i32
    scf.if %2 {
      %cst_10 = arith.constant 0.000000e+00 : f32
      %12 = vector.broadcast %cst_10 : f32 to vector<256x128xf32>
      %c0_11 = arith.constant 0 : index
      %c0_12 = arith.constant 0 : index
      %13 = vector.load %arg7[%c0_11, %c0_12] : memref<256x128xf32, #tpu.memory_space<vmem>>, vector<256x128xf32>
      tpu.vector_store %arg7[%c0_11, %c0_12], %12 {strides = array<i32>} : memref<256x128xf32, #tpu.memory_space<vmem>>, vector<256x128xf32>,
    } else {
    }
    %c0 = arith.constant 0 : index
    %c0_1 = arith.constant 0 : index
    %3 = vector.load %arg7[%c0, %c0_1] : memref<256x128xf32, #tpu.memory_space<vmem>>, vector<256x128xf32>
    %c0_2 = arith.constant 0 : index
    %c0_3 = arith.constant 0 : index
    %4 = vector.load %arg3[%c0_2, %c0_3] : memref<256x128xbf16, #tpu.memory_space<vmem>>, vector<256x128xbf16>
    %c0_4 = arith.constant 0 : index
    %c0_5 = arith.constant 0 : index
    %5 = vector.load %arg4[%c0_4, %c0_5] : memref<128x128xbf16, #tpu.memory_space<vmem>>, vector<128x128xbf16>
    %cst = arith.constant dense<0.000000e+00> : vector<256x128xf32>
    %6 = tpu.matmul %4, %5, %cst {dimension_numbers = #tpu.dot_dimension_numbers<[1], [0], [0], [1], [0, 0, 1, 1], [], []>} : vector<256x128xbf16>, vector<128x128xbf16>, vector<256x128xf32> -> vector<256x128xf32>
    %7 = arith.addf %3, %6 : vector<256x128xf32>
    %c0_6 = arith.constant 0 : index
    %c0_7 = arith.constant 0 : index
    %8 = vector.load %arg7[%c0_6, %c0_7] : memref<256x128xf32, #tpu.memory_space<vmem>>, vector<256x128xf32>
    tpu.vector_store %arg7[%c0_6, %c0_7], %7 {strides = array<i32>} : memref<256x128xf32, #tpu.memory_space<vmem>>, vector<256x128xf32>,
    %c0_i32_8 = arith.constant 0 : i32
    %9 = arith.cmpi eq, %arg2, %c0_i32_8 : i32
    %10 = arith.extui %9 : i1 to i32
    %c0_i32_9 = arith.constant 0 : i32
    %11 = arith.cmpi ne, %10, %c0_i32_9 : i32
    scf.if %11 {
      %c0_10 = arith.constant 0 : index
      %c0_11 = arith.constant 0 : index
      %12 = vector.load %arg7[%c0_10, %c0_11] : memref<256x128xf32, #tpu.memory_space<vmem>>, vector<256x128xf32>
      %cst_12 = arith.constant dense<0.000000e+00> : vector<128xf32>
      %13 = vector.multi_reduction <add>, %12, %cst_12 [0] : vector<256x128xf32> to vector<128xf32>
      %14 = vector.shape_cast %13 : vector<128xf32> to vector<1x128xf32>
      %15 = arith.mulf %12, %12 : vector<256x128xf32>
      %cst_13 = arith.constant dense<0.000000e+00> : vector<128xf32>
      %16 = vector.multi_reduction <add>, %15, %cst_13 [0] : vector<256x128xf32> to vector<128xf32>
      %17 = vector.shape_cast %16 : vector<128xf32> to vector<1x128xf32>
      %18 = tpu.iota {dimensions = array<i32: 0>} : vector<8x128xi32>
      %c0_i32_14 = arith.constant 0 : i32
      %19 = vector.broadcast %c0_i32_14 : i32 to vector<8x128xi32>
      %20 = arith.cmpi eq, %18, %19 : vector<8x128xi32>
      %c1_i32 = arith.constant 1 : i32
      %21 = vector.broadcast %c1_i32 : i32 to vector<8x128xi32>
      %22 = arith.cmpi eq, %18, %21 : vector<8x128xi32>
      %cst_15 = arith.constant 0.000000e+00 : f32
      %23 = vector.shape_cast %17 : vector<1x128xf32> to vector<1x128xf32>
      %24 = vector.broadcast %23 : vector<1x128xf32> to vector<8x128xf32>
      %25 = vector.broadcast %cst_15 : f32 to vector<8x128xf32>
      %26 = arith.select %22, %24, %25 : vector<8x128xi1>, vector<8x128xf32>
      %27 = vector.shape_cast %14 : vector<1x128xf32> to vector<1x128xf32>
      %28 = vector.broadcast %27 : vector<1x128xf32> to vector<8x128xf32>
      %29 = arith.select %20, %28, %26 : vector<8x128xi1>, vector<8x128xf32>
      %c0_16 = arith.constant 0 : index
      %c0_17 = arith.constant 0 : index
      %30 = vector.load %arg6[%c0_16, %c0_17] : memref<8x128xf32, #tpu.memory_space<vmem>>, vector<8x128xf32>
      tpu.vector_store %arg6[%c0_16, %c0_17], %29 {strides = array<i32>} : memref<8x128xf32, #tpu.memory_space<vmem>>, vector<8x128xf32>,
      %31 = arith.truncf %12 : vector<256x128xf32> to vector<256x128xbf16>
      %c0_18 = arith.constant 0 : index
      %c0_19 = arith.constant 0 : index
      %32 = vector.load %arg5[%c0_18, %c0_19] : memref<256x128xbf16, #tpu.memory_space<vmem>>, vector<256x128xbf16>
      tpu.vector_store %arg5[%c0_18, %c0_19], %31 {strides = array<i32>} : memref<256x128xbf16, #tpu.memory_space<vmem>>, vector<256x128xbf16>,
    } else {
    }
    return
  }
  func.func @transform_0(%arg0: i32, %arg1: i32, %arg2: i32) -> (i32, i32) {
    %c0_i32 = arith.constant 0 : i32
    return %arg0, %arg2 : i32, i32
  }
  func.func @transform_1(%arg0: i32, %arg1: i32, %arg2: i32) -> (i32, i32) {
    %c0_i32 = arith.constant 0 : i32
    return %arg2, %arg1 : i32, i32
  }
  func.func @transform_2(%arg0: i32, %arg1: i32, %arg2: i32) -> (i32, i32) {
    %c0_i32 = arith.constant 0 : i32
    return %arg0, %arg1 : i32, i32
  }
  func.func @transform_3(%arg0: i32, %arg1: i32, %arg2: i32) -> (i32, i32) {
    %c0_i32 = arith.constant 0 : i32
    return %arg0, %arg1 : i32, i32
  }
}

module attributes {stable_mosaic.version = 11 : i64} {
  func.func @_bn_apply_kernel(%arg0: i32, %arg1: memref<512x128xbf16, #tpu.memory_space<vmem>>, %arg2: memref<1x128xf32, #tpu.memory_space<vmem>>, %arg3: memref<1x128xf32, #tpu.memory_space<vmem>>, %arg4: memref<512x128xbf16, #tpu.memory_space<vmem>>) attributes {dimension_semantics = [#tpu.dimension_semantics<parallel>], iteration_bounds = array<i64: 1>, scalar_prefetch = 0 : i64, scratch_operands = 0 : i64, tpu.core_type = #tpu.core_type<tc>, window_params = [{transform_indices = @transform_0, window_bounds = array<i64: 512, 128>}, {pipeline_mode = #tpu.pipeline_mode<synchronous>, transform_indices = @transform_1, window_bounds = array<i64: 1, 128>}, {pipeline_mode = #tpu.pipeline_mode<synchronous>, transform_indices = @transform_2, window_bounds = array<i64: 1, 128>}, {transform_indices = @transform_3, window_bounds = array<i64: 512, 128>}]} {
    %c0 = arith.constant 0 : index
    %c0_0 = arith.constant 0 : index
    %0 = vector.load %arg1[%c0, %c0_0] : memref<512x128xbf16, #tpu.memory_space<vmem>>, vector<512x128xbf16>
    %1 = arith.extf %0 : vector<512x128xbf16> to vector<512x128xf32>
    %c0_1 = arith.constant 0 : index
    %c0_2 = arith.constant 0 : index
    %2 = vector.load %arg2[%c0_1, %c0_2] : memref<1x128xf32, #tpu.memory_space<vmem>>, vector<1x128xf32>
    %3 = vector.broadcast %2 : vector<1x128xf32> to vector<512x128xf32>
    %4 = arith.mulf %1, %3 : vector<512x128xf32>
    %c0_3 = arith.constant 0 : index
    %c0_4 = arith.constant 0 : index
    %5 = vector.load %arg3[%c0_3, %c0_4] : memref<1x128xf32, #tpu.memory_space<vmem>>, vector<1x128xf32>
    %6 = vector.broadcast %5 : vector<1x128xf32> to vector<512x128xf32>
    %7 = arith.addf %4, %6 : vector<512x128xf32>
    %cst = arith.constant 0.000000e+00 : f32
    %8 = vector.broadcast %cst : f32 to vector<512x128xf32>
    %9 = arith.maximumf %7, %8 : vector<512x128xf32>
    %10 = arith.truncf %9 : vector<512x128xf32> to vector<512x128xbf16>
    %c0_5 = arith.constant 0 : index
    %c0_6 = arith.constant 0 : index
    %11 = vector.load %arg4[%c0_5, %c0_6] : memref<512x128xbf16, #tpu.memory_space<vmem>>, vector<512x128xbf16>
    tpu.vector_store %arg4[%c0_5, %c0_6], %10 {strides = array<i32>} : memref<512x128xbf16, #tpu.memory_space<vmem>>, vector<512x128xbf16>,
    return
  }
  func.func @transform_0(%arg0: i32) -> (i32, i32) {
    %c0_i32 = arith.constant 0 : i32
    %c0_i32_0 = arith.constant 0 : i32
    return %arg0, %c0_i32 : i32, i32
  }
  func.func @transform_1(%arg0: i32) -> (i32, i32) {
    %c0_i32 = arith.constant 0 : i32
    %c0_i32_0 = arith.constant 0 : i32
    %c0_i32_1 = arith.constant 0 : i32
    return %c0_i32, %c0_i32_0 : i32, i32
  }
  func.func @transform_2(%arg0: i32) -> (i32, i32) {
    %c0_i32 = arith.constant 0 : i32
    %c0_i32_0 = arith.constant 0 : i32
    %c0_i32_1 = arith.constant 0 : i32
    return %c0_i32, %c0_i32_0 : i32, i32
  }
  func.func @transform_3(%arg0: i32) -> (i32, i32) {
    %c0_i32 = arith.constant 0 : i32
    %c0_i32_0 = arith.constant 0 : i32
    return %arg0, %c0_i32 : i32, i32
  }
}

module attributes {stable_mosaic.version = 11 : i64} {
  func.func @_matmul_kernel(%arg0: i32, %arg1: i32, %arg2: i32, %arg3: memref<256x384xbf16, #tpu.memory_space<vmem>>, %arg4: memref<384x128xbf16, #tpu.memory_space<vmem>>, %arg5: memref<256x128xbf16, #tpu.memory_space<vmem>>, %arg6: memref<8x128xf32, #tpu.memory_space<vmem>>, %arg7: memref<256x128xf32, #tpu.memory_space<vmem>>) attributes {dimension_semantics = [#tpu.dimension_semantics<parallel>, #tpu.dimension_semantics<parallel>, #tpu.dimension_semantics<arbitrary>], iteration_bounds = array<i64: 2, 1, 3>, scalar_prefetch = 0 : i64, scratch_operands = 1 : i64, tpu.core_type = #tpu.core_type<tc>, window_params = [{transform_indices = @transform_0, window_bounds = array<i64: 256, 384>}, {transform_indices = @transform_1, window_bounds = array<i64: 384, 128>}, {transform_indices = @transform_2, window_bounds = array<i64: 256, 128>}, {transform_indices = @transform_3, window_bounds = array<i64: 8, 128>}]} {
    %c0_i32 = arith.constant 0 : i32
    %0 = arith.cmpi eq, %arg2, %c0_i32 : i32
    %1 = arith.extui %0 : i1 to i32
    %c0_i32_0 = arith.constant 0 : i32
    %2 = arith.cmpi ne, %1, %c0_i32_0 : i32
    scf.if %2 {
      %cst_9 = arith.constant 0.000000e+00 : f32
      %12 = vector.broadcast %cst_9 : f32 to vector<256x128xf32>
      %c0_10 = arith.constant 0 : index
      %c0_11 = arith.constant 0 : index
      %13 = vector.load %arg7[%c0_10, %c0_11] : memref<256x128xf32, #tpu.memory_space<vmem>>, vector<256x128xf32>
      tpu.vector_store %arg7[%c0_10, %c0_11], %12 {strides = array<i32>} : memref<256x128xf32, #tpu.memory_space<vmem>>, vector<256x128xf32>,
    } else {
    }
    %c0 = arith.constant 0 : index
    %c0_1 = arith.constant 0 : index
    %3 = vector.load %arg7[%c0, %c0_1] : memref<256x128xf32, #tpu.memory_space<vmem>>, vector<256x128xf32>
    %c0_2 = arith.constant 0 : index
    %c0_3 = arith.constant 0 : index
    %4 = vector.load %arg3[%c0_2, %c0_3] : memref<256x384xbf16, #tpu.memory_space<vmem>>, vector<256x384xbf16>
    %c0_4 = arith.constant 0 : index
    %c0_5 = arith.constant 0 : index
    %5 = vector.load %arg4[%c0_4, %c0_5] : memref<384x128xbf16, #tpu.memory_space<vmem>>, vector<384x128xbf16>
    %cst = arith.constant dense<0.000000e+00> : vector<256x128xf32>
    %6 = tpu.matmul %4, %5, %cst {dimension_numbers = #tpu.dot_dimension_numbers<[1], [0], [0], [1], [0, 0, 1, 1], [], []>} : vector<256x384xbf16>, vector<384x128xbf16>, vector<256x128xf32> -> vector<256x128xf32>
    %7 = arith.addf %3, %6 : vector<256x128xf32>
    %c0_6 = arith.constant 0 : index
    %c0_7 = arith.constant 0 : index
    %8 = vector.load %arg7[%c0_6, %c0_7] : memref<256x128xf32, #tpu.memory_space<vmem>>, vector<256x128xf32>
    tpu.vector_store %arg7[%c0_6, %c0_7], %7 {strides = array<i32>} : memref<256x128xf32, #tpu.memory_space<vmem>>, vector<256x128xf32>,
    %c2_i32 = arith.constant 2 : i32
    %9 = arith.cmpi eq, %arg2, %c2_i32 : i32
    %10 = arith.extui %9 : i1 to i32
    %c0_i32_8 = arith.constant 0 : i32
    %11 = arith.cmpi ne, %10, %c0_i32_8 : i32
    scf.if %11 {
      %c0_9 = arith.constant 0 : index
      %c0_10 = arith.constant 0 : index
      %12 = vector.load %arg7[%c0_9, %c0_10] : memref<256x128xf32, #tpu.memory_space<vmem>>, vector<256x128xf32>
      %cst_11 = arith.constant dense<0.000000e+00> : vector<128xf32>
      %13 = vector.multi_reduction <add>, %12, %cst_11 [0] : vector<256x128xf32> to vector<128xf32>
      %14 = vector.shape_cast %13 : vector<128xf32> to vector<1x128xf32>
      %15 = arith.mulf %12, %12 : vector<256x128xf32>
      %cst_12 = arith.constant dense<0.000000e+00> : vector<128xf32>
      %16 = vector.multi_reduction <add>, %15, %cst_12 [0] : vector<256x128xf32> to vector<128xf32>
      %17 = vector.shape_cast %16 : vector<128xf32> to vector<1x128xf32>
      %18 = tpu.iota {dimensions = array<i32: 0>} : vector<8x128xi32>
      %c0_i32_13 = arith.constant 0 : i32
      %19 = vector.broadcast %c0_i32_13 : i32 to vector<8x128xi32>
      %20 = arith.cmpi eq, %18, %19 : vector<8x128xi32>
      %c1_i32 = arith.constant 1 : i32
      %21 = vector.broadcast %c1_i32 : i32 to vector<8x128xi32>
      %22 = arith.cmpi eq, %18, %21 : vector<8x128xi32>
      %cst_14 = arith.constant 0.000000e+00 : f32
      %23 = vector.shape_cast %17 : vector<1x128xf32> to vector<1x128xf32>
      %24 = vector.broadcast %23 : vector<1x128xf32> to vector<8x128xf32>
      %25 = vector.broadcast %cst_14 : f32 to vector<8x128xf32>
      %26 = arith.select %22, %24, %25 : vector<8x128xi1>, vector<8x128xf32>
      %27 = vector.shape_cast %14 : vector<1x128xf32> to vector<1x128xf32>
      %28 = vector.broadcast %27 : vector<1x128xf32> to vector<8x128xf32>
      %29 = arith.select %20, %28, %26 : vector<8x128xi1>, vector<8x128xf32>
      %c0_15 = arith.constant 0 : index
      %c0_16 = arith.constant 0 : index
      %30 = vector.load %arg6[%c0_15, %c0_16] : memref<8x128xf32, #tpu.memory_space<vmem>>, vector<8x128xf32>
      tpu.vector_store %arg6[%c0_15, %c0_16], %29 {strides = array<i32>} : memref<8x128xf32, #tpu.memory_space<vmem>>, vector<8x128xf32>,
      %31 = arith.truncf %12 : vector<256x128xf32> to vector<256x128xbf16>
      %c0_17 = arith.constant 0 : index
      %c0_18 = arith.constant 0 : index
      %32 = vector.load %arg5[%c0_17, %c0_18] : memref<256x128xbf16, #tpu.memory_space<vmem>>, vector<256x128xbf16>
      tpu.vector_store %arg5[%c0_17, %c0_18], %31 {strides = array<i32>} : memref<256x128xbf16, #tpu.memory_space<vmem>>, vector<256x128xbf16>,
    } else {
    }
    return
  }
  func.func @transform_0(%arg0: i32, %arg1: i32, %arg2: i32) -> (i32, i32) {
    %c0_i32 = arith.constant 0 : i32
    return %arg0, %arg2 : i32, i32
  }
  func.func @transform_1(%arg0: i32, %arg1: i32, %arg2: i32) -> (i32, i32) {
    %c0_i32 = arith.constant 0 : i32
    return %arg2, %arg1 : i32, i32
  }
  func.func @transform_2(%arg0: i32, %arg1: i32, %arg2: i32) -> (i32, i32) {
    %c0_i32 = arith.constant 0 : i32
    return %arg0, %arg1 : i32, i32
  }
  func.func @transform_3(%arg0: i32, %arg1: i32, %arg2: i32) -> (i32, i32) {
    %c0_i32 = arith.constant 0 : i32
    return %arg0, %arg1 : i32, i32
  }
}

module attributes {stable_mosaic.version = 11 : i64} {
  func.func @_bn_apply_kernel(%arg0: i32, %arg1: memref<512x128xbf16, #tpu.memory_space<vmem>>, %arg2: memref<512x128xbf16, #tpu.memory_space<vmem>>, %arg3: memref<1x128xf32, #tpu.memory_space<vmem>>, %arg4: memref<1x128xf32, #tpu.memory_space<vmem>>, %arg5: memref<512x128xbf16, #tpu.memory_space<vmem>>) attributes {dimension_semantics = [#tpu.dimension_semantics<parallel>], iteration_bounds = array<i64: 1>, scalar_prefetch = 0 : i64, scratch_operands = 0 : i64, tpu.core_type = #tpu.core_type<tc>, window_params = [{transform_indices = @transform_0, window_bounds = array<i64: 512, 128>}, {transform_indices = @transform_1, window_bounds = array<i64: 512, 128>}, {pipeline_mode = #tpu.pipeline_mode<synchronous>, transform_indices = @transform_2, window_bounds = array<i64: 1, 128>}, {pipeline_mode = #tpu.pipeline_mode<synchronous>, transform_indices = @transform_3, window_bounds = array<i64: 1, 128>}, {transform_indices = @transform_4, window_bounds = array<i64: 512, 128>}]} {
    %c0 = arith.constant 0 : index
    %c0_0 = arith.constant 0 : index
    %0 = vector.load %arg1[%c0, %c0_0] : memref<512x128xbf16, #tpu.memory_space<vmem>>, vector<512x128xbf16>
    %1 = arith.extf %0 : vector<512x128xbf16> to vector<512x128xf32>
    %c0_1 = arith.constant 0 : index
    %c0_2 = arith.constant 0 : index
    %2 = vector.load %arg3[%c0_1, %c0_2] : memref<1x128xf32, #tpu.memory_space<vmem>>, vector<1x128xf32>
    %3 = vector.broadcast %2 : vector<1x128xf32> to vector<512x128xf32>
    %4 = arith.mulf %1, %3 : vector<512x128xf32>
    %c0_3 = arith.constant 0 : index
    %c0_4 = arith.constant 0 : index
    %5 = vector.load %arg4[%c0_3, %c0_4] : memref<1x128xf32, #tpu.memory_space<vmem>>, vector<1x128xf32>
    %6 = vector.broadcast %5 : vector<1x128xf32> to vector<512x128xf32>
    %7 = arith.addf %4, %6 : vector<512x128xf32>
    %c0_5 = arith.constant 0 : index
    %c0_6 = arith.constant 0 : index
    %8 = vector.load %arg2[%c0_5, %c0_6] : memref<512x128xbf16, #tpu.memory_space<vmem>>, vector<512x128xbf16>
    %9 = arith.extf %8 : vector<512x128xbf16> to vector<512x128xf32>
    %10 = arith.addf %7, %9 : vector<512x128xf32>
    %cst = arith.constant 0.000000e+00 : f32
    %11 = vector.broadcast %cst : f32 to vector<512x128xf32>
    %12 = arith.maximumf %10, %11 : vector<512x128xf32>
    %13 = arith.truncf %12 : vector<512x128xf32> to vector<512x128xbf16>
    %c0_7 = arith.constant 0 : index
    %c0_8 = arith.constant 0 : index
    %14 = vector.load %arg5[%c0_7, %c0_8] : memref<512x128xbf16, #tpu.memory_space<vmem>>, vector<512x128xbf16>
    tpu.vector_store %arg5[%c0_7, %c0_8], %13 {strides = array<i32>} : memref<512x128xbf16, #tpu.memory_space<vmem>>, vector<512x128xbf16>,
    return
  }
  func.func @transform_0(%arg0: i32) -> (i32, i32) {
    %c0_i32 = arith.constant 0 : i32
    %c0_i32_0 = arith.constant 0 : i32
    return %arg0, %c0_i32 : i32, i32
  }
  func.func @transform_1(%arg0: i32) -> (i32, i32) {
    %c0_i32 = arith.constant 0 : i32
    %c0_i32_0 = arith.constant 0 : i32
    return %arg0, %c0_i32 : i32, i32
  }
  func.func @transform_2(%arg0: i32) -> (i32, i32) {
    %c0_i32 = arith.constant 0 : i32
    %c0_i32_0 = arith.constant 0 : i32
    %c0_i32_1 = arith.constant 0 : i32
    return %c0_i32, %c0_i32_0 : i32, i32
  }
  func.func @transform_3(%arg0: i32) -> (i32, i32) {
    %c0_i32 = arith.constant 0 : i32
    %c0_i32_0 = arith.constant 0 : i32
    %c0_i32_1 = arith.constant 0 : i32
    return %c0_i32, %c0_i32_0 : i32, i32
  }
  func.func @transform_4(%arg0: i32) -> (i32, i32) {
    %c0_i32 = arith.constant 0 : i32
    %c0_i32_0 = arith.constant 0 : i32
    return %arg0, %c0_i32 : i32, i32
  }
}

module attributes {stable_mosaic.version = 11 : i64} {
  func.func @_matmul_kernel(%arg0: i32, %arg1: i32, %arg2: i32, %arg3: memref<128x128xbf16, #tpu.memory_space<vmem>>, %arg4: memref<128x128xbf16, #tpu.memory_space<vmem>>, %arg5: memref<128x128xbf16, #tpu.memory_space<vmem>>, %arg6: memref<8x128xf32, #tpu.memory_space<vmem>>, %arg7: memref<128x128xf32, #tpu.memory_space<vmem>>) attributes {dimension_semantics = [#tpu.dimension_semantics<parallel>, #tpu.dimension_semantics<parallel>, #tpu.dimension_semantics<arbitrary>], iteration_bounds = array<i64: 1, 1, 1>, scalar_prefetch = 0 : i64, scratch_operands = 1 : i64, tpu.core_type = #tpu.core_type<tc>, window_params = [{transform_indices = @transform_0, window_bounds = array<i64: 128, 128>}, {transform_indices = @transform_1, window_bounds = array<i64: 128, 128>}, {transform_indices = @transform_2, window_bounds = array<i64: 128, 128>}, {transform_indices = @transform_3, window_bounds = array<i64: 8, 128>}]} {
    %c0_i32 = arith.constant 0 : i32
    %0 = arith.cmpi eq, %arg2, %c0_i32 : i32
    %1 = arith.extui %0 : i1 to i32
    %c0_i32_0 = arith.constant 0 : i32
    %2 = arith.cmpi ne, %1, %c0_i32_0 : i32
    scf.if %2 {
      %cst_10 = arith.constant 0.000000e+00 : f32
      %12 = vector.broadcast %cst_10 : f32 to vector<128x128xf32>
      %c0_11 = arith.constant 0 : index
      %c0_12 = arith.constant 0 : index
      %13 = vector.load %arg7[%c0_11, %c0_12] : memref<128x128xf32, #tpu.memory_space<vmem>>, vector<128x128xf32>
      tpu.vector_store %arg7[%c0_11, %c0_12], %12 {strides = array<i32>} : memref<128x128xf32, #tpu.memory_space<vmem>>, vector<128x128xf32>,
    } else {
    }
    %c0 = arith.constant 0 : index
    %c0_1 = arith.constant 0 : index
    %3 = vector.load %arg7[%c0, %c0_1] : memref<128x128xf32, #tpu.memory_space<vmem>>, vector<128x128xf32>
    %c0_2 = arith.constant 0 : index
    %c0_3 = arith.constant 0 : index
    %4 = vector.load %arg3[%c0_2, %c0_3] : memref<128x128xbf16, #tpu.memory_space<vmem>>, vector<128x128xbf16>
    %c0_4 = arith.constant 0 : index
    %c0_5 = arith.constant 0 : index
    %5 = vector.load %arg4[%c0_4, %c0_5] : memref<128x128xbf16, #tpu.memory_space<vmem>>, vector<128x128xbf16>
    %cst = arith.constant dense<0.000000e+00> : vector<128x128xf32>
    %6 = tpu.matmul %4, %5, %cst {dimension_numbers = #tpu.dot_dimension_numbers<[1], [0], [0], [1], [0, 0, 1, 1], [], []>} : vector<128x128xbf16>, vector<128x128xbf16>, vector<128x128xf32> -> vector<128x128xf32>
    %7 = arith.addf %3, %6 : vector<128x128xf32>
    %c0_6 = arith.constant 0 : index
    %c0_7 = arith.constant 0 : index
    %8 = vector.load %arg7[%c0_6, %c0_7] : memref<128x128xf32, #tpu.memory_space<vmem>>, vector<128x128xf32>
    tpu.vector_store %arg7[%c0_6, %c0_7], %7 {strides = array<i32>} : memref<128x128xf32, #tpu.memory_space<vmem>>, vector<128x128xf32>,
    %c0_i32_8 = arith.constant 0 : i32
    %9 = arith.cmpi eq, %arg2, %c0_i32_8 : i32
    %10 = arith.extui %9 : i1 to i32
    %c0_i32_9 = arith.constant 0 : i32
    %11 = arith.cmpi ne, %10, %c0_i32_9 : i32
    scf.if %11 {
      %c0_10 = arith.constant 0 : index
      %c0_11 = arith.constant 0 : index
      %12 = vector.load %arg7[%c0_10, %c0_11] : memref<128x128xf32, #tpu.memory_space<vmem>>, vector<128x128xf32>
      %cst_12 = arith.constant dense<0.000000e+00> : vector<128xf32>
      %13 = vector.multi_reduction <add>, %12, %cst_12 [0] : vector<128x128xf32> to vector<128xf32>
      %14 = vector.shape_cast %13 : vector<128xf32> to vector<1x128xf32>
      %15 = arith.mulf %12, %12 : vector<128x128xf32>
      %cst_13 = arith.constant dense<0.000000e+00> : vector<128xf32>
      %16 = vector.multi_reduction <add>, %15, %cst_13 [0] : vector<128x128xf32> to vector<128xf32>
      %17 = vector.shape_cast %16 : vector<128xf32> to vector<1x128xf32>
      %18 = tpu.iota {dimensions = array<i32: 0>} : vector<8x128xi32>
      %c0_i32_14 = arith.constant 0 : i32
      %19 = vector.broadcast %c0_i32_14 : i32 to vector<8x128xi32>
      %20 = arith.cmpi eq, %18, %19 : vector<8x128xi32>
      %c1_i32 = arith.constant 1 : i32
      %21 = vector.broadcast %c1_i32 : i32 to vector<8x128xi32>
      %22 = arith.cmpi eq, %18, %21 : vector<8x128xi32>
      %cst_15 = arith.constant 0.000000e+00 : f32
      %23 = vector.shape_cast %17 : vector<1x128xf32> to vector<1x128xf32>
      %24 = vector.broadcast %23 : vector<1x128xf32> to vector<8x128xf32>
      %25 = vector.broadcast %cst_15 : f32 to vector<8x128xf32>
      %26 = arith.select %22, %24, %25 : vector<8x128xi1>, vector<8x128xf32>
      %27 = vector.shape_cast %14 : vector<1x128xf32> to vector<1x128xf32>
      %28 = vector.broadcast %27 : vector<1x128xf32> to vector<8x128xf32>
      %29 = arith.select %20, %28, %26 : vector<8x128xi1>, vector<8x128xf32>
      %c0_16 = arith.constant 0 : index
      %c0_17 = arith.constant 0 : index
      %30 = vector.load %arg6[%c0_16, %c0_17] : memref<8x128xf32, #tpu.memory_space<vmem>>, vector<8x128xf32>
      tpu.vector_store %arg6[%c0_16, %c0_17], %29 {strides = array<i32>} : memref<8x128xf32, #tpu.memory_space<vmem>>, vector<8x128xf32>,
      %31 = arith.truncf %12 : vector<128x128xf32> to vector<128x128xbf16>
      %c0_18 = arith.constant 0 : index
      %c0_19 = arith.constant 0 : index
      %32 = vector.load %arg5[%c0_18, %c0_19] : memref<128x128xbf16, #tpu.memory_space<vmem>>, vector<128x128xbf16>
      tpu.vector_store %arg5[%c0_18, %c0_19], %31 {strides = array<i32>} : memref<128x128xbf16, #tpu.memory_space<vmem>>, vector<128x128xbf16>,
    } else {
    }
    return
  }
  func.func @transform_0(%arg0: i32, %arg1: i32, %arg2: i32) -> (i32, i32) {
    %c0_i32 = arith.constant 0 : i32
    return %arg0, %arg2 : i32, i32
  }
  func.func @transform_1(%arg0: i32, %arg1: i32, %arg2: i32) -> (i32, i32) {
    %c0_i32 = arith.constant 0 : i32
    return %arg2, %arg1 : i32, i32
  }
  func.func @transform_2(%arg0: i32, %arg1: i32, %arg2: i32) -> (i32, i32) {
    %c0_i32 = arith.constant 0 : i32
    return %arg0, %arg1 : i32, i32
  }
  func.func @transform_3(%arg0: i32, %arg1: i32, %arg2: i32) -> (i32, i32) {
    %c0_i32 = arith.constant 0 : i32
    return %arg0, %arg1 : i32, i32
  }
}

module attributes {stable_mosaic.version = 11 : i64} {
  func.func @_bn_apply_kernel(%arg0: i32, %arg1: memref<128x128xbf16, #tpu.memory_space<vmem>>, %arg2: memref<1x128xf32, #tpu.memory_space<vmem>>, %arg3: memref<1x128xf32, #tpu.memory_space<vmem>>, %arg4: memref<128x128xbf16, #tpu.memory_space<vmem>>) attributes {dimension_semantics = [#tpu.dimension_semantics<parallel>], iteration_bounds = array<i64: 1>, scalar_prefetch = 0 : i64, scratch_operands = 0 : i64, tpu.core_type = #tpu.core_type<tc>, window_params = [{transform_indices = @transform_0, window_bounds = array<i64: 128, 128>}, {pipeline_mode = #tpu.pipeline_mode<synchronous>, transform_indices = @transform_1, window_bounds = array<i64: 1, 128>}, {pipeline_mode = #tpu.pipeline_mode<synchronous>, transform_indices = @transform_2, window_bounds = array<i64: 1, 128>}, {transform_indices = @transform_3, window_bounds = array<i64: 128, 128>}]} {
    %c0 = arith.constant 0 : index
    %c0_0 = arith.constant 0 : index
    %0 = vector.load %arg1[%c0, %c0_0] : memref<128x128xbf16, #tpu.memory_space<vmem>>, vector<128x128xbf16>
    %1 = arith.extf %0 : vector<128x128xbf16> to vector<128x128xf32>
    %c0_1 = arith.constant 0 : index
    %c0_2 = arith.constant 0 : index
    %2 = vector.load %arg2[%c0_1, %c0_2] : memref<1x128xf32, #tpu.memory_space<vmem>>, vector<1x128xf32>
    %3 = vector.broadcast %2 : vector<1x128xf32> to vector<128x128xf32>
    %4 = arith.mulf %1, %3 : vector<128x128xf32>
    %c0_3 = arith.constant 0 : index
    %c0_4 = arith.constant 0 : index
    %5 = vector.load %arg3[%c0_3, %c0_4] : memref<1x128xf32, #tpu.memory_space<vmem>>, vector<1x128xf32>
    %6 = vector.broadcast %5 : vector<1x128xf32> to vector<128x128xf32>
    %7 = arith.addf %4, %6 : vector<128x128xf32>
    %8 = arith.truncf %7 : vector<128x128xf32> to vector<128x128xbf16>
    %c0_5 = arith.constant 0 : index
    %c0_6 = arith.constant 0 : index
    %9 = vector.load %arg4[%c0_5, %c0_6] : memref<128x128xbf16, #tpu.memory_space<vmem>>, vector<128x128xbf16>
    tpu.vector_store %arg4[%c0_5, %c0_6], %8 {strides = array<i32>} : memref<128x128xbf16, #tpu.memory_space<vmem>>, vector<128x128xbf16>,
    return
  }
  func.func @transform_0(%arg0: i32) -> (i32, i32) {
    %c0_i32 = arith.constant 0 : i32
    %c0_i32_0 = arith.constant 0 : i32
    return %arg0, %c0_i32 : i32, i32
  }
  func.func @transform_1(%arg0: i32) -> (i32, i32) {
    %c0_i32 = arith.constant 0 : i32
    %c0_i32_0 = arith.constant 0 : i32
    %c0_i32_1 = arith.constant 0 : i32
    return %c0_i32, %c0_i32_0 : i32, i32
  }
  func.func @transform_2(%arg0: i32) -> (i32, i32) {
    %c0_i32 = arith.constant 0 : i32
    %c0_i32_0 = arith.constant 0 : i32
    %c0_i32_1 = arith.constant 0 : i32
    return %c0_i32, %c0_i32_0 : i32, i32
  }
  func.func @transform_3(%arg0: i32) -> (i32, i32) {
    %c0_i32 = arith.constant 0 : i32
    %c0_i32_0 = arith.constant 0 : i32
    return %arg0, %c0_i32 : i32, i32
  }
}

module attributes {stable_mosaic.version = 11 : i64} {
  func.func @_matmul_kernel(%arg0: i32, %arg1: i32, %arg2: i32, %arg3: memref<128x384xbf16, #tpu.memory_space<vmem>>, %arg4: memref<384x128xbf16, #tpu.memory_space<vmem>>, %arg5: memref<128x128xbf16, #tpu.memory_space<vmem>>, %arg6: memref<8x128xf32, #tpu.memory_space<vmem>>, %arg7: memref<128x128xf32, #tpu.memory_space<vmem>>) attributes {dimension_semantics = [#tpu.dimension_semantics<parallel>, #tpu.dimension_semantics<parallel>, #tpu.dimension_semantics<arbitrary>], iteration_bounds = array<i64: 1, 1, 3>, scalar_prefetch = 0 : i64, scratch_operands = 1 : i64, tpu.core_type = #tpu.core_type<tc>, window_params = [{transform_indices = @transform_0, window_bounds = array<i64: 128, 384>}, {transform_indices = @transform_1, window_bounds = array<i64: 384, 128>}, {transform_indices = @transform_2, window_bounds = array<i64: 128, 128>}, {transform_indices = @transform_3, window_bounds = array<i64: 8, 128>}]} {
    %c0_i32 = arith.constant 0 : i32
    %0 = arith.cmpi eq, %arg2, %c0_i32 : i32
    %1 = arith.extui %0 : i1 to i32
    %c0_i32_0 = arith.constant 0 : i32
    %2 = arith.cmpi ne, %1, %c0_i32_0 : i32
    scf.if %2 {
      %cst_9 = arith.constant 0.000000e+00 : f32
      %12 = vector.broadcast %cst_9 : f32 to vector<128x128xf32>
      %c0_10 = arith.constant 0 : index
      %c0_11 = arith.constant 0 : index
      %13 = vector.load %arg7[%c0_10, %c0_11] : memref<128x128xf32, #tpu.memory_space<vmem>>, vector<128x128xf32>
      tpu.vector_store %arg7[%c0_10, %c0_11], %12 {strides = array<i32>} : memref<128x128xf32, #tpu.memory_space<vmem>>, vector<128x128xf32>,
    } else {
    }
    %c0 = arith.constant 0 : index
    %c0_1 = arith.constant 0 : index
    %3 = vector.load %arg7[%c0, %c0_1] : memref<128x128xf32, #tpu.memory_space<vmem>>, vector<128x128xf32>
    %c0_2 = arith.constant 0 : index
    %c0_3 = arith.constant 0 : index
    %4 = vector.load %arg3[%c0_2, %c0_3] : memref<128x384xbf16, #tpu.memory_space<vmem>>, vector<128x384xbf16>
    %c0_4 = arith.constant 0 : index
    %c0_5 = arith.constant 0 : index
    %5 = vector.load %arg4[%c0_4, %c0_5] : memref<384x128xbf16, #tpu.memory_space<vmem>>, vector<384x128xbf16>
    %cst = arith.constant dense<0.000000e+00> : vector<128x128xf32>
    %6 = tpu.matmul %4, %5, %cst {dimension_numbers = #tpu.dot_dimension_numbers<[1], [0], [0], [1], [0, 0, 1, 1], [], []>} : vector<128x384xbf16>, vector<384x128xbf16>, vector<128x128xf32> -> vector<128x128xf32>
    %7 = arith.addf %3, %6 : vector<128x128xf32>
    %c0_6 = arith.constant 0 : index
    %c0_7 = arith.constant 0 : index
    %8 = vector.load %arg7[%c0_6, %c0_7] : memref<128x128xf32, #tpu.memory_space<vmem>>, vector<128x128xf32>
    tpu.vector_store %arg7[%c0_6, %c0_7], %7 {strides = array<i32>} : memref<128x128xf32, #tpu.memory_space<vmem>>, vector<128x128xf32>,
    %c2_i32 = arith.constant 2 : i32
    %9 = arith.cmpi eq, %arg2, %c2_i32 : i32
    %10 = arith.extui %9 : i1 to i32
    %c0_i32_8 = arith.constant 0 : i32
    %11 = arith.cmpi ne, %10, %c0_i32_8 : i32
    scf.if %11 {
      %c0_9 = arith.constant 0 : index
      %c0_10 = arith.constant 0 : index
      %12 = vector.load %arg7[%c0_9, %c0_10] : memref<128x128xf32, #tpu.memory_space<vmem>>, vector<128x128xf32>
      %cst_11 = arith.constant dense<0.000000e+00> : vector<128xf32>
      %13 = vector.multi_reduction <add>, %12, %cst_11 [0] : vector<128x128xf32> to vector<128xf32>
      %14 = vector.shape_cast %13 : vector<128xf32> to vector<1x128xf32>
      %15 = arith.mulf %12, %12 : vector<128x128xf32>
      %cst_12 = arith.constant dense<0.000000e+00> : vector<128xf32>
      %16 = vector.multi_reduction <add>, %15, %cst_12 [0] : vector<128x128xf32> to vector<128xf32>
      %17 = vector.shape_cast %16 : vector<128xf32> to vector<1x128xf32>
      %18 = tpu.iota {dimensions = array<i32: 0>} : vector<8x128xi32>
      %c0_i32_13 = arith.constant 0 : i32
      %19 = vector.broadcast %c0_i32_13 : i32 to vector<8x128xi32>
      %20 = arith.cmpi eq, %18, %19 : vector<8x128xi32>
      %c1_i32 = arith.constant 1 : i32
      %21 = vector.broadcast %c1_i32 : i32 to vector<8x128xi32>
      %22 = arith.cmpi eq, %18, %21 : vector<8x128xi32>
      %cst_14 = arith.constant 0.000000e+00 : f32
      %23 = vector.shape_cast %17 : vector<1x128xf32> to vector<1x128xf32>
      %24 = vector.broadcast %23 : vector<1x128xf32> to vector<8x128xf32>
      %25 = vector.broadcast %cst_14 : f32 to vector<8x128xf32>
      %26 = arith.select %22, %24, %25 : vector<8x128xi1>, vector<8x128xf32>
      %27 = vector.shape_cast %14 : vector<1x128xf32> to vector<1x128xf32>
      %28 = vector.broadcast %27 : vector<1x128xf32> to vector<8x128xf32>
      %29 = arith.select %20, %28, %26 : vector<8x128xi1>, vector<8x128xf32>
      %c0_15 = arith.constant 0 : index
      %c0_16 = arith.constant 0 : index
      %30 = vector.load %arg6[%c0_15, %c0_16] : memref<8x128xf32, #tpu.memory_space<vmem>>, vector<8x128xf32>
      tpu.vector_store %arg6[%c0_15, %c0_16], %29 {strides = array<i32>} : memref<8x128xf32, #tpu.memory_space<vmem>>, vector<8x128xf32>,
      %31 = arith.truncf %12 : vector<128x128xf32> to vector<128x128xbf16>
      %c0_17 = arith.constant 0 : index
      %c0_18 = arith.constant 0 : index
      %32 = vector.load %arg5[%c0_17, %c0_18] : memref<128x128xbf16, #tpu.memory_space<vmem>>, vector<128x128xbf16>
      tpu.vector_store %arg5[%c0_17, %c0_18], %31 {strides = array<i32>} : memref<128x128xbf16, #tpu.memory_space<vmem>>, vector<128x128xbf16>,
    } else {
    }
    return
  }
  func.func @transform_0(%arg0: i32, %arg1: i32, %arg2: i32) -> (i32, i32) {
    %c0_i32 = arith.constant 0 : i32
    return %arg0, %arg2 : i32, i32
  }
  func.func @transform_1(%arg0: i32, %arg1: i32, %arg2: i32) -> (i32, i32) {
    %c0_i32 = arith.constant 0 : i32
    return %arg2, %arg1 : i32, i32
  }
  func.func @transform_2(%arg0: i32, %arg1: i32, %arg2: i32) -> (i32, i32) {
    %c0_i32 = arith.constant 0 : i32
    return %arg0, %arg1 : i32, i32
  }
  func.func @transform_3(%arg0: i32, %arg1: i32, %arg2: i32) -> (i32, i32) {
    %c0_i32 = arith.constant 0 : i32
    return %arg0, %arg1 : i32, i32
  }
}

module attributes {stable_mosaic.version = 11 : i64} {
  func.func @_bn_apply_kernel(%arg0: i32, %arg1: memref<128x128xbf16, #tpu.memory_space<vmem>>, %arg2: memref<1x128xf32, #tpu.memory_space<vmem>>, %arg3: memref<1x128xf32, #tpu.memory_space<vmem>>, %arg4: memref<128x128xbf16, #tpu.memory_space<vmem>>) attributes {dimension_semantics = [#tpu.dimension_semantics<parallel>], iteration_bounds = array<i64: 1>, scalar_prefetch = 0 : i64, scratch_operands = 0 : i64, tpu.core_type = #tpu.core_type<tc>, window_params = [{transform_indices = @transform_0, window_bounds = array<i64: 128, 128>}, {pipeline_mode = #tpu.pipeline_mode<synchronous>, transform_indices = @transform_1, window_bounds = array<i64: 1, 128>}, {pipeline_mode = #tpu.pipeline_mode<synchronous>, transform_indices = @transform_2, window_bounds = array<i64: 1, 128>}, {transform_indices = @transform_3, window_bounds = array<i64: 128, 128>}]} {
    %c0 = arith.constant 0 : index
    %c0_0 = arith.constant 0 : index
    %0 = vector.load %arg1[%c0, %c0_0] : memref<128x128xbf16, #tpu.memory_space<vmem>>, vector<128x128xbf16>
    %1 = arith.extf %0 : vector<128x128xbf16> to vector<128x128xf32>
    %c0_1 = arith.constant 0 : index
    %c0_2 = arith.constant 0 : index
    %2 = vector.load %arg2[%c0_1, %c0_2] : memref<1x128xf32, #tpu.memory_space<vmem>>, vector<1x128xf32>
    %3 = vector.broadcast %2 : vector<1x128xf32> to vector<128x128xf32>
    %4 = arith.mulf %1, %3 : vector<128x128xf32>
    %c0_3 = arith.constant 0 : index
    %c0_4 = arith.constant 0 : index
    %5 = vector.load %arg3[%c0_3, %c0_4] : memref<1x128xf32, #tpu.memory_space<vmem>>, vector<1x128xf32>
    %6 = vector.broadcast %5 : vector<1x128xf32> to vector<128x128xf32>
    %7 = arith.addf %4, %6 : vector<128x128xf32>
    %cst = arith.constant 0.000000e+00 : f32
    %8 = vector.broadcast %cst : f32 to vector<128x128xf32>
    %9 = arith.maximumf %7, %8 : vector<128x128xf32>
    %10 = arith.truncf %9 : vector<128x128xf32> to vector<128x128xbf16>
    %c0_5 = arith.constant 0 : index
    %c0_6 = arith.constant 0 : index
    %11 = vector.load %arg4[%c0_5, %c0_6] : memref<128x128xbf16, #tpu.memory_space<vmem>>, vector<128x128xbf16>
    tpu.vector_store %arg4[%c0_5, %c0_6], %10 {strides = array<i32>} : memref<128x128xbf16, #tpu.memory_space<vmem>>, vector<128x128xbf16>,
    return
  }
  func.func @transform_0(%arg0: i32) -> (i32, i32) {
    %c0_i32 = arith.constant 0 : i32
    %c0_i32_0 = arith.constant 0 : i32
    return %arg0, %c0_i32 : i32, i32
  }
  func.func @transform_1(%arg0: i32) -> (i32, i32) {
    %c0_i32 = arith.constant 0 : i32
    %c0_i32_0 = arith.constant 0 : i32
    %c0_i32_1 = arith.constant 0 : i32
    return %c0_i32, %c0_i32_0 : i32, i32
  }
  func.func @transform_2(%arg0: i32) -> (i32, i32) {
    %c0_i32 = arith.constant 0 : i32
    %c0_i32_0 = arith.constant 0 : i32
    %c0_i32_1 = arith.constant 0 : i32
    return %c0_i32, %c0_i32_0 : i32, i32
  }
  func.func @transform_3(%arg0: i32) -> (i32, i32) {
    %c0_i32 = arith.constant 0 : i32
    %c0_i32_0 = arith.constant 0 : i32
    return %arg0, %c0_i32 : i32, i32
  }
}

module attributes {stable_mosaic.version = 11 : i64} {
  func.func @_bn_apply_kernel(%arg0: i32, %arg1: memref<128x128xbf16, #tpu.memory_space<vmem>>, %arg2: memref<128x128xbf16, #tpu.memory_space<vmem>>, %arg3: memref<1x128xf32, #tpu.memory_space<vmem>>, %arg4: memref<1x128xf32, #tpu.memory_space<vmem>>, %arg5: memref<128x128xbf16, #tpu.memory_space<vmem>>) attributes {dimension_semantics = [#tpu.dimension_semantics<parallel>], iteration_bounds = array<i64: 1>, scalar_prefetch = 0 : i64, scratch_operands = 0 : i64, tpu.core_type = #tpu.core_type<tc>, window_params = [{transform_indices = @transform_0, window_bounds = array<i64: 128, 128>}, {transform_indices = @transform_1, window_bounds = array<i64: 128, 128>}, {pipeline_mode = #tpu.pipeline_mode<synchronous>, transform_indices = @transform_2, window_bounds = array<i64: 1, 128>}, {pipeline_mode = #tpu.pipeline_mode<synchronous>, transform_indices = @transform_3, window_bounds = array<i64: 1, 128>}, {transform_indices = @transform_4, window_bounds = array<i64: 128, 128>}]} {
    %c0 = arith.constant 0 : index
    %c0_0 = arith.constant 0 : index
    %0 = vector.load %arg1[%c0, %c0_0] : memref<128x128xbf16, #tpu.memory_space<vmem>>, vector<128x128xbf16>
    %1 = arith.extf %0 : vector<128x128xbf16> to vector<128x128xf32>
    %c0_1 = arith.constant 0 : index
    %c0_2 = arith.constant 0 : index
    %2 = vector.load %arg3[%c0_1, %c0_2] : memref<1x128xf32, #tpu.memory_space<vmem>>, vector<1x128xf32>
    %3 = vector.broadcast %2 : vector<1x128xf32> to vector<128x128xf32>
    %4 = arith.mulf %1, %3 : vector<128x128xf32>
    %c0_3 = arith.constant 0 : index
    %c0_4 = arith.constant 0 : index
    %5 = vector.load %arg4[%c0_3, %c0_4] : memref<1x128xf32, #tpu.memory_space<vmem>>, vector<1x128xf32>
    %6 = vector.broadcast %5 : vector<1x128xf32> to vector<128x128xf32>
    %7 = arith.addf %4, %6 : vector<128x128xf32>
    %c0_5 = arith.constant 0 : index
    %c0_6 = arith.constant 0 : index
    %8 = vector.load %arg2[%c0_5, %c0_6] : memref<128x128xbf16, #tpu.memory_space<vmem>>, vector<128x128xbf16>
    %9 = arith.extf %8 : vector<128x128xbf16> to vector<128x128xf32>
    %10 = arith.addf %7, %9 : vector<128x128xf32>
    %cst = arith.constant 0.000000e+00 : f32
    %11 = vector.broadcast %cst : f32 to vector<128x128xf32>
    %12 = arith.maximumf %10, %11 : vector<128x128xf32>
    %13 = arith.truncf %12 : vector<128x128xf32> to vector<128x128xbf16>
    %c0_7 = arith.constant 0 : index
    %c0_8 = arith.constant 0 : index
    %14 = vector.load %arg5[%c0_7, %c0_8] : memref<128x128xbf16, #tpu.memory_space<vmem>>, vector<128x128xbf16>
    tpu.vector_store %arg5[%c0_7, %c0_8], %13 {strides = array<i32>} : memref<128x128xbf16, #tpu.memory_space<vmem>>, vector<128x128xbf16>,
    return
  }
  func.func @transform_0(%arg0: i32) -> (i32, i32) {
    %c0_i32 = arith.constant 0 : i32
    %c0_i32_0 = arith.constant 0 : i32
    return %arg0, %c0_i32 : i32, i32
  }
  func.func @transform_1(%arg0: i32) -> (i32, i32) {
    %c0_i32 = arith.constant 0 : i32
    %c0_i32_0 = arith.constant 0 : i32
    return %arg0, %c0_i32 : i32, i32
  }
  func.func @transform_2(%arg0: i32) -> (i32, i32) {
    %c0_i32 = arith.constant 0 : i32
    %c0_i32_0 = arith.constant 0 : i32
    %c0_i32_1 = arith.constant 0 : i32
    return %c0_i32, %c0_i32_0 : i32, i32
  }
  func.func @transform_3(%arg0: i32) -> (i32, i32) {
    %c0_i32 = arith.constant 0 : i32
    %c0_i32_0 = arith.constant 0 : i32
    %c0_i32_1 = arith.constant 0 : i32
    return %c0_i32, %c0_i32_0 : i32, i32
  }
  func.func @transform_4(%arg0: i32) -> (i32, i32) {
    %c0_i32 = arith.constant 0 : i32
    %c0_i32_0 = arith.constant 0 : i32
    return %arg0, %c0_i32 : i32, i32
  }
}

module attributes {stable_mosaic.version = 11 : i64} {
  func.func @_matmul_kernel(%arg0: i32, %arg1: i32, %arg2: i32, %arg3: memref<32x384xbf16, #tpu.memory_space<vmem>>, %arg4: memref<384x256xbf16, #tpu.memory_space<vmem>>, %arg5: memref<32x256xbf16, #tpu.memory_space<vmem>>, %arg6: memref<8x256xf32, #tpu.memory_space<vmem>>, %arg7: memref<32x256xf32, #tpu.memory_space<vmem>>) attributes {dimension_semantics = [#tpu.dimension_semantics<parallel>, #tpu.dimension_semantics<parallel>, #tpu.dimension_semantics<arbitrary>], iteration_bounds = array<i64: 1, 1, 3>, scalar_prefetch = 0 : i64, scratch_operands = 1 : i64, tpu.core_type = #tpu.core_type<tc>, window_params = [{transform_indices = @transform_0, window_bounds = array<i64: 32, 384>}, {transform_indices = @transform_1, window_bounds = array<i64: 384, 256>}, {transform_indices = @transform_2, window_bounds = array<i64: 32, 256>}, {transform_indices = @transform_3, window_bounds = array<i64: 8, 256>}]} {
    %c0_i32 = arith.constant 0 : i32
    %0 = arith.cmpi eq, %arg2, %c0_i32 : i32
    %1 = arith.extui %0 : i1 to i32
    %c0_i32_0 = arith.constant 0 : i32
    %2 = arith.cmpi ne, %1, %c0_i32_0 : i32
    scf.if %2 {
      %cst_9 = arith.constant 0.000000e+00 : f32
      %12 = vector.broadcast %cst_9 : f32 to vector<32x256xf32>
      %c0_10 = arith.constant 0 : index
      %c0_11 = arith.constant 0 : index
      %13 = vector.load %arg7[%c0_10, %c0_11] : memref<32x256xf32, #tpu.memory_space<vmem>>, vector<32x256xf32>
      tpu.vector_store %arg7[%c0_10, %c0_11], %12 {strides = array<i32>} : memref<32x256xf32, #tpu.memory_space<vmem>>, vector<32x256xf32>,
    } else {
    }
    %c0 = arith.constant 0 : index
    %c0_1 = arith.constant 0 : index
    %3 = vector.load %arg7[%c0, %c0_1] : memref<32x256xf32, #tpu.memory_space<vmem>>, vector<32x256xf32>
    %c0_2 = arith.constant 0 : index
    %c0_3 = arith.constant 0 : index
    %4 = vector.load %arg3[%c0_2, %c0_3] : memref<32x384xbf16, #tpu.memory_space<vmem>>, vector<32x384xbf16>
    %c0_4 = arith.constant 0 : index
    %c0_5 = arith.constant 0 : index
    %5 = vector.load %arg4[%c0_4, %c0_5] : memref<384x256xbf16, #tpu.memory_space<vmem>>, vector<384x256xbf16>
    %cst = arith.constant dense<0.000000e+00> : vector<32x256xf32>
    %6 = tpu.matmul %4, %5, %cst {dimension_numbers = #tpu.dot_dimension_numbers<[1], [0], [0], [1], [0, 0, 1, 1], [], []>} : vector<32x384xbf16>, vector<384x256xbf16>, vector<32x256xf32> -> vector<32x256xf32>
    %7 = arith.addf %3, %6 : vector<32x256xf32>
    %c0_6 = arith.constant 0 : index
    %c0_7 = arith.constant 0 : index
    %8 = vector.load %arg7[%c0_6, %c0_7] : memref<32x256xf32, #tpu.memory_space<vmem>>, vector<32x256xf32>
    tpu.vector_store %arg7[%c0_6, %c0_7], %7 {strides = array<i32>} : memref<32x256xf32, #tpu.memory_space<vmem>>, vector<32x256xf32>,
    %c2_i32 = arith.constant 2 : i32
    %9 = arith.cmpi eq, %arg2, %c2_i32 : i32
    %10 = arith.extui %9 : i1 to i32
    %c0_i32_8 = arith.constant 0 : i32
    %11 = arith.cmpi ne, %10, %c0_i32_8 : i32
    scf.if %11 {
      %c0_9 = arith.constant 0 : index
      %c0_10 = arith.constant 0 : index
      %12 = vector.load %arg7[%c0_9, %c0_10] : memref<32x256xf32, #tpu.memory_space<vmem>>, vector<32x256xf32>
      %cst_11 = arith.constant dense<0.000000e+00> : vector<256xf32>
      %13 = vector.multi_reduction <add>, %12, %cst_11 [0] : vector<32x256xf32> to vector<256xf32>
      %14 = vector.shape_cast %13 : vector<256xf32> to vector<1x256xf32>
      %15 = arith.mulf %12, %12 : vector<32x256xf32>
      %cst_12 = arith.constant dense<0.000000e+00> : vector<256xf32>
      %16 = vector.multi_reduction <add>, %15, %cst_12 [0] : vector<32x256xf32> to vector<256xf32>
      %17 = vector.shape_cast %16 : vector<256xf32> to vector<1x256xf32>
      %18 = tpu.iota {dimensions = array<i32: 0>} : vector<8x256xi32>
      %c0_i32_13 = arith.constant 0 : i32
      %19 = vector.broadcast %c0_i32_13 : i32 to vector<8x256xi32>
      %20 = arith.cmpi eq, %18, %19 : vector<8x256xi32>
      %c1_i32 = arith.constant 1 : i32
      %21 = vector.broadcast %c1_i32 : i32 to vector<8x256xi32>
      %22 = arith.cmpi eq, %18, %21 : vector<8x256xi32>
      %cst_14 = arith.constant 0.000000e+00 : f32
      %23 = vector.shape_cast %17 : vector<1x256xf32> to vector<1x256xf32>
      %24 = vector.broadcast %23 : vector<1x256xf32> to vector<8x256xf32>
      %25 = vector.broadcast %cst_14 : f32 to vector<8x256xf32>
      %26 = arith.select %22, %24, %25 : vector<8x256xi1>, vector<8x256xf32>
      %27 = vector.shape_cast %14 : vector<1x256xf32> to vector<1x256xf32>
      %28 = vector.broadcast %27 : vector<1x256xf32> to vector<8x256xf32>
      %29 = arith.select %20, %28, %26 : vector<8x256xi1>, vector<8x256xf32>
      %c0_15 = arith.constant 0 : index
      %c0_16 = arith.constant 0 : index
      %30 = vector.load %arg6[%c0_15, %c0_16] : memref<8x256xf32, #tpu.memory_space<vmem>>, vector<8x256xf32>
      tpu.vector_store %arg6[%c0_15, %c0_16], %29 {strides = array<i32>} : memref<8x256xf32, #tpu.memory_space<vmem>>, vector<8x256xf32>,
      %31 = arith.truncf %12 : vector<32x256xf32> to vector<32x256xbf16>
      %c0_17 = arith.constant 0 : index
      %c0_18 = arith.constant 0 : index
      %32 = vector.load %arg5[%c0_17, %c0_18] : memref<32x256xbf16, #tpu.memory_space<vmem>>, vector<32x256xbf16>
      tpu.vector_store %arg5[%c0_17, %c0_18], %31 {strides = array<i32>} : memref<32x256xbf16, #tpu.memory_space<vmem>>, vector<32x256xbf16>,
    } else {
    }
    return
  }
  func.func @transform_0(%arg0: i32, %arg1: i32, %arg2: i32) -> (i32, i32) {
    %c0_i32 = arith.constant 0 : i32
    return %arg0, %arg2 : i32, i32
  }
  func.func @transform_1(%arg0: i32, %arg1: i32, %arg2: i32) -> (i32, i32) {
    %c0_i32 = arith.constant 0 : i32
    return %arg2, %arg1 : i32, i32
  }
  func.func @transform_2(%arg0: i32, %arg1: i32, %arg2: i32) -> (i32, i32) {
    %c0_i32 = arith.constant 0 : i32
    return %arg0, %arg1 : i32, i32
  }
  func.func @transform_3(%arg0: i32, %arg1: i32, %arg2: i32) -> (i32, i32) {
    %c0_i32 = arith.constant 0 : i32
    return %arg0, %arg1 : i32, i32
  }
}

module attributes {stable_mosaic.version = 11 : i64} {
  func.func @_bn_apply_kernel(%arg0: i32, %arg1: memref<32x256xbf16, #tpu.memory_space<vmem>>, %arg2: memref<1x256xf32, #tpu.memory_space<vmem>>, %arg3: memref<1x256xf32, #tpu.memory_space<vmem>>, %arg4: memref<32x256xbf16, #tpu.memory_space<vmem>>) attributes {dimension_semantics = [#tpu.dimension_semantics<parallel>], iteration_bounds = array<i64: 1>, scalar_prefetch = 0 : i64, scratch_operands = 0 : i64, tpu.core_type = #tpu.core_type<tc>, window_params = [{transform_indices = @transform_0, window_bounds = array<i64: 32, 256>}, {pipeline_mode = #tpu.pipeline_mode<synchronous>, transform_indices = @transform_1, window_bounds = array<i64: 1, 256>}, {pipeline_mode = #tpu.pipeline_mode<synchronous>, transform_indices = @transform_2, window_bounds = array<i64: 1, 256>}, {transform_indices = @transform_3, window_bounds = array<i64: 32, 256>}]} {
    %c0 = arith.constant 0 : index
    %c0_0 = arith.constant 0 : index
    %0 = vector.load %arg1[%c0, %c0_0] : memref<32x256xbf16, #tpu.memory_space<vmem>>, vector<32x256xbf16>
    %1 = arith.extf %0 : vector<32x256xbf16> to vector<32x256xf32>
    %c0_1 = arith.constant 0 : index
    %c0_2 = arith.constant 0 : index
    %2 = vector.load %arg2[%c0_1, %c0_2] : memref<1x256xf32, #tpu.memory_space<vmem>>, vector<1x256xf32>
    %3 = vector.broadcast %2 : vector<1x256xf32> to vector<32x256xf32>
    %4 = arith.mulf %1, %3 : vector<32x256xf32>
    %c0_3 = arith.constant 0 : index
    %c0_4 = arith.constant 0 : index
    %5 = vector.load %arg3[%c0_3, %c0_4] : memref<1x256xf32, #tpu.memory_space<vmem>>, vector<1x256xf32>
    %6 = vector.broadcast %5 : vector<1x256xf32> to vector<32x256xf32>
    %7 = arith.addf %4, %6 : vector<32x256xf32>
    %cst = arith.constant 0.000000e+00 : f32
    %8 = vector.broadcast %cst : f32 to vector<32x256xf32>
    %9 = arith.maximumf %7, %8 : vector<32x256xf32>
    %10 = arith.truncf %9 : vector<32x256xf32> to vector<32x256xbf16>
    %c0_5 = arith.constant 0 : index
    %c0_6 = arith.constant 0 : index
    %11 = vector.load %arg4[%c0_5, %c0_6] : memref<32x256xbf16, #tpu.memory_space<vmem>>, vector<32x256xbf16>
    tpu.vector_store %arg4[%c0_5, %c0_6], %10 {strides = array<i32>} : memref<32x256xbf16, #tpu.memory_space<vmem>>, vector<32x256xbf16>,
    return
  }
  func.func @transform_0(%arg0: i32) -> (i32, i32) {
    %c0_i32 = arith.constant 0 : i32
    %c0_i32_0 = arith.constant 0 : i32
    return %arg0, %c0_i32 : i32, i32
  }
  func.func @transform_1(%arg0: i32) -> (i32, i32) {
    %c0_i32 = arith.constant 0 : i32
    %c0_i32_0 = arith.constant 0 : i32
    %c0_i32_1 = arith.constant 0 : i32
    return %c0_i32, %c0_i32_0 : i32, i32
  }
  func.func @transform_2(%arg0: i32) -> (i32, i32) {
    %c0_i32 = arith.constant 0 : i32
    %c0_i32_0 = arith.constant 0 : i32
    %c0_i32_1 = arith.constant 0 : i32
    return %c0_i32, %c0_i32_0 : i32, i32
  }
  func.func @transform_3(%arg0: i32) -> (i32, i32) {
    %c0_i32 = arith.constant 0 : i32
    %c0_i32_0 = arith.constant 0 : i32
    return %arg0, %c0_i32 : i32, i32
  }
}

module attributes {stable_mosaic.version = 11 : i64} {
  func.func @_matmul_kernel(%arg0: i32, %arg1: i32, %arg2: i32, %arg3: memref<32x384xbf16, #tpu.memory_space<vmem>>, %arg4: memref<384x256xbf16, #tpu.memory_space<vmem>>, %arg5: memref<32x256xbf16, #tpu.memory_space<vmem>>, %arg6: memref<8x256xf32, #tpu.memory_space<vmem>>, %arg7: memref<32x256xf32, #tpu.memory_space<vmem>>) attributes {dimension_semantics = [#tpu.dimension_semantics<parallel>, #tpu.dimension_semantics<parallel>, #tpu.dimension_semantics<arbitrary>], iteration_bounds = array<i64: 1, 1, 6>, scalar_prefetch = 0 : i64, scratch_operands = 1 : i64, tpu.core_type = #tpu.core_type<tc>, window_params = [{transform_indices = @transform_0, window_bounds = array<i64: 32, 384>}, {transform_indices = @transform_1, window_bounds = array<i64: 384, 256>}, {transform_indices = @transform_2, window_bounds = array<i64: 32, 256>}, {transform_indices = @transform_3, window_bounds = array<i64: 8, 256>}]} {
    %c0_i32 = arith.constant 0 : i32
    %0 = arith.cmpi eq, %arg2, %c0_i32 : i32
    %1 = arith.extui %0 : i1 to i32
    %c0_i32_0 = arith.constant 0 : i32
    %2 = arith.cmpi ne, %1, %c0_i32_0 : i32
    scf.if %2 {
      %cst_9 = arith.constant 0.000000e+00 : f32
      %12 = vector.broadcast %cst_9 : f32 to vector<32x256xf32>
      %c0_10 = arith.constant 0 : index
      %c0_11 = arith.constant 0 : index
      %13 = vector.load %arg7[%c0_10, %c0_11] : memref<32x256xf32, #tpu.memory_space<vmem>>, vector<32x256xf32>
      tpu.vector_store %arg7[%c0_10, %c0_11], %12 {strides = array<i32>} : memref<32x256xf32, #tpu.memory_space<vmem>>, vector<32x256xf32>,
    } else {
    }
    %c0 = arith.constant 0 : index
    %c0_1 = arith.constant 0 : index
    %3 = vector.load %arg7[%c0, %c0_1] : memref<32x256xf32, #tpu.memory_space<vmem>>, vector<32x256xf32>
    %c0_2 = arith.constant 0 : index
    %c0_3 = arith.constant 0 : index
    %4 = vector.load %arg3[%c0_2, %c0_3] : memref<32x384xbf16, #tpu.memory_space<vmem>>, vector<32x384xbf16>
    %c0_4 = arith.constant 0 : index
    %c0_5 = arith.constant 0 : index
    %5 = vector.load %arg4[%c0_4, %c0_5] : memref<384x256xbf16, #tpu.memory_space<vmem>>, vector<384x256xbf16>
    %cst = arith.constant dense<0.000000e+00> : vector<32x256xf32>
    %6 = tpu.matmul %4, %5, %cst {dimension_numbers = #tpu.dot_dimension_numbers<[1], [0], [0], [1], [0, 0, 1, 1], [], []>} : vector<32x384xbf16>, vector<384x256xbf16>, vector<32x256xf32> -> vector<32x256xf32>
    %7 = arith.addf %3, %6 : vector<32x256xf32>
    %c0_6 = arith.constant 0 : index
    %c0_7 = arith.constant 0 : index
    %8 = vector.load %arg7[%c0_6, %c0_7] : memref<32x256xf32, #tpu.memory_space<vmem>>, vector<32x256xf32>
    tpu.vector_store %arg7[%c0_6, %c0_7], %7 {strides = array<i32>} : memref<32x256xf32, #tpu.memory_space<vmem>>, vector<32x256xf32>,
    %c5_i32 = arith.constant 5 : i32
    %9 = arith.cmpi eq, %arg2, %c5_i32 : i32
    %10 = arith.extui %9 : i1 to i32
    %c0_i32_8 = arith.constant 0 : i32
    %11 = arith.cmpi ne, %10, %c0_i32_8 : i32
    scf.if %11 {
      %c0_9 = arith.constant 0 : index
      %c0_10 = arith.constant 0 : index
      %12 = vector.load %arg7[%c0_9, %c0_10] : memref<32x256xf32, #tpu.memory_space<vmem>>, vector<32x256xf32>
      %cst_11 = arith.constant dense<0.000000e+00> : vector<256xf32>
      %13 = vector.multi_reduction <add>, %12, %cst_11 [0] : vector<32x256xf32> to vector<256xf32>
      %14 = vector.shape_cast %13 : vector<256xf32> to vector<1x256xf32>
      %15 = arith.mulf %12, %12 : vector<32x256xf32>
      %cst_12 = arith.constant dense<0.000000e+00> : vector<256xf32>
      %16 = vector.multi_reduction <add>, %15, %cst_12 [0] : vector<32x256xf32> to vector<256xf32>
      %17 = vector.shape_cast %16 : vector<256xf32> to vector<1x256xf32>
      %18 = tpu.iota {dimensions = array<i32: 0>} : vector<8x256xi32>
      %c0_i32_13 = arith.constant 0 : i32
      %19 = vector.broadcast %c0_i32_13 : i32 to vector<8x256xi32>
      %20 = arith.cmpi eq, %18, %19 : vector<8x256xi32>
      %c1_i32 = arith.constant 1 : i32
      %21 = vector.broadcast %c1_i32 : i32 to vector<8x256xi32>
      %22 = arith.cmpi eq, %18, %21 : vector<8x256xi32>
      %cst_14 = arith.constant 0.000000e+00 : f32
      %23 = vector.shape_cast %17 : vector<1x256xf32> to vector<1x256xf32>
      %24 = vector.broadcast %23 : vector<1x256xf32> to vector<8x256xf32>
      %25 = vector.broadcast %cst_14 : f32 to vector<8x256xf32>
      %26 = arith.select %22, %24, %25 : vector<8x256xi1>, vector<8x256xf32>
      %27 = vector.shape_cast %14 : vector<1x256xf32> to vector<1x256xf32>
      %28 = vector.broadcast %27 : vector<1x256xf32> to vector<8x256xf32>
      %29 = arith.select %20, %28, %26 : vector<8x256xi1>, vector<8x256xf32>
      %c0_15 = arith.constant 0 : index
      %c0_16 = arith.constant 0 : index
      %30 = vector.load %arg6[%c0_15, %c0_16] : memref<8x256xf32, #tpu.memory_space<vmem>>, vector<8x256xf32>
      tpu.vector_store %arg6[%c0_15, %c0_16], %29 {strides = array<i32>} : memref<8x256xf32, #tpu.memory_space<vmem>>, vector<8x256xf32>,
      %31 = arith.truncf %12 : vector<32x256xf32> to vector<32x256xbf16>
      %c0_17 = arith.constant 0 : index
      %c0_18 = arith.constant 0 : index
      %32 = vector.load %arg5[%c0_17, %c0_18] : memref<32x256xbf16, #tpu.memory_space<vmem>>, vector<32x256xbf16>
      tpu.vector_store %arg5[%c0_17, %c0_18], %31 {strides = array<i32>} : memref<32x256xbf16, #tpu.memory_space<vmem>>, vector<32x256xbf16>,
    } else {
    }
    return
  }
  func.func @transform_0(%arg0: i32, %arg1: i32, %arg2: i32) -> (i32, i32) {
    %c0_i32 = arith.constant 0 : i32
    return %arg0, %arg2 : i32, i32
  }
  func.func @transform_1(%arg0: i32, %arg1: i32, %arg2: i32) -> (i32, i32) {
    %c0_i32 = arith.constant 0 : i32
    return %arg2, %arg1 : i32, i32
  }
  func.func @transform_2(%arg0: i32, %arg1: i32, %arg2: i32) -> (i32, i32) {
    %c0_i32 = arith.constant 0 : i32
    return %arg0, %arg1 : i32, i32
  }
  func.func @transform_3(%arg0: i32, %arg1: i32, %arg2: i32) -> (i32, i32) {
    %c0_i32 = arith.constant 0 : i32
    return %arg0, %arg1 : i32, i32
  }
}

module attributes {stable_mosaic.version = 11 : i64} {
  func.func @_matmul_kernel(%arg0: i32, %arg1: i32, %arg2: i32, %arg3: memref<32x128xbf16, #tpu.memory_space<vmem>>, %arg4: memref<128x256xbf16, #tpu.memory_space<vmem>>, %arg5: memref<32x256xbf16, #tpu.memory_space<vmem>>, %arg6: memref<8x256xf32, #tpu.memory_space<vmem>>, %arg7: memref<32x256xf32, #tpu.memory_space<vmem>>) attributes {dimension_semantics = [#tpu.dimension_semantics<parallel>, #tpu.dimension_semantics<parallel>, #tpu.dimension_semantics<arbitrary>], iteration_bounds = array<i64: 1, 1, 1>, scalar_prefetch = 0 : i64, scratch_operands = 1 : i64, tpu.core_type = #tpu.core_type<tc>, window_params = [{transform_indices = @transform_0, window_bounds = array<i64: 32, 128>}, {transform_indices = @transform_1, window_bounds = array<i64: 128, 256>}, {transform_indices = @transform_2, window_bounds = array<i64: 32, 256>}, {transform_indices = @transform_3, window_bounds = array<i64: 8, 256>}]} {
    %c0_i32 = arith.constant 0 : i32
    %0 = arith.cmpi eq, %arg2, %c0_i32 : i32
    %1 = arith.extui %0 : i1 to i32
    %c0_i32_0 = arith.constant 0 : i32
    %2 = arith.cmpi ne, %1, %c0_i32_0 : i32
    scf.if %2 {
      %cst_10 = arith.constant 0.000000e+00 : f32
      %12 = vector.broadcast %cst_10 : f32 to vector<32x256xf32>
      %c0_11 = arith.constant 0 : index
      %c0_12 = arith.constant 0 : index
      %13 = vector.load %arg7[%c0_11, %c0_12] : memref<32x256xf32, #tpu.memory_space<vmem>>, vector<32x256xf32>
      tpu.vector_store %arg7[%c0_11, %c0_12], %12 {strides = array<i32>} : memref<32x256xf32, #tpu.memory_space<vmem>>, vector<32x256xf32>,
    } else {
    }
    %c0 = arith.constant 0 : index
    %c0_1 = arith.constant 0 : index
    %3 = vector.load %arg7[%c0, %c0_1] : memref<32x256xf32, #tpu.memory_space<vmem>>, vector<32x256xf32>
    %c0_2 = arith.constant 0 : index
    %c0_3 = arith.constant 0 : index
    %4 = vector.load %arg3[%c0_2, %c0_3] : memref<32x128xbf16, #tpu.memory_space<vmem>>, vector<32x128xbf16>
    %c0_4 = arith.constant 0 : index
    %c0_5 = arith.constant 0 : index
    %5 = vector.load %arg4[%c0_4, %c0_5] : memref<128x256xbf16, #tpu.memory_space<vmem>>, vector<128x256xbf16>
    %cst = arith.constant dense<0.000000e+00> : vector<32x256xf32>
    %6 = tpu.matmul %4, %5, %cst {dimension_numbers = #tpu.dot_dimension_numbers<[1], [0], [0], [1], [0, 0, 1, 1], [], []>} : vector<32x128xbf16>, vector<128x256xbf16>, vector<32x256xf32> -> vector<32x256xf32>
    %7 = arith.addf %3, %6 : vector<32x256xf32>
    %c0_6 = arith.constant 0 : index
    %c0_7 = arith.constant 0 : index
    %8 = vector.load %arg7[%c0_6, %c0_7] : memref<32x256xf32, #tpu.memory_space<vmem>>, vector<32x256xf32>
    tpu.vector_store %arg7[%c0_6, %c0_7], %7 {strides = array<i32>} : memref<32x256xf32, #tpu.memory_space<vmem>>, vector<32x256xf32>,
    %c0_i32_8 = arith.constant 0 : i32
    %9 = arith.cmpi eq, %arg2, %c0_i32_8 : i32
    %10 = arith.extui %9 : i1 to i32
    %c0_i32_9 = arith.constant 0 : i32
    %11 = arith.cmpi ne, %10, %c0_i32_9 : i32
    scf.if %11 {
      %c0_10 = arith.constant 0 : index
      %c0_11 = arith.constant 0 : index
      %12 = vector.load %arg7[%c0_10, %c0_11] : memref<32x256xf32, #tpu.memory_space<vmem>>, vector<32x256xf32>
      %cst_12 = arith.constant dense<0.000000e+00> : vector<256xf32>
      %13 = vector.multi_reduction <add>, %12, %cst_12 [0] : vector<32x256xf32> to vector<256xf32>
      %14 = vector.shape_cast %13 : vector<256xf32> to vector<1x256xf32>
      %15 = arith.mulf %12, %12 : vector<32x256xf32>
      %cst_13 = arith.constant dense<0.000000e+00> : vector<256xf32>
      %16 = vector.multi_reduction <add>, %15, %cst_13 [0] : vector<32x256xf32> to vector<256xf32>
      %17 = vector.shape_cast %16 : vector<256xf32> to vector<1x256xf32>
      %18 = tpu.iota {dimensions = array<i32: 0>} : vector<8x256xi32>
      %c0_i32_14 = arith.constant 0 : i32
      %19 = vector.broadcast %c0_i32_14 : i32 to vector<8x256xi32>
      %20 = arith.cmpi eq, %18, %19 : vector<8x256xi32>
      %c1_i32 = arith.constant 1 : i32
      %21 = vector.broadcast %c1_i32 : i32 to vector<8x256xi32>
      %22 = arith.cmpi eq, %18, %21 : vector<8x256xi32>
      %cst_15 = arith.constant 0.000000e+00 : f32
      %23 = vector.shape_cast %17 : vector<1x256xf32> to vector<1x256xf32>
      %24 = vector.broadcast %23 : vector<1x256xf32> to vector<8x256xf32>
      %25 = vector.broadcast %cst_15 : f32 to vector<8x256xf32>
      %26 = arith.select %22, %24, %25 : vector<8x256xi1>, vector<8x256xf32>
      %27 = vector.shape_cast %14 : vector<1x256xf32> to vector<1x256xf32>
      %28 = vector.broadcast %27 : vector<1x256xf32> to vector<8x256xf32>
      %29 = arith.select %20, %28, %26 : vector<8x256xi1>, vector<8x256xf32>
      %c0_16 = arith.constant 0 : index
      %c0_17 = arith.constant 0 : index
      %30 = vector.load %arg6[%c0_16, %c0_17] : memref<8x256xf32, #tpu.memory_space<vmem>>, vector<8x256xf32>
      tpu.vector_store %arg6[%c0_16, %c0_17], %29 {strides = array<i32>} : memref<8x256xf32, #tpu.memory_space<vmem>>, vector<8x256xf32>,
      %31 = arith.truncf %12 : vector<32x256xf32> to vector<32x256xbf16>
      %c0_18 = arith.constant 0 : index
      %c0_19 = arith.constant 0 : index
      %32 = vector.load %arg5[%c0_18, %c0_19] : memref<32x256xbf16, #tpu.memory_space<vmem>>, vector<32x256xbf16>
      tpu.vector_store %arg5[%c0_18, %c0_19], %31 {strides = array<i32>} : memref<32x256xbf16, #tpu.memory_space<vmem>>, vector<32x256xbf16>,
    } else {
    }
    return
  }
  func.func @transform_0(%arg0: i32, %arg1: i32, %arg2: i32) -> (i32, i32) {
    %c0_i32 = arith.constant 0 : i32
    return %arg0, %arg2 : i32, i32
  }
  func.func @transform_1(%arg0: i32, %arg1: i32, %arg2: i32) -> (i32, i32) {
    %c0_i32 = arith.constant 0 : i32
    return %arg2, %arg1 : i32, i32
  }
  func.func @transform_2(%arg0: i32, %arg1: i32, %arg2: i32) -> (i32, i32) {
    %c0_i32 = arith.constant 0 : i32
    return %arg0, %arg1 : i32, i32
  }
  func.func @transform_3(%arg0: i32, %arg1: i32, %arg2: i32) -> (i32, i32) {
    %c0_i32 = arith.constant 0 : i32
    return %arg0, %arg1 : i32, i32
  }
}

module attributes {stable_mosaic.version = 11 : i64} {
  func.func @_bn_apply_kernel(%arg0: i32, %arg1: memref<32x256xbf16, #tpu.memory_space<vmem>>, %arg2: memref<1x256xf32, #tpu.memory_space<vmem>>, %arg3: memref<1x256xf32, #tpu.memory_space<vmem>>, %arg4: memref<32x256xbf16, #tpu.memory_space<vmem>>) attributes {dimension_semantics = [#tpu.dimension_semantics<parallel>], iteration_bounds = array<i64: 1>, scalar_prefetch = 0 : i64, scratch_operands = 0 : i64, tpu.core_type = #tpu.core_type<tc>, window_params = [{transform_indices = @transform_0, window_bounds = array<i64: 32, 256>}, {pipeline_mode = #tpu.pipeline_mode<synchronous>, transform_indices = @transform_1, window_bounds = array<i64: 1, 256>}, {pipeline_mode = #tpu.pipeline_mode<synchronous>, transform_indices = @transform_2, window_bounds = array<i64: 1, 256>}, {transform_indices = @transform_3, window_bounds = array<i64: 32, 256>}]} {
    %c0 = arith.constant 0 : index
    %c0_0 = arith.constant 0 : index
    %0 = vector.load %arg1[%c0, %c0_0] : memref<32x256xbf16, #tpu.memory_space<vmem>>, vector<32x256xbf16>
    %1 = arith.extf %0 : vector<32x256xbf16> to vector<32x256xf32>
    %c0_1 = arith.constant 0 : index
    %c0_2 = arith.constant 0 : index
    %2 = vector.load %arg2[%c0_1, %c0_2] : memref<1x256xf32, #tpu.memory_space<vmem>>, vector<1x256xf32>
    %3 = vector.broadcast %2 : vector<1x256xf32> to vector<32x256xf32>
    %4 = arith.mulf %1, %3 : vector<32x256xf32>
    %c0_3 = arith.constant 0 : index
    %c0_4 = arith.constant 0 : index
    %5 = vector.load %arg3[%c0_3, %c0_4] : memref<1x256xf32, #tpu.memory_space<vmem>>, vector<1x256xf32>
    %6 = vector.broadcast %5 : vector<1x256xf32> to vector<32x256xf32>
    %7 = arith.addf %4, %6 : vector<32x256xf32>
    %8 = arith.truncf %7 : vector<32x256xf32> to vector<32x256xbf16>
    %c0_5 = arith.constant 0 : index
    %c0_6 = arith.constant 0 : index
    %9 = vector.load %arg4[%c0_5, %c0_6] : memref<32x256xbf16, #tpu.memory_space<vmem>>, vector<32x256xbf16>
    tpu.vector_store %arg4[%c0_5, %c0_6], %8 {strides = array<i32>} : memref<32x256xbf16, #tpu.memory_space<vmem>>, vector<32x256xbf16>,
    return
  }
  func.func @transform_0(%arg0: i32) -> (i32, i32) {
    %c0_i32 = arith.constant 0 : i32
    %c0_i32_0 = arith.constant 0 : i32
    return %arg0, %c0_i32 : i32, i32
  }
  func.func @transform_1(%arg0: i32) -> (i32, i32) {
    %c0_i32 = arith.constant 0 : i32
    %c0_i32_0 = arith.constant 0 : i32
    %c0_i32_1 = arith.constant 0 : i32
    return %c0_i32, %c0_i32_0 : i32, i32
  }
  func.func @transform_2(%arg0: i32) -> (i32, i32) {
    %c0_i32 = arith.constant 0 : i32
    %c0_i32_0 = arith.constant 0 : i32
    %c0_i32_1 = arith.constant 0 : i32
    return %c0_i32, %c0_i32_0 : i32, i32
  }
  func.func @transform_3(%arg0: i32) -> (i32, i32) {
    %c0_i32 = arith.constant 0 : i32
    %c0_i32_0 = arith.constant 0 : i32
    return %arg0, %c0_i32 : i32, i32
  }
}

module attributes {stable_mosaic.version = 11 : i64} {
  func.func @_bn_apply_kernel(%arg0: i32, %arg1: memref<32x256xbf16, #tpu.memory_space<vmem>>, %arg2: memref<32x256xbf16, #tpu.memory_space<vmem>>, %arg3: memref<1x256xf32, #tpu.memory_space<vmem>>, %arg4: memref<1x256xf32, #tpu.memory_space<vmem>>, %arg5: memref<32x256xbf16, #tpu.memory_space<vmem>>) attributes {dimension_semantics = [#tpu.dimension_semantics<parallel>], iteration_bounds = array<i64: 1>, scalar_prefetch = 0 : i64, scratch_operands = 0 : i64, tpu.core_type = #tpu.core_type<tc>, window_params = [{transform_indices = @transform_0, window_bounds = array<i64: 32, 256>}, {transform_indices = @transform_1, window_bounds = array<i64: 32, 256>}, {pipeline_mode = #tpu.pipeline_mode<synchronous>, transform_indices = @transform_2, window_bounds = array<i64: 1, 256>}, {pipeline_mode = #tpu.pipeline_mode<synchronous>, transform_indices = @transform_3, window_bounds = array<i64: 1, 256>}, {transform_indices = @transform_4, window_bounds = array<i64: 32, 256>}]} {
    %c0 = arith.constant 0 : index
    %c0_0 = arith.constant 0 : index
    %0 = vector.load %arg1[%c0, %c0_0] : memref<32x256xbf16, #tpu.memory_space<vmem>>, vector<32x256xbf16>
    %1 = arith.extf %0 : vector<32x256xbf16> to vector<32x256xf32>
    %c0_1 = arith.constant 0 : index
    %c0_2 = arith.constant 0 : index
    %2 = vector.load %arg3[%c0_1, %c0_2] : memref<1x256xf32, #tpu.memory_space<vmem>>, vector<1x256xf32>
    %3 = vector.broadcast %2 : vector<1x256xf32> to vector<32x256xf32>
    %4 = arith.mulf %1, %3 : vector<32x256xf32>
    %c0_3 = arith.constant 0 : index
    %c0_4 = arith.constant 0 : index
    %5 = vector.load %arg4[%c0_3, %c0_4] : memref<1x256xf32, #tpu.memory_space<vmem>>, vector<1x256xf32>
    %6 = vector.broadcast %5 : vector<1x256xf32> to vector<32x256xf32>
    %7 = arith.addf %4, %6 : vector<32x256xf32>
    %c0_5 = arith.constant 0 : index
    %c0_6 = arith.constant 0 : index
    %8 = vector.load %arg2[%c0_5, %c0_6] : memref<32x256xbf16, #tpu.memory_space<vmem>>, vector<32x256xbf16>
    %9 = arith.extf %8 : vector<32x256xbf16> to vector<32x256xf32>
    %10 = arith.addf %7, %9 : vector<32x256xf32>
    %cst = arith.constant 0.000000e+00 : f32
    %11 = vector.broadcast %cst : f32 to vector<32x256xf32>
    %12 = arith.maximumf %10, %11 : vector<32x256xf32>
    %13 = arith.truncf %12 : vector<32x256xf32> to vector<32x256xbf16>
    %c0_7 = arith.constant 0 : index
    %c0_8 = arith.constant 0 : index
    %14 = vector.load %arg5[%c0_7, %c0_8] : memref<32x256xbf16, #tpu.memory_space<vmem>>, vector<32x256xbf16>
    tpu.vector_store %arg5[%c0_7, %c0_8], %13 {strides = array<i32>} : memref<32x256xbf16, #tpu.memory_space<vmem>>, vector<32x256xbf16>,
    return
  }
  func.func @transform_0(%arg0: i32) -> (i32, i32) {
    %c0_i32 = arith.constant 0 : i32
    %c0_i32_0 = arith.constant 0 : i32
    return %arg0, %c0_i32 : i32, i32
  }
  func.func @transform_1(%arg0: i32) -> (i32, i32) {
    %c0_i32 = arith.constant 0 : i32
    %c0_i32_0 = arith.constant 0 : i32
    return %arg0, %c0_i32 : i32, i32
  }
  func.func @transform_2(%arg0: i32) -> (i32, i32) {
    %c0_i32 = arith.constant 0 : i32
    %c0_i32_0 = arith.constant 0 : i32
    %c0_i32_1 = arith.constant 0 : i32
    return %c0_i32, %c0_i32_0 : i32, i32
  }
  func.func @transform_3(%arg0: i32) -> (i32, i32) {
    %c0_i32 = arith.constant 0 : i32
    %c0_i32_0 = arith.constant 0 : i32
    %c0_i32_1 = arith.constant 0 : i32
    return %c0_i32, %c0_i32_0 : i32, i32
  }
  func.func @transform_4(%arg0: i32) -> (i32, i32) {
    %c0_i32 = arith.constant 0 : i32
    %c0_i32_0 = arith.constant 0 : i32
    return %arg0, %c0_i32 : i32, i32
  }
}

module attributes {stable_mosaic.version = 11 : i64} {
  func.func @_matmul_kernel(%arg0: i32, %arg1: i32, %arg2: i32, %arg3: memref<8x384xbf16, #tpu.memory_space<vmem>>, %arg4: memref<384x512xbf16, #tpu.memory_space<vmem>>, %arg5: memref<8x512xbf16, #tpu.memory_space<vmem>>, %arg6: memref<8x512xf32, #tpu.memory_space<vmem>>, %arg7: memref<8x512xf32, #tpu.memory_space<vmem>>) attributes {dimension_semantics = [#tpu.dimension_semantics<parallel>, #tpu.dimension_semantics<parallel>, #tpu.dimension_semantics<arbitrary>], iteration_bounds = array<i64: 1, 1, 6>, scalar_prefetch = 0 : i64, scratch_operands = 1 : i64, tpu.core_type = #tpu.core_type<tc>, window_params = [{transform_indices = @transform_0, window_bounds = array<i64: 8, 384>}, {transform_indices = @transform_1, window_bounds = array<i64: 384, 512>}, {transform_indices = @transform_2, window_bounds = array<i64: 8, 512>}, {transform_indices = @transform_3, window_bounds = array<i64: 8, 512>}]} {
    %c0_i32 = arith.constant 0 : i32
    %0 = arith.cmpi eq, %arg2, %c0_i32 : i32
    %1 = arith.extui %0 : i1 to i32
    %c0_i32_0 = arith.constant 0 : i32
    %2 = arith.cmpi ne, %1, %c0_i32_0 : i32
    scf.if %2 {
      %cst_9 = arith.constant 0.000000e+00 : f32
      %12 = vector.broadcast %cst_9 : f32 to vector<8x512xf32>
      %c0_10 = arith.constant 0 : index
      %c0_11 = arith.constant 0 : index
      %13 = vector.load %arg7[%c0_10, %c0_11] : memref<8x512xf32, #tpu.memory_space<vmem>>, vector<8x512xf32>
      tpu.vector_store %arg7[%c0_10, %c0_11], %12 {strides = array<i32>} : memref<8x512xf32, #tpu.memory_space<vmem>>, vector<8x512xf32>,
    } else {
    }
    %c0 = arith.constant 0 : index
    %c0_1 = arith.constant 0 : index
    %3 = vector.load %arg7[%c0, %c0_1] : memref<8x512xf32, #tpu.memory_space<vmem>>, vector<8x512xf32>
    %c0_2 = arith.constant 0 : index
    %c0_3 = arith.constant 0 : index
    %4 = vector.load %arg3[%c0_2, %c0_3] : memref<8x384xbf16, #tpu.memory_space<vmem>>, vector<8x384xbf16>
    %c0_4 = arith.constant 0 : index
    %c0_5 = arith.constant 0 : index
    %5 = vector.load %arg4[%c0_4, %c0_5] : memref<384x512xbf16, #tpu.memory_space<vmem>>, vector<384x512xbf16>
    %cst = arith.constant dense<0.000000e+00> : vector<8x512xf32>
    %6 = tpu.matmul %4, %5, %cst {dimension_numbers = #tpu.dot_dimension_numbers<[1], [0], [0], [1], [0, 0, 1, 1], [], []>} : vector<8x384xbf16>, vector<384x512xbf16>, vector<8x512xf32> -> vector<8x512xf32>
    %7 = arith.addf %3, %6 : vector<8x512xf32>
    %c0_6 = arith.constant 0 : index
    %c0_7 = arith.constant 0 : index
    %8 = vector.load %arg7[%c0_6, %c0_7] : memref<8x512xf32, #tpu.memory_space<vmem>>, vector<8x512xf32>
    tpu.vector_store %arg7[%c0_6, %c0_7], %7 {strides = array<i32>} : memref<8x512xf32, #tpu.memory_space<vmem>>, vector<8x512xf32>,
    %c5_i32 = arith.constant 5 : i32
    %9 = arith.cmpi eq, %arg2, %c5_i32 : i32
    %10 = arith.extui %9 : i1 to i32
    %c0_i32_8 = arith.constant 0 : i32
    %11 = arith.cmpi ne, %10, %c0_i32_8 : i32
    scf.if %11 {
      %c0_9 = arith.constant 0 : index
      %c0_10 = arith.constant 0 : index
      %12 = vector.load %arg7[%c0_9, %c0_10] : memref<8x512xf32, #tpu.memory_space<vmem>>, vector<8x512xf32>
      %cst_11 = arith.constant dense<0.000000e+00> : vector<512xf32>
      %13 = vector.multi_reduction <add>, %12, %cst_11 [0] : vector<8x512xf32> to vector<512xf32>
      %14 = vector.shape_cast %13 : vector<512xf32> to vector<1x512xf32>
      %15 = arith.mulf %12, %12 : vector<8x512xf32>
      %cst_12 = arith.constant dense<0.000000e+00> : vector<512xf32>
      %16 = vector.multi_reduction <add>, %15, %cst_12 [0] : vector<8x512xf32> to vector<512xf32>
      %17 = vector.shape_cast %16 : vector<512xf32> to vector<1x512xf32>
      %18 = tpu.iota {dimensions = array<i32: 0>} : vector<8x512xi32>
      %c0_i32_13 = arith.constant 0 : i32
      %19 = vector.broadcast %c0_i32_13 : i32 to vector<8x512xi32>
      %20 = arith.cmpi eq, %18, %19 : vector<8x512xi32>
      %c1_i32 = arith.constant 1 : i32
      %21 = vector.broadcast %c1_i32 : i32 to vector<8x512xi32>
      %22 = arith.cmpi eq, %18, %21 : vector<8x512xi32>
      %cst_14 = arith.constant 0.000000e+00 : f32
      %23 = vector.shape_cast %17 : vector<1x512xf32> to vector<1x512xf32>
      %24 = vector.broadcast %23 : vector<1x512xf32> to vector<8x512xf32>
      %25 = vector.broadcast %cst_14 : f32 to vector<8x512xf32>
      %26 = arith.select %22, %24, %25 : vector<8x512xi1>, vector<8x512xf32>
      %27 = vector.shape_cast %14 : vector<1x512xf32> to vector<1x512xf32>
      %28 = vector.broadcast %27 : vector<1x512xf32> to vector<8x512xf32>
      %29 = arith.select %20, %28, %26 : vector<8x512xi1>, vector<8x512xf32>
      %c0_15 = arith.constant 0 : index
      %c0_16 = arith.constant 0 : index
      %30 = vector.load %arg6[%c0_15, %c0_16] : memref<8x512xf32, #tpu.memory_space<vmem>>, vector<8x512xf32>
      tpu.vector_store %arg6[%c0_15, %c0_16], %29 {strides = array<i32>} : memref<8x512xf32, #tpu.memory_space<vmem>>, vector<8x512xf32>,
      %31 = arith.truncf %12 : vector<8x512xf32> to vector<8x512xbf16>
      %c0_17 = arith.constant 0 : index
      %c0_18 = arith.constant 0 : index
      %32 = vector.load %arg5[%c0_17, %c0_18] : memref<8x512xbf16, #tpu.memory_space<vmem>>, vector<8x512xbf16>
      tpu.vector_store %arg5[%c0_17, %c0_18], %31 {strides = array<i32>} : memref<8x512xbf16, #tpu.memory_space<vmem>>, vector<8x512xbf16>,
    } else {
    }
    return
  }
  func.func @transform_0(%arg0: i32, %arg1: i32, %arg2: i32) -> (i32, i32) {
    %c0_i32 = arith.constant 0 : i32
    return %arg0, %arg2 : i32, i32
  }
  func.func @transform_1(%arg0: i32, %arg1: i32, %arg2: i32) -> (i32, i32) {
    %c0_i32 = arith.constant 0 : i32
    return %arg2, %arg1 : i32, i32
  }
  func.func @transform_2(%arg0: i32, %arg1: i32, %arg2: i32) -> (i32, i32) {
    %c0_i32 = arith.constant 0 : i32
    return %arg0, %arg1 : i32, i32
  }
  func.func @transform_3(%arg0: i32, %arg1: i32, %arg2: i32) -> (i32, i32) {
    %c0_i32 = arith.constant 0 : i32
    return %arg0, %arg1 : i32, i32
  }
}

module attributes {stable_mosaic.version = 11 : i64} {
  func.func @_bn_apply_kernel(%arg0: i32, %arg1: memref<8x512xbf16, #tpu.memory_space<vmem>>, %arg2: memref<1x512xf32, #tpu.memory_space<vmem>>, %arg3: memref<1x512xf32, #tpu.memory_space<vmem>>, %arg4: memref<8x512xbf16, #tpu.memory_space<vmem>>) attributes {dimension_semantics = [#tpu.dimension_semantics<parallel>], iteration_bounds = array<i64: 1>, scalar_prefetch = 0 : i64, scratch_operands = 0 : i64, tpu.core_type = #tpu.core_type<tc>, window_params = [{transform_indices = @transform_0, window_bounds = array<i64: 8, 512>}, {pipeline_mode = #tpu.pipeline_mode<synchronous>, transform_indices = @transform_1, window_bounds = array<i64: 1, 512>}, {pipeline_mode = #tpu.pipeline_mode<synchronous>, transform_indices = @transform_2, window_bounds = array<i64: 1, 512>}, {transform_indices = @transform_3, window_bounds = array<i64: 8, 512>}]} {
    %c0 = arith.constant 0 : index
    %c0_0 = arith.constant 0 : index
    %0 = vector.load %arg1[%c0, %c0_0] : memref<8x512xbf16, #tpu.memory_space<vmem>>, vector<8x512xbf16>
    %1 = arith.extf %0 : vector<8x512xbf16> to vector<8x512xf32>
    %c0_1 = arith.constant 0 : index
    %c0_2 = arith.constant 0 : index
    %2 = vector.load %arg2[%c0_1, %c0_2] : memref<1x512xf32, #tpu.memory_space<vmem>>, vector<1x512xf32>
    %3 = vector.broadcast %2 : vector<1x512xf32> to vector<8x512xf32>
    %4 = arith.mulf %1, %3 : vector<8x512xf32>
    %c0_3 = arith.constant 0 : index
    %c0_4 = arith.constant 0 : index
    %5 = vector.load %arg3[%c0_3, %c0_4] : memref<1x512xf32, #tpu.memory_space<vmem>>, vector<1x512xf32>
    %6 = vector.broadcast %5 : vector<1x512xf32> to vector<8x512xf32>
    %7 = arith.addf %4, %6 : vector<8x512xf32>
    %cst = arith.constant 0.000000e+00 : f32
    %8 = vector.broadcast %cst : f32 to vector<8x512xf32>
    %9 = arith.maximumf %7, %8 : vector<8x512xf32>
    %10 = arith.truncf %9 : vector<8x512xf32> to vector<8x512xbf16>
    %c0_5 = arith.constant 0 : index
    %c0_6 = arith.constant 0 : index
    %11 = vector.load %arg4[%c0_5, %c0_6] : memref<8x512xbf16, #tpu.memory_space<vmem>>, vector<8x512xbf16>
    tpu.vector_store %arg4[%c0_5, %c0_6], %10 {strides = array<i32>} : memref<8x512xbf16, #tpu.memory_space<vmem>>, vector<8x512xbf16>,
    return
  }
  func.func @transform_0(%arg0: i32) -> (i32, i32) {
    %c0_i32 = arith.constant 0 : i32
    %c0_i32_0 = arith.constant 0 : i32
    return %arg0, %c0_i32 : i32, i32
  }
  func.func @transform_1(%arg0: i32) -> (i32, i32) {
    %c0_i32 = arith.constant 0 : i32
    %c0_i32_0 = arith.constant 0 : i32
    %c0_i32_1 = arith.constant 0 : i32
    return %c0_i32, %c0_i32_0 : i32, i32
  }
  func.func @transform_2(%arg0: i32) -> (i32, i32) {
    %c0_i32 = arith.constant 0 : i32
    %c0_i32_0 = arith.constant 0 : i32
    %c0_i32_1 = arith.constant 0 : i32
    return %c0_i32, %c0_i32_0 : i32, i32
  }
  func.func @transform_3(%arg0: i32) -> (i32, i32) {
    %c0_i32 = arith.constant 0 : i32
    %c0_i32_0 = arith.constant 0 : i32
    return %arg0, %c0_i32 : i32, i32
  }
}

module attributes {stable_mosaic.version = 11 : i64} {
  func.func @_matmul_kernel(%arg0: i32, %arg1: i32, %arg2: i32, %arg3: memref<8x512xbf16, #tpu.memory_space<vmem>>, %arg4: memref<512x512xbf16, #tpu.memory_space<vmem>>, %arg5: memref<8x512xbf16, #tpu.memory_space<vmem>>, %arg6: memref<8x512xf32, #tpu.memory_space<vmem>>, %arg7: memref<8x512xf32, #tpu.memory_space<vmem>>) attributes {dimension_semantics = [#tpu.dimension_semantics<parallel>, #tpu.dimension_semantics<parallel>, #tpu.dimension_semantics<arbitrary>], iteration_bounds = array<i64: 1, 1, 9>, scalar_prefetch = 0 : i64, scratch_operands = 1 : i64, tpu.core_type = #tpu.core_type<tc>, window_params = [{transform_indices = @transform_0, window_bounds = array<i64: 8, 512>}, {transform_indices = @transform_1, window_bounds = array<i64: 512, 512>}, {transform_indices = @transform_2, window_bounds = array<i64: 8, 512>}, {transform_indices = @transform_3, window_bounds = array<i64: 8, 512>}]} {
    %c0_i32 = arith.constant 0 : i32
    %0 = arith.cmpi eq, %arg2, %c0_i32 : i32
    %1 = arith.extui %0 : i1 to i32
    %c0_i32_0 = arith.constant 0 : i32
    %2 = arith.cmpi ne, %1, %c0_i32_0 : i32
    scf.if %2 {
      %cst_9 = arith.constant 0.000000e+00 : f32
      %12 = vector.broadcast %cst_9 : f32 to vector<8x512xf32>
      %c0_10 = arith.constant 0 : index
      %c0_11 = arith.constant 0 : index
      %13 = vector.load %arg7[%c0_10, %c0_11] : memref<8x512xf32, #tpu.memory_space<vmem>>, vector<8x512xf32>
      tpu.vector_store %arg7[%c0_10, %c0_11], %12 {strides = array<i32>} : memref<8x512xf32, #tpu.memory_space<vmem>>, vector<8x512xf32>,
    } else {
    }
    %c0 = arith.constant 0 : index
    %c0_1 = arith.constant 0 : index
    %3 = vector.load %arg7[%c0, %c0_1] : memref<8x512xf32, #tpu.memory_space<vmem>>, vector<8x512xf32>
    %c0_2 = arith.constant 0 : index
    %c0_3 = arith.constant 0 : index
    %4 = vector.load %arg3[%c0_2, %c0_3] : memref<8x512xbf16, #tpu.memory_space<vmem>>, vector<8x512xbf16>
    %c0_4 = arith.constant 0 : index
    %c0_5 = arith.constant 0 : index
    %5 = vector.load %arg4[%c0_4, %c0_5] : memref<512x512xbf16, #tpu.memory_space<vmem>>, vector<512x512xbf16>
    %cst = arith.constant dense<0.000000e+00> : vector<8x512xf32>
    %6 = tpu.matmul %4, %5, %cst {dimension_numbers = #tpu.dot_dimension_numbers<[1], [0], [0], [1], [0, 0, 1, 1], [], []>} : vector<8x512xbf16>, vector<512x512xbf16>, vector<8x512xf32> -> vector<8x512xf32>
    %7 = arith.addf %3, %6 : vector<8x512xf32>
    %c0_6 = arith.constant 0 : index
    %c0_7 = arith.constant 0 : index
    %8 = vector.load %arg7[%c0_6, %c0_7] : memref<8x512xf32, #tpu.memory_space<vmem>>, vector<8x512xf32>
    tpu.vector_store %arg7[%c0_6, %c0_7], %7 {strides = array<i32>} : memref<8x512xf32, #tpu.memory_space<vmem>>, vector<8x512xf32>,
    %c8_i32 = arith.constant 8 : i32
    %9 = arith.cmpi eq, %arg2, %c8_i32 : i32
    %10 = arith.extui %9 : i1 to i32
    %c0_i32_8 = arith.constant 0 : i32
    %11 = arith.cmpi ne, %10, %c0_i32_8 : i32
    scf.if %11 {
      %c0_9 = arith.constant 0 : index
      %c0_10 = arith.constant 0 : index
      %12 = vector.load %arg7[%c0_9, %c0_10] : memref<8x512xf32, #tpu.memory_space<vmem>>, vector<8x512xf32>
      %cst_11 = arith.constant dense<0.000000e+00> : vector<512xf32>
      %13 = vector.multi_reduction <add>, %12, %cst_11 [0] : vector<8x512xf32> to vector<512xf32>
      %14 = vector.shape_cast %13 : vector<512xf32> to vector<1x512xf32>
      %15 = arith.mulf %12, %12 : vector<8x512xf32>
      %cst_12 = arith.constant dense<0.000000e+00> : vector<512xf32>
      %16 = vector.multi_reduction <add>, %15, %cst_12 [0] : vector<8x512xf32> to vector<512xf32>
      %17 = vector.shape_cast %16 : vector<512xf32> to vector<1x512xf32>
      %18 = tpu.iota {dimensions = array<i32: 0>} : vector<8x512xi32>
      %c0_i32_13 = arith.constant 0 : i32
      %19 = vector.broadcast %c0_i32_13 : i32 to vector<8x512xi32>
      %20 = arith.cmpi eq, %18, %19 : vector<8x512xi32>
      %c1_i32 = arith.constant 1 : i32
      %21 = vector.broadcast %c1_i32 : i32 to vector<8x512xi32>
      %22 = arith.cmpi eq, %18, %21 : vector<8x512xi32>
      %cst_14 = arith.constant 0.000000e+00 : f32
      %23 = vector.shape_cast %17 : vector<1x512xf32> to vector<1x512xf32>
      %24 = vector.broadcast %23 : vector<1x512xf32> to vector<8x512xf32>
      %25 = vector.broadcast %cst_14 : f32 to vector<8x512xf32>
      %26 = arith.select %22, %24, %25 : vector<8x512xi1>, vector<8x512xf32>
      %27 = vector.shape_cast %14 : vector<1x512xf32> to vector<1x512xf32>
      %28 = vector.broadcast %27 : vector<1x512xf32> to vector<8x512xf32>
      %29 = arith.select %20, %28, %26 : vector<8x512xi1>, vector<8x512xf32>
      %c0_15 = arith.constant 0 : index
      %c0_16 = arith.constant 0 : index
      %30 = vector.load %arg6[%c0_15, %c0_16] : memref<8x512xf32, #tpu.memory_space<vmem>>, vector<8x512xf32>
      tpu.vector_store %arg6[%c0_15, %c0_16], %29 {strides = array<i32>} : memref<8x512xf32, #tpu.memory_space<vmem>>, vector<8x512xf32>,
      %31 = arith.truncf %12 : vector<8x512xf32> to vector<8x512xbf16>
      %c0_17 = arith.constant 0 : index
      %c0_18 = arith.constant 0 : index
      %32 = vector.load %arg5[%c0_17, %c0_18] : memref<8x512xbf16, #tpu.memory_space<vmem>>, vector<8x512xbf16>
      tpu.vector_store %arg5[%c0_17, %c0_18], %31 {strides = array<i32>} : memref<8x512xbf16, #tpu.memory_space<vmem>>, vector<8x512xbf16>,
    } else {
    }
    return
  }
  func.func @transform_0(%arg0: i32, %arg1: i32, %arg2: i32) -> (i32, i32) {
    %c0_i32 = arith.constant 0 : i32
    return %arg0, %arg2 : i32, i32
  }
  func.func @transform_1(%arg0: i32, %arg1: i32, %arg2: i32) -> (i32, i32) {
    %c0_i32 = arith.constant 0 : i32
    return %arg2, %arg1 : i32, i32
  }
  func.func @transform_2(%arg0: i32, %arg1: i32, %arg2: i32) -> (i32, i32) {
    %c0_i32 = arith.constant 0 : i32
    return %arg0, %arg1 : i32, i32
  }
  func.func @transform_3(%arg0: i32, %arg1: i32, %arg2: i32) -> (i32, i32) {
    %c0_i32 = arith.constant 0 : i32
    return %arg0, %arg1 : i32, i32
  }
}

module attributes {stable_mosaic.version = 11 : i64} {
  func.func @_matmul_kernel(%arg0: i32, %arg1: i32, %arg2: i32, %arg3: memref<8x256xbf16, #tpu.memory_space<vmem>>, %arg4: memref<256x512xbf16, #tpu.memory_space<vmem>>, %arg5: memref<8x512xbf16, #tpu.memory_space<vmem>>, %arg6: memref<8x512xf32, #tpu.memory_space<vmem>>, %arg7: memref<8x512xf32, #tpu.memory_space<vmem>>) attributes {dimension_semantics = [#tpu.dimension_semantics<parallel>, #tpu.dimension_semantics<parallel>, #tpu.dimension_semantics<arbitrary>], iteration_bounds = array<i64: 1, 1, 1>, scalar_prefetch = 0 : i64, scratch_operands = 1 : i64, tpu.core_type = #tpu.core_type<tc>, window_params = [{transform_indices = @transform_0, window_bounds = array<i64: 8, 256>}, {transform_indices = @transform_1, window_bounds = array<i64: 256, 512>}, {transform_indices = @transform_2, window_bounds = array<i64: 8, 512>}, {transform_indices = @transform_3, window_bounds = array<i64: 8, 512>}]} {
    %c0_i32 = arith.constant 0 : i32
    %0 = arith.cmpi eq, %arg2, %c0_i32 : i32
    %1 = arith.extui %0 : i1 to i32
    %c0_i32_0 = arith.constant 0 : i32
    %2 = arith.cmpi ne, %1, %c0_i32_0 : i32
    scf.if %2 {
      %cst_10 = arith.constant 0.000000e+00 : f32
      %12 = vector.broadcast %cst_10 : f32 to vector<8x512xf32>
      %c0_11 = arith.constant 0 : index
      %c0_12 = arith.constant 0 : index
      %13 = vector.load %arg7[%c0_11, %c0_12] : memref<8x512xf32, #tpu.memory_space<vmem>>, vector<8x512xf32>
      tpu.vector_store %arg7[%c0_11, %c0_12], %12 {strides = array<i32>} : memref<8x512xf32, #tpu.memory_space<vmem>>, vector<8x512xf32>,
    } else {
    }
    %c0 = arith.constant 0 : index
    %c0_1 = arith.constant 0 : index
    %3 = vector.load %arg7[%c0, %c0_1] : memref<8x512xf32, #tpu.memory_space<vmem>>, vector<8x512xf32>
    %c0_2 = arith.constant 0 : index
    %c0_3 = arith.constant 0 : index
    %4 = vector.load %arg3[%c0_2, %c0_3] : memref<8x256xbf16, #tpu.memory_space<vmem>>, vector<8x256xbf16>
    %c0_4 = arith.constant 0 : index
    %c0_5 = arith.constant 0 : index
    %5 = vector.load %arg4[%c0_4, %c0_5] : memref<256x512xbf16, #tpu.memory_space<vmem>>, vector<256x512xbf16>
    %cst = arith.constant dense<0.000000e+00> : vector<8x512xf32>
    %6 = tpu.matmul %4, %5, %cst {dimension_numbers = #tpu.dot_dimension_numbers<[1], [0], [0], [1], [0, 0, 1, 1], [], []>} : vector<8x256xbf16>, vector<256x512xbf16>, vector<8x512xf32> -> vector<8x512xf32>
    %7 = arith.addf %3, %6 : vector<8x512xf32>
    %c0_6 = arith.constant 0 : index
    %c0_7 = arith.constant 0 : index
    %8 = vector.load %arg7[%c0_6, %c0_7] : memref<8x512xf32, #tpu.memory_space<vmem>>, vector<8x512xf32>
    tpu.vector_store %arg7[%c0_6, %c0_7], %7 {strides = array<i32>} : memref<8x512xf32, #tpu.memory_space<vmem>>, vector<8x512xf32>,
    %c0_i32_8 = arith.constant 0 : i32
    %9 = arith.cmpi eq, %arg2, %c0_i32_8 : i32
    %10 = arith.extui %9 : i1 to i32
    %c0_i32_9 = arith.constant 0 : i32
    %11 = arith.cmpi ne, %10, %c0_i32_9 : i32
    scf.if %11 {
      %c0_10 = arith.constant 0 : index
      %c0_11 = arith.constant 0 : index
      %12 = vector.load %arg7[%c0_10, %c0_11] : memref<8x512xf32, #tpu.memory_space<vmem>>, vector<8x512xf32>
      %cst_12 = arith.constant dense<0.000000e+00> : vector<512xf32>
      %13 = vector.multi_reduction <add>, %12, %cst_12 [0] : vector<8x512xf32> to vector<512xf32>
      %14 = vector.shape_cast %13 : vector<512xf32> to vector<1x512xf32>
      %15 = arith.mulf %12, %12 : vector<8x512xf32>
      %cst_13 = arith.constant dense<0.000000e+00> : vector<512xf32>
      %16 = vector.multi_reduction <add>, %15, %cst_13 [0] : vector<8x512xf32> to vector<512xf32>
      %17 = vector.shape_cast %16 : vector<512xf32> to vector<1x512xf32>
      %18 = tpu.iota {dimensions = array<i32: 0>} : vector<8x512xi32>
      %c0_i32_14 = arith.constant 0 : i32
      %19 = vector.broadcast %c0_i32_14 : i32 to vector<8x512xi32>
      %20 = arith.cmpi eq, %18, %19 : vector<8x512xi32>
      %c1_i32 = arith.constant 1 : i32
      %21 = vector.broadcast %c1_i32 : i32 to vector<8x512xi32>
      %22 = arith.cmpi eq, %18, %21 : vector<8x512xi32>
      %cst_15 = arith.constant 0.000000e+00 : f32
      %23 = vector.shape_cast %17 : vector<1x512xf32> to vector<1x512xf32>
      %24 = vector.broadcast %23 : vector<1x512xf32> to vector<8x512xf32>
      %25 = vector.broadcast %cst_15 : f32 to vector<8x512xf32>
      %26 = arith.select %22, %24, %25 : vector<8x512xi1>, vector<8x512xf32>
      %27 = vector.shape_cast %14 : vector<1x512xf32> to vector<1x512xf32>
      %28 = vector.broadcast %27 : vector<1x512xf32> to vector<8x512xf32>
      %29 = arith.select %20, %28, %26 : vector<8x512xi1>, vector<8x512xf32>
      %c0_16 = arith.constant 0 : index
      %c0_17 = arith.constant 0 : index
      %30 = vector.load %arg6[%c0_16, %c0_17] : memref<8x512xf32, #tpu.memory_space<vmem>>, vector<8x512xf32>
      tpu.vector_store %arg6[%c0_16, %c0_17], %29 {strides = array<i32>} : memref<8x512xf32, #tpu.memory_space<vmem>>, vector<8x512xf32>,
      %31 = arith.truncf %12 : vector<8x512xf32> to vector<8x512xbf16>
      %c0_18 = arith.constant 0 : index
      %c0_19 = arith.constant 0 : index
      %32 = vector.load %arg5[%c0_18, %c0_19] : memref<8x512xbf16, #tpu.memory_space<vmem>>, vector<8x512xbf16>
      tpu.vector_store %arg5[%c0_18, %c0_19], %31 {strides = array<i32>} : memref<8x512xbf16, #tpu.memory_space<vmem>>, vector<8x512xbf16>,
    } else {
    }
    return
  }
  func.func @transform_0(%arg0: i32, %arg1: i32, %arg2: i32) -> (i32, i32) {
    %c0_i32 = arith.constant 0 : i32
    return %arg0, %arg2 : i32, i32
  }
  func.func @transform_1(%arg0: i32, %arg1: i32, %arg2: i32) -> (i32, i32) {
    %c0_i32 = arith.constant 0 : i32
    return %arg2, %arg1 : i32, i32
  }
  func.func @transform_2(%arg0: i32, %arg1: i32, %arg2: i32) -> (i32, i32) {
    %c0_i32 = arith.constant 0 : i32
    return %arg0, %arg1 : i32, i32
  }
  func.func @transform_3(%arg0: i32, %arg1: i32, %arg2: i32) -> (i32, i32) {
    %c0_i32 = arith.constant 0 : i32
    return %arg0, %arg1 : i32, i32
  }
}

module attributes {stable_mosaic.version = 11 : i64} {
  func.func @_bn_apply_kernel(%arg0: i32, %arg1: memref<8x512xbf16, #tpu.memory_space<vmem>>, %arg2: memref<1x512xf32, #tpu.memory_space<vmem>>, %arg3: memref<1x512xf32, #tpu.memory_space<vmem>>, %arg4: memref<8x512xbf16, #tpu.memory_space<vmem>>) attributes {dimension_semantics = [#tpu.dimension_semantics<parallel>], iteration_bounds = array<i64: 1>, scalar_prefetch = 0 : i64, scratch_operands = 0 : i64, tpu.core_type = #tpu.core_type<tc>, window_params = [{transform_indices = @transform_0, window_bounds = array<i64: 8, 512>}, {pipeline_mode = #tpu.pipeline_mode<synchronous>, transform_indices = @transform_1, window_bounds = array<i64: 1, 512>}, {pipeline_mode = #tpu.pipeline_mode<synchronous>, transform_indices = @transform_2, window_bounds = array<i64: 1, 512>}, {transform_indices = @transform_3, window_bounds = array<i64: 8, 512>}]} {
    %c0 = arith.constant 0 : index
    %c0_0 = arith.constant 0 : index
    %0 = vector.load %arg1[%c0, %c0_0] : memref<8x512xbf16, #tpu.memory_space<vmem>>, vector<8x512xbf16>
    %1 = arith.extf %0 : vector<8x512xbf16> to vector<8x512xf32>
    %c0_1 = arith.constant 0 : index
    %c0_2 = arith.constant 0 : index
    %2 = vector.load %arg2[%c0_1, %c0_2] : memref<1x512xf32, #tpu.memory_space<vmem>>, vector<1x512xf32>
    %3 = vector.broadcast %2 : vector<1x512xf32> to vector<8x512xf32>
    %4 = arith.mulf %1, %3 : vector<8x512xf32>
    %c0_3 = arith.constant 0 : index
    %c0_4 = arith.constant 0 : index
    %5 = vector.load %arg3[%c0_3, %c0_4] : memref<1x512xf32, #tpu.memory_space<vmem>>, vector<1x512xf32>
    %6 = vector.broadcast %5 : vector<1x512xf32> to vector<8x512xf32>
    %7 = arith.addf %4, %6 : vector<8x512xf32>
    %8 = arith.truncf %7 : vector<8x512xf32> to vector<8x512xbf16>
    %c0_5 = arith.constant 0 : index
    %c0_6 = arith.constant 0 : index
    %9 = vector.load %arg4[%c0_5, %c0_6] : memref<8x512xbf16, #tpu.memory_space<vmem>>, vector<8x512xbf16>
    tpu.vector_store %arg4[%c0_5, %c0_6], %8 {strides = array<i32>} : memref<8x512xbf16, #tpu.memory_space<vmem>>, vector<8x512xbf16>,
    return
  }
  func.func @transform_0(%arg0: i32) -> (i32, i32) {
    %c0_i32 = arith.constant 0 : i32
    %c0_i32_0 = arith.constant 0 : i32
    return %arg0, %c0_i32 : i32, i32
  }
  func.func @transform_1(%arg0: i32) -> (i32, i32) {
    %c0_i32 = arith.constant 0 : i32
    %c0_i32_0 = arith.constant 0 : i32
    %c0_i32_1 = arith.constant 0 : i32
    return %c0_i32, %c0_i32_0 : i32, i32
  }
  func.func @transform_2(%arg0: i32) -> (i32, i32) {
    %c0_i32 = arith.constant 0 : i32
    %c0_i32_0 = arith.constant 0 : i32
    %c0_i32_1 = arith.constant 0 : i32
    return %c0_i32, %c0_i32_0 : i32, i32
  }
  func.func @transform_3(%arg0: i32) -> (i32, i32) {
    %c0_i32 = arith.constant 0 : i32
    %c0_i32_0 = arith.constant 0 : i32
    return %arg0, %c0_i32 : i32, i32
  }
}

module attributes {stable_mosaic.version = 11 : i64} {
  func.func @_bn_apply_kernel(%arg0: i32, %arg1: memref<8x512xbf16, #tpu.memory_space<vmem>>, %arg2: memref<8x512xbf16, #tpu.memory_space<vmem>>, %arg3: memref<1x512xf32, #tpu.memory_space<vmem>>, %arg4: memref<1x512xf32, #tpu.memory_space<vmem>>, %arg5: memref<8x512xbf16, #tpu.memory_space<vmem>>) attributes {dimension_semantics = [#tpu.dimension_semantics<parallel>], iteration_bounds = array<i64: 1>, scalar_prefetch = 0 : i64, scratch_operands = 0 : i64, tpu.core_type = #tpu.core_type<tc>, window_params = [{transform_indices = @transform_0, window_bounds = array<i64: 8, 512>}, {transform_indices = @transform_1, window_bounds = array<i64: 8, 512>}, {pipeline_mode = #tpu.pipeline_mode<synchronous>, transform_indices = @transform_2, window_bounds = array<i64: 1, 512>}, {pipeline_mode = #tpu.pipeline_mode<synchronous>, transform_indices = @transform_3, window_bounds = array<i64: 1, 512>}, {transform_indices = @transform_4, window_bounds = array<i64: 8, 512>}]} {
    %c0 = arith.constant 0 : index
    %c0_0 = arith.constant 0 : index
    %0 = vector.load %arg1[%c0, %c0_0] : memref<8x512xbf16, #tpu.memory_space<vmem>>, vector<8x512xbf16>
    %1 = arith.extf %0 : vector<8x512xbf16> to vector<8x512xf32>
    %c0_1 = arith.constant 0 : index
    %c0_2 = arith.constant 0 : index
    %2 = vector.load %arg3[%c0_1, %c0_2] : memref<1x512xf32, #tpu.memory_space<vmem>>, vector<1x512xf32>
    %3 = vector.broadcast %2 : vector<1x512xf32> to vector<8x512xf32>
    %4 = arith.mulf %1, %3 : vector<8x512xf32>
    %c0_3 = arith.constant 0 : index
    %c0_4 = arith.constant 0 : index
    %5 = vector.load %arg4[%c0_3, %c0_4] : memref<1x512xf32, #tpu.memory_space<vmem>>, vector<1x512xf32>
    %6 = vector.broadcast %5 : vector<1x512xf32> to vector<8x512xf32>
    %7 = arith.addf %4, %6 : vector<8x512xf32>
    %c0_5 = arith.constant 0 : index
    %c0_6 = arith.constant 0 : index
    %8 = vector.load %arg2[%c0_5, %c0_6] : memref<8x512xbf16, #tpu.memory_space<vmem>>, vector<8x512xbf16>
    %9 = arith.extf %8 : vector<8x512xbf16> to vector<8x512xf32>
    %10 = arith.addf %7, %9 : vector<8x512xf32>
    %cst = arith.constant 0.000000e+00 : f32
    %11 = vector.broadcast %cst : f32 to vector<8x512xf32>
    %12 = arith.maximumf %10, %11 : vector<8x512xf32>
    %13 = arith.truncf %12 : vector<8x512xf32> to vector<8x512xbf16>
    %c0_7 = arith.constant 0 : index
    %c0_8 = arith.constant 0 : index
    %14 = vector.load %arg5[%c0_7, %c0_8] : memref<8x512xbf16, #tpu.memory_space<vmem>>, vector<8x512xbf16>
    tpu.vector_store %arg5[%c0_7, %c0_8], %13 {strides = array<i32>} : memref<8x512xbf16, #tpu.memory_space<vmem>>, vector<8x512xbf16>,
    return
  }
  func.func @transform_0(%arg0: i32) -> (i32, i32) {
    %c0_i32 = arith.constant 0 : i32
    %c0_i32_0 = arith.constant 0 : i32
    return %arg0, %c0_i32 : i32, i32
  }
  func.func @transform_1(%arg0: i32) -> (i32, i32) {
    %c0_i32 = arith.constant 0 : i32
    %c0_i32_0 = arith.constant 0 : i32
    return %arg0, %c0_i32 : i32, i32
  }
  func.func @transform_2(%arg0: i32) -> (i32, i32) {
    %c0_i32 = arith.constant 0 : i32
    %c0_i32_0 = arith.constant 0 : i32
    %c0_i32_1 = arith.constant 0 : i32
    return %c0_i32, %c0_i32_0 : i32, i32
  }
  func.func @transform_3(%arg0: i32) -> (i32, i32) {
    %c0_i32 = arith.constant 0 : i32
    %c0_i32_0 = arith.constant 0 : i32
    %c0_i32_1 = arith.constant 0 : i32
    return %c0_i32, %c0_i32_0 : i32, i32
  }
  func.func @transform_4(%arg0: i32) -> (i32, i32) {
    %c0_i32 = arith.constant 0 : i32
    %c0_i32_0 = arith.constant 0 : i32
    return %arg0, %c0_i32 : i32, i32
  }
}

module attributes {stable_mosaic.version = 11 : i64} {
  func.func @_gap_kernel(%arg0: i32, %arg1: memref<2x4x512xbf16, #tpu.memory_space<vmem>>, %arg2: memref<2x512xf32, #tpu.memory_space<vmem>>) attributes {dimension_semantics = [#tpu.dimension_semantics<arbitrary>], iteration_bounds = array<i64: 1>, scalar_prefetch = 0 : i64, scratch_operands = 0 : i64, tpu.core_type = #tpu.core_type<tc>, window_params = [{pipeline_mode = #tpu.pipeline_mode<synchronous>, transform_indices = @transform_0, window_bounds = array<i64: 2, 4, 512>}, {pipeline_mode = #tpu.pipeline_mode<synchronous>, transform_indices = @transform_1, window_bounds = array<i64: 2, 512>}]} {
    %c0 = arith.constant 0 : index
    %c0_0 = arith.constant 0 : index
    %c0_1 = arith.constant 0 : index
    %0 = vector.load %arg1[%c0, %c0_0, %c0_1] : memref<2x4x512xbf16, #tpu.memory_space<vmem>>, vector<2x4x512xbf16>
    %1 = arith.extf %0 : vector<2x4x512xbf16> to vector<2x4x512xf32>
    %cst = arith.constant dense<0.000000e+00> : vector<2x512xf32>
    %2 = vector.multi_reduction <add>, %1, %cst [1] : vector<2x4x512xf32> to vector<2x512xf32>
    %cst_2 = arith.constant 2.500000e-01 : f32
    %3 = vector.broadcast %cst_2 : f32 to vector<2x512xf32>
    %4 = arith.mulf %2, %3 : vector<2x512xf32>
    %c0_3 = arith.constant 0 : index
    %c0_4 = arith.constant 0 : index
    %5 = vector.load %arg2[%c0_3, %c0_4] : memref<2x512xf32, #tpu.memory_space<vmem>>, vector<2x512xf32>
    tpu.vector_store %arg2[%c0_3, %c0_4], %4 {strides = array<i32>} : memref<2x512xf32, #tpu.memory_space<vmem>>, vector<2x512xf32>,
    return
  }
  func.func @transform_0(%arg0: i32) -> (i32, i32, i32) {
    %c0_i32 = arith.constant 0 : i32
    %c0_i32_0 = arith.constant 0 : i32
    %c0_i32_1 = arith.constant 0 : i32
    %c0_i32_2 = arith.constant 0 : i32
    return %c0_i32, %c0_i32_0, %c0_i32_1 : i32, i32, i32
  }
  func.func @transform_1(%arg0: i32) -> (i32, i32) {
    %c0_i32 = arith.constant 0 : i32
    %c0_i32_0 = arith.constant 0 : i32
    %c0_i32_1 = arith.constant 0 : i32
    return %c0_i32, %c0_i32_0 : i32, i32
  }
}

module attributes {stable_mosaic.version = 11 : i64} {
  func.func @_matmul_kernel(%arg0: i32, %arg1: i32, %arg2: i32, %arg3: memref<8x512xbf16, #tpu.memory_space<vmem>>, %arg4: memref<512x128xbf16, #tpu.memory_space<vmem>>, %arg5: memref<1x128xf32, #tpu.memory_space<vmem>>, %arg6: memref<8x128xf32, #tpu.memory_space<vmem>>, %arg7: memref<8x128xf32, #tpu.memory_space<vmem>>) attributes {dimension_semantics = [#tpu.dimension_semantics<parallel>, #tpu.dimension_semantics<parallel>, #tpu.dimension_semantics<arbitrary>], iteration_bounds = array<i64: 1, 1, 1>, scalar_prefetch = 0 : i64, scratch_operands = 1 : i64, tpu.core_type = #tpu.core_type<tc>, window_params = [{transform_indices = @transform_0, window_bounds = array<i64: 8, 512>}, {transform_indices = @transform_1, window_bounds = array<i64: 512, 128>}, {transform_indices = @transform_2, window_bounds = array<i64: 1, 128>}, {transform_indices = @transform_3, window_bounds = array<i64: 8, 128>}]} {
    %c0_i32 = arith.constant 0 : i32
    %0 = arith.cmpi eq, %arg2, %c0_i32 : i32
    %1 = arith.extui %0 : i1 to i32
    %c0_i32_0 = arith.constant 0 : i32
    %2 = arith.cmpi ne, %1, %c0_i32_0 : i32
    scf.if %2 {
      %cst_10 = arith.constant 0.000000e+00 : f32
      %12 = vector.broadcast %cst_10 : f32 to vector<8x128xf32>
      %c0_11 = arith.constant 0 : index
      %c0_12 = arith.constant 0 : index
      %13 = vector.load %arg7[%c0_11, %c0_12] : memref<8x128xf32, #tpu.memory_space<vmem>>, vector<8x128xf32>
      tpu.vector_store %arg7[%c0_11, %c0_12], %12 {strides = array<i32>} : memref<8x128xf32, #tpu.memory_space<vmem>>, vector<8x128xf32>,
    } else {
    }
    %c0 = arith.constant 0 : index
    %c0_1 = arith.constant 0 : index
    %3 = vector.load %arg7[%c0, %c0_1] : memref<8x128xf32, #tpu.memory_space<vmem>>, vector<8x128xf32>
    %c0_2 = arith.constant 0 : index
    %c0_3 = arith.constant 0 : index
    %4 = vector.load %arg3[%c0_2, %c0_3] : memref<8x512xbf16, #tpu.memory_space<vmem>>, vector<8x512xbf16>
    %c0_4 = arith.constant 0 : index
    %c0_5 = arith.constant 0 : index
    %5 = vector.load %arg4[%c0_4, %c0_5] : memref<512x128xbf16, #tpu.memory_space<vmem>>, vector<512x128xbf16>
    %cst = arith.constant dense<0.000000e+00> : vector<8x128xf32>
    %6 = tpu.matmul %4, %5, %cst {dimension_numbers = #tpu.dot_dimension_numbers<[1], [0], [0], [1], [0, 0, 1, 1], [], []>} : vector<8x512xbf16>, vector<512x128xbf16>, vector<8x128xf32> -> vector<8x128xf32>
    %7 = arith.addf %3, %6 : vector<8x128xf32>
    %c0_6 = arith.constant 0 : index
    %c0_7 = arith.constant 0 : index
    %8 = vector.load %arg7[%c0_6, %c0_7] : memref<8x128xf32, #tpu.memory_space<vmem>>, vector<8x128xf32>
    tpu.vector_store %arg7[%c0_6, %c0_7], %7 {strides = array<i32>} : memref<8x128xf32, #tpu.memory_space<vmem>>, vector<8x128xf32>,
    %c0_i32_8 = arith.constant 0 : i32
    %9 = arith.cmpi eq, %arg2, %c0_i32_8 : i32
    %10 = arith.extui %9 : i1 to i32
    %c0_i32_9 = arith.constant 0 : i32
    %11 = arith.cmpi ne, %10, %c0_i32_9 : i32
    scf.if %11 {
      %c0_10 = arith.constant 0 : index
      %c0_11 = arith.constant 0 : index
      %12 = vector.load %arg7[%c0_10, %c0_11] : memref<8x128xf32, #tpu.memory_space<vmem>>, vector<8x128xf32>
      %c0_12 = arith.constant 0 : index
      %c0_13 = arith.constant 0 : index
      %13 = vector.load %arg5[%c0_12, %c0_13] : memref<1x128xf32, #tpu.memory_space<vmem>>, vector<1x128xf32>
      %14 = vector.broadcast %13 : vector<1x128xf32> to vector<8x128xf32>
      %15 = arith.addf %12, %14 : vector<8x128xf32>
      %cst_14 = arith.constant 0.000000e+00 : f32
      %16 = vector.broadcast %cst_14 : f32 to vector<8x128xf32>
      %17 = arith.maximumf %15, %16 : vector<8x128xf32>
      %c0_15 = arith.constant 0 : index
      %c0_16 = arith.constant 0 : index
      %18 = vector.load %arg6[%c0_15, %c0_16] : memref<8x128xf32, #tpu.memory_space<vmem>>, vector<8x128xf32>
      tpu.vector_store %arg6[%c0_15, %c0_16], %17 {strides = array<i32>} : memref<8x128xf32, #tpu.memory_space<vmem>>, vector<8x128xf32>,
    } else {
    }
    return
  }
  func.func @transform_0(%arg0: i32, %arg1: i32, %arg2: i32) -> (i32, i32) {
    %c0_i32 = arith.constant 0 : i32
    return %arg0, %arg2 : i32, i32
  }
  func.func @transform_1(%arg0: i32, %arg1: i32, %arg2: i32) -> (i32, i32) {
    %c0_i32 = arith.constant 0 : i32
    return %arg2, %arg1 : i32, i32
  }
  func.func @transform_2(%arg0: i32, %arg1: i32, %arg2: i32) -> (i32, i32) {
    %c0_i32 = arith.constant 0 : i32
    %c0_i32_0 = arith.constant 0 : i32
    return %c0_i32, %arg1 : i32, i32
  }
  func.func @transform_3(%arg0: i32, %arg1: i32, %arg2: i32) -> (i32, i32) {
    %c0_i32 = arith.constant 0 : i32
    return %arg0, %arg1 : i32, i32
  }
}

module attributes {stable_mosaic.version = 11 : i64} {
  func.func @_matmul_kernel(%arg0: i32, %arg1: i32, %arg2: i32, %arg3: memref<8x128xbf16, #tpu.memory_space<vmem>>, %arg4: memref<128x512xbf16, #tpu.memory_space<vmem>>, %arg5: memref<1x512xf32, #tpu.memory_space<vmem>>, %arg6: memref<8x512xf32, #tpu.memory_space<vmem>>, %arg7: memref<8x512xf32, #tpu.memory_space<vmem>>) attributes {dimension_semantics = [#tpu.dimension_semantics<parallel>, #tpu.dimension_semantics<parallel>, #tpu.dimension_semantics<arbitrary>], iteration_bounds = array<i64: 1, 1, 1>, scalar_prefetch = 0 : i64, scratch_operands = 1 : i64, tpu.core_type = #tpu.core_type<tc>, window_params = [{transform_indices = @transform_0, window_bounds = array<i64: 8, 128>}, {transform_indices = @transform_1, window_bounds = array<i64: 128, 512>}, {transform_indices = @transform_2, window_bounds = array<i64: 1, 512>}, {transform_indices = @transform_3, window_bounds = array<i64: 8, 512>}]} {
    %c0_i32 = arith.constant 0 : i32
    %0 = arith.cmpi eq, %arg2, %c0_i32 : i32
    %1 = arith.extui %0 : i1 to i32
    %c0_i32_0 = arith.constant 0 : i32
    %2 = arith.cmpi ne, %1, %c0_i32_0 : i32
    scf.if %2 {
      %cst_10 = arith.constant 0.000000e+00 : f32
      %12 = vector.broadcast %cst_10 : f32 to vector<8x512xf32>
      %c0_11 = arith.constant 0 : index
      %c0_12 = arith.constant 0 : index
      %13 = vector.load %arg7[%c0_11, %c0_12] : memref<8x512xf32, #tpu.memory_space<vmem>>, vector<8x512xf32>
      tpu.vector_store %arg7[%c0_11, %c0_12], %12 {strides = array<i32>} : memref<8x512xf32, #tpu.memory_space<vmem>>, vector<8x512xf32>,
    } else {
    }
    %c0 = arith.constant 0 : index
    %c0_1 = arith.constant 0 : index
    %3 = vector.load %arg7[%c0, %c0_1] : memref<8x512xf32, #tpu.memory_space<vmem>>, vector<8x512xf32>
    %c0_2 = arith.constant 0 : index
    %c0_3 = arith.constant 0 : index
    %4 = vector.load %arg3[%c0_2, %c0_3] : memref<8x128xbf16, #tpu.memory_space<vmem>>, vector<8x128xbf16>
    %c0_4 = arith.constant 0 : index
    %c0_5 = arith.constant 0 : index
    %5 = vector.load %arg4[%c0_4, %c0_5] : memref<128x512xbf16, #tpu.memory_space<vmem>>, vector<128x512xbf16>
    %cst = arith.constant dense<0.000000e+00> : vector<8x512xf32>
    %6 = tpu.matmul %4, %5, %cst {dimension_numbers = #tpu.dot_dimension_numbers<[1], [0], [0], [1], [0, 0, 1, 1], [], []>} : vector<8x128xbf16>, vector<128x512xbf16>, vector<8x512xf32> -> vector<8x512xf32>
    %7 = arith.addf %3, %6 : vector<8x512xf32>
    %c0_6 = arith.constant 0 : index
    %c0_7 = arith.constant 0 : index
    %8 = vector.load %arg7[%c0_6, %c0_7] : memref<8x512xf32, #tpu.memory_space<vmem>>, vector<8x512xf32>
    tpu.vector_store %arg7[%c0_6, %c0_7], %7 {strides = array<i32>} : memref<8x512xf32, #tpu.memory_space<vmem>>, vector<8x512xf32>,
    %c0_i32_8 = arith.constant 0 : i32
    %9 = arith.cmpi eq, %arg2, %c0_i32_8 : i32
    %10 = arith.extui %9 : i1 to i32
    %c0_i32_9 = arith.constant 0 : i32
    %11 = arith.cmpi ne, %10, %c0_i32_9 : i32
    scf.if %11 {
      %c0_10 = arith.constant 0 : index
      %c0_11 = arith.constant 0 : index
      %12 = vector.load %arg7[%c0_10, %c0_11] : memref<8x512xf32, #tpu.memory_space<vmem>>, vector<8x512xf32>
      %c0_12 = arith.constant 0 : index
      %c0_13 = arith.constant 0 : index
      %13 = vector.load %arg5[%c0_12, %c0_13] : memref<1x512xf32, #tpu.memory_space<vmem>>, vector<1x512xf32>
      %14 = vector.broadcast %13 : vector<1x512xf32> to vector<8x512xf32>
      %15 = arith.addf %12, %14 : vector<8x512xf32>
      %cst_14 = arith.constant 0.000000e+00 : f32
      %16 = vector.broadcast %cst_14 : f32 to vector<8x512xf32>
      %17 = arith.maximumf %15, %16 : vector<8x512xf32>
      %c0_15 = arith.constant 0 : index
      %c0_16 = arith.constant 0 : index
      %18 = vector.load %arg6[%c0_15, %c0_16] : memref<8x512xf32, #tpu.memory_space<vmem>>, vector<8x512xf32>
      tpu.vector_store %arg6[%c0_15, %c0_16], %17 {strides = array<i32>} : memref<8x512xf32, #tpu.memory_space<vmem>>, vector<8x512xf32>,
    } else {
    }
    return
  }
  func.func @transform_0(%arg0: i32, %arg1: i32, %arg2: i32) -> (i32, i32) {
    %c0_i32 = arith.constant 0 : i32
    return %arg0, %arg2 : i32, i32
  }
  func.func @transform_1(%arg0: i32, %arg1: i32, %arg2: i32) -> (i32, i32) {
    %c0_i32 = arith.constant 0 : i32
    return %arg2, %arg1 : i32, i32
  }
  func.func @transform_2(%arg0: i32, %arg1: i32, %arg2: i32) -> (i32, i32) {
    %c0_i32 = arith.constant 0 : i32
    %c0_i32_0 = arith.constant 0 : i32
    return %c0_i32, %arg1 : i32, i32
  }
  func.func @transform_3(%arg0: i32, %arg1: i32, %arg2: i32) -> (i32, i32) {
    %c0_i32 = arith.constant 0 : i32
    return %arg0, %arg1 : i32, i32
  }
}

module attributes {stable_mosaic.version = 11 : i64} {
  func.func @_matmul_kernel(%arg0: i32, %arg1: i32, %arg2: i32, %arg3: memref<8x512xbf16, #tpu.memory_space<vmem>>, %arg4: memref<512x128xbf16, #tpu.memory_space<vmem>>, %arg5: memref<1x128xf32, #tpu.memory_space<vmem>>, %arg6: memref<8x128xf32, #tpu.memory_space<vmem>>, %arg7: memref<8x128xf32, #tpu.memory_space<vmem>>) attributes {dimension_semantics = [#tpu.dimension_semantics<parallel>, #tpu.dimension_semantics<parallel>, #tpu.dimension_semantics<arbitrary>], iteration_bounds = array<i64: 1, 1, 1>, scalar_prefetch = 0 : i64, scratch_operands = 1 : i64, tpu.core_type = #tpu.core_type<tc>, window_params = [{transform_indices = @transform_0, window_bounds = array<i64: 8, 512>}, {transform_indices = @transform_1, window_bounds = array<i64: 512, 128>}, {transform_indices = @transform_2, window_bounds = array<i64: 1, 128>}, {transform_indices = @transform_3, window_bounds = array<i64: 8, 128>}]} {
    %c0_i32 = arith.constant 0 : i32
    %0 = arith.cmpi eq, %arg2, %c0_i32 : i32
    %1 = arith.extui %0 : i1 to i32
    %c0_i32_0 = arith.constant 0 : i32
    %2 = arith.cmpi ne, %1, %c0_i32_0 : i32
    scf.if %2 {
      %cst_10 = arith.constant 0.000000e+00 : f32
      %12 = vector.broadcast %cst_10 : f32 to vector<8x128xf32>
      %c0_11 = arith.constant 0 : index
      %c0_12 = arith.constant 0 : index
      %13 = vector.load %arg7[%c0_11, %c0_12] : memref<8x128xf32, #tpu.memory_space<vmem>>, vector<8x128xf32>
      tpu.vector_store %arg7[%c0_11, %c0_12], %12 {strides = array<i32>} : memref<8x128xf32, #tpu.memory_space<vmem>>, vector<8x128xf32>,
    } else {
    }
    %c0 = arith.constant 0 : index
    %c0_1 = arith.constant 0 : index
    %3 = vector.load %arg7[%c0, %c0_1] : memref<8x128xf32, #tpu.memory_space<vmem>>, vector<8x128xf32>
    %c0_2 = arith.constant 0 : index
    %c0_3 = arith.constant 0 : index
    %4 = vector.load %arg3[%c0_2, %c0_3] : memref<8x512xbf16, #tpu.memory_space<vmem>>, vector<8x512xbf16>
    %c0_4 = arith.constant 0 : index
    %c0_5 = arith.constant 0 : index
    %5 = vector.load %arg4[%c0_4, %c0_5] : memref<512x128xbf16, #tpu.memory_space<vmem>>, vector<512x128xbf16>
    %cst = arith.constant dense<0.000000e+00> : vector<8x128xf32>
    %6 = tpu.matmul %4, %5, %cst {dimension_numbers = #tpu.dot_dimension_numbers<[1], [0], [0], [1], [0, 0, 1, 1], [], []>} : vector<8x512xbf16>, vector<512x128xbf16>, vector<8x128xf32> -> vector<8x128xf32>
    %7 = arith.addf %3, %6 : vector<8x128xf32>
    %c0_6 = arith.constant 0 : index
    %c0_7 = arith.constant 0 : index
    %8 = vector.load %arg7[%c0_6, %c0_7] : memref<8x128xf32, #tpu.memory_space<vmem>>, vector<8x128xf32>
    tpu.vector_store %arg7[%c0_6, %c0_7], %7 {strides = array<i32>} : memref<8x128xf32, #tpu.memory_space<vmem>>, vector<8x128xf32>,
    %c0_i32_8 = arith.constant 0 : i32
    %9 = arith.cmpi eq, %arg2, %c0_i32_8 : i32
    %10 = arith.extui %9 : i1 to i32
    %c0_i32_9 = arith.constant 0 : i32
    %11 = arith.cmpi ne, %10, %c0_i32_9 : i32
    scf.if %11 {
      %c0_10 = arith.constant 0 : index
      %c0_11 = arith.constant 0 : index
      %12 = vector.load %arg7[%c0_10, %c0_11] : memref<8x128xf32, #tpu.memory_space<vmem>>, vector<8x128xf32>
      %c0_12 = arith.constant 0 : index
      %c0_13 = arith.constant 0 : index
      %13 = vector.load %arg5[%c0_12, %c0_13] : memref<1x128xf32, #tpu.memory_space<vmem>>, vector<1x128xf32>
      %14 = vector.broadcast %13 : vector<1x128xf32> to vector<8x128xf32>
      %15 = arith.addf %12, %14 : vector<8x128xf32>
      %c0_14 = arith.constant 0 : index
      %c0_15 = arith.constant 0 : index
      %16 = vector.load %arg6[%c0_14, %c0_15] : memref<8x128xf32, #tpu.memory_space<vmem>>, vector<8x128xf32>
      tpu.vector_store %arg6[%c0_14, %c0_15], %15 {strides = array<i32>} : memref<8x128xf32, #tpu.memory_space<vmem>>, vector<8x128xf32>,
    } else {
    }
    return
  }
  func.func @transform_0(%arg0: i32, %arg1: i32, %arg2: i32) -> (i32, i32) {
    %c0_i32 = arith.constant 0 : i32
    return %arg0, %arg2 : i32, i32
  }
  func.func @transform_1(%arg0: i32, %arg1: i32, %arg2: i32) -> (i32, i32) {
    %c0_i32 = arith.constant 0 : i32
    return %arg2, %arg1 : i32, i32
  }
  func.func @transform_2(%arg0: i32, %arg1: i32, %arg2: i32) -> (i32, i32) {
    %c0_i32 = arith.constant 0 : i32
    %c0_i32_0 = arith.constant 0 : i32
    return %c0_i32, %arg1 : i32, i32
  }
  func.func @transform_3(%arg0: i32, %arg1: i32, %arg2: i32) -> (i32, i32) {
    %c0_i32 = arith.constant 0 : i32
    return %arg0, %arg1 : i32, i32
  }
}

</mosaic_0001>

<bundles_post_ra>
// kernel: _forward.45
= control target key start
LH: loop header
LB: loop body
LE: loop exit
PB: predicated region body
PF: predicated region fallthrough
CT: control target
= control target key end

     0   :  { %s1502_s0 = inlined_call_operand.vmem [shape: bf16[512,128], index: 0, kind: input, shape index: {}]   ;;  %s1503_s1 = inlined_call_operand.vmem [shape: f32[1,128], index: 1, kind: input, shape index: {}]   ;;  %s1504_s2 = inlined_call_operand.vmem [shape: f32[1,128], index: 2, kind: input, shape index: {}]   ;;  %s1505_s3 = inlined_call_operand.vmem [shape: bf16[512,128], index: 3, kind: output, shape index: {}]  }
   0x1   :  { %v803_v0 = vld [vmem:[%s1502_s0] sm:$0xff]   ;;  %v1090_v4 = vld [vmem:[%s1502_s0 + $0x8] sm:$0xff]   ;;  %v1091_v5 = vld [vmem:[%s1502_s0 + $0x10] sm:$0xff]  }
   0x2   :  { %v1178_v1 = vld [vmem:[%s1503_s1] ss:$0 sm:$0xff]  ;;  %v804_v2 = vunpack.c.l.bf16 %v803_v0  ;;  %v805_v3 = vunpack.c.h.bf16 %v803_v0  ;;  %v1092_v6 = vld [vmem:[%s1502_s0 + $0x18] sm:$0xff]   ;;  %v808_v8 = vunpack.c.l.bf16 %v1090_v4  ;;  %v809_v9 = vunpack.c.h.bf16 %v1090_v4  ;;  %v1094_v33 = vld [vmem:[%s1502_s0 + $0x28] sm:$0xff]  }
   0x3   :  { %v1192_v7 = vld [vmem:[%s1504_s2] ss:$0 sm:$0xff]  ;;  %v812_v10 = vunpack.c.l.bf16 %v1091_v5  ;;  %v813_v11 = vunpack.c.h.bf16 %v1091_v5  ;;  %v816_v14 = vunpack.c.l.bf16 %v1092_v6  ;;  %v817_v15 = vunpack.c.h.bf16 %v1092_v6  ;;  %v1095_v38 = vld [vmem:[%s1502_s0 + $0x30] sm:$0xff]   ;;  %v1096_v43 = vld [vmem:[%s1502_s0 + $0x38] sm:$0xff]  }
   0x4   :  { %v149_v12 = vmul.f32 %v804_v2, %v1178_v1  ;;  %v150_v13 = vmul.f32 %v805_v3, %v1178_v1  ;;  %v151_v16 = vmul.f32 %v808_v8, %v1178_v1  ;;  %v152_v17 = vmul.f32 %v809_v9, %v1178_v1  ;;  %v1093_v28 = vld [vmem:[%s1502_s0 + $0x20] sm:$0xff]  }
   0x5   :  { %v153_v18 = vmul.f32 %v812_v10, %v1178_v1  ;;  %v154_v19 = vmul.f32 %v813_v11, %v1178_v1  ;;  %v155_v22 = vmul.f32 %v816_v14, %v1178_v1  ;;  %v156_v23 = vmul.f32 %v817_v15, %v1178_v1  ;;  %v1097_v0 = vld [vmem:[%s1502_s0 + $0x40] sm:$0xff]   ;;  %v1098_v11 = vld [vmem:[%s1502_s0 + $0x48] sm:$0xff]  }
   0x6   :  { %v220_v20 = vadd.f32 %v1192_v7, %v149_v12  ;;  %v221_v21 = vadd.f32 %v1192_v7, %v150_v13  ;;  %v222_v24 = vadd.f32 %v1192_v7, %v151_v16  ;;  %v223_v25 = vadd.f32 %v1192_v7, %v152_v17  ;;  %v1099_v16 = vld [vmem:[%s1502_s0 + $0x50] sm:$0xff]  }
   0x7   :  { %v224_v26 = vadd.f32 %v1192_v7, %v153_v18  ;;  %v225_v27 = vadd.f32 %v1192_v7, %v154_v19  ;;  %v226_v31 = vadd.f32 %v1192_v7, %v155_v22  ;;  %v227_v32 = vadd.f32 %v1192_v7, %v156_v23 }
   0x8   :  { %v284_v29 = vmax.f32 %v220_v20, 0.0  ;;  %v285_v30 = vmax.f32 %v221_v21, 0.0  ;;  %v286_v34 = vmax.f32 %v222_v24, 0.0  ;;  %v287_v35 = vmax.f32 %v223_v25, 0.0  ;;  %v1100_v25 = vld [vmem:[%s1502_s0 + $0x58] sm:$0xff]  }
   0x9   :  { %v288_v36 = vmax.f32 %v224_v26, 0.0  ;;  %v289_v37 = vmax.f32 %v225_v27, 0.0  ;;  %v290_v40 = vmax.f32 %v226_v31, 0.0  ;;  %v291_v41 = vmax.f32 %v227_v32, 0.0 }
   0xa   :  { %v933_v39 = vpack.c.bf16 %v285_v30, %v284_v29  ;;  %v820_v42 = vunpack.c.l.bf16 %v1093_v28  ;;  %v938_v44 = vpack.c.bf16 %v287_v35, %v286_v34  ;;  %v821_v46 = vunpack.c.h.bf16 %v1093_v28 }
   0xb   :  { %v943_v45 = vpack.c.bf16 %v289_v37, %v288_v36  ;;  %v824_v47 = vunpack.c.l.bf16 %v1094_v33  ;;  %v948_v48 = vpack.c.bf16 %v291_v41, %v290_v40  ;;  %v825_v50 = vunpack.c.h.bf16 %v1094_v33 }
   0xc   :  { %934 = vst [vmem:[%s1505_s3] sm:$0xff] %v933_v39   ;;  %v157_v49 = vmul.f32 %v820_v42, %v1178_v1  ;;  %v828_v51 = vunpack.c.l.bf16 %v1095_v38  ;;  %1121 = vst [vmem:[%s1505_s3 + $0x8] sm:$0xff] %v938_v44   ;;  %v158_v52 = vmul.f32 %v821_v46, %v1178_v1  ;;  %v829_v54 = vunpack.c.h.bf16 %v1095_v38  ;;  %v1101_v38 = vld [vmem:[%s1502_s0 + $0x60] sm:$0xff]  }
   0xd   :  { %1122 = vst [vmem:[%s1505_s3 + $0x10] sm:$0xff] %v943_v45   ;;  %v159_v53 = vmul.f32 %v824_v47, %v1178_v1  ;;  %v832_v55 = vunpack.c.l.bf16 %v1096_v43  ;;  %1123 = vst [vmem:[%s1505_s3 + $0x18] sm:$0xff] %v948_v48   ;;  %v160_v57 = vmul.f32 %v825_v50, %v1178_v1  ;;  %v833_v59 = vunpack.c.h.bf16 %v1096_v43 }
   0xe   :  { %v228_v56 = vadd.f32 %v1192_v7, %v157_v49  ;;  %v161_v58 = vmul.f32 %v828_v51, %v1178_v1  ;;  %v229_v60 = vadd.f32 %v1192_v7, %v158_v52  ;;  %v162_v62 = vmul.f32 %v829_v54, %v1178_v1  ;;  %v1102_v51 = vld [vmem:[%s1502_s0 + $0x68] sm:$0xff]  }
   0xf   :  { %v230_v61 = vadd.f32 %v1192_v7, %v159_v53  ;;  %v163_v63 = vmul.f32 %v832_v55, %v1178_v1  ;;  %v231_v3 = vadd.f32 %v1192_v7, %v160_v57  ;;  %v164_v5 = vmul.f32 %v833_v59, %v1178_v1 }
  0x10   :  { %v292_v2 = vmax.f32 %v228_v56, 0.0  ;;  %v232_v4 = vadd.f32 %v1192_v7, %v161_v58  ;;  %v293_v6 = vmax.f32 %v229_v60, 0.0  ;;  %v233_v9 = vadd.f32 %v1192_v7, %v162_v62  ;;  %v1103_v60 = vld [vmem:[%s1502_s0 + $0x70] sm:$0xff]  }
  0x11   :  { %v294_v8 = vmax.f32 %v230_v61, 0.0  ;;  %v234_v10 = vadd.f32 %v1192_v7, %v163_v63  ;;  %v295_v12 = vmax.f32 %v231_v3, 0.0  ;;  %v235_v14 = vadd.f32 %v1192_v7, %v164_v5 }
  0x12   :  { %v296_v13 = vmax.f32 %v232_v4, 0.0  ;;  %v836_v15 = vunpack.c.l.bf16 %v1097_v0  ;;  %v953_v17 = vpack.c.bf16 %v293_v6, %v292_v2  ;;  %v297_v18 = vmax.f32 %v233_v9, 0.0  ;;  %v1104_v2 = vld [vmem:[%s1502_s0 + $0x78] sm:$0xff]  }
  0x13   :  { %v298_v19 = vmax.f32 %v234_v10, 0.0  ;;  %v837_v20 = vunpack.c.h.bf16 %v1097_v0  ;;  %v958_v21 = vpack.c.bf16 %v295_v12, %v294_v8  ;;  %v299_v22 = vmax.f32 %v235_v14, 0.0  ;;  %v1105_v12 = vld [vmem:[%s1502_s0 + $0x80] sm:$0xff]  }
  0x14   :  { %v165_v23 = vmul.f32 %v836_v15, %v1178_v1  ;;  %v840_v24 = vunpack.c.l.bf16 %v1098_v11  ;;  %1124 = vst [vmem:[%s1505_s3 + $0x20] sm:$0xff] %v953_v17   ;;  %v963_v26 = vpack.c.bf16 %v297_v18, %v296_v13  ;;  %v841_v28 = vunpack.c.h.bf16 %v1098_v11 }
  0x15   :  { %v166_v27 = vmul.f32 %v837_v20, %v1178_v1  ;;  %v844_v29 = vunpack.c.l.bf16 %v1099_v16  ;;  %1125 = vst [vmem:[%s1505_s3 + $0x28] sm:$0xff] %v958_v21   ;;  %v968_v30 = vpack.c.bf16 %v299_v22, %v298_v19  ;;  %v845_v33 = vunpack.c.h.bf16 %v1099_v16 }
  0x16   :  { %v236_v31 = vadd.f32 %v1192_v7, %v165_v23  ;;  %v167_v32 = vmul.f32 %v840_v24, %v1178_v1  ;;  %1126 = vst [vmem:[%s1505_s3 + $0x30] sm:$0xff] %v963_v26   ;;  %v168_v35 = vmul.f32 %v841_v28, %v1178_v1  ;;  %v848_v37 = vunpack.c.l.bf16 %v1100_v25 }
  0x17   :  { %v237_v34 = vadd.f32 %v1192_v7, %v166_v27  ;;  %v169_v36 = vmul.f32 %v844_v29, %v1178_v1  ;;  %1127 = vst [vmem:[%s1505_s3 + $0x38] sm:$0xff] %v968_v30   ;;  %v170_v41 = vmul.f32 %v845_v33, %v1178_v1  ;;  %v849_v42 = vunpack.c.h.bf16 %v1100_v25  ;;  %v1106_v29 = vld [vmem:[%s1502_s0 + $0x88] sm:$0xff]  }
  0x18   :  { %v300_v39 = vmax.f32 %v236_v31, 0.0  ;;  %v238_v40 = vadd.f32 %v1192_v7, %v167_v32  ;;  %v239_v44 = vadd.f32 %v1192_v7, %v168_v35  ;;  %v171_v46 = vmul.f32 %v848_v37, %v1178_v1 }
  0x19   :  { %v301_v43 = vmax.f32 %v237_v34, 0.0  ;;  %v240_v45 = vadd.f32 %v1192_v7, %v169_v36  ;;  %v241_v48 = vadd.f32 %v1192_v7, %v170_v41  ;;  %v172_v49 = vmul.f32 %v849_v42, %v1178_v1  ;;  %v1107_v34 = vld [vmem:[%s1502_s0 + $0x90] sm:$0xff]  }
  0x1a   :  { %v302_v47 = vmax.f32 %v238_v40, 0.0  ;;  %v852_v50 = vunpack.c.l.bf16 %v1101_v38  ;;  %v303_v53 = vmax.f32 %v239_v44, 0.0  ;;  %v242_v55 = vadd.f32 %v1192_v7, %v171_v46 }
  0x1b   :  { %v973_v52 = vpack.c.bf16 %v301_v43, %v300_v39  ;;  %v304_v54 = vmax.f32 %v240_v45, 0.0  ;;  %v305_v56 = vmax.f32 %v241_v48, 0.0  ;;  %v243_v57 = vadd.f32 %v1192_v7, %v172_v49  ;;  %v1108_v43 = vld [vmem:[%s1502_s0 + $0x98] sm:$0xff]  }
  0x1c   :  { %v853_v58 = vunpack.c.h.bf16 %v1101_v38  ;;  %v173_v59 = vmul.f32 %v852_v50, %v1178_v1  ;;  %v978_v61 = vpack.c.bf16 %v303_v53, %v302_v47  ;;  %v306_v62 = vmax.f32 %v242_v55, 0.0 }
  0x1d   :  { %1128 = vst [vmem:[%s1505_s3 + $0x40] sm:$0xff] %v973_v52   ;;  %v856_v63 = vunpack.c.l.bf16 %v1102_v51  ;;  %v857_v0 = vunpack.c.h.bf16 %v1102_v51  ;;  %v983_v3 = vpack.c.bf16 %v305_v56, %v304_v54  ;;  %v307_v4 = vmax.f32 %v243_v57, 0.0  ;;  %v1109_v56 = vld [vmem:[%s1502_s0 + $0xa0] sm:$0xff]  }
  0x1e   :  { %v174_v5 = vmul.f32 %v853_v58, %v1178_v1  ;;  %v244_v6 = vadd.f32 %v1192_v7, %v173_v59  ;;  %1129 = vst [vmem:[%s1505_s3 + $0x48] sm:$0xff] %v978_v61   ;;  %v860_v10 = vunpack.c.l.bf16 %v1103_v60  ;;  %v861_v11 = vunpack.c.h.bf16 %v1103_v60 }
  0x1f   :  { %v175_v8 = vmul.f32 %v856_v63, %v1178_v1  ;;  %v176_v9 = vmul.f32 %v857_v0, %v1178_v1  ;;  %1130 = vst [vmem:[%s1505_s3 + $0x50] sm:$0xff] %v983_v3   ;;  %v988_v13 = vpack.c.bf16 %v307_v4, %v306_v62  ;;  %v864_v16 = vunpack.c.l.bf16 %v1104_v2 }
  0x20   :  { %v245_v14 = vadd.f32 %v1192_v7, %v174_v5  ;;  %v308_v15 = vmax.f32 %v244_v6, 0.0  ;;  %v177_v19 = vmul.f32 %v860_v10, %v1178_v1  ;;  %v178_v20 = vmul.f32 %v861_v11, %v1178_v1 }
  0x21   :  { %v246_v17 = vadd.f32 %v1192_v7, %v175_v8  ;;  %v247_v18 = vadd.f32 %v1192_v7, %v176_v9  ;;  %1131 = vst [vmem:[%s1505_s3 + $0x58] sm:$0xff] %v988_v13   ;;  %v865_v22 = vunpack.c.h.bf16 %v1104_v2  ;;  %v179_v23 = vmul.f32 %v864_v16, %v1178_v1  ;;  %v1110_v2 = vld [vmem:[%s1502_s0 + $0xa8] sm:$0xff]   ;;  %v1111_v16 = vld [vmem:[%s1502_s0 + $0xb0] sm:$0xff]  }
  0x22   :  { %v309_v21 = vmax.f32 %v245_v14, 0.0  ;;  %v868_v24 = vunpack.c.l.bf16 %v1105_v12  ;;  %v248_v27 = vadd.f32 %v1192_v7, %v177_v19  ;;  %v249_v28 = vadd.f32 %v1192_v7, %v178_v20 }
  0x23   :  { %v310_v25 = vmax.f32 %v246_v17, 0.0  ;;  %v311_v26 = vmax.f32 %v247_v18, 0.0  ;;  %v180_v31 = vmul.f32 %v865_v22, %v1178_v1  ;;  %v250_v32 = vadd.f32 %v1192_v7, %v179_v23 }
  0x24   :  { %v993_v30 = vpack.c.bf16 %v309_v21, %v308_v15  ;;  %v869_v33 = vunpack.c.h.bf16 %v1105_v12  ;;  %v312_v36 = vmax.f32 %v248_v27, 0.0  ;;  %v313_v37 = vmax.f32 %v249_v28, 0.0  ;;  %v1112_v21 = vld [vmem:[%s1502_s0 + $0xb8] sm:$0xff]  }
  0x25   :  { %v998_v35 = vpack.c.bf16 %v311_v26, %v310_v25  ;;  %v181_v38 = vmul.f32 %v868_v24, %v1178_v1  ;;  %v251_v39 = vadd.f32 %v1192_v7, %v180_v31  ;;  %v314_v40 = vmax.f32 %v250_v32, 0.0 }
  0x26   :  { %1132 = vst [vmem:[%s1505_s3 + $0x60] sm:$0xff] %v993_v30   ;;  %v182_v41 = vmul.f32 %v869_v33, %v1178_v1  ;;  %v872_v42 = vunpack.c.l.bf16 %v1106_v29  ;;  %v1003_v44 = vpack.c.bf16 %v313_v37, %v312_v36  ;;  %v873_v46 = vunpack.c.h.bf16 %v1106_v29 }
  0x27   :  { %1133 = vst [vmem:[%s1505_s3 + $0x68] sm:$0xff] %v998_v35   ;;  %v252_v45 = vadd.f32 %v1192_v7, %v181_v38  ;;  %v876_v47 = vunpack.c.l.bf16 %v1107_v34  ;;  %v315_v48 = vmax.f32 %v251_v39, 0.0  ;;  %v877_v51 = vunpack.c.h.bf16 %v1107_v34  ;;  %v1113_v34 = vld [vmem:[%s1502_s0 + $0xc0] sm:$0xff]  }
  0x28   :  { %v253_v49 = vadd.f32 %v1192_v7, %v182_v41  ;;  %v183_v50 = vmul.f32 %v872_v42, %v1178_v1  ;;  %1134 = vst [vmem:[%s1505_s3 + $0x70] sm:$0xff] %v1003_v44   ;;  %v184_v53 = vmul.f32 %v873_v46, %v1178_v1  ;;  %v880_v55 = vunpack.c.l.bf16 %v1108_v43 }
  0x29   :  { %v316_v52 = vmax.f32 %v252_v45, 0.0  ;;  %v185_v54 = vmul.f32 %v876_v47, %v1178_v1  ;;  %v1008_v57 = vpack.c.bf16 %v315_v48, %v314_v40  ;;  %v186_v60 = vmul.f32 %v877_v51, %v1178_v1  ;;  %v1114_v47 = vld [vmem:[%s1502_s0 + $0xc8] sm:$0xff]  }
  0x2a   :  { %v317_v58 = vmax.f32 %v253_v49, 0.0  ;;  %v254_v59 = vadd.f32 %v1192_v7, %v183_v50  ;;  %v255_v61 = vadd.f32 %v1192_v7, %v184_v53  ;;  %v881_v63 = vunpack.c.h.bf16 %v1108_v43 }
  0x2b   :  { %v256_v62 = vadd.f32 %v1192_v7, %v185_v54  ;;  %v187_v0 = vmul.f32 %v880_v55, %v1178_v1  ;;  %1135 = vst [vmem:[%s1505_s3 + $0x78] sm:$0xff] %v1008_v57   ;;  %v257_v5 = vadd.f32 %v1192_v7, %v186_v60  ;;  %v884_v6 = vunpack.c.l.bf16 %v1109_v56 }
  0x2c   :  { %v1013_v3 = vpack.c.bf16 %v317_v58, %v316_v52  ;;  %v318_v4 = vmax.f32 %v254_v59, 0.0  ;;  %v319_v8 = vmax.f32 %v255_v61, 0.0  ;;  %v188_v10 = vmul.f32 %v881_v63, %v1178_v1  ;;  %v1115_v52 = vld [vmem:[%s1502_s0 + $0xd0] sm:$0xff]   ;;  %v1116_v61 = vld [vmem:[%s1502_s0 + $0xd8] sm:$0xff]  }
  0x2d   :  { %v320_v9 = vmax.f32 %v256_v62, 0.0  ;;  %v258_v11 = vadd.f32 %v1192_v7, %v187_v0  ;;  %v321_v12 = vmax.f32 %v257_v5, 0.0  ;;  %v885_v13 = vunpack.c.h.bf16 %v1109_v56 }
  0x2e   :  { %1136 = vst [vmem:[%s1505_s3 + $0x80] sm:$0xff] %v1013_v3   ;;  %v189_v14 = vmul.f32 %v884_v6, %v1178_v1  ;;  %v888_v15 = vunpack.c.l.bf16 %v1110_v2  ;;  %v1018_v17 = vpack.c.bf16 %v319_v8, %v318_v4  ;;  %v259_v18 = vadd.f32 %v1192_v7, %v188_v10 }
  0x2f   :  { %v322_v19 = vmax.f32 %v258_v11, 0.0  ;;  %v889_v20 = vunpack.c.h.bf16 %v1110_v2  ;;  %v1023_v22 = vpack.c.bf16 %v321_v12, %v320_v9  ;;  %v190_v23 = vmul.f32 %v885_v13, %v1178_v1  ;;  %v1117_v12 = vld [vmem:[%s1502_s0 + $0xe0] sm:$0xff]  }
  0x30   :  { %v260_v24 = vadd.f32 %v1192_v7, %v189_v14  ;;  %v191_v25 = vmul.f32 %v888_v15, %v1178_v1  ;;  %1137 = vst [vmem:[%s1505_s3 + $0x88] sm:$0xff] %v1018_v17   ;;  %v323_v26 = vmax.f32 %v259_v18, 0.0  ;;  %v892_v28 = vunpack.c.l.bf16 %v1111_v16 }
  0x31   :  { %v192_v27 = vmul.f32 %v889_v20, %v1178_v1  ;;  %v893_v29 = vunpack.c.h.bf16 %v1111_v16  ;;  %1138 = vst [vmem:[%s1505_s3 + $0x90] sm:$0xff] %v1023_v22   ;;  %v261_v30 = vadd.f32 %v1192_v7, %v190_v23  ;;  %v896_v33 = vunpack.c.l.bf16 %v1112_v21 }
  0x32   :  { %v324_v31 = vmax.f32 %v260_v24, 0.0  ;;  %v262_v32 = vadd.f32 %v1192_v7, %v191_v25  ;;  %v1028_v35 = vpack.c.bf16 %v323_v26, %v322_v19  ;;  %v193_v37 = vmul.f32 %v892_v28, %v1178_v1 }
  0x33   :  { %v263_v36 = vadd.f32 %v1192_v7, %v192_v27  ;;  %v194_v38 = vmul.f32 %v893_v29, %v1178_v1  ;;  %v325_v39 = vmax.f32 %v261_v30, 0.0  ;;  %v897_v41 = vunpack.c.h.bf16 %v1112_v21  ;;  %v1118_v21 = vld [vmem:[%s1502_s0 + $0xe8] sm:$0xff]  }
  0x34   :  { %v326_v40 = vmax.f32 %v262_v32, 0.0  ;;  %v195_v42 = vmul.f32 %v896_v33, %v1178_v1  ;;  %1139 = vst [vmem:[%s1505_s3 + $0x98] sm:$0xff] %v1028_v35   ;;  %v264_v44 = vadd.f32 %v1192_v7, %v193_v37  ;;  %v900_v46 = vunpack.c.l.bf16 %v1113_v34 }
  0x35   :  { %v327_v43 = vmax.f32 %v263_v36, 0.0  ;;  %v265_v45 = vadd.f32 %v1192_v7, %v194_v38  ;;  %v1033_v48 = vpack.c.bf16 %v325_v39, %v324_v31  ;;  %v196_v49 = vmul.f32 %v897_v41, %v1178_v1  ;;  %v1120_v39 = vld [vmem:[%s1502_s0 + $0xf8] sm:$0xff]  }
  0x36   :  { %v266_v50 = vadd.f32 %v1192_v7, %v195_v42  ;;  %v901_v51 = vunpack.c.h.bf16 %v1113_v34  ;;  %v328_v54 = vmax.f32 %v264_v44, 0.0  ;;  %v197_v56 = vmul.f32 %v900_v46, %v1178_v1  ;;  %v1119_v34 = vld [vmem:[%s1502_s0 + $0xf0] sm:$0xff]  }
  0x37   :  { %v1038_v53 = vpack.c.bf16 %v327_v43, %v326_v40  ;;  %v329_v55 = vmax.f32 %v265_v45, 0.0  ;;  %1140 = vst [vmem:[%s1505_s3 + $0xa0] sm:$0xff] %v1033_v48   ;;  %v267_v57 = vadd.f32 %v1192_v7, %v196_v49  ;;  %v904_v60 = vunpack.c.l.bf16 %v1114_v47 }
  0x38   :  { %v330_v58 = vmax.f32 %v266_v50, 0.0  ;;  %v198_v59 = vmul.f32 %v901_v51, %v1178_v1  ;;  %v268_v63 = vadd.f32 %v1192_v7, %v197_v56  ;;  %v905_v0 = vunpack.c.h.bf16 %v1114_v47 }
  0x39   :  { %1141 = vst [vmem:[%s1505_s3 + $0xa8] sm:$0xff] %v1038_v53   ;;  %v1043_v62 = vpack.c.bf16 %v329_v55, %v328_v54  ;;  %v908_v2 = vunpack.c.l.bf16 %v1115_v52  ;;  %v331_v3 = vmax.f32 %v267_v57, 0.0  ;;  %v199_v5 = vmul.f32 %v904_v60, %v1178_v1 }
  0x3a   :  { %v269_v4 = vadd.f32 %v1192_v7, %v198_v59  ;;  %v909_v6 = vunpack.c.h.bf16 %v1115_v52  ;;  %v332_v8 = vmax.f32 %v268_v63, 0.0  ;;  %v200_v9 = vmul.f32 %v905_v0, %v1178_v1 }
  0x3b   :  { %1142 = vst [vmem:[%s1505_s3 + $0xb0] sm:$0xff] %v1043_v62   ;;  %v201_v10 = vmul.f32 %v908_v2, %v1178_v1  ;;  %v912_v11 = vunpack.c.l.bf16 %v1116_v61  ;;  %v1048_v13 = vpack.c.bf16 %v331_v3, %v330_v58  ;;  %v270_v15 = vadd.f32 %v1192_v7, %v199_v5 }
  0x3c   :  { %v333_v14 = vmax.f32 %v269_v4, 0.0  ;;  %v202_v16 = vmul.f32 %v909_v6, %v1178_v1  ;;  %v271_v17 = vadd.f32 %v1192_v7, %v200_v9  ;;  %v913_v19 = vunpack.c.h.bf16 %v1116_v61 }
  0x3d   :  { %v272_v18 = vadd.f32 %v1192_v7, %v201_v10  ;;  %v203_v20 = vmul.f32 %v912_v11, %v1178_v1  ;;  %1143 = vst [vmem:[%s1505_s3 + $0xb8] sm:$0xff] %v1048_v13   ;;  %v334_v23 = vmax.f32 %v270_v15, 0.0  ;;  %v916_v25 = vunpack.c.l.bf16 %v1117_v12 }
  0x3e   :  { %v1053_v22 = vpack.c.bf16 %v333_v14, %v332_v8  ;;  %v273_v24 = vadd.f32 %v1192_v7, %v202_v16  ;;  %v335_v26 = vmax.f32 %v271_v17, 0.0  ;;  %v204_v28 = vmul.f32 %v913_v19, %v1178_v1 }
  0x3f   :  { %v336_v27 = vmax.f32 %v272_v18, 0.0  ;;  %v274_v29 = vadd.f32 %v1192_v7, %v203_v20  ;;  %v917_v31 = vunpack.c.h.bf16 %v1117_v12  ;;  %v205_v32 = vmul.f32 %v916_v25, %v1178_v1 }
  0x40   :  { %1144 = vst [vmem:[%s1505_s3 + $0xc0] sm:$0xff] %v1053_v22   ;;  %v337_v30 = vmax.f32 %v273_v24, 0.0  ;;  %v920_v33 = vunpack.c.l.bf16 %v1118_v21  ;;  %v1058_v35 = vpack.c.bf16 %v335_v26, %v334_v23  ;;  %v275_v36 = vadd.f32 %v1192_v7, %v204_v28 }
  0x41   :  { %v338_v37 = vmax.f32 %v274_v29, 0.0  ;;  %v921_v38 = vunpack.c.h.bf16 %v1118_v21  ;;  %v206_v41 = vmul.f32 %v917_v31, %v1178_v1  ;;  %v276_v42 = vadd.f32 %v1192_v7, %v205_v32 }
  0x42   :  { %v1063_v40 = vpack.c.bf16 %v337_v30, %v336_v27  ;;  %v207_v43 = vmul.f32 %v920_v33, %v1178_v1  ;;  %1145 = vst [vmem:[%s1505_s3 + $0xc8] sm:$0xff] %v1058_v35   ;;  %v339_v44 = vmax.f32 %v275_v36, 0.0  ;;  %v924_v46 = vunpack.c.l.bf16 %v1119_v34 }
  0x43   :  { %v208_v45 = vmul.f32 %v921_v38, %v1178_v1  ;;  %v925_v47 = vunpack.c.h.bf16 %v1119_v34  ;;  %v277_v48 = vadd.f32 %v1192_v7, %v206_v41  ;;  %v340_v49 = vmax.f32 %v276_v42, 0.0 }
  0x44   :  { %1146 = vst [vmem:[%s1505_s3 + $0xd0] sm:$0xff] %v1063_v40   ;;  %v278_v50 = vadd.f32 %v1192_v7, %v207_v43  ;;  %v928_v51 = vunpack.c.l.bf16 %v1120_v39  ;;  %v1068_v52 = vpack.c.bf16 %v339_v44, %v338_v37  ;;  %v209_v54 = vmul.f32 %v924_v46, %v1178_v1 }
  0x45   :  { %v279_v53 = vadd.f32 %v1192_v7, %v208_v45  ;;  %v210_v55 = vmul.f32 %v925_v47, %v1178_v1  ;;  %v341_v56 = vmax.f32 %v277_v48, 0.0  ;;  %v929_v58 = vunpack.c.h.bf16 %v1120_v39 }
  0x46   :  { %v342_v57 = vmax.f32 %v278_v50, 0.0  ;;  %v211_v59 = vmul.f32 %v928_v51, %v1178_v1  ;;  %1147 = vst [vmem:[%s1505_s3 + $0xd8] sm:$0xff] %v1068_v52   ;;  %v280_v61 = vadd.f32 %v1192_v7, %v209_v54 }
  0x47   :  { %v343_v60 = vmax.f32 %v279_v53, 0.0  ;;  %v281_v62 = vadd.f32 %v1192_v7, %v210_v55  ;;  %v1073_v63 = vpack.c.bf16 %v341_v56, %v340_v49  ;;  %v212_v0 = vmul.f32 %v929_v58, %v1178_v1 }
  0x48   :  { %v282_v2 = vadd.f32 %v1192_v7, %v211_v59  ;;  %v344_v4 = vmax.f32 %v280_v61, 0.0 }
  0x49   :  { %v1078_v3 = vpack.c.bf16 %v343_v60, %v342_v57  ;;  %v345_v5 = vmax.f32 %v281_v62, 0.0  ;;  %1148 = vst [vmem:[%s1505_s3 + $0xe0] sm:$0xff] %v1073_v63   ;;  %v283_v6 = vadd.f32 %v1192_v7, %v212_v0 }
  0x4a   :  { %v346_v8 = vmax.f32 %v282_v2, 0.0 }
  0x4b   :  { %1149 = vst [vmem:[%s1505_s3 + $0xe8] sm:$0xff] %v1078_v3   ;;  %v1083_v9 = vpack.c.bf16 %v345_v5, %v344_v4  ;;  %v347_v10 = vmax.f32 %v283_v6, 0.0 }
  0x4d   :  { %1150 = vst [vmem:[%s1505_s3 + $0xf0] sm:$0xff] %v1083_v9   ;;  %v1088_v1 = vpack.c.bf16 %v347_v10, %v346_v8 }
  0x4f   :  { %1151 = vst [vmem:[%s1505_s3 + $0xf8] sm:$0xff] %v1088_v1  }

// kernel: _forward.44
= control target key start
LH: loop header
LB: loop body
LE: loop exit
PB: predicated region body
PF: predicated region fallthrough
CT: control target
= control target key end

     0   :  { %s1574_s12 = smov 0   ;;  %s1576_s13 = smov 0   ;;  %s1766_s0 = inlined_call_operand.vmem [shape: bf16[512,128], index: 0, kind: input, shape index: {}]   ;;  %s1767_s1 = inlined_call_operand.vmem [shape: bf16[128,128], index: 1, kind: input, shape index: {}]   ;;  %s1768_s2 = inlined_call_operand.vmem [shape: bf16[512,128], index: 2, kind: output, shape index: {0}]   ;;  %s1769_s3 = inlined_call_operand.vmem [shape: f32[16,128], index: 3, kind: output, shape index: {1}]  }
   0x1   :  { %s1578_s14 = smov 0  }
   0x2 LB: > { %s33_s15 = sadd.s32 1, %s1548_s13  ;;  %p1203_p0 = scmp.ge.s32.totalorder %s1552_s14, 1  ;;  %s1552_s14 = sphi %s1578_s14, %s14_s14   ;;  %s1548_s13 = sphi %s1576_s13, %s1771_s13   ;;  %s1544_s12 = sphi %s1574_s12, %s1770_s12  }
   0x3   : > { %p35_p1 = scmp.ge.s32.totalorder %s33_s15, 2  ;;  %p185_p2 = scmp.lt.s32.totalorder %s1552_s14, 3 }
   0x5   : > { %s1773_s15 = smov (%p35_p1, %s33_s15), 0  ;;  %p186_p3 = pnand %p1203_p0, %p185_p2 }
   0x6   : > { %v1506_v0 = vld [vmem:[%s1767_s1] sm:$0xff] (!%p186_p3)   ;;  %s1204_s18 = sshll.u32 (!%p186_p3), %s1544_s12, 5  ;;  %v1507_v1 = vld [vmem:[%s1767_s1 + $0x8] sm:$0xff] (!%p186_p3)   ;;  %v1508_v2 = vld [vmem:[%s1767_s1 + $0x10] sm:$0xff] (!%p186_p3)   ;;  %p257_p5 = scmp.lt.s32.totalorder (!%p186_p3), %s1544_s12, 1 }
   0x7   : > { %189 = sbr.rel (%p186_p3) target bundleno = 333 (0x14d), region = 28  ;;  %p231_p4 = scmp.lt.s32.totalorder (!%p186_p3), %s1204_s18, 63  ;;  %1418 = vmatprep.subr.bf16.mxu0 (!%p186_p3), %v1506_v0  ;;  %1466 = vmatprep.subr.bf16.mxu1 (!%p186_p3), %v1506_v0  ;;  %v1509_v3 = vld [vmem:[%s1767_s1 + $0x18] sm:$0xff] (!%p186_p3)   ;;  %v1510_v5 = vld [vmem:[%s1767_s1 + $0x20] sm:$0xff] (!%p186_p3)   ;;  %v1511_v6 = vld [vmem:[%s1767_s1 + $0x28] sm:$0xff] (!%p186_p3)  }
   0x8   : > { %1419 = vmatpush3.bf16.msra.mxu0 (!%p186_p3), %v1506_v0  ;;  %1474 = vmatpush3.bf16.msra.mxu1 (!%p186_p3), %v1506_v0  ;;  %v1512_v8 = vld [vmem:[%s1767_s1 + $0x30] sm:$0xff] (!%p186_p3)   ;;  %v1513_v9 = vld [vmem:[%s1767_s1 + $0x38] sm:$0xff] (!%p186_p3)  }
   0x9   : > { %1420 = vmatprep.subr.bf16.mxu0 (!%p186_p3), %v1507_v1  ;;  %1467 = vmatprep.subr.bf16.mxu1 (!%p186_p3), %v1507_v1 }
   0xc   : > { %1421 = vmatpush3.bf16.msra.mxu0 (!%p186_p3), %v1507_v1  ;;  %1475 = vmatpush3.bf16.msra.mxu1 (!%p186_p3), %v1507_v1 }
   0xd   : > { %1422 = vmatprep.subr.bf16.mxu0 (!%p186_p3), %v1508_v2  ;;  %1468 = vmatprep.subr.bf16.mxu1 (!%p186_p3), %v1508_v2 }
   0xe   : > { %s1775_s18 = smov (!%p231_p4, %s1204_s18), 63  ;;  %s1777_s12 = smov (!%p257_p5, %s1544_s12), 1 }
   0xf   : > { %s1205_s23 = sshll.u32 %s1775_s18, 2  ;;  %s1208_s17 = sshll.u32 %s1777_s12, 3 }
  0x10   : > { %s1612_s26 = scalar_lea.vmem %s1766_s0, %s1205_s23  ;;  %1423 = vmatpush3.bf16.msra.mxu0 %v1508_v2  ;;  %1476 = vmatpush3.bf16.msra.mxu1 %v1508_v2  ;;  %s1654_s16 = scalar_lea.vmem %s1768_s2, %s1205_s23 }
  0x11   : > { %v1514_v4 = vld [vmem:[%s1612_s26] sm:$0xff]   ;;  %1424 = vmatprep.subr.bf16.mxu0 %v1509_v3  ;;  %1469 = vmatprep.subr.bf16.mxu1 %v1509_v3  ;;  %v1515_v10 = vld [vmem:[%s1612_s26 + $0x8] sm:$0xff]   ;;  %v1516_v12 = vld [vmem:[%s1612_s26 + $0x10] sm:$0xff]   ;;  %s263_s20 = scalar_lea.vmem %s1769_s3, %s1208_s17 }
  0x12   : > { %1434 = vmatprep.mubr.bf16.mxu0 %v1514_v4  ;;  %v1522_v7 = vld [vmem:[%s1612_s26 + $0x40] sm:$0xff]   ;;  %v1523_v11 = vld [vmem:[%s1612_s26 + $0x48] sm:$0xff]   ;;  %v1524_v13 = vld [vmem:[%s1612_s26 + $0x50] sm:$0xff]  }
  0x13   : > { %1450 = vmatprep.mubr.bf16.mxu1 %v1522_v7  ;;  %v1517_v14 = vld [vmem:[%s1612_s26 + $0x18] sm:$0xff]   ;;  %v1518_v16 = vld [vmem:[%s1612_s26 + $0x20] sm:$0xff]   ;;  %v1519_v18 = vld [vmem:[%s1612_s26 + $0x28] sm:$0xff]  }
  0x14   : > { %1425 = vmatpush3.bf16.msra.mxu0 %v1509_v3  ;;  %1477 = vmatpush3.bf16.msra.mxu1 %v1509_v3  ;;  %v1525_v15 = vld [vmem:[%s1612_s26 + $0x58] sm:$0xff]   ;;  %v1526_v17 = vld [vmem:[%s1612_s26 + $0x60] sm:$0xff]   ;;  %v1527_v19 = vld [vmem:[%s1612_s26 + $0x68] sm:$0xff]  }
  0x15   : > { %1426 = vmatprep.subr.bf16.mxu0 %v1510_v5  ;;  %1470 = vmatprep.subr.bf16.mxu1 %v1510_v5  ;;  %v1520_v20 = vld [vmem:[%s1612_s26 + $0x30] sm:$0xff]   ;;  %v1521_v22 = vld [vmem:[%s1612_s26 + $0x38] sm:$0xff]  }
  0x16   : > { %v1528_v21 = vld [vmem:[%s1612_s26 + $0x70] sm:$0xff]   ;;  %v1529_v23 = vld [vmem:[%s1612_s26 + $0x78] sm:$0xff]  }
  0x18   : > { %1427 = vmatpush3.bf16.msra.mxu0 %v1510_v5  ;;  %1478 = vmatpush3.bf16.msra.mxu1 %v1510_v5 }
  0x19   : > { %1428 = vmatprep.subr.bf16.mxu0 %v1511_v6  ;;  %1471 = vmatprep.subr.bf16.mxu1 %v1511_v6 }
  0x1c   : > { %1429 = vmatpush3.bf16.msra.mxu0 %v1511_v6  ;;  %1479 = vmatpush3.bf16.msra.mxu1 %v1511_v6 }
  0x1d   : > { %1430 = vmatprep.subr.bf16.mxu0 %v1512_v8  ;;  %1472 = vmatprep.subr.bf16.mxu1 %v1512_v8 }
  0x20   : > { %1431 = vmatpush3.bf16.msra.mxu0 %v1512_v8  ;;  %1480 = vmatpush3.bf16.msra.mxu1 %v1512_v8 }
  0x21   : > { %1432 = vmatprep.subr.bf16.mxu0 %v1513_v9  ;;  %1473 = vmatprep.subr.bf16.mxu1 %v1513_v9 }
  0x24   : > { %1433 = vmatpush3.bf16.msra.mxu0 %v1513_v9  ;;  %1481 = vmatpush3.bf16.msra.mxu1 %v1513_v9 }
  0x27   : > { %1435 = vmatmul.mubr.bf16.vlgmr.msra.gmra.mrb[0].mxu0 %v1515_v10  ;;  %1451 = vmatmul.mubr.bf16.vlgmr.msra.gmra.mrb[0].mxu1 %v1523_v11 }
  0x28   : > { %1438 = vmatprep.mubr.bf16.mxu0 %v1516_v12  ;;  %1454 = vmatprep.mubr.bf16.mxu1 %v1524_v13 }
  0x2f   : > { %1439 = vmatmul.mubr.bf16.gmra.mrb[4].mxu0 %v1517_v14  ;;  %1455 = vmatmul.mubr.bf16.gmra.mrb[4].mxu1 %v1525_v15 }
  0x30   : > { %1442 = vmatprep.mubr.bf16.mxu0 %v1518_v16  ;;  %1458 = vmatprep.mubr.bf16.mxu1 %v1526_v17 }
  0x37   : > { %1443 = vmatmul.mubr.bf16.gmra.mrb[8].mxu0 %v1519_v18  ;;  %1459 = vmatmul.mubr.bf16.gmra.mrb[8].mxu1 %v1527_v19 }
  0x38   : > { %1446 = vmatprep.mubr.bf16.mxu0 %v1520_v20  ;;  %1462 = vmatprep.mubr.bf16.mxu1 %v1528_v21 }
  0x3f   : > { %1447 = vmatmul.mubr.bf16.gmra.mrb[12].mxu0 %v1521_v22  ;;  %1463 = vmatmul.mubr.bf16.gmra.mrb[12].mxu1 %v1529_v23 }
  0xfa   : > { %v1436_v24 = vpop.f32.mrb[0].mxu0  ;;  %v1645_v25 = vpop.f32.mrb[0].mxu1 }
  0xfb   : > { %v559_v26 = vpop.f32.mrb[1].mxu0  ;;  %v1647_v27 = vpop.f32.mrb[1].mxu1  ;;  %v824_v39 = vmul.f32 %v1436_v24, %v1436_v24 }
  0xfc   : > { %v1437_v28 = vpop.f32.mrb[2].mxu0  ;;  %v1656_v29 = vpop.f32.mrb[2].mxu1  ;;  %v822_v34 = vmul.f32 %v559_v26, %v559_v26 }
  0xfd   : > { %v1307_v30 = vpack.c.bf16 %v1437_v28, %v1436_v24  ;;  %v562_v31 = vpop.f32.mrb[3].mxu0  ;;  %v1347_v32 = vpack.c.bf16 %v1656_v29, %v1645_v25  ;;  %v1660_v33 = vpop.f32.mrb[3].mxu1  ;;  %v825_v42 = vmul.f32 %v1437_v28, %v1437_v28 }
  0xfe   : > { %v785_v35 = vadd.f32 %v562_v31, %v559_v26  ;;  %v823_v36 = vmul.f32 %v562_v31, %v562_v31  ;;  %v1302_v37 = vpack.c.bf16 %v562_v31, %v559_v26  ;;  %v1342_v38 = vpack.c.bf16 %v1660_v33, %v1647_v27 }
  0xff   : > { %1379 = vst [vmem:[%s1654_s16 + $0x8] sm:$0xff] %v1307_v30   ;;  %1387 = vst [vmem:[%s1654_s16 + $0x48] sm:$0xff] %v1347_v32  }
 0x100   : > { %v786_v40 = vadd.f32 %v1436_v24, %v785_v35  ;;  %v854_v41 = vadd.f32 %v823_v36, %v822_v34  ;;  %1303 = vst [vmem:[%s1654_s16] sm:$0xff] %v1302_v37   ;;  %1386 = vst [vmem:[%s1654_s16 + $0x40] sm:$0xff] %v1342_v38  }
 0x102   : > { %v855_v43 = vadd.f32 %v854_v41, %v824_v39  ;;  %v1440_v44 = vpop.f32.mrb[4].mxu0  ;;  %v787_v45 = vadd.f32 %v1437_v28, %v786_v40  ;;  %v1668_v46 = vpop.f32.mrb[4].mxu1 }
 0x103   : > { %v575_v47 = vpop.f32.mrb[5].mxu0  ;;  %v1670_v48 = vpop.f32.mrb[5].mxu1  ;;  %v828_v63 = vmul.f32 %v1440_v44, %v1440_v44 }
 0x104   : > { %v788_v49 = vadd.f32 %v787_v45, %v575_v47  ;;  %v826_v50 = vmul.f32 %v575_v47, %v575_v47  ;;  %v856_v51 = vadd.f32 %v855_v43, %v825_v42  ;;  %v1441_v52 = vpop.f32.mrb[6].mxu0  ;;  %v1672_v53 = vpop.f32.mrb[6].mxu1 }
 0x105   : > { %v1317_v54 = vpack.c.bf16 %v1441_v52, %v1440_v44  ;;  %v578_v55 = vpop.f32.mrb[7].mxu0  ;;  %v1357_v56 = vpack.c.bf16 %v1672_v53, %v1668_v46  ;;  %v1676_v57 = vpop.f32.mrb[7].mxu1  ;;  %v829_v2 = vmul.f32 %v1441_v52, %v1441_v52 }
 0x106   : > { %v857_v58 = vadd.f32 %v856_v51, %v826_v50  ;;  %v789_v59 = vadd.f32 %v788_v49, %v578_v55  ;;  %v827_v60 = vmul.f32 %v578_v55, %v578_v55  ;;  %v1312_v61 = vpack.c.bf16 %v578_v55, %v575_v47 }
 0x107   : > { %1381 = vst [vmem:[%s1654_s16 + $0x18] sm:$0xff] %v1317_v54   ;;  %1389 = vst [vmem:[%s1654_s16 + $0x58] sm:$0xff] %v1357_v56   ;;  %v1352_v62 = vpack.c.bf16 %v1676_v57, %v1670_v48 }
 0x108   : > { %v790_v0 = vadd.f32 %v1440_v44, %v789_v59  ;;  %v858_v1 = vadd.f32 %v857_v58, %v827_v60  ;;  %1380 = vst [vmem:[%s1654_s16 + $0x10] sm:$0xff] %v1312_v61   ;;  %v838_v61 = vmul.f32 %v1647_v27, %v1647_v27 }
 0x109   : > { %1388 = vst [vmem:[%s1654_s16 + $0x50] sm:$0xff] %v1352_v62  }
 0x10a   : > { %v859_v3 = vadd.f32 %v858_v1, %v828_v63  ;;  %v1444_v4 = vpop.f32.mrb[8].mxu0  ;;  %v791_v5 = vadd.f32 %v1441_v52, %v790_v0  ;;  %v1684_v6 = vpop.f32.mrb[8].mxu1 }
 0x10b   : > { %v591_v7 = vpop.f32.mrb[9].mxu0  ;;  %v1686_v8 = vpop.f32.mrb[9].mxu1  ;;  %v832_v23 = vmul.f32 %v1444_v4, %v1444_v4 }
 0x10c   : > { %v792_v9 = vadd.f32 %v791_v5, %v591_v7  ;;  %v830_v10 = vmul.f32 %v591_v7, %v591_v7  ;;  %v860_v11 = vadd.f32 %v859_v3, %v829_v2  ;;  %v1445_v12 = vpop.f32.mrb[10].mxu0  ;;  %v1688_v13 = vpop.f32.mrb[10].mxu1  ;;  %v839_v2 = vmul.f32 %v1660_v33, %v1660_v33 }
 0x10d   : > { %v1327_v14 = vpack.c.bf16 %v1445_v12, %v1444_v4  ;;  %v594_v15 = vpop.f32.mrb[11].mxu0  ;;  %v1367_v16 = vpack.c.bf16 %v1688_v13, %v1684_v6  ;;  %v1692_v17 = vpop.f32.mrb[11].mxu1  ;;  %v833_v28 = vmul.f32 %v1445_v12, %v1445_v12  ;;  %v840_v3 = vmul.f32 %v1645_v25, %v1645_v25 }
 0x10e   : > { %v861_v18 = vadd.f32 %v860_v11, %v830_v10  ;;  %v793_v19 = vadd.f32 %v792_v9, %v594_v15  ;;  %v831_v20 = vmul.f32 %v594_v15, %v594_v15  ;;  %v1322_v21 = vpack.c.bf16 %v594_v15, %v591_v7 }
 0x10f   : > { %1383 = vst [vmem:[%s1654_s16 + $0x28] sm:$0xff] %v1327_v14   ;;  %1391 = vst [vmem:[%s1654_s16 + $0x68] sm:$0xff] %v1367_v16   ;;  %v1362_v22 = vpack.c.bf16 %v1692_v17, %v1686_v8  ;;  %v841_v7 = vmul.f32 %v1656_v29, %v1656_v29  ;;  %v843_v15 = vmul.f32 %v1676_v57, %v1676_v57 }
 0x110   : > { %v794_v24 = vadd.f32 %v1444_v4, %v793_v19  ;;  %v862_v26 = vadd.f32 %v861_v18, %v831_v20  ;;  %1382 = vst [vmem:[%s1654_s16 + $0x20] sm:$0xff] %v1322_v21  }
 0x111   : > { %1390 = vst [vmem:[%s1654_s16 + $0x60] sm:$0xff] %v1362_v22  }
 0x112   : > { %v863_v30 = vadd.f32 %v862_v26, %v832_v23  ;;  %v1448_v31 = vpop.f32.mrb[12].mxu0  ;;  %v795_v32 = vadd.f32 %v1445_v12, %v794_v24  ;;  %v1700_v34 = vpop.f32.mrb[12].mxu1  ;;  %v847_v24 = vmul.f32 %v1692_v17, %v1692_v17 }
 0x113   : > { %v607_v35 = vpop.f32.mrb[13].mxu0  ;;  %v671_v36 = vpop.f32.mrb[13].mxu1  ;;  %v836_v54 = vmul.f32 %v1448_v31, %v1448_v31 }
 0x114   : > { %v796_v37 = vadd.f32 %v795_v32, %v607_v35  ;;  %v834_v38 = vmul.f32 %v607_v35, %v607_v35  ;;  %v864_v39 = vadd.f32 %v863_v30, %v833_v28  ;;  %v1449_v40 = vpop.f32.mrb[14].mxu0  ;;  %v1702_v41 = vpop.f32.mrb[14].mxu1 }
 0x115   : > { %v1337_v42 = vpack.c.bf16 %v1449_v40, %v1448_v31  ;;  %v610_v43 = vpop.f32.mrb[15].mxu0  ;;  %v1377_v44 = vpack.c.bf16 %v1702_v41, %v1700_v34  ;;  %v674_v45 = vpop.f32.mrb[15].mxu1  ;;  %v837_v58 = vmul.f32 %v1449_v40, %v1449_v40 }
 0x116   : > { %v865_v47 = vadd.f32 %v864_v39, %v834_v38  ;;  %v797_v49 = vadd.f32 %v796_v37, %v610_v43  ;;  %v835_v50 = vmul.f32 %v610_v43, %v610_v43  ;;  %v1332_v51 = vpack.c.bf16 %v610_v43, %v607_v35 }
 0x117   : > { %1385 = vst [vmem:[%s1654_s16 + $0x38] sm:$0xff] %v1337_v42   ;;  %1393 = vst [vmem:[%s1654_s16 + $0x78] sm:$0xff] %v1377_v44   ;;  %v1372_v52 = vpack.c.bf16 %v674_v45, %v671_v36  ;;  %v852_v39 = vmul.f32 %v1700_v34, %v1700_v34  ;;  %v853_v42 = vmul.f32 %v1702_v41, %v1702_v41 }
 0x118   : > { %v798_v55 = vadd.f32 %v1448_v31, %v797_v49  ;;  %v866_v56 = vadd.f32 %v865_v47, %v835_v50  ;;  %1384 = vst [vmem:[%s1654_s16 + $0x30] sm:$0xff] %v1332_v51   ;;  %v850_v31 = vmul.f32 %v671_v36, %v671_v36  ;;  %v891_v50 = vlaneseq }
 0x119   : > { %1392 = vst [vmem:[%s1654_s16 + $0x70] sm:$0xff] %v1372_v52  }
 0x11a   : > { %v867_v59 = vadd.f32 %v866_v56, %v836_v54  ;;  %v799_v60 = vadd.f32 %v1449_v40, %v798_v55  ;;  %v892_v55 = vshrl.u32 %v891_v50, 7 }
 0x11c   : > { %v800_v62 = vadd.f32 %v799_v60, %v1647_v27  ;;  %v868_v63 = vadd.f32 %v867_v59, %v837_v58  ;;  %v842_v27 = vmul.f32 %v1670_v48, %v1670_v48  ;;  %vm894_vm0 = vcmp.eq.s32.totalorder %v892_v55, 1 }
 0x11d   : > { %vm893_vm1 = vcmp.eq.s32.totalorder %v892_v55, 0 }
 0x11e   : > { %v869_v0 = vadd.f32 %v868_v63, %v838_v61  ;;  %v801_v1 = vadd.f32 %v800_v62, %v1660_v33 }
 0x120   : > { %v802_v4 = vadd.f32 %v1645_v25, %v801_v1  ;;  %v870_v5 = vadd.f32 %v869_v0, %v839_v2  ;;  %v844_v25 = vmul.f32 %v1668_v46, %v1668_v46 }
 0x122   : > { %v871_v9 = vadd.f32 %v870_v5, %v840_v3  ;;  %v803_v10 = vadd.f32 %v1656_v29, %v802_v4  ;;  %v845_v29 = vmul.f32 %v1672_v53, %v1672_v53 }
 0x124   : > { %v804_v11 = vadd.f32 %v803_v10, %v1670_v48  ;;  %v872_v12 = vadd.f32 %v871_v9, %v841_v7  ;;  %v846_v48 = vmul.f32 %v1686_v8, %v1686_v8 }
 0x126   : > { %v873_v14 = vadd.f32 %v872_v12, %v842_v27  ;;  %v805_v33 = vadd.f32 %v804_v11, %v1676_v57 }
 0x128   : > { %v806_v16 = vadd.f32 %v1668_v46, %v805_v33  ;;  %v874_v18 = vadd.f32 %v873_v14, %v843_v15  ;;  %v848_v46 = vmul.f32 %v1684_v6, %v1684_v6 }
 0x12a   : > { %v875_v19 = vadd.f32 %v874_v18, %v844_v25  ;;  %v807_v20 = vadd.f32 %v1672_v53, %v806_v16  ;;  %v849_v53 = vmul.f32 %v1688_v13, %v1688_v13 }
 0x12c   : > { %v808_v21 = vadd.f32 %v807_v20, %v1686_v8  ;;  %v876_v22 = vadd.f32 %v875_v19, %v845_v29 }
 0x12e   : > { %v877_v23 = vadd.f32 %v876_v22, %v846_v48  ;;  %v809_v57 = vadd.f32 %v808_v21, %v1692_v17  ;;  %v851_v17 = vmul.f32 %v674_v45, %v674_v45 }
 0x130   : > { %v810_v26 = vadd.f32 %v1684_v6, %v809_v57  ;;  %v878_v28 = vadd.f32 %v877_v23, %v847_v24 }
 0x132   : > { %v879_v30 = vadd.f32 %v878_v28, %v848_v46  ;;  %v811_v8 = vadd.f32 %v1688_v13, %v810_v26 }
 0x134   : > { %v812_v32 = vadd.f32 %v811_v8, %v671_v36  ;;  %v880_v35 = vadd.f32 %v879_v30, %v849_v53 }
 0x136   : > { %v881_v37 = vadd.f32 %v880_v35, %v850_v31  ;;  %v813_v38 = vadd.f32 %v812_v32, %v674_v45 }
 0x138   : > { %v814_v6 = vadd.f32 %v1700_v34, %v813_v38  ;;  %v882_v40 = vadd.f32 %v881_v37, %v851_v17 }
 0x13a   : > { %v815_v43 = vadd.f32 %v1702_v41, %v814_v6  ;;  %v883_v44 = vadd.f32 %v882_v40, %v852_v39 }
 0x13c   : > { %v816_v13 = vrot.slane %v815_v43, 4  ;;  %v884_v47 = vadd.f32 %v883_v44, %v853_v42 }
 0x13e   : > { %v817_v36 = vadd.f32 %v816_v13, %v815_v43  ;;  %v885_v49 = vrot.slane %v884_v47, 4 }
 0x140   : > { %v818_v51 = vrot.slane %v817_v36, 2  ;;  %v886_v45 = vadd.f32 %v885_v49, %v884_v47 }
 0x142   : > { %v819_v52 = vadd.f32 %v818_v51, %v817_v36  ;;  %v887_v54 = vrot.slane %v886_v45, 2 }
 0x144   : > { %v888_v34 = vadd.f32 %v887_v54, %v886_v45  ;;  %v820_v56 = vrot.slane %v819_v52, 1 }
 0x146   : > { %v889_v58 = vrot.slane %v888_v34, 1  ;;  %v821_v41 = vadd.f32 %v820_v56, %v819_v52 }
 0x148   : > { %v890_v59 = vadd.f32 %v889_v58, %v888_v34 }
 0x14a   : > { %v895_v60 = vsel %vm894_vm0, %v890_v59, 0.0 }
 0x14b   : > { %v896_v61 = vsel %vm893_vm1, %v821_v41, %v895_v60 }
 0x14c   : > { %897 = vst [vmem:[%s263_s20] sm:$0xff] %v896_v61 }
 0x14d PF: > { %s14_s14 = sadd.s32 1, %s1552_s14   ;;  %s1770_s12 = smov %s1548_s13 }
 0x14e   : > { %p11_p6 = scmp.ge.s32.totalorder %s14_s14, 4   ;;  %s1771_s13 = smov %s1773_s15 }
 0x150   :  { %13 = sbr.rel (!%p11_p6) target bundleno = 2 (0x2), region = 81 }

// kernel: _forward.49
= control target key start
LH: loop header
LB: loop body
LE: loop exit
PB: predicated region body
PF: predicated region fallthrough
CT: control target
= control target key end

     0   :  { %s1957_s0 = inlined_call_operand.vmem [shape: bf16[512,128], index: 0, kind: input, shape index: {}]   ;;  %s1958_s1 = inlined_call_operand.vmem [shape: bf16[512,128], index: 1, kind: input, shape index: {}]   ;;  %s1959_s2 = inlined_call_operand.vmem [shape: f32[1,128], index: 2, kind: input, shape index: {}]   ;;  %s1960_s3 = inlined_call_operand.vmem [shape: f32[1,128], index: 3, kind: input, shape index: {}]   ;;  %s1961_s4 = inlined_call_operand.vmem [shape: bf16[512,128], index: 4, kind: output, shape index: {}]  }
   0x1   :  { %v998_v0 = vld [vmem:[%s1957_s0] sm:$0xff]   ;;  %v1413_v5 = vld [vmem:[%s1957_s0 + $0x8] sm:$0xff]   ;;  %v1414_v12 = vld [vmem:[%s1957_s0 + $0x10] sm:$0xff]  }
   0x2   :  { %v1537_v1 = vld [vmem:[%s1959_s2] ss:$0 sm:$0xff]  ;;  %v999_v2 = vunpack.c.l.bf16 %v998_v0  ;;  %v1000_v3 = vunpack.c.h.bf16 %v998_v0  ;;  %v1444_v6 = vld [vmem:[%s1958_s1 + $0x8] sm:$0xff]   ;;  %v1003_v10 = vunpack.c.l.bf16 %v1413_v5  ;;  %v1004_v11 = vunpack.c.h.bf16 %v1413_v5  ;;  %v1445_v13 = vld [vmem:[%s1958_s1 + $0x10] sm:$0xff]  }
   0x3   :  { %v1126_v4 = vld [vmem:[%s1958_s1] sm:$0xff]   ;;  %v1131_v16 = vunpack.c.l.bf16 %v1444_v6  ;;  %v1132_v17 = vunpack.c.h.bf16 %v1444_v6  ;;  %v1007_v20 = vunpack.c.l.bf16 %v1414_v12  ;;  %v1008_v21 = vunpack.c.h.bf16 %v1414_v12  ;;  %v1415_v22 = vld [vmem:[%s1957_s0 + $0x18] sm:$0xff]   ;;  %v1417_v54 = vld [vmem:[%s1957_s0 + $0x28] sm:$0xff]  }
   0x4   :  { %v1551_v7 = vld [vmem:[%s1960_s3] ss:$0 sm:$0xff]  ;;  %v1127_v8 = vunpack.c.l.bf16 %v1126_v4  ;;  %v1128_v9 = vunpack.c.h.bf16 %v1126_v4  ;;  %v152_v14 = vmul.f32 %v999_v2, %v1537_v1  ;;  %v153_v15 = vmul.f32 %v1000_v3, %v1537_v1  ;;  %v1446_v39 = vld [vmem:[%s1958_s1 + $0x18] sm:$0xff]   ;;  %v1448_v63 = vld [vmem:[%s1958_s1 + $0x28] sm:$0xff]  }
   0x5   :  { %v154_v18 = vmul.f32 %v1003_v10, %v1537_v1  ;;  %v155_v19 = vmul.f32 %v1004_v11, %v1537_v1  ;;  %v1135_v25 = vunpack.c.l.bf16 %v1445_v13  ;;  %v1136_v26 = vunpack.c.h.bf16 %v1445_v13  ;;  %v1416_v48 = vld [vmem:[%s1957_s0 + $0x20] sm:$0xff]   ;;  %v1418_v5 = vld [vmem:[%s1957_s0 + $0x30] sm:$0xff]  }
   0x6   :  { %v223_v23 = vadd.f32 %v1551_v7, %v152_v14  ;;  %v224_v24 = vadd.f32 %v1551_v7, %v153_v15  ;;  %v156_v29 = vmul.f32 %v1007_v20, %v1537_v1  ;;  %v157_v30 = vmul.f32 %v1008_v21, %v1537_v1  ;;  %v1447_v49 = vld [vmem:[%s1958_s1 + $0x20] sm:$0xff]   ;;  %v1449_v11 = vld [vmem:[%s1958_s1 + $0x30] sm:$0xff]   ;;  %v1419_v20 = vld [vmem:[%s1957_s0 + $0x38] sm:$0xff]  }
   0x7   :  { %v225_v27 = vadd.f32 %v1551_v7, %v154_v18  ;;  %v226_v28 = vadd.f32 %v1551_v7, %v155_v19  ;;  %v1011_v33 = vunpack.c.l.bf16 %v1415_v22  ;;  %v1012_v34 = vunpack.c.h.bf16 %v1415_v22 }
   0x8   :  { %v415_v31 = vadd.f32 %v1127_v8, %v223_v23  ;;  %v416_v32 = vadd.f32 %v1128_v9, %v224_v24  ;;  %v227_v37 = vadd.f32 %v1551_v7, %v156_v29  ;;  %v228_v38 = vadd.f32 %v1551_v7, %v157_v30 }
   0x9   :  { %v417_v35 = vadd.f32 %v1131_v16, %v225_v27  ;;  %v418_v36 = vadd.f32 %v1132_v17, %v226_v28  ;;  %v158_v42 = vmul.f32 %v1011_v33, %v1537_v1  ;;  %v159_v43 = vmul.f32 %v1012_v34, %v1537_v1  ;;  %v1450_v33 = vld [vmem:[%s1958_s1 + $0x38] sm:$0xff]  }
   0xa   :  { %v479_v40 = vmax.f32 %v415_v31, 0.0  ;;  %v480_v41 = vmax.f32 %v416_v32, 0.0  ;;  %v419_v46 = vadd.f32 %v1135_v25, %v227_v37  ;;  %v420_v47 = vadd.f32 %v1136_v26, %v228_v38 }
   0xb   :  { %v481_v44 = vmax.f32 %v417_v35, 0.0  ;;  %v482_v45 = vmax.f32 %v418_v36, 0.0  ;;  %v229_v51 = vadd.f32 %v1551_v7, %v158_v42  ;;  %v230_v52 = vadd.f32 %v1551_v7, %v159_v43  ;;  %v1420_v42 = vld [vmem:[%s1957_s0 + $0x40] sm:$0xff]  }
   0xc   :  { %v1256_v50 = vpack.c.bf16 %v480_v41, %v479_v40  ;;  %v1139_v53 = vunpack.c.l.bf16 %v1446_v39  ;;  %v483_v56 = vmax.f32 %v419_v46, 0.0  ;;  %v484_v57 = vmax.f32 %v420_v47, 0.0  ;;  %v1451_v47 = vld [vmem:[%s1958_s1 + $0x40] sm:$0xff]  }
   0xd   :  { %v1261_v55 = vpack.c.bf16 %v482_v45, %v481_v44  ;;  %v1140_v58 = vunpack.c.h.bf16 %v1446_v39  ;;  %v1015_v60 = vunpack.c.l.bf16 %v1416_v48  ;;  %v1016_v61 = vunpack.c.h.bf16 %v1416_v48 }
   0xe   :  { %1257 = vst [vmem:[%s1961_s4] sm:$0xff] %v1256_v50   ;;  %v421_v59 = vadd.f32 %v1139_v53, %v229_v51  ;;  %v1143_v62 = vunpack.c.l.bf16 %v1447_v49  ;;  %v1266_v0 = vpack.c.bf16 %v484_v57, %v483_v56  ;;  %v1144_v3 = vunpack.c.h.bf16 %v1447_v49 }
   0xf   :  { %1475 = vst [vmem:[%s1961_s4 + $0x8] sm:$0xff] %v1261_v55   ;;  %v422_v2 = vadd.f32 %v1140_v58, %v230_v52  ;;  %v1019_v4 = vunpack.c.l.bf16 %v1417_v54  ;;  %v160_v8 = vmul.f32 %v1015_v60, %v1537_v1  ;;  %v161_v9 = vmul.f32 %v1016_v61, %v1537_v1  ;;  %v1421_v52 = vld [vmem:[%s1957_s0 + $0x48] sm:$0xff]  }
  0x10   :  { %v485_v6 = vmax.f32 %v421_v59, 0.0  ;;  %v1020_v10 = vunpack.c.h.bf16 %v1417_v54  ;;  %1476 = vst [vmem:[%s1961_s4 + $0x10] sm:$0xff] %v1266_v0   ;;  %v1147_v14 = vunpack.c.l.bf16 %v1448_v63  ;;  %v1148_v15 = vunpack.c.h.bf16 %v1448_v63  ;;  %v1452_v61 = vld [vmem:[%s1958_s1 + $0x48] sm:$0xff]  }
  0x11   :  { %v486_v12 = vmax.f32 %v422_v2, 0.0  ;;  %v162_v13 = vmul.f32 %v1019_v4, %v1537_v1  ;;  %v231_v16 = vadd.f32 %v1551_v7, %v160_v8  ;;  %v232_v17 = vadd.f32 %v1551_v7, %v161_v9 }
  0x12   :  { %v163_v18 = vmul.f32 %v1020_v10, %v1537_v1  ;;  %v1023_v19 = vunpack.c.l.bf16 %v1418_v5  ;;  %v1024_v23 = vunpack.c.h.bf16 %v1418_v5  ;;  %v1151_v24 = vunpack.c.l.bf16 %v1449_v11 }
  0x13   :  { %v1271_v21 = vpack.c.bf16 %v486_v12, %v485_v6  ;;  %v233_v22 = vadd.f32 %v1551_v7, %v162_v13  ;;  %v423_v25 = vadd.f32 %v1143_v62, %v231_v16  ;;  %v424_v26 = vadd.f32 %v1144_v3, %v232_v17  ;;  %v1422_v3 = vld [vmem:[%s1957_s0 + $0x50] sm:$0xff]  }
  0x14   :  { %v234_v27 = vadd.f32 %v1551_v7, %v163_v18  ;;  %v164_v28 = vmul.f32 %v1023_v19, %v1537_v1  ;;  %v165_v30 = vmul.f32 %v1024_v23, %v1537_v1  ;;  %v1152_v31 = vunpack.c.h.bf16 %v1449_v11  ;;  %v1453_v13 = vld [vmem:[%s1958_s1 + $0x50] sm:$0xff]  }
  0x15   :  { %1477 = vst [vmem:[%s1961_s4 + $0x18] sm:$0xff] %v1271_v21   ;;  %v425_v29 = vadd.f32 %v1147_v14, %v233_v22  ;;  %v1027_v32 = vunpack.c.l.bf16 %v1419_v20  ;;  %v487_v34 = vmax.f32 %v423_v25, 0.0  ;;  %v488_v35 = vmax.f32 %v424_v26, 0.0  ;;  %v1423_v22 = vld [vmem:[%s1957_s0 + $0x58] sm:$0xff]  }
  0x16   :  { %v426_v36 = vadd.f32 %v1148_v15, %v234_v27  ;;  %v235_v37 = vadd.f32 %v1551_v7, %v164_v28  ;;  %v236_v39 = vadd.f32 %v1551_v7, %v165_v30  ;;  %v1028_v40 = vunpack.c.h.bf16 %v1419_v20 }
  0x17   :  { %v489_v38 = vmax.f32 %v425_v29, 0.0  ;;  %v166_v41 = vmul.f32 %v1027_v32, %v1537_v1  ;;  %v1276_v43 = vpack.c.bf16 %v488_v35, %v487_v34  ;;  %v1155_v46 = vunpack.c.l.bf16 %v1450_v33 }
  0x18   :  { %v490_v44 = vmax.f32 %v426_v36, 0.0  ;;  %v427_v45 = vadd.f32 %v1151_v24, %v235_v37  ;;  %v428_v48 = vadd.f32 %v1152_v31, %v236_v39  ;;  %v167_v49 = vmul.f32 %v1028_v40, %v1537_v1  ;;  %v1454_v31 = vld [vmem:[%s1958_s1 + $0x58] sm:$0xff]   ;;  %v1424_v36 = vld [vmem:[%s1957_s0 + $0x60] sm:$0xff]  }
  0x19   :  { %v237_v50 = vadd.f32 %v1551_v7, %v166_v41  ;;  %v1156_v51 = vunpack.c.h.bf16 %v1450_v33  ;;  %1478 = vst [vmem:[%s1961_s4 + $0x20] sm:$0xff] %v1276_v43   ;;  %v1031_v55 = vunpack.c.l.bf16 %v1420_v42  ;;  %v1032_v56 = vunpack.c.h.bf16 %v1420_v42 }
  0x1a   :  { %v1281_v53 = vpack.c.bf16 %v490_v44, %v489_v38  ;;  %v491_v54 = vmax.f32 %v427_v45, 0.0  ;;  %v492_v57 = vmax.f32 %v428_v48, 0.0  ;;  %v238_v58 = vadd.f32 %v1551_v7, %v167_v49  ;;  %v1455_v45 = vld [vmem:[%s1958_s1 + $0x60] sm:$0xff]  }
  0x1b   :  { %v429_v59 = vadd.f32 %v1155_v46, %v237_v50  ;;  %v1159_v60 = vunpack.c.l.bf16 %v1451_v47  ;;  %v168_v62 = vmul.f32 %v1031_v55, %v1537_v1  ;;  %v169_v63 = vmul.f32 %v1032_v56, %v1537_v1  ;;  %v1425_v50 = vld [vmem:[%s1957_s0 + $0x68] sm:$0xff]  }
  0x1c   :  { %1479 = vst [vmem:[%s1961_s4 + $0x28] sm:$0xff] %v1281_v53   ;;  %v1160_v0 = vunpack.c.h.bf16 %v1451_v47  ;;  %v1035_v2 = vunpack.c.l.bf16 %v1421_v52  ;;  %v1286_v4 = vpack.c.bf16 %v492_v57, %v491_v54  ;;  %v430_v5 = vadd.f32 %v1156_v51, %v238_v58 }
  0x1d   :  { %v493_v6 = vmax.f32 %v429_v59, 0.0  ;;  %v1036_v8 = vunpack.c.h.bf16 %v1421_v52  ;;  %v239_v9 = vadd.f32 %v1551_v7, %v168_v62  ;;  %v240_v10 = vadd.f32 %v1551_v7, %v169_v63  ;;  %v1456_v59 = vld [vmem:[%s1958_s1 + $0x68] sm:$0xff]  }
  0x1e   :  { %v170_v11 = vmul.f32 %v1035_v2, %v1537_v1  ;;  %v1163_v12 = vunpack.c.l.bf16 %v1452_v61  ;;  %1480 = vst [vmem:[%s1961_s4 + $0x30] sm:$0xff] %v1286_v4   ;;  %v494_v14 = vmax.f32 %v430_v5, 0.0  ;;  %v1164_v16 = vunpack.c.h.bf16 %v1452_v61  ;;  %v1426_v5 = vld [vmem:[%s1957_s0 + $0x70] sm:$0xff]  }
  0x1f   :  { %v171_v15 = vmul.f32 %v1036_v8, %v1537_v1  ;;  %v1039_v17 = vunpack.c.l.bf16 %v1422_v3  ;;  %v431_v18 = vadd.f32 %v1159_v60, %v239_v9  ;;  %v432_v19 = vadd.f32 %v1160_v0, %v240_v10 }
  0x20   :  { %v241_v20 = vadd.f32 %v1551_v7, %v170_v11  ;;  %v1040_v21 = vunpack.c.h.bf16 %v1422_v3  ;;  %v1291_v23 = vpack.c.bf16 %v494_v14, %v493_v6  ;;  %v1167_v26 = vunpack.c.l.bf16 %v1453_v13  ;;  %v1457_v11 = vld [vmem:[%s1958_s1 + $0x70] sm:$0xff]  }
  0x21   :  { %v242_v24 = vadd.f32 %v1551_v7, %v171_v15  ;;  %v172_v25 = vmul.f32 %v1039_v17, %v1537_v1  ;;  %v495_v27 = vmax.f32 %v431_v18, 0.0  ;;  %v496_v28 = vmax.f32 %v432_v19, 0.0 }
  0x22   :  { %v433_v29 = vadd.f32 %v1163_v12, %v241_v20  ;;  %v173_v30 = vmul.f32 %v1040_v21, %v1537_v1  ;;  %1481 = vst [vmem:[%s1961_s4 + $0x38] sm:$0xff] %v1291_v23   ;;  %v1168_v34 = vunpack.c.h.bf16 %v1453_v13  ;;  %v1043_v35 = vunpack.c.l.bf16 %v1423_v22  ;;  %v1427_v20 = vld [vmem:[%s1957_s0 + $0x78] sm:$0xff]  }
  0x23   :  { %v434_v32 = vadd.f32 %v1164_v16, %v242_v24  ;;  %v243_v33 = vadd.f32 %v1551_v7, %v172_v25  ;;  %v1296_v37 = vpack.c.bf16 %v496_v28, %v495_v27  ;;  %v1044_v40 = vunpack.c.h.bf16 %v1423_v22 }
  0x24   :  { %v497_v38 = vmax.f32 %v433_v29, 0.0  ;;  %v244_v39 = vadd.f32 %v1551_v7, %v173_v30  ;;  %v174_v43 = vmul.f32 %v1043_v35, %v1537_v1  ;;  %v1171_v44 = vunpack.c.l.bf16 %v1454_v31  ;;  %v1458_v29 = vld [vmem:[%s1958_s1 + $0x78] sm:$0xff]  }
  0x25   :  { %v498_v41 = vmax.f32 %v434_v32, 0.0  ;;  %v435_v42 = vadd.f32 %v1167_v26, %v243_v33  ;;  %1482 = vst [vmem:[%s1961_s4 + $0x40] sm:$0xff] %v1296_v37   ;;  %v175_v47 = vmul.f32 %v1044_v40, %v1537_v1  ;;  %v1172_v48 = vunpack.c.h.bf16 %v1454_v31 }
  0x26   :  { %v436_v46 = vadd.f32 %v1168_v34, %v244_v39  ;;  %v1047_v49 = vunpack.c.l.bf16 %v1424_v36  ;;  %v245_v53 = vadd.f32 %v1551_v7, %v174_v43  ;;  %v1048_v54 = vunpack.c.h.bf16 %v1424_v36  ;;  %v1428_v34 = vld [vmem:[%s1957_s0 + $0x80] sm:$0xff]  }
  0x27   :  { %v1301_v51 = vpack.c.bf16 %v498_v41, %v497_v38  ;;  %v499_v52 = vmax.f32 %v435_v42, 0.0  ;;  %v246_v56 = vadd.f32 %v1551_v7, %v175_v47  ;;  %v1175_v58 = vunpack.c.l.bf16 %v1455_v45  ;;  %v1459_v43 = vld [vmem:[%s1958_s1 + $0x80] sm:$0xff]  }
  0x28   :  { %v500_v55 = vmax.f32 %v436_v46, 0.0  ;;  %v176_v57 = vmul.f32 %v1047_v49, %v1537_v1  ;;  %v437_v60 = vadd.f32 %v1171_v44, %v245_v53  ;;  %v177_v61 = vmul.f32 %v1048_v54, %v1537_v1 }
  0x29   :  { %1483 = vst [vmem:[%s1961_s4 + $0x48] sm:$0xff] %v1301_v51   ;;  %v1176_v62 = vunpack.c.h.bf16 %v1455_v45  ;;  %v1051_v63 = vunpack.c.l.bf16 %v1425_v50  ;;  %v438_v2 = vadd.f32 %v1172_v48, %v246_v56  ;;  %v1052_v4 = vunpack.c.h.bf16 %v1425_v50 }
  0x2a   :  { %v1306_v0 = vpack.c.bf16 %v500_v55, %v499_v52  ;;  %v247_v3 = vadd.f32 %v1551_v7, %v176_v57  ;;  %v501_v6 = vmax.f32 %v437_v60, 0.0  ;;  %v248_v8 = vadd.f32 %v1551_v7, %v177_v61  ;;  %v1429_v52 = vld [vmem:[%s1957_s0 + $0x88] sm:$0xff]  }
  0x2b   :  { %v178_v9 = vmul.f32 %v1051_v63, %v1537_v1  ;;  %v1179_v10 = vunpack.c.l.bf16 %v1456_v59  ;;  %v502_v12 = vmax.f32 %v438_v2, 0.0  ;;  %v179_v14 = vmul.f32 %v1052_v4, %v1537_v1  ;;  %v1460_v57 = vld [vmem:[%s1958_s1 + $0x88] sm:$0xff]  }
  0x2c   :  { %1484 = vst [vmem:[%s1961_s4 + $0x50] sm:$0xff] %v1306_v0   ;;  %v439_v13 = vadd.f32 %v1175_v58, %v247_v3  ;;  %v1180_v15 = vunpack.c.h.bf16 %v1456_v59  ;;  %v440_v16 = vadd.f32 %v1176_v62, %v248_v8  ;;  %v1055_v18 = vunpack.c.l.bf16 %v1426_v5  ;;  %v1430_v3 = vld [vmem:[%s1957_s0 + $0x90] sm:$0xff]  }
  0x2d   :  { %v249_v17 = vadd.f32 %v1551_v7, %v178_v9  ;;  %v1056_v19 = vunpack.c.h.bf16 %v1426_v5  ;;  %v1311_v21 = vpack.c.bf16 %v502_v12, %v501_v6  ;;  %v250_v23 = vadd.f32 %v1551_v7, %v179_v14  ;;  %v1461_v9 = vld [vmem:[%s1958_s1 + $0x90] sm:$0xff]  }
  0x2e   :  { %v503_v22 = vmax.f32 %v439_v13, 0.0  ;;  %v1183_v24 = vunpack.c.l.bf16 %v1457_v11  ;;  %v504_v25 = vmax.f32 %v440_v16, 0.0  ;;  %v180_v27 = vmul.f32 %v1055_v18, %v1537_v1  ;;  %v1431_v18 = vld [vmem:[%s1957_s0 + $0x98] sm:$0xff]  }
  0x2f   :  { %v441_v26 = vadd.f32 %v1179_v10, %v249_v17  ;;  %v181_v28 = vmul.f32 %v1056_v19, %v1537_v1  ;;  %1485 = vst [vmem:[%s1961_s4 + $0x58] sm:$0xff] %v1311_v21   ;;  %v442_v30 = vadd.f32 %v1180_v15, %v250_v23  ;;  %v1184_v31 = vunpack.c.h.bf16 %v1457_v11  ;;  %v1462_v23 = vld [vmem:[%s1958_s1 + $0x98] sm:$0xff]  }
  0x30   :  { %v1059_v32 = vunpack.c.l.bf16 %v1427_v20  ;;  %v1060_v33 = vunpack.c.h.bf16 %v1427_v20  ;;  %v1316_v35 = vpack.c.bf16 %v504_v25, %v503_v22  ;;  %v251_v37 = vadd.f32 %v1551_v7, %v180_v27 }
  0x31   :  { %v505_v36 = vmax.f32 %v441_v26, 0.0  ;;  %v252_v38 = vadd.f32 %v1551_v7, %v181_v28  ;;  %v506_v39 = vmax.f32 %v442_v30, 0.0  ;;  %v1187_v42 = vunpack.c.l.bf16 %v1458_v29 }
  0x32   :  { %v182_v40 = vmul.f32 %v1059_v32, %v1537_v1  ;;  %v183_v41 = vmul.f32 %v1060_v33, %v1537_v1  ;;  %1486 = vst [vmem:[%s1961_s4 + $0x60] sm:$0xff] %v1316_v35   ;;  %v443_v44 = vadd.f32 %v1183_v24, %v251_v37  ;;  %v1188_v46 = vunpack.c.h.bf16 %v1458_v29  ;;  %v1432_v32 = vld [vmem:[%s1957_s0 + $0xa0] sm:$0xff]  }
  0x33   :  { %v444_v45 = vadd.f32 %v1184_v31, %v252_v38  ;;  %v1063_v47 = vunpack.c.l.bf16 %v1428_v34  ;;  %v1321_v48 = vpack.c.bf16 %v506_v39, %v505_v36  ;;  %v1064_v51 = vunpack.c.h.bf16 %v1428_v34 }
  0x34   :  { %v253_v49 = vadd.f32 %v1551_v7, %v182_v40  ;;  %v254_v50 = vadd.f32 %v1551_v7, %v183_v41  ;;  %v507_v53 = vmax.f32 %v443_v44, 0.0  ;;  %v1191_v56 = vunpack.c.l.bf16 %v1459_v43  ;;  %v1463_v41 = vld [vmem:[%s1958_s1 + $0xa0] sm:$0xff]  }
  0x35   :  { %v508_v54 = vmax.f32 %v444_v45, 0.0  ;;  %v184_v55 = vmul.f32 %v1063_v47, %v1537_v1  ;;  %1487 = vst [vmem:[%s1961_s4 + $0x68] sm:$0xff] %v1321_v48   ;;  %v185_v60 = vmul.f32 %v1064_v51, %v1537_v1  ;;  %v1192_v61 = vunpack.c.h.bf16 %v1459_v43 }
  0x36   :  { %v445_v58 = vadd.f32 %v1187_v42, %v253_v49  ;;  %v446_v59 = vadd.f32 %v1188_v46, %v254_v50  ;;  %v1067_v0 = vunpack.c.l.bf16 %v1429_v52  ;;  %v1068_v2 = vunpack.c.h.bf16 %v1429_v52  ;;  %v1433_v50 = vld [vmem:[%s1957_s0 + $0xa8] sm:$0xff]  }
  0x37   :  { %v1326_v62 = vpack.c.bf16 %v508_v54, %v507_v53  ;;  %v255_v63 = vadd.f32 %v1551_v7, %v184_v55  ;;  %v256_v6 = vadd.f32 %v1551_v7, %v185_v60  ;;  %v1195_v8 = vunpack.c.l.bf16 %v1460_v57  ;;  %v1464_v55 = vld [vmem:[%s1958_s1 + $0xa8] sm:$0xff]  }
  0x38   :  { %v509_v4 = vmax.f32 %v445_v58, 0.0  ;;  %v510_v5 = vmax.f32 %v446_v59, 0.0  ;;  %v186_v11 = vmul.f32 %v1067_v0, %v1537_v1  ;;  %v187_v12 = vmul.f32 %v1068_v2, %v1537_v1  ;;  %v1434_v0 = vld [vmem:[%s1957_s0 + $0xb0] sm:$0xff]  }
  0x39   :  { %1488 = vst [vmem:[%s1961_s4 + $0x70] sm:$0xff] %v1326_v62   ;;  %v447_v10 = vadd.f32 %v1191_v56, %v255_v63  ;;  %v1196_v13 = vunpack.c.h.bf16 %v1460_v57  ;;  %v448_v15 = vadd.f32 %v1192_v61, %v256_v6  ;;  %v1071_v16 = vunpack.c.l.bf16 %v1430_v3  ;;  %v1465_v6 = vld [vmem:[%s1958_s1 + $0xb0] sm:$0xff]  }
  0x3a   :  { %v1331_v14 = vpack.c.bf16 %v510_v5, %v509_v4  ;;  %v1072_v17 = vunpack.c.h.bf16 %v1430_v3  ;;  %v257_v20 = vadd.f32 %v1551_v7, %v186_v11  ;;  %v258_v21 = vadd.f32 %v1551_v7, %v187_v12 }
  0x3b   :  { %v511_v19 = vmax.f32 %v447_v10, 0.0  ;;  %v1199_v22 = vunpack.c.l.bf16 %v1461_v9  ;;  %v512_v24 = vmax.f32 %v448_v15, 0.0  ;;  %v188_v25 = vmul.f32 %v1071_v16, %v1537_v1  ;;  %v1435_v16 = vld [vmem:[%s1957_s0 + $0xb8] sm:$0xff]  }
  0x3c   :  { %1489 = vst [vmem:[%s1961_s4 + $0x78] sm:$0xff] %v1331_v14   ;;  %v189_v26 = vmul.f32 %v1072_v17, %v1537_v1  ;;  %v1200_v27 = vunpack.c.h.bf16 %v1461_v9  ;;  %v449_v28 = vadd.f32 %v1195_v8, %v257_v20  ;;  %v450_v29 = vadd.f32 %v1196_v13, %v258_v21  ;;  %v1466_v21 = vld [vmem:[%s1958_s1 + $0xb8] sm:$0xff]  }
  0x3d   :  { %v1075_v30 = vunpack.c.l.bf16 %v1431_v18  ;;  %v1076_v31 = vunpack.c.h.bf16 %v1431_v18  ;;  %v1336_v33 = vpack.c.bf16 %v512_v24, %v511_v19  ;;  %v259_v34 = vadd.f32 %v1551_v7, %v188_v25 }
  0x3e   :  { %v260_v35 = vadd.f32 %v1551_v7, %v189_v26  ;;  %v1203_v36 = vunpack.c.l.bf16 %v1462_v23  ;;  %v513_v37 = vmax.f32 %v449_v28, 0.0  ;;  %v514_v38 = vmax.f32 %v450_v29, 0.0 }
  0x3f   :  { %v190_v39 = vmul.f32 %v1075_v30, %v1537_v1  ;;  %v191_v40 = vmul.f32 %v1076_v31, %v1537_v1  ;;  %1490 = vst [vmem:[%s1961_s4 + $0x80] sm:$0xff] %v1336_v33   ;;  %v451_v42 = vadd.f32 %v1199_v22, %v259_v34  ;;  %v1204_v44 = vunpack.c.h.bf16 %v1462_v23  ;;  %v1436_v30 = vld [vmem:[%s1957_s0 + $0xc0] sm:$0xff]  }
  0x40   :  { %v452_v43 = vadd.f32 %v1200_v27, %v260_v35  ;;  %v1079_v45 = vunpack.c.l.bf16 %v1432_v32  ;;  %v1341_v46 = vpack.c.bf16 %v514_v38, %v513_v37  ;;  %v1080_v49 = vunpack.c.h.bf16 %v1432_v32 }
  0x41   :  { %v261_v47 = vadd.f32 %v1551_v7, %v190_v39  ;;  %v262_v48 = vadd.f32 %v1551_v7, %v191_v40  ;;  %v515_v51 = vmax.f32 %v451_v42, 0.0  ;;  %v1207_v54 = vunpack.c.l.bf16 %v1463_v41  ;;  %v1467_v39 = vld [vmem:[%s1958_s1 + $0xc0] sm:$0xff]  }
  0x42   :  { %v516_v52 = vmax.f32 %v452_v43, 0.0  ;;  %v192_v53 = vmul.f32 %v1079_v45, %v1537_v1  ;;  %1491 = vst [vmem:[%s1961_s4 + $0x88] sm:$0xff] %v1341_v46   ;;  %v193_v58 = vmul.f32 %v1080_v49, %v1537_v1  ;;  %v1208_v59 = vunpack.c.h.bf16 %v1463_v41 }
  0x43   :  { %v453_v56 = vadd.f32 %v1203_v36, %v261_v47  ;;  %v454_v57 = vadd.f32 %v1204_v44, %v262_v48  ;;  %v1083_v62 = vunpack.c.l.bf16 %v1433_v50  ;;  %v1084_v63 = vunpack.c.h.bf16 %v1433_v50  ;;  %v1437_v48 = vld [vmem:[%s1957_s0 + $0xc8] sm:$0xff]  }
  0x44   :  { %v1346_v60 = vpack.c.bf16 %v516_v52, %v515_v51  ;;  %v263_v61 = vadd.f32 %v1551_v7, %v192_v53  ;;  %v264_v4 = vadd.f32 %v1551_v7, %v193_v58  ;;  %v1211_v5 = vunpack.c.l.bf16 %v1464_v55  ;;  %v1468_v53 = vld [vmem:[%s1958_s1 + $0xc8] sm:$0xff]  }
  0x45   :  { %v517_v2 = vmax.f32 %v453_v56, 0.0  ;;  %v518_v3 = vmax.f32 %v454_v57, 0.0  ;;  %v194_v9 = vmul.f32 %v1083_v62, %v1537_v1  ;;  %v195_v10 = vmul.f32 %v1084_v63, %v1537_v1  ;;  %v1438_v62 = vld [vmem:[%s1957_s0 + $0xd0] sm:$0xff]  }
  0x46   :  { %1492 = vst [vmem:[%s1961_s4 + $0x90] sm:$0xff] %v1346_v60   ;;  %v455_v8 = vadd.f32 %v1207_v54, %v263_v61  ;;  %v1212_v11 = vunpack.c.h.bf16 %v1464_v55  ;;  %v456_v13 = vadd.f32 %v1208_v59, %v264_v4  ;;  %v1087_v14 = vunpack.c.l.bf16 %v1434_v0  ;;  %v1469_v4 = vld [vmem:[%s1958_s1 + $0xd0] sm:$0xff]  }
  0x47   :  { %v1351_v12 = vpack.c.bf16 %v518_v3, %v517_v2  ;;  %v1088_v15 = vunpack.c.h.bf16 %v1434_v0  ;;  %v265_v18 = vadd.f32 %v1551_v7, %v194_v9  ;;  %v266_v19 = vadd.f32 %v1551_v7, %v195_v10 }
  0x48   :  { %v519_v17 = vmax.f32 %v455_v8, 0.0  ;;  %v1215_v20 = vunpack.c.l.bf16 %v1465_v6  ;;  %v520_v22 = vmax.f32 %v456_v13, 0.0  ;;  %v196_v23 = vmul.f32 %v1087_v14, %v1537_v1  ;;  %v1439_v14 = vld [vmem:[%s1957_s0 + $0xd8] sm:$0xff]  }
  0x49   :  { %1493 = vst [vmem:[%s1961_s4 + $0x98] sm:$0xff] %v1351_v12   ;;  %v197_v24 = vmul.f32 %v1088_v15, %v1537_v1  ;;  %v1216_v25 = vunpack.c.h.bf16 %v1465_v6  ;;  %v457_v26 = vadd.f32 %v1211_v5, %v265_v18  ;;  %v458_v27 = vadd.f32 %v1212_v11, %v266_v19  ;;  %v1470_v19 = vld [vmem:[%s1958_s1 + $0xd8] sm:$0xff]  }
  0x4a   :  { %v1091_v28 = vunpack.c.l.bf16 %v1435_v16  ;;  %v1092_v29 = vunpack.c.h.bf16 %v1435_v16  ;;  %v1356_v31 = vpack.c.bf16 %v520_v22, %v519_v17  ;;  %v267_v32 = vadd.f32 %v1551_v7, %v196_v23 }
  0x4b   :  { %v268_v33 = vadd.f32 %v1551_v7, %v197_v24  ;;  %v1219_v34 = vunpack.c.l.bf16 %v1466_v21  ;;  %v521_v35 = vmax.f32 %v457_v26, 0.0  ;;  %v522_v36 = vmax.f32 %v458_v27, 0.0 }
  0x4c   :  { %v198_v37 = vmul.f32 %v1091_v28, %v1537_v1  ;;  %v199_v38 = vmul.f32 %v1092_v29, %v1537_v1  ;;  %1494 = vst [vmem:[%s1961_s4 + $0xa0] sm:$0xff] %v1356_v31   ;;  %v459_v40 = vadd.f32 %v1215_v20, %v267_v32  ;;  %v1220_v42 = vunpack.c.h.bf16 %v1466_v21  ;;  %v1440_v28 = vld [vmem:[%s1957_s0 + $0xe0] sm:$0xff]  }
  0x4d   :  { %v460_v41 = vadd.f32 %v1216_v25, %v268_v33  ;;  %v1095_v43 = vunpack.c.l.bf16 %v1436_v30  ;;  %v1361_v44 = vpack.c.bf16 %v522_v36, %v521_v35  ;;  %v1096_v47 = vunpack.c.h.bf16 %v1436_v30 }
  0x4e   :  { %v269_v45 = vadd.f32 %v1551_v7, %v198_v37  ;;  %v270_v46 = vadd.f32 %v1551_v7, %v199_v38  ;;  %v523_v49 = vmax.f32 %v459_v40, 0.0  ;;  %v1223_v52 = vunpack.c.l.bf16 %v1467_v39  ;;  %v1471_v37 = vld [vmem:[%s1958_s1 + $0xe0] sm:$0xff]  }
  0x4f   :  { %v524_v50 = vmax.f32 %v460_v41, 0.0  ;;  %v200_v51 = vmul.f32 %v1095_v43, %v1537_v1  ;;  %1495 = vst [vmem:[%s1961_s4 + $0xa8] sm:$0xff] %v1361_v44   ;;  %v201_v56 = vmul.f32 %v1096_v47, %v1537_v1  ;;  %v1224_v57 = vunpack.c.h.bf16 %v1467_v39 }
  0x50   :  { %v461_v54 = vadd.f32 %v1219_v34, %v269_v45  ;;  %v462_v55 = vadd.f32 %v1220_v42, %v270_v46  ;;  %v1099_v60 = vunpack.c.l.bf16 %v1437_v48  ;;  %v1100_v61 = vunpack.c.h.bf16 %v1437_v48  ;;  %v1441_v46 = vld [vmem:[%s1957_s0 + $0xe8] sm:$0xff]  }
  0x51   :  { %v1366_v58 = vpack.c.bf16 %v524_v50, %v523_v49  ;;  %v271_v59 = vadd.f32 %v1551_v7, %v200_v51  ;;  %v272_v2 = vadd.f32 %v1551_v7, %v201_v56  ;;  %v1227_v3 = vunpack.c.l.bf16 %v1468_v53  ;;  %v1472_v51 = vld [vmem:[%s1958_s1 + $0xe8] sm:$0xff]  }
  0x52   :  { %v525_v63 = vmax.f32 %v461_v54, 0.0  ;;  %v526_v0 = vmax.f32 %v462_v55, 0.0  ;;  %v202_v6 = vmul.f32 %v1099_v60, %v1537_v1  ;;  %v203_v8 = vmul.f32 %v1100_v61, %v1537_v1  ;;  %v1442_v60 = vld [vmem:[%s1957_s0 + $0xf0] sm:$0xff]  }
  0x53   :  { %1496 = vst [vmem:[%s1961_s4 + $0xb0] sm:$0xff] %v1366_v58   ;;  %v463_v5 = vadd.f32 %v1223_v52, %v271_v59  ;;  %v1228_v9 = vunpack.c.h.bf16 %v1468_v53  ;;  %v464_v11 = vadd.f32 %v1224_v57, %v272_v2  ;;  %v1103_v12 = vunpack.c.l.bf16 %v1438_v62  ;;  %v1473_v2 = vld [vmem:[%s1958_s1 + $0xf0] sm:$0xff]  }
  0x54   :  { %v1371_v10 = vpack.c.bf16 %v526_v0, %v525_v63  ;;  %v1104_v13 = vunpack.c.h.bf16 %v1438_v62  ;;  %v273_v16 = vadd.f32 %v1551_v7, %v202_v6  ;;  %v274_v17 = vadd.f32 %v1551_v7, %v203_v8 }
  0x55   :  { %v527_v15 = vmax.f32 %v463_v5, 0.0  ;;  %v1231_v18 = vunpack.c.l.bf16 %v1469_v4  ;;  %v528_v20 = vmax.f32 %v464_v11, 0.0  ;;  %v204_v21 = vmul.f32 %v1103_v12, %v1537_v1  ;;  %v1443_v12 = vld [vmem:[%s1957_s0 + $0xf8] sm:$0xff]  }
  0x56   :  { %1497 = vst [vmem:[%s1961_s4 + $0xb8] sm:$0xff] %v1371_v10   ;;  %v205_v22 = vmul.f32 %v1104_v13, %v1537_v1  ;;  %v1232_v23 = vunpack.c.h.bf16 %v1469_v4  ;;  %v465_v24 = vadd.f32 %v1227_v3, %v273_v16  ;;  %v466_v25 = vadd.f32 %v1228_v9, %v274_v17  ;;  %v1474_v17 = vld [vmem:[%s1958_s1 + $0xf8] sm:$0xff]  }
  0x57   :  { %v1107_v26 = vunpack.c.l.bf16 %v1439_v14  ;;  %v1108_v27 = vunpack.c.h.bf16 %v1439_v14  ;;  %v1376_v29 = vpack.c.bf16 %v528_v20, %v527_v15  ;;  %v275_v30 = vadd.f32 %v1551_v7, %v204_v21 }
  0x58   :  { %v276_v31 = vadd.f32 %v1551_v7, %v205_v22  ;;  %v1235_v32 = vunpack.c.l.bf16 %v1470_v19  ;;  %v529_v33 = vmax.f32 %v465_v24, 0.0  ;;  %v530_v34 = vmax.f32 %v466_v25, 0.0 }
  0x59   :  { %v206_v35 = vmul.f32 %v1107_v26, %v1537_v1  ;;  %v207_v36 = vmul.f32 %v1108_v27, %v1537_v1  ;;  %1498 = vst [vmem:[%s1961_s4 + $0xc0] sm:$0xff] %v1376_v29   ;;  %v467_v38 = vadd.f32 %v1231_v18, %v275_v30  ;;  %v1236_v40 = vunpack.c.h.bf16 %v1470_v19 }
  0x5a   :  { %v468_v39 = vadd.f32 %v1232_v23, %v276_v31  ;;  %v1111_v41 = vunpack.c.l.bf16 %v1440_v28  ;;  %v1381_v42 = vpack.c.bf16 %v530_v34, %v529_v33  ;;  %v1112_v45 = vunpack.c.h.bf16 %v1440_v28 }
  0x5b   :  { %v277_v43 = vadd.f32 %v1551_v7, %v206_v35  ;;  %v278_v44 = vadd.f32 %v1551_v7, %v207_v36  ;;  %v531_v47 = vmax.f32 %v467_v38, 0.0  ;;  %v1239_v50 = vunpack.c.l.bf16 %v1471_v37 }
  0x5c   :  { %v532_v48 = vmax.f32 %v468_v39, 0.0  ;;  %v208_v49 = vmul.f32 %v1111_v41, %v1537_v1  ;;  %1499 = vst [vmem:[%s1961_s4 + $0xc8] sm:$0xff] %v1381_v42   ;;  %v209_v54 = vmul.f32 %v1112_v45, %v1537_v1  ;;  %v1240_v55 = vunpack.c.h.bf16 %v1471_v37 }
  0x5d   :  { %v469_v52 = vadd.f32 %v1235_v32, %v277_v43  ;;  %v470_v53 = vadd.f32 %v1236_v40, %v278_v44  ;;  %v1115_v58 = vunpack.c.l.bf16 %v1441_v46  ;;  %v1116_v59 = vunpack.c.h.bf16 %v1441_v46 }
  0x5e   :  { %v1386_v56 = vpack.c.bf16 %v532_v48, %v531_v47  ;;  %v279_v57 = vadd.f32 %v1551_v7, %v208_v49  ;;  %v280_v63 = vadd.f32 %v1551_v7, %v209_v54  ;;  %v1243_v0 = vunpack.c.l.bf16 %v1472_v51 }
  0x5f   :  { %v533_v61 = vmax.f32 %v469_v52, 0.0  ;;  %v534_v62 = vmax.f32 %v470_v53, 0.0  ;;  %v210_v4 = vmul.f32 %v1115_v58, %v1537_v1  ;;  %v211_v5 = vmul.f32 %v1116_v59, %v1537_v1 }
  0x60   :  { %1500 = vst [vmem:[%s1961_s4 + $0xd0] sm:$0xff] %v1386_v56   ;;  %v471_v3 = vadd.f32 %v1239_v50, %v279_v57  ;;  %v1244_v6 = vunpack.c.h.bf16 %v1472_v51  ;;  %v472_v9 = vadd.f32 %v1240_v55, %v280_v63  ;;  %v1119_v10 = vunpack.c.l.bf16 %v1442_v60 }
  0x61   :  { %v1391_v8 = vpack.c.bf16 %v534_v62, %v533_v61  ;;  %v1120_v11 = vunpack.c.h.bf16 %v1442_v60  ;;  %v281_v14 = vadd.f32 %v1551_v7, %v210_v4  ;;  %v282_v15 = vadd.f32 %v1551_v7, %v211_v5 }
  0x62   :  { %v535_v13 = vmax.f32 %v471_v3, 0.0  ;;  %v1247_v16 = vunpack.c.l.bf16 %v1473_v2  ;;  %v536_v18 = vmax.f32 %v472_v9, 0.0  ;;  %v212_v19 = vmul.f32 %v1119_v10, %v1537_v1 }
  0x63   :  { %1501 = vst [vmem:[%s1961_s4 + $0xd8] sm:$0xff] %v1391_v8   ;;  %v213_v20 = vmul.f32 %v1120_v11, %v1537_v1  ;;  %v1248_v21 = vunpack.c.h.bf16 %v1473_v2  ;;  %v473_v22 = vadd.f32 %v1243_v0, %v281_v14  ;;  %v474_v23 = vadd.f32 %v1244_v6, %v282_v15 }
  0x64   :  { %v1123_v24 = vunpack.c.l.bf16 %v1443_v12  ;;  %v1124_v25 = vunpack.c.h.bf16 %v1443_v12  ;;  %v1396_v26 = vpack.c.bf16 %v536_v18, %v535_v13  ;;  %v283_v27 = vadd.f32 %v1551_v7, %v212_v19 }
  0x65   :  { %v284_v28 = vadd.f32 %v1551_v7, %v213_v20  ;;  %v1251_v29 = vunpack.c.l.bf16 %v1474_v17  ;;  %v537_v30 = vmax.f32 %v473_v22, 0.0  ;;  %v538_v31 = vmax.f32 %v474_v23, 0.0 }
  0x66   :  { %v214_v32 = vmul.f32 %v1123_v24, %v1537_v1  ;;  %v215_v33 = vmul.f32 %v1124_v25, %v1537_v1  ;;  %1502 = vst [vmem:[%s1961_s4 + $0xe0] sm:$0xff] %v1396_v26   ;;  %v475_v34 = vadd.f32 %v1247_v16, %v283_v27  ;;  %v1252_v36 = vunpack.c.h.bf16 %v1474_v17 }
  0x67   :  { %v476_v35 = vadd.f32 %v1248_v21, %v284_v28  ;;  %v1401_v37 = vpack.c.bf16 %v538_v31, %v537_v30 }
  0x68   :  { %v285_v38 = vadd.f32 %v1551_v7, %v214_v32  ;;  %v286_v39 = vadd.f32 %v1551_v7, %v215_v33  ;;  %v539_v40 = vmax.f32 %v475_v34, 0.0 }
  0x69   :  { %v540_v41 = vmax.f32 %v476_v35, 0.0  ;;  %1503 = vst [vmem:[%s1961_s4 + $0xe8] sm:$0xff] %v1401_v37  }
  0x6a   :  { %v477_v42 = vadd.f32 %v1251_v29, %v285_v38  ;;  %v478_v1 = vadd.f32 %v1252_v36, %v286_v39 }
  0x6b   :  { %v1406_v43 = vpack.c.bf16 %v540_v41, %v539_v40 }
  0x6c   :  { %v541_v44 = vmax.f32 %v477_v42, 0.0  ;;  %v542_v45 = vmax.f32 %v478_v1, 0.0 }
  0x6d   :  { %1504 = vst [vmem:[%s1961_s4 + $0xf0] sm:$0xff] %v1406_v43  }
  0x6e   :  { %v1411_v46 = vpack.c.bf16 %v542_v45, %v541_v44 }
  0x70   :  { %1505 = vst [vmem:[%s1961_s4 + $0xf8] sm:$0xff] %v1411_v46  }

// kernel: _forward.46
= control target key start
LH: loop header
LB: loop body
LE: loop exit
PB: predicated region body
PF: predicated region fallthrough
CT: control target
= control target key end

     0   :  { %s2575_s12 = smov 0   ;;  %s2577_s13 = smov 0   ;;  %s3065_s0 = inlined_call_operand.vmem [shape: bf16[512,1152], index: 0, kind: input, shape index: {}]   ;;  %s3066_s1 = inlined_call_operand.vmem [shape: bf16[1152,128], index: 1, kind: input, shape index: {}]   ;;  %s3067_s2 = inlined_call_operand.vmem [shape: bf16[512,128], index: 2, kind: output, shape index: {0}]   ;;  %s3068_s3 = inlined_call_operand.vmem [shape: f32[16,128], index: 3, kind: output, shape index: {1}]  }
   0x1   :  { %s2579_s14 = smov 0   ;;  %s2581_s15 = smov 0  }
   0x2   :  { %s2583_s16 = smov 0   ;;  %s2585_s17 = smov 0  }
   0x3   :  { %s2587_s18 = smov 0  }
   0x4 LB: > { %s26_s19 = sadd.s32 1, %s2544_s16  ;;  %s33_s20 = sadd.s32 1, %s2548_s17  ;;  %s2552_s18 = sphi %s2587_s18, %s14_s18   ;;  %s2548_s17 = sphi %s2585_s17, %s3074_s17   ;;  %s2544_s16 = sphi %s2583_s16, %s3073_s16   ;;  %s2540_s15 = sphi %s2581_s15, %s3072_s15   ;;  %s2536_s14 = sphi %s2579_s14, %s3071_s14   ;;  %s2532_s13 = sphi %s2577_s13, %s3070_s13   ;;  %s2528_s12 = sphi %s2575_s12, %s3069_s12  }
   0x5   : > { %p27_p0 = scmp.ge.s32.totalorder %s26_s19, 3  ;;  %p49_p1 = scmp.ne.s32.totalorder %s2532_s13, %s2528_s12 }
   0x6   : > { %p50_p2 = scmp.eq.s32.totalorder %s2552_s18, 0  ;;  %s42_s24 = sadd.s32 1, %s2532_s13 }
   0x7   : > { %s3076_s19 = smov (%p27_p0, %s26_s19), 0  ;;  %s3078_s20 = smov (!%p27_p0, %s33_s20), %s2548_s17 }
   0x8   : > { %p51_p3 = por %p50_p2, %p49_p1  ;;  %p35_p4 = scmp.ge.s32.totalorder %s3078_s20, 2 }
   0x9   : > { %s38_s21 = ssub.s32 %s2544_s16, %s3076_s19  ;;  %p1842_p6 = scmp.ge.s32.totalorder %s2552_s18, 6 }
   0xa   : > { %s3080_s20 = smov (%p35_p4, %s3078_s20), 0 }
   0xb   : > { %s37_s22 = ssub.s32 %s2548_s17, %s3080_s20  ;;  %159 = sbr.rel (%p1842_p6) target bundleno = 64 (0x40), region = 16 }
   0xc   : > { %s39_s23 = sor.u32 %s38_s21, %s37_s22 }
   0xd   : > { %p40_p5 = scmp.eq.s32.totalorder %s39_s23, 0 }
   0xf   : > { %s2626_s25 = scalar_select %p40_p5, %s2532_s13, %s42_s24  }
  0x12   : > { %162 = sbr.rel (!%p51_p3) target bundleno = 64 (0x40), region = 20  ;;  %s164_s26 = sand.u32 (%p51_p3), 1, %s2532_s13  }
  0x13   : > { %s168_s27 = smul.u32 (%p51_p3), 3, %s2544_s16 }
  0x14   : > { %s2350_s28 = smul.u32 (%p51_p3), 384, %s164_s26 }
  0x15   : > { %s2351_s29 = smul.u32 (%p51_p3), 288, %s2548_s17 }
  0x16   : > { %s2640_s8 = scalar_lea.vmem (%p51_p3), [#allocation3], %s2350_s28 }
  0x17   : > { %s170_s30 = sadd.s32 (%p51_p3), %s2351_s29, %s168_s27 }
  0x18   : > { %s1845_s4 = sshll.u32 (%p51_p3), %s170_s30, 2 }
  0x19   : > { %s2635_s7 = scalar_lea.vmem %s3065_s0, %s1845_s4 }
  0x1a   : > { %v187_v0 = vld [vmem:[%s2635_s7] sm:$0xff]  ;;  %v191_v2 = vld [vmem:[%s2635_s7 + $0x48] sm:$0xff]  ;;  %v195_v4 = vld [vmem:[%s2635_s7 + $0x90] sm:$0xff] }
  0x1b   : > { %v189_v1 = vld [vmem:[%s2635_s7 + $0x24] sm:$0xff]  ;;  %188 = vst [vmem:[%s2640_s8] sm:$0xff] %v187_v0  ;;  %192 = vst [vmem:[%s2640_s8 + $0x18] sm:$0xff] %v191_v2  ;;  %v193_v3 = vld [vmem:[%s2635_s7 + $0x6c] sm:$0xff] }
  0x1c   : > { %190 = vst [vmem:[%s2640_s8 + $0xc] sm:$0xff] %v189_v1  ;;  %v197_v5 = vld [vmem:[%s2635_s7 + $0xb4] sm:$0xff]  ;;  %194 = vst [vmem:[%s2640_s8 + $0x24] sm:$0xff] %v193_v3  ;;  %v201_v7 = vld [vmem:[%s2635_s7 + $0xfc] sm:$0xff] }
  0x1d   : > { %196 = vst [vmem:[%s2640_s8 + $0x30] sm:$0xff] %v195_v4  ;;  %198 = vst [vmem:[%s2640_s8 + $0x3c] sm:$0xff] %v197_v5  ;;  %v199_v6 = vld [vmem:[%s2635_s7 + $0xd8] sm:$0xff]  ;;  %v203_v8 = vld [vmem:[%s2635_s7 + $0x120] sm:$0xff] }
  0x1e   : > { %200 = vst [vmem:[%s2640_s8 + $0x48] sm:$0xff] %v199_v6  ;;  %202 = vst [vmem:[%s2640_s8 + $0x54] sm:$0xff] %v201_v7  ;;  %v205_v9 = vld [vmem:[%s2635_s7 + $0x144] sm:$0xff]  ;;  %v209_v11 = vld [vmem:[%s2635_s7 + $0x18c] sm:$0xff] }
  0x1f   : > { %204 = vst [vmem:[%s2640_s8 + $0x60] sm:$0xff] %v203_v8  ;;  %v207_v10 = vld [vmem:[%s2635_s7 + $0x168] sm:$0xff]  ;;  %206 = vst [vmem:[%s2640_s8 + $0x6c] sm:$0xff] %v205_v9  ;;  %v211_v12 = vld [vmem:[%s2635_s7 + $0x1b0] sm:$0xff] }
  0x20   : > { %208 = vst [vmem:[%s2640_s8 + $0x78] sm:$0xff] %v207_v10  ;;  %210 = vst [vmem:[%s2640_s8 + $0x84] sm:$0xff] %v209_v11  ;;  %v213_v13 = vld [vmem:[%s2635_s7 + $0x1d4] sm:$0xff]  ;;  %v217_v15 = vld [vmem:[%s2635_s7 + $0x21c] sm:$0xff] }
  0x21   : > { %v215_v14 = vld [vmem:[%s2635_s7 + $0x1f8] sm:$0xff]  ;;  %212 = vst [vmem:[%s2640_s8 + $0x90] sm:$0xff] %v211_v12  ;;  %214 = vst [vmem:[%s2640_s8 + $0x9c] sm:$0xff] %v213_v13  ;;  %v219_v16 = vld [vmem:[%s2635_s7 + $0x240] sm:$0xff] }
  0x22   : > { %216 = vst [vmem:[%s2640_s8 + $0xa8] sm:$0xff] %v215_v14  ;;  %v221_v17 = vld [vmem:[%s2635_s7 + $0x264] sm:$0xff]  ;;  %218 = vst [vmem:[%s2640_s8 + $0xb4] sm:$0xff] %v217_v15  ;;  %v225_v19 = vld [vmem:[%s2635_s7 + $0x2ac] sm:$0xff] }
  0x23   : > { %220 = vst [vmem:[%s2640_s8 + $0xc0] sm:$0xff] %v219_v16  ;;  %222 = vst [vmem:[%s2640_s8 + $0xcc] sm:$0xff] %v221_v17  ;;  %v223_v18 = vld [vmem:[%s2635_s7 + $0x288] sm:$0xff]  ;;  %v227_v20 = vld [vmem:[%s2635_s7 + $0x2d0] sm:$0xff] }
  0x24   : > { %224 = vst [vmem:[%s2640_s8 + $0xd8] sm:$0xff] %v223_v18  ;;  %226 = vst [vmem:[%s2640_s8 + $0xe4] sm:$0xff] %v225_v19  ;;  %v229_v21 = vld [vmem:[%s2635_s7 + $0x2f4] sm:$0xff]  ;;  %v233_v23 = vld [vmem:[%s2635_s7 + $0x33c] sm:$0xff] }
  0x25   : > { %228 = vst [vmem:[%s2640_s8 + $0xf0] sm:$0xff] %v227_v20  ;;  %v231_v22 = vld [vmem:[%s2635_s7 + $0x318] sm:$0xff]  ;;  %230 = vst [vmem:[%s2640_s8 + $0xfc] sm:$0xff] %v229_v21  ;;  %v235_v24 = vld [vmem:[%s2635_s7 + $0x360] sm:$0xff] }
  0x26   : > { %232 = vst [vmem:[%s2640_s8 + $0x108] sm:$0xff] %v231_v22  ;;  %234 = vst [vmem:[%s2640_s8 + $0x114] sm:$0xff] %v233_v23  ;;  %v237_v25 = vld [vmem:[%s2635_s7 + $0x384] sm:$0xff]  ;;  %v241_v27 = vld [vmem:[%s2635_s7 + $0x3cc] sm:$0xff] }
  0x27   : > { %v239_v26 = vld [vmem:[%s2635_s7 + $0x3a8] sm:$0xff]  ;;  %236 = vst [vmem:[%s2640_s8 + $0x120] sm:$0xff] %v235_v24  ;;  %238 = vst [vmem:[%s2640_s8 + $0x12c] sm:$0xff] %v237_v25  ;;  %v243_v28 = vld [vmem:[%s2635_s7 + $0x3f0] sm:$0xff] }
  0x28   : > { %240 = vst [vmem:[%s2640_s8 + $0x138] sm:$0xff] %v239_v26  ;;  %v245_v29 = vld [vmem:[%s2635_s7 + $0x414] sm:$0xff]  ;;  %242 = vst [vmem:[%s2640_s8 + $0x144] sm:$0xff] %v241_v27  ;;  %v249_v31 = vld [vmem:[%s2635_s7 + $0x45c] sm:$0xff] }
  0x29   : > { %244 = vst [vmem:[%s2640_s8 + $0x150] sm:$0xff] %v243_v28  ;;  %246 = vst [vmem:[%s2640_s8 + $0x15c] sm:$0xff] %v245_v29  ;;  %v247_v30 = vld [vmem:[%s2635_s7 + $0x438] sm:$0xff]  ;;  %v1846_v32 = vld [vmem:[%s2635_s7 + $0x8] sm:$0xf] }
  0x2a   : > { %248 = vst [vmem:[%s2640_s8 + $0x168] sm:$0xff] %v247_v30  ;;  %250 = vst [vmem:[%s2640_s8 + $0x174] sm:$0xff] %v249_v31  ;;  %v1848_v33 = vld [vmem:[%s2635_s7 + $0x2c] sm:$0xf]  ;;  %v1850_v34 = vld [vmem:[%s2635_s7 + $0x50] sm:$0xf] }
  0x2b   : > { %1847 = vst [vmem:[%s2640_s8 + $0x8] sm:$0xf] %v1846_v32  ;;  %v1852_v35 = vld [vmem:[%s2635_s7 + $0x74] sm:$0xf]  ;;  %1849 = vst [vmem:[%s2640_s8 + $0x14] sm:$0xf] %v1848_v33 }
  0x2c   : > { %1851 = vst [vmem:[%s2640_s8 + $0x20] sm:$0xf] %v1850_v34  ;;  %1853 = vst [vmem:[%s2640_s8 + $0x2c] sm:$0xf] %v1852_v35  ;;  %v1854_v36 = vld [vmem:[%s2635_s7 + $0x98] sm:$0xf] }
  0x2d   : > { %v1856_v37 = vld [vmem:[%s2635_s7 + $0xbc] sm:$0xf]  ;;  %v1858_v38 = vld [vmem:[%s2635_s7 + $0xe0] sm:$0xf]  ;;  %1855 = vst [vmem:[%s2640_s8 + $0x38] sm:$0xf] %v1854_v36 }
  0x2e   : > { %1857 = vst [vmem:[%s2640_s8 + $0x44] sm:$0xf] %v1856_v37  ;;  %1859 = vst [vmem:[%s2640_s8 + $0x50] sm:$0xf] %v1858_v38  ;;  %v1860_v39 = vld [vmem:[%s2635_s7 + $0x104] sm:$0xf] }
  0x2f   : > { %v1862_v40 = vld [vmem:[%s2635_s7 + $0x128] sm:$0xf]  ;;  %v1864_v41 = vld [vmem:[%s2635_s7 + $0x14c] sm:$0xf]  ;;  %1861 = vst [vmem:[%s2640_s8 + $0x5c] sm:$0xf] %v1860_v39 }
  0x30   : > { %1863 = vst [vmem:[%s2640_s8 + $0x68] sm:$0xf] %v1862_v40  ;;  %1865 = vst [vmem:[%s2640_s8 + $0x74] sm:$0xf] %v1864_v41  ;;  %v1866_v42 = vld [vmem:[%s2635_s7 + $0x170] sm:$0xf] }
  0x31   : > { %v1868_v43 = vld [vmem:[%s2635_s7 + $0x194] sm:$0xf]  ;;  %v1870_v44 = vld [vmem:[%s2635_s7 + $0x1b8] sm:$0xf]  ;;  %1867 = vst [vmem:[%s2640_s8 + $0x80] sm:$0xf] %v1866_v42 }
  0x32   : > { %1869 = vst [vmem:[%s2640_s8 + $0x8c] sm:$0xf] %v1868_v43  ;;  %1871 = vst [vmem:[%s2640_s8 + $0x98] sm:$0xf] %v1870_v44  ;;  %v1872_v45 = vld [vmem:[%s2635_s7 + $0x1dc] sm:$0xf] }
  0x33   : > { %v1874_v46 = vld [vmem:[%s2635_s7 + $0x200] sm:$0xf]  ;;  %v1876_v47 = vld [vmem:[%s2635_s7 + $0x224] sm:$0xf]  ;;  %1873 = vst [vmem:[%s2640_s8 + $0xa4] sm:$0xf] %v1872_v45 }
  0x34   : > { %1875 = vst [vmem:[%s2640_s8 + $0xb0] sm:$0xf] %v1874_v46  ;;  %1877 = vst [vmem:[%s2640_s8 + $0xbc] sm:$0xf] %v1876_v47  ;;  %v1878_v48 = vld [vmem:[%s2635_s7 + $0x248] sm:$0xf] }
  0x35   : > { %v1880_v49 = vld [vmem:[%s2635_s7 + $0x26c] sm:$0xf]  ;;  %v1882_v50 = vld [vmem:[%s2635_s7 + $0x290] sm:$0xf]  ;;  %1879 = vst [vmem:[%s2640_s8 + $0xc8] sm:$0xf] %v1878_v48 }
  0x36   : > { %1881 = vst [vmem:[%s2640_s8 + $0xd4] sm:$0xf] %v1880_v49  ;;  %1883 = vst [vmem:[%s2640_s8 + $0xe0] sm:$0xf] %v1882_v50  ;;  %v1884_v51 = vld [vmem:[%s2635_s7 + $0x2b4] sm:$0xf] }
  0x37   : > { %v1886_v52 = vld [vmem:[%s2635_s7 + $0x2d8] sm:$0xf]  ;;  %v1888_v53 = vld [vmem:[%s2635_s7 + $0x2fc] sm:$0xf]  ;;  %1885 = vst [vmem:[%s2640_s8 + $0xec] sm:$0xf] %v1884_v51 }
  0x38   : > { %1887 = vst [vmem:[%s2640_s8 + $0xf8] sm:$0xf] %v1886_v52  ;;  %1889 = vst [vmem:[%s2640_s8 + $0x104] sm:$0xf] %v1888_v53  ;;  %v1890_v54 = vld [vmem:[%s2635_s7 + $0x320] sm:$0xf] }
  0x39   : > { %v1892_v55 = vld [vmem:[%s2635_s7 + $0x344] sm:$0xf]  ;;  %v1894_v56 = vld [vmem:[%s2635_s7 + $0x368] sm:$0xf]  ;;  %1891 = vst [vmem:[%s2640_s8 + $0x110] sm:$0xf] %v1890_v54 }
  0x3a   : > { %1893 = vst [vmem:[%s2640_s8 + $0x11c] sm:$0xf] %v1892_v55  ;;  %1895 = vst [vmem:[%s2640_s8 + $0x128] sm:$0xf] %v1894_v56  ;;  %v1896_v57 = vld [vmem:[%s2635_s7 + $0x38c] sm:$0xf] }
  0x3b   : > { %v1898_v58 = vld [vmem:[%s2635_s7 + $0x3b0] sm:$0xf]  ;;  %v1900_v59 = vld [vmem:[%s2635_s7 + $0x3d4] sm:$0xf]  ;;  %1897 = vst [vmem:[%s2640_s8 + $0x134] sm:$0xf] %v1896_v57 }
  0x3c   : > { %1899 = vst [vmem:[%s2640_s8 + $0x140] sm:$0xf] %v1898_v58  ;;  %1901 = vst [vmem:[%s2640_s8 + $0x14c] sm:$0xf] %v1900_v59  ;;  %v1902_v60 = vld [vmem:[%s2635_s7 + $0x3f8] sm:$0xf] }
  0x3d   : > { %v1904_v61 = vld [vmem:[%s2635_s7 + $0x41c] sm:$0xf]  ;;  %v1906_v62 = vld [vmem:[%s2635_s7 + $0x440] sm:$0xf]  ;;  %1903 = vst [vmem:[%s2640_s8 + $0x158] sm:$0xf] %v1902_v60 }
  0x3e   : > { %1905 = vst [vmem:[%s2640_s8 + $0x164] sm:$0xf] %v1904_v61  ;;  %1907 = vst [vmem:[%s2640_s8 + $0x170] sm:$0xf] %v1906_v62  ;;  %v1908_v63 = vld [vmem:[%s2635_s7 + $0x464] sm:$0xf] }
  0x3f   : > { %1909 = vst [vmem:[%s2640_s8 + $0x17c] sm:$0xf] %v1908_v63 }
  0x40 PF: > { %p1910_p7 = scmp.ge.s32.totalorder %s2552_s18, 1  ;;  %p338_p8 = scmp.lt.s32.totalorder %s2552_s18, 7 }
  0x42   : > { %p339_p9 = pnand %p1910_p7, %p338_p8 }
  0x43   : > { %s345_s9 = sand.u32 (!%p339_p9), 1, %s2528_s12   ;;  %s388_s10 = smul.u32 (!%p339_p9), 48, %s2536_s14 }
  0x44   : > { %342 = sbr.rel (%p339_p9) target bundleno = 510 (0x1fe), region = 50  ;;  %s1912_s21 = sshll.u32 (!%p339_p9), %s2540_s15, 5 }
  0x45   : > { %s2352_s11 = smul.u32 (!%p339_p9), 384, %s345_s9  ;;  %p389_p10 = scmp.lt.s32.totalorder (!%p339_p9), %s388_s10, 143 }
  0x46   : > { %p398_p11 = scmp.lt.s32.totalorder (!%p339_p9), %s1912_s21, 63  ;;  %p406_p12 = scmp.lt.s32.totalorder (!%p339_p9), %s2540_s15, 1 }
  0x47   : > { %s2789_s7 = scalar_lea.vmem (!%p339_p9), [#allocation3], %s2352_s11  ;;  %p1915_p13 = scmp.ne.s32.totalorder (!%p339_p9), %s2536_s14, 0 }
  0x4b   : > { %s3082_s10 = smov (!%p389_p10, %s388_s10), 143  ;;  %s3084_s21 = smov (!%p398_p11, %s1912_s21), 63 }
  0x4c   : > { %s1911_s22 = sshll.u32 %s3082_s10, 2  ;;  %s1913_s27 = sshll.u32 %s3084_s21, 2  ;;  %v2554_v0 = vmov (!%p1915_p13), 0.0  }
  0x4d   : > { %s2776_s26 = scalar_lea.vmem %s3066_s1, %s1911_s22  ;;  %s2781_s30 = scalar_lea.vmem %s3067_s2, %s1913_s27  ;;  %418 = vst [vmem:[#allocation2] sm:$0xff] (!%p1915_p13), %v2554_v0  ;;  %419 = vst [vmem:[#allocation2 + $0x8] sm:$0xff] (!%p1915_p13), %v2554_v0 }
  0x4e   : > { %s3086_s15 = smov (!%p406_p12, %s2540_s15), 1  ;;  %417 = sbr.rel (%p1915_p13) target bundleno = 94 (0x5e), region = 58 }
  0x4f   : > { %s1914_s12 = sshll.u32 %s3086_s15, 3  ;;  %420 = vst [vmem:[#allocation2 + $0x10] sm:$0xff] (!%p1915_p13), %v2554_v0  ;;  %421 = vst [vmem:[#allocation2 + $0x18] sm:$0xff] (!%p1915_p13), %v2554_v0 }
  0x50   : > { %s2787_s6 = scalar_lea.vmem %s3068_s3, %s1914_s12  ;;  %422 = vst [vmem:[#allocation2 + $0x20] sm:$0xff] (!%p1915_p13), %v2554_v0  ;;  %423 = vst [vmem:[#allocation2 + $0x28] sm:$0xff] (!%p1915_p13), %v2554_v0 }
  0x51   : > { %424 = vst [vmem:[#allocation2 + $0x30] sm:$0xff] (!%p1915_p13), %v2554_v0  ;;  %425 = vst [vmem:[#allocation2 + $0x38] sm:$0xff] (!%p1915_p13), %v2554_v0 }
  0x52   : > { %426 = vst [vmem:[#allocation2 + $0x40] sm:$0xff] (!%p1915_p13), %v2554_v0  ;;  %427 = vst [vmem:[#allocation2 + $0x48] sm:$0xff] (!%p1915_p13), %v2554_v0 }
  0x53   : > { %428 = vst [vmem:[#allocation2 + $0x50] sm:$0xff] (!%p1915_p13), %v2554_v0  ;;  %429 = vst [vmem:[#allocation2 + $0x58] sm:$0xff] (!%p1915_p13), %v2554_v0 }
  0x54   : > { %430 = vst [vmem:[#allocation2 + $0x60] sm:$0xff] (!%p1915_p13), %v2554_v0  ;;  %431 = vst [vmem:[#allocation2 + $0x68] sm:$0xff] (!%p1915_p13), %v2554_v0 }
  0x55   : > { %432 = vst [vmem:[#allocation2 + $0x70] sm:$0xff] %v2554_v0  ;;  %433 = vst [vmem:[#allocation2 + $0x78] sm:$0xff] %v2554_v0 }
  0x56   : > { %434 = vst [vmem:[#allocation2 + $0x80] sm:$0xff] %v2554_v0  ;;  %435 = vst [vmem:[#allocation2 + $0x88] sm:$0xff] %v2554_v0 }
  0x57   : > { %436 = vst [vmem:[#allocation2 + $0x90] sm:$0xff] %v2554_v0  ;;  %437 = vst [vmem:[#allocation2 + $0x98] sm:$0xff] %v2554_v0 }
  0x58   : > { %438 = vst [vmem:[#allocation2 + $0xa0] sm:$0xff] %v2554_v0  ;;  %439 = vst [vmem:[#allocation2 + $0xa8] sm:$0xff] %v2554_v0 }
  0x59   : > { %440 = vst [vmem:[#allocation2 + $0xb0] sm:$0xff] %v2554_v0  ;;  %441 = vst [vmem:[#allocation2 + $0xb8] sm:$0xff] %v2554_v0 }
  0x5a   : > { %442 = vst [vmem:[#allocation2 + $0xc0] sm:$0xff] %v2554_v0  ;;  %443 = vst [vmem:[#allocation2 + $0xc8] sm:$0xff] %v2554_v0 }
  0x5b   : > { %444 = vst [vmem:[#allocation2 + $0xd0] sm:$0xff] %v2554_v0  ;;  %445 = vst [vmem:[#allocation2 + $0xd8] sm:$0xff] %v2554_v0 }
  0x5c   : > { %446 = vst [vmem:[#allocation2 + $0xe0] sm:$0xff] %v2554_v0  ;;  %447 = vst [vmem:[#allocation2 + $0xe8] sm:$0xff] %v2554_v0 }
  0x5d   : > { %448 = vst [vmem:[#allocation2 + $0xf0] sm:$0xff] %v2554_v0  ;;  %449 = vst [vmem:[#allocation2 + $0xf8] sm:$0xff] %v2554_v0 }
  0x5e PF: > { %v2410_v1 = vld [vmem:[%s2776_s26 + $0x40] sm:$0xff]   ;;  %v2412_v3 = vld [vmem:[%s2776_s26 + $0x48] sm:$0xff]   ;;  %v2414_v5 = vld [vmem:[%s2776_s26 + $0x50] sm:$0xff]   ;;  %p1988_p0 = scmp.ne.s32.totalorder %s2536_s14, 2 }
  0x5f   : > { %v2411_v2 = vld [vmem:[%s2776_s26] sm:$0xff]   ;;  %2150 = vmatprep.subr.bf16.mxu0 %v2410_v1  ;;  %2334 = vmatprep.subr.bf16.mxu1 %v2410_v1  ;;  %v2413_v4 = vld [vmem:[%s2776_s26 + $0x8] sm:$0xff]   ;;  %v2415_v6 = vld [vmem:[%s2776_s26 + $0x10] sm:$0xff]  }
  0x60   : > { %2151 = vmatpush3.bf16.msra.mxu0 %v2411_v2  ;;  %2342 = vmatpush3.bf16.msra.mxu1 %v2411_v2  ;;  %v2416_v7 = vld [vmem:[%s2776_s26 + $0x58] sm:$0xff]   ;;  %v2418_v9 = vld [vmem:[%s2776_s26 + $0x60] sm:$0xff]   ;;  %v2420_v11 = vld [vmem:[%s2776_s26 + $0x68] sm:$0xff]  }
  0x61   : > { %2152 = vmatprep.subr.bf16.mxu0 %v2412_v3  ;;  %2335 = vmatprep.subr.bf16.mxu1 %v2412_v3  ;;  %v2417_v8 = vld [vmem:[%s2776_s26 + $0x18] sm:$0xff]   ;;  %v2419_v10 = vld [vmem:[%s2776_s26 + $0x20] sm:$0xff]   ;;  %v2421_v14 = vld [vmem:[%s2776_s26 + $0x28] sm:$0xff]  }
  0x62   : > { %v2428_v12 = vld [vmem:[%s2789_s7 + $0x4] ss:$12 sps:$4 sm:$0xff]   ;;  %v2424_v17 = vld [vmem:[%s2776_s26 + $0x78] sm:$0xff]   ;;  %v2426_v20 = vld [vmem:[%s2789_s7] ss:$12 sps:$4 sm:$0xff]  }
  0x63   : > { %v2431_v13 = vld [vmem:[%s2789_s7 + $0x124] ss:$12 sps:$4 sm:$0xff]   ;;  %1026 = vmatprep.mubr.bf16.mxu0 %v2428_v12  ;;  %v2425_v18 = vld [vmem:[%s2776_s26 + $0x38] sm:$0xff]   ;;  %v2429_v21 = vld [vmem:[%s2789_s7 + $0x120] ss:$12 sps:$4 sm:$0xff]  }
  0x64   : > { %2153 = vmatpush3.bf16.msra.mxu0 %v2413_v4  ;;  %2343 = vmatpush3.bf16.msra.mxu1 %v2413_v4  ;;  %v2422_v15 = vld [vmem:[%s2776_s26 + $0x70] sm:$0xff]   ;;  %v2432_v19 = vld [vmem:[%s2776_s26 + $0x80] sm:$0xff]   ;;  %v2434_v22 = vld [vmem:[%s2789_s7 + $0x1c] ss:$12 sps:$4 sm:$0xff]  }
  0x65   : > { %2154 = vmatprep.subr.bf16.mxu0 %v2414_v5  ;;  %2336 = vmatprep.subr.bf16.mxu1 %v2414_v5  ;;  %v2423_v16 = vld [vmem:[%s2776_s26 + $0x30] sm:$0xff]   ;;  %v2433_v23 = vld [vmem:[%s2776_s26 + $0x88] sm:$0xff]   ;;  %v2438_v25 = vld [vmem:[%s2789_s7 + $0x18] ss:$12 sps:$4 sm:$0xff]  }
  0x66   : > { %1122 = vmatprep.mubr.bf16.mxu1 %v2431_v13  ;;  %v2436_v24 = vld [vmem:[%s2789_s7 + $0x13c] ss:$12 sps:$4 sm:$0xff]   ;;  %v2440_v26 = vld [vmem:[%s2776_s26 + $0x90] sm:$0xff]   ;;  %v2439_v27 = vld [vmem:[%s2789_s7 + $0x138] ss:$12 sps:$4 sm:$0xff]  }
  0x67   : > { %v2441_v28 = vld [vmem:[%s2776_s26 + $0x98] sm:$0xff]   ;;  %v2442_v29 = vld [vmem:[%s2789_s7 + $0x34] ss:$12 sps:$4 sm:$0xff]   ;;  %v2449_v34 = vld [vmem:[%s2776_s26 + $0xa8] sm:$0xff]  }
  0x68   : > { %2155 = vmatpush3.bf16.msra.mxu0 %v2415_v6  ;;  %2344 = vmatpush3.bf16.msra.mxu1 %v2415_v6  ;;  %v2444_v30 = vld [vmem:[%s2789_s7 + $0x154] ss:$12 sps:$4 sm:$0xff]   ;;  %v2446_v32 = vld [vmem:[%s2789_s7 + $0x30] ss:$12 sps:$4 sm:$0xff]   ;;  %v2450_v35 = vld [vmem:[%s2789_s7 + $0x4c] ss:$12 sps:$4 sm:$0xff]  }
  0x69   : > { %2156 = vmatprep.subr.bf16.mxu0 %v2416_v7  ;;  %2337 = vmatprep.subr.bf16.mxu1 %v2416_v7  ;;  %v2448_v31 = vld [vmem:[%s2776_s26 + $0xa0] sm:$0xff]   ;;  %v2447_v33 = vld [vmem:[%s2789_s7 + $0x150] ss:$12 sps:$4 sm:$0xff]   ;;  %v2452_v36 = vld [vmem:[%s2789_s7 + $0x16c] ss:$12 sps:$4 sm:$0xff]  }
  0x6a   : > { %v2456_v37 = vld [vmem:[%s2776_s26 + $0xb0] sm:$0xff]   ;;  %v2457_v41 = vld [vmem:[%s2776_s26 + $0xb8] sm:$0xff]   ;;  %v2461_v43 = vld [vmem:[%s2789_s7 + $0x60] ss:$12 sps:$4 sm:$0xff]  }
  0x6b   : > { %v2454_v38 = vld [vmem:[%s2789_s7 + $0x48] ss:$12 sps:$4 sm:$0xff]   ;;  %v2458_v40 = vld [vmem:[%s2789_s7 + $0x64] ss:$12 sps:$4 sm:$0xff]   ;;  %v2462_v44 = vld [vmem:[%s2789_s7 + $0x20] ss:$12 sps:$4 sm:$0xff]  }
  0x6c   : > { %2157 = vmatpush3.bf16.msra.mxu0 %v2417_v8  ;;  %2345 = vmatpush3.bf16.msra.mxu1 %v2417_v8  ;;  %v2455_v39 = vld [vmem:[%s2789_s7 + $0x168] ss:$12 sps:$4 sm:$0xff]   ;;  %v2465_v46 = vld [vmem:[%s2789_s7 + $0x38] ss:$12 sps:$4 sm:$0xff]   ;;  %v2467_v48 = vld [vmem:[%s2789_s7 + $0x50] ss:$12 sps:$4 sm:$0xff]  }
  0x6d   : > { %2158 = vmatprep.subr.bf16.mxu0 %v2418_v9  ;;  %2338 = vmatprep.subr.bf16.mxu1 %v2418_v9  ;;  %v2460_v42 = vld [vmem:[%s2789_s7 + $0x8] ss:$12 sps:$4 sm:$0xff]   ;;  %v2466_v47 = vld [vmem:[%s2789_s7 + $0x78] ss:$12 sps:$4 sm:$0xff]   ;;  %v2471_v51 = vld [vmem:[%s2789_s7 + $0x90] ss:$12 sps:$4 sm:$0xff]  }
  0x6e   : > { %v2463_v45 = vld [vmem:[%s2789_s7 + $0x7c] ss:$12 sps:$4 sm:$0xff]   ;;  %v2468_v49 = vld [vmem:[%s2789_s7 + $0x94] ss:$12 sps:$4 sm:$0xff]   ;;  %v2473_v53 = vld [vmem:[%s2789_s7 + $0xac] ss:$12 sps:$4 sm:$0xff]  }
  0x6f   : > { %v2470_v50 = vld [vmem:[%s2789_s7 + $0x68] ss:$12 sps:$4 sm:$0xff]   ;;  %v2472_v52 = vld [vmem:[%s2789_s7 + $0x80] ss:$12 sps:$4 sm:$0xff]   ;;  %v2475_v54 = vld [vmem:[%s2789_s7 + $0x98] ss:$12 sps:$4 sm:$0xff]  }
  0x70   : > { %2159 = vmatpush3.bf16.msra.mxu0 %v2419_v10  ;;  %2346 = vmatpush3.bf16.msra.mxu1 %v2419_v10  ;;  %v2476_v55 = vld [vmem:[%s2789_s7 + $0xa8] ss:$12 sps:$4 sm:$0xff]   ;;  %v2477_v56 = vld [vmem:[%s2789_s7 + $0xb0] ss:$12 sps:$4 sm:$0xff]   ;;  %v2481_v59 = vld [vmem:[%s2789_s7 + $0xc0] ss:$12 sps:$4 sm:$0xff]  }
  0x71   : > { %2160 = vmatprep.subr.bf16.mxu0 %v2420_v11  ;;  %2339 = vmatprep.subr.bf16.mxu1 %v2420_v11  ;;  %v2478_v57 = vld [vmem:[%s2789_s7 + $0xc4] ss:$12 sps:$4 sm:$0xff]   ;;  %v2480_v58 = vld [vmem:[%s2789_s7 + $0xc8] ss:$12 sps:$4 sm:$0xff]   ;;  %v2482_v60 = vld [vmem:[%s2789_s7 + $0xe0] ss:$12 sps:$4 sm:$0xff]  }
  0x72   : > { %v2483_v61 = vld [vmem:[%s2789_s7 + $0xdc] ss:$12 sps:$4 sm:$0xff]   ;;  %v2485_v62 = vld [vmem:[%s2789_s7 + $0xf8] ss:$12 sps:$4 sm:$0xff]   ;;  %v2488_v1 = vld [vmem:[%s2789_s7 + $0xf4] ss:$12 sps:$4 sm:$0xff]  }
  0x73   : > { %v2486_v63 = vld [vmem:[%s2789_s7 + $0xd8] ss:$12 sps:$4 sm:$0xff]   ;;  %v2487_v0 = vld [vmem:[%s2789_s7 + $0x110] ss:$12 sps:$4 sm:$0xff]   ;;  %v2490_v2 = vld [vmem:[%s2789_s7 + $0x128] ss:$12 sps:$4 sm:$0xff]  }
  0x74   : > { %2161 = vmatpush3.bf16.msra.mxu0 %v2421_v14  ;;  %2347 = vmatpush3.bf16.msra.mxu1 %v2421_v14  ;;  %v2491_v3 = vld [vmem:[%s2789_s7 + $0xf0] ss:$12 sps:$4 sm:$0xff]   ;;  %v2492_v4 = vld [vmem:[%s2789_s7 + $0x140] ss:$12 sps:$4 sm:$0xff]   ;;  %v2495_v6 = vld [vmem:[%s2789_s7 + $0x158] ss:$12 sps:$4 sm:$0xff]  }
  0x75   : > { %2162 = vmatprep.subr.bf16.mxu0 %v2422_v15  ;;  %2340 = vmatprep.subr.bf16.mxu1 %v2422_v15  ;;  %v2493_v5 = vld [vmem:[%s2789_s7 + $0x10c] ss:$12 sps:$4 sm:$0xff]   ;;  %v2496_v7 = vld [vmem:[%s2789_s7 + $0x108] ss:$12 sps:$4 sm:$0xff]   ;;  %v2497_v8 = vld [vmem:[%s2789_s7 + $0x170] ss:$12 sps:$4 sm:$0xff]  }
  0x78   : > { %2163 = vmatpush3.bf16.msra.mxu0 %v2423_v16  ;;  %2348 = vmatpush3.bf16.msra.mxu1 %v2423_v16 }
  0x79   : > { %2164 = vmatprep.subr.bf16.mxu0 %v2424_v17  ;;  %2341 = vmatprep.subr.bf16.mxu1 %v2424_v17 }
  0x7c   : > { %2165 = vmatpush3.bf16.msra.mxu0 %v2425_v18  ;;  %2349 = vmatpush3.bf16.msra.mxu1 %v2425_v18 }
  0x7d   : > { %2286 = vmatprep.subr.bf16.mxu1 %v2432_v19 }
  0x7f   : > { %1027 = vmatmul.mubr.bf16.vlgmr.msra.gmra.mrb[0].mxu0 %v2426_v20  ;;  %1123 = vmatmul.mubr.bf16.vlgmr.msra.gmra.mrb[0].mxu1 %v2429_v21 }
  0x80   : > { %2287 = vmatpush3.bf16.msra.mxu1 %v2432_v19  ;;  %1034 = vmatprep.mubr.bf16.mxu0 %v2434_v22 }
  0x81   : > { %2288 = vmatprep.subr.bf16.mxu1 %v2433_v23  ;;  %1130 = vmatprep.mubr.bf16.mxu1 %v2436_v24 }
  0x84   : > { %2289 = vmatpush3.bf16.msra.mxu1 %v2433_v23 }
  0x85   : > { %2290 = vmatprep.subr.bf16.mxu1 %v2440_v26 }
  0x87   : > { %1035 = vmatmul.mubr.bf16.gmra.mrb[4].mxu0 %v2438_v25  ;;  %1131 = vmatmul.mubr.bf16.gmra.mrb[4].mxu1 %v2439_v27 }
  0x88   : > { %2291 = vmatpush3.bf16.msra.mxu1 %v2440_v26  ;;  %1042 = vmatprep.mubr.bf16.mxu0 %v2442_v29 }
  0x89   : > { %2292 = vmatprep.subr.bf16.mxu1 %v2441_v28  ;;  %1138 = vmatprep.mubr.bf16.mxu1 %v2444_v30 }
  0x8c   : > { %2293 = vmatpush3.bf16.msra.mxu1 %v2441_v28 }
  0x8d   : > { %2294 = vmatprep.subr.bf16.mxu1 %v2448_v31 }
  0x8f   : > { %1043 = vmatmul.mubr.bf16.gmra.mrb[8].mxu0 %v2446_v32  ;;  %1139 = vmatmul.mubr.bf16.gmra.mrb[8].mxu1 %v2447_v33 }
  0x90   : > { %2295 = vmatpush3.bf16.msra.mxu1 %v2448_v31  ;;  %1050 = vmatprep.mubr.bf16.mxu0 %v2450_v35 }
  0x91   : > { %2296 = vmatprep.subr.bf16.mxu1 %v2449_v34  ;;  %1146 = vmatprep.mubr.bf16.mxu1 %v2452_v36 }
  0x94   : > { %2297 = vmatpush3.bf16.msra.mxu1 %v2449_v34 }
  0x95   : > { %2298 = vmatprep.subr.bf16.mxu1 %v2456_v37 }
  0x97   : > { %1051 = vmatmul.mubr.bf16.gmra.mrb[12].mxu0 %v2454_v38  ;;  %1147 = vmatmul.mubr.bf16.gmra.mrb[12].mxu1 %v2455_v39 }
  0x98   : > { %2299 = vmatpush3.bf16.msra.mxu1 %v2456_v37  ;;  %1058 = vmatprep.mubr.bf16.mxu0 %v2458_v40 }
  0x99   : > { %2300 = vmatprep.subr.bf16.mxu1 %v2457_v41  ;;  %2302 = vmatprep.mubr.bf16.mxu1 %v2460_v42 }
  0x9c   : > { %2301 = vmatpush3.bf16.msra.mxu1 %v2457_v41 }
  0x9f   : > { %1059 = vmatmul.mubr.bf16.gmra.mrb[16].mxu0 %v2461_v43  ;;  %2303 = vmatmul.mubr.bf16.vlgmr.msra.gmra.mrb[16].mxu1 %v2462_v44 }
  0xa0   : > { %1066 = vmatprep.mubr.bf16.mxu0 %v2463_v45  ;;  %2306 = vmatprep.mubr.bf16.mxu1 %v2465_v46 }
  0xa7   : > { %1067 = vmatmul.mubr.bf16.gmra.mrb[20].mxu0 %v2466_v47  ;;  %2307 = vmatmul.mubr.bf16.gmra.mrb[20].mxu1 %v2467_v48 }
  0xa8   : > { %1074 = vmatprep.mubr.bf16.mxu0 %v2468_v49  ;;  %2310 = vmatprep.mubr.bf16.mxu1 %v2470_v50 }
  0xaf   : > { %1075 = vmatmul.mubr.bf16.gmra.mrb[24].mxu0 %v2471_v51  ;;  %2311 = vmatmul.mubr.bf16.gmra.mrb[24].mxu1 %v2472_v52 }
  0xb0   : > { %1082 = vmatprep.mubr.bf16.mxu0 %v2473_v53  ;;  %2314 = vmatprep.mubr.bf16.mxu1 %v2475_v54 }
  0xb7   : > { %1083 = vmatmul.mubr.bf16.gmra.mrb[28].mxu0 %v2476_v55  ;;  %2315 = vmatmul.mubr.bf16.gmra.mrb[28].mxu1 %v2477_v56 }
  0xb8   : > { %1090 = vmatprep.mubr.bf16.mxu0 %v2478_v57  ;;  %2318 = vmatprep.mubr.bf16.mxu1 %v2480_v58  ;;  %v452_v58 = vld [vmem:[#allocation2 + $0x10] sm:$0xff] }
  0xbf   : > { %1091 = vmatmul.mubr.bf16.gmra.mrb[32].mxu0 %v2481_v59  ;;  %2319 = vmatmul.mubr.bf16.gmra.mrb[32].mxu1 %v2482_v60 }
  0xc0   : > { %1098 = vmatprep.mubr.bf16.mxu0 %v2483_v61  ;;  %2322 = vmatprep.mubr.bf16.mxu1 %v2485_v62  ;;  %v450_v62 = vld [vmem:[#allocation2] sm:$0xff] }
  0xc7   : > { %1099 = vmatmul.mubr.bf16.gmra.mrb[36].mxu0 %v2486_v63  ;;  %2323 = vmatmul.mubr.bf16.gmra.mrb[36].mxu1 %v2487_v0 }
  0xc8   : > { %1106 = vmatprep.mubr.bf16.mxu0 %v2488_v1  ;;  %2326 = vmatprep.mubr.bf16.mxu1 %v2490_v2 }
  0xcf   : > { %1107 = vmatmul.mubr.bf16.gmra.mrb[40].mxu0 %v2491_v3  ;;  %2327 = vmatmul.mubr.bf16.gmra.mrb[40].mxu1 %v2492_v4  ;;  %v453_v3 = vld [vmem:[#allocation2 + $0x18] sm:$0xff] }
  0xd0   : > { %1114 = vmatprep.mubr.bf16.mxu0 %v2493_v5  ;;  %2330 = vmatprep.mubr.bf16.mxu1 %v2495_v6 }
  0xd7   : > { %1115 = vmatmul.mubr.bf16.gmra.mrb[44].mxu0 %v2496_v7  ;;  %2331 = vmatmul.mubr.bf16.gmra.mrb[44].mxu1 %v2497_v8  ;;  %v451_v8 = vld [vmem:[#allocation2 + $0x8] sm:$0xff] }
 0x152   : > { %v2166_v9 = vpop.f32.mrb[0].mxu0  ;;  %v2238_v10 = vpop.f32.mrb[0].mxu1 }
 0x153   : > { %v2167_v11 = vpop.f32.mrb[1].mxu0  ;;  %v2239_v12 = vpop.f32.mrb[1].mxu1 }
 0x154   : > { %v2168_v13 = vadd.f32 %v2167_v11, %v2166_v9  ;;  %v2864_v14 = vadd.f32 %v2239_v12, %v2238_v10  ;;  %v2169_v15 = vpop.f32.mrb[2].mxu0  ;;  %v2241_v16 = vpop.f32.mrb[2].mxu1 }
 0x155   : > { %v2170_v17 = vpop.f32.mrb[3].mxu0  ;;  %v2242_v18 = vpop.f32.mrb[3].mxu1 }
 0x156   : > { %v2171_v19 = vadd.f32 %v2170_v17, %v2169_v15  ;;  %v2866_v20 = vadd.f32 %v2242_v18, %v2241_v16  ;;  %v456_v18 = vld [vmem:[#allocation2 + $0x30] sm:$0xff] }
 0x15a   : > { %v2172_v21 = vpop.f32.mrb[4].mxu0  ;;  %v2244_v22 = vpop.f32.mrb[4].mxu1 }
 0x15b   : > { %v2173_v23 = vpop.f32.mrb[5].mxu0  ;;  %v2245_v24 = vpop.f32.mrb[5].mxu1 }
 0x15c   : > { %v2174_v25 = vadd.f32 %v2173_v23, %v2172_v21  ;;  %v2868_v26 = vadd.f32 %v2245_v24, %v2244_v22  ;;  %v2175_v27 = vpop.f32.mrb[6].mxu0  ;;  %v2247_v28 = vpop.f32.mrb[6].mxu1  ;;  %v454_v23 = vld [vmem:[#allocation2 + $0x20] sm:$0xff] }
 0x15d   : > { %v2176_v29 = vpop.f32.mrb[7].mxu0  ;;  %v2248_v30 = vpop.f32.mrb[7].mxu1 }
 0x15e   : > { %v2177_v31 = vadd.f32 %v2176_v29, %v2175_v27  ;;  %v2870_v32 = vadd.f32 %v2248_v30, %v2247_v28  ;;  %v457_v29 = vld [vmem:[#allocation2 + $0x38] sm:$0xff] }
 0x162   : > { %v2178_v33 = vpop.f32.mrb[8].mxu0  ;;  %v2250_v34 = vpop.f32.mrb[8].mxu1 }
 0x163   : > { %v2179_v35 = vpop.f32.mrb[9].mxu0  ;;  %v2251_v36 = vpop.f32.mrb[9].mxu1 }
 0x164   : > { %v2180_v37 = vadd.f32 %v2179_v35, %v2178_v33  ;;  %v2872_v38 = vadd.f32 %v2251_v36, %v2250_v34  ;;  %v2181_v39 = vpop.f32.mrb[10].mxu0  ;;  %v2253_v40 = vpop.f32.mrb[10].mxu1  ;;  %v455_v34 = vld [vmem:[#allocation2 + $0x28] sm:$0xff] }
 0x165   : > { %v2182_v41 = vpop.f32.mrb[11].mxu0  ;;  %v2254_v42 = vpop.f32.mrb[11].mxu1 }
 0x166   : > { %v2183_v43 = vadd.f32 %v2182_v41, %v2181_v39  ;;  %v2874_v44 = vadd.f32 %v2254_v42, %v2253_v40 }
 0x16a   : > { %v2184_v45 = vpop.f32.mrb[12].mxu0  ;;  %v2256_v46 = vpop.f32.mrb[12].mxu1 }
 0x16b   : > { %v2185_v47 = vpop.f32.mrb[13].mxu0  ;;  %v2257_v48 = vpop.f32.mrb[13].mxu1 }
 0x16c   : > { %v2186_v49 = vadd.f32 %v2185_v47, %v2184_v45  ;;  %v2876_v50 = vadd.f32 %v2257_v48, %v2256_v46  ;;  %v2187_v51 = vpop.f32.mrb[14].mxu0  ;;  %v2259_v52 = vpop.f32.mrb[14].mxu1  ;;  %v460_v46 = vld [vmem:[#allocation2 + $0x50] sm:$0xff] }
 0x16d   : > { %v2188_v53 = vpop.f32.mrb[15].mxu0  ;;  %v2260_v54 = vpop.f32.mrb[15].mxu1 }
 0x16e   : > { %v2189_v55 = vadd.f32 %v2188_v53, %v2187_v51  ;;  %v2878_v56 = vadd.f32 %v2260_v54, %v2259_v52 }
 0x172   : > { %v2190_v57 = vpop.f32.mrb[16].mxu0  ;;  %v2304_v59 = vpop.f32.mrb[16].mxu1 }
 0x173   : > { %v1198_v60 = vadd.f32 %v2304_v59, %v2174_v25  ;;  %v2191_v61 = vpop.f32.mrb[17].mxu0  ;;  %v1189_v63 = vpop.f32.mrb[17].mxu1 }
 0x174   : > { %v2192_v0 = vadd.f32 %v2191_v61, %v2190_v57  ;;  %v1190_v1 = vadd.f32 %v2168_v13, %v1189_v63  ;;  %v2193_v2 = vpop.f32.mrb[18].mxu0  ;;  %v2305_v4 = vpop.f32.mrb[18].mxu1 }
 0x175   : > { %v1318_v5 = vadd.f32 %v1198_v60, %v452_v58  ;;  %v1201_v6 = vadd.f32 %v2305_v4, %v2177_v31  ;;  %v2194_v7 = vpop.f32.mrb[19].mxu0  ;;  %v1192_v9 = vpop.f32.mrb[19].mxu1  ;;  %v459_v60 = vld [vmem:[#allocation2 + $0x48] sm:$0xff] }
 0x176   : > { %v1316_v10 = vadd.f32 %v1190_v1, %v450_v62  ;;  %v2195_v11 = vadd.f32 %v2194_v7, %v2193_v2  ;;  %v1193_v12 = vadd.f32 %v2171_v19, %v1192_v9 }
 0x177   : > { %1350 = vst [vmem:[#allocation2 + $0x10] sm:$0xff] %v1318_v5  ;;  %v1319_v15 = vadd.f32 %v1201_v6, %v453_v3  ;;  %v462_v6 = vld [vmem:[#allocation2 + $0x60] sm:$0xff] }
 0x178   : > { %1348 = vst [vmem:[#allocation2] sm:$0xff] %v1316_v10  ;;  %v1317_v16 = vadd.f32 %v1193_v12, %v451_v8 }
 0x179   : > { %1351 = vst [vmem:[#allocation2 + $0x18] sm:$0xff] %v1319_v15  ;;  %v464_v15 = vld [vmem:[#allocation2 + $0x70] sm:$0xff] }
 0x17a   : > { %1349 = vst [vmem:[#allocation2 + $0x8] sm:$0xff] %v1317_v16  ;;  %v2196_v17 = vpop.f32.mrb[20].mxu0  ;;  %v2308_v13 = vpop.f32.mrb[20].mxu1 }
 0x17b   : > { %v1214_v21 = vadd.f32 %v2308_v13, %v2186_v49  ;;  %v2197_v22 = vpop.f32.mrb[21].mxu0  ;;  %v1205_v24 = vpop.f32.mrb[21].mxu1  ;;  %v458_v49 = vld [vmem:[#allocation2 + $0x40] sm:$0xff] }
 0x17c   : > { %v2198_v25 = vadd.f32 %v2197_v22, %v2196_v17  ;;  %v1206_v27 = vadd.f32 %v2180_v37, %v1205_v24  ;;  %v2199_v28 = vpop.f32.mrb[22].mxu0  ;;  %v2309_v30 = vpop.f32.mrb[22].mxu1  ;;  %v463_v17 = vld [vmem:[#allocation2 + $0x68] sm:$0xff] }
 0x17d   : > { %v1322_v31 = vadd.f32 %v1214_v21, %v456_v18  ;;  %v1217_v19 = vadd.f32 %v2309_v30, %v2189_v55  ;;  %v2200_v33 = vpop.f32.mrb[23].mxu0  ;;  %v1208_v35 = vpop.f32.mrb[23].mxu1  ;;  %v461_v55 = vld [vmem:[#allocation2 + $0x58] sm:$0xff] }
 0x17e   : > { %v1320_v36 = vadd.f32 %v1206_v27, %v454_v23  ;;  %v2201_v39 = vadd.f32 %v2200_v33, %v2199_v28  ;;  %v1209_v40 = vadd.f32 %v2183_v43, %v1208_v35  ;;  %v465_v23 = vld [vmem:[#allocation2 + $0x78] sm:$0xff] }
 0x17f   : > { %1354 = vst [vmem:[#allocation2 + $0x30] sm:$0xff] %v1322_v31  ;;  %v1323_v41 = vadd.f32 %v1217_v19, %v457_v29 }
 0x180   : > { %1352 = vst [vmem:[#allocation2 + $0x20] sm:$0xff] %v1320_v36  ;;  %v1321_v42 = vadd.f32 %v1209_v40, %v455_v34  ;;  %v466_v36 = vld [vmem:[#allocation2 + $0x80] sm:$0xff] }
 0x181   : > { %1355 = vst [vmem:[#allocation2 + $0x38] sm:$0xff] %v1323_v41 }
 0x182   : > { %1353 = vst [vmem:[#allocation2 + $0x28] sm:$0xff] %v1321_v42  ;;  %v2202_v45 = vpop.f32.mrb[24].mxu0  ;;  %v2312_v37 = vpop.f32.mrb[24].mxu1 }
 0x183   : > { %v1230_v47 = vadd.f32 %v2312_v37, %v2198_v25  ;;  %v2203_v48 = vpop.f32.mrb[25].mxu0  ;;  %v1221_v51 = vpop.f32.mrb[25].mxu1 }
 0x184   : > { %v2204_v52 = vadd.f32 %v2203_v48, %v2202_v45  ;;  %v1222_v53 = vadd.f32 %v2192_v0, %v1221_v51  ;;  %v2205_v54 = vpop.f32.mrb[26].mxu0  ;;  %v2313_v57 = vpop.f32.mrb[26].mxu1  ;;  %v467_v45 = vld [vmem:[#allocation2 + $0x88] sm:$0xff] }
 0x185   : > { %v1326_v58 = vadd.f32 %v1230_v47, %v460_v46  ;;  %v1233_v43 = vadd.f32 %v2313_v57, %v2201_v39  ;;  %v2206_v59 = vpop.f32.mrb[27].mxu0  ;;  %v1224_v61 = vpop.f32.mrb[27].mxu1  ;;  %v468_v57 = vld [vmem:[#allocation2 + $0x90] sm:$0xff] }
 0x186   : > { %v1324_v62 = vadd.f32 %v1222_v53, %v458_v49  ;;  %v2207_v63 = vadd.f32 %v2206_v59, %v2205_v54  ;;  %v1225_v1 = vadd.f32 %v2195_v11, %v1224_v61  ;;  %v469_v61 = vld [vmem:[#allocation2 + $0x98] sm:$0xff] }
 0x187   : > { %1358 = vst [vmem:[#allocation2 + $0x50] sm:$0xff] %v1326_v58  ;;  %v1327_v2 = vadd.f32 %v1233_v43, %v461_v55 }
 0x188   : > { %1356 = vst [vmem:[#allocation2 + $0x40] sm:$0xff] %v1324_v62  ;;  %v1325_v3 = vadd.f32 %v1225_v1, %v459_v60 }
 0x189   : > { %1359 = vst [vmem:[#allocation2 + $0x58] sm:$0xff] %v1327_v2 }
 0x18a   : > { %1357 = vst [vmem:[#allocation2 + $0x48] sm:$0xff] %v1325_v3  ;;  %v2208_v4 = vpop.f32.mrb[28].mxu0  ;;  %v2316_v5 = vpop.f32.mrb[28].mxu1  ;;  %v476_v3 = vld [vmem:[#allocation2 + $0xd0] sm:$0xff] }
 0x18b   : > { %v2209_v0 = vpop.f32.mrb[29].mxu0  ;;  %v1237_v7 = vpop.f32.mrb[29].mxu1 }
 0x18c   : > { %v2210_v8 = vadd.f32 %v2209_v0, %v2208_v4  ;;  %v1238_v9 = vadd.f32 %v2204_v52, %v1237_v7  ;;  %v2211_v10 = vpop.f32.mrb[30].mxu0  ;;  %v2317_v12 = vpop.f32.mrb[30].mxu1 }
 0x18d   : > { %v2212_v16 = vpop.f32.mrb[31].mxu0  ;;  %v1240_v18 = vpop.f32.mrb[31].mxu1 }
 0x18e   : > { %v1246_v11 = vadd.f32 %v2316_v5, %v2210_v8  ;;  %v1328_v13 = vadd.f32 %v1238_v9, %v462_v6  ;;  %v2213_v21 = vadd.f32 %v2212_v16, %v2211_v10  ;;  %v1241_v22 = vadd.f32 %v2207_v63, %v1240_v18  ;;  %v474_v6 = vld [vmem:[#allocation2 + $0xc0] sm:$0xff] }
 0x190   : > { %v1330_v24 = vadd.f32 %v1246_v11, %v464_v15  ;;  %1360 = vst [vmem:[#allocation2 + $0x60] sm:$0xff] %v1328_v13  ;;  %v1249_v25 = vadd.f32 %v2317_v12, %v2213_v21  ;;  %v1329_v27 = vadd.f32 %v1241_v22, %v463_v17  ;;  %v477_v12 = vld [vmem:[#allocation2 + $0xd8] sm:$0xff]  ;;  %v470_v17 = vld [vmem:[#allocation2 + $0xa0] sm:$0xff]  ;;  %v475_v13 = vld [vmem:[#allocation2 + $0xc8] sm:$0xff] }
 0x192   : > { %1362 = vst [vmem:[#allocation2 + $0x70] sm:$0xff] %v1330_v24  ;;  %v1331_v28 = vadd.f32 %v1249_v25, %v465_v23  ;;  %1361 = vst [vmem:[#allocation2 + $0x68] sm:$0xff] %v1329_v27  ;;  %v2214_v29 = vpop.f32.mrb[32].mxu0  ;;  %v2320_v30 = vpop.f32.mrb[32].mxu1  ;;  %v471_v27 = vld [vmem:[#allocation2 + $0xa8] sm:$0xff] }
 0x193   : > { %v2215_v31 = vpop.f32.mrb[33].mxu0  ;;  %v1253_v19 = vpop.f32.mrb[33].mxu1 }
 0x194   : > { %1363 = vst [vmem:[#allocation2 + $0x78] sm:$0xff] %v1331_v28  ;;  %v2216_v33 = vadd.f32 %v2215_v31, %v2214_v29  ;;  %v2217_v34 = vpop.f32.mrb[34].mxu0  ;;  %v2321_v35 = vpop.f32.mrb[34].mxu1  ;;  %v480_v31 = vld [vmem:[#allocation2 + $0xf0] sm:$0xff] }
 0x195   : > { %v2218_v39 = vpop.f32.mrb[35].mxu0  ;;  %v1256_v40 = vpop.f32.mrb[35].mxu1 }
 0x196   : > { %v1254_v41 = vadd.f32 %v2216_v33, %v1253_v19  ;;  %v2219_v42 = vadd.f32 %v2218_v39, %v2217_v34 }
 0x198   : > { %v1332_v46 = vadd.f32 %v1254_v41, %v466_v36  ;;  %v1257_v37 = vadd.f32 %v2219_v42, %v1256_v40  ;;  %v481_v41 = vld [vmem:[#allocation2 + $0xf8] sm:$0xff] }
 0x19a   : > { %1364 = vst [vmem:[#allocation2 + $0x80] sm:$0xff] %v1332_v46  ;;  %v1333_v47 = vadd.f32 %v1257_v37, %v467_v45  ;;  %v2220_v48 = vpop.f32.mrb[36].mxu0  ;;  %v2880_v49 = vpop.f32.mrb[36].mxu1  ;;  %v472_v46 = vld [vmem:[#allocation2 + $0xb0] sm:$0xff] }
 0x19b   : > { %v2221_v51 = vpop.f32.mrb[37].mxu0  ;;  %v1269_v52 = vpop.f32.mrb[37].mxu1 }
 0x19c   : > { %1365 = vst [vmem:[#allocation2 + $0x88] sm:$0xff] %v1333_v47  ;;  %v2222_v53 = vadd.f32 %v2221_v51, %v2220_v48  ;;  %v2223_v54 = vpop.f32.mrb[38].mxu0  ;;  %v2882_v55 = vpop.f32.mrb[38].mxu1  ;;  %v479_v48 = vld [vmem:[#allocation2 + $0xe8] sm:$0xff] }
 0x19d   : > { %v2224_v58 = vpop.f32.mrb[39].mxu0  ;;  %v1272_v43 = vpop.f32.mrb[39].mxu1 }
 0x19e   : > { %v1262_v59 = vadd.f32 %v2320_v30, %v2222_v53  ;;  %v2225_v60 = vadd.f32 %v2224_v58, %v2223_v54  ;;  %v473_v58 = vld [vmem:[#allocation2 + $0xb8] sm:$0xff] }
 0x1a0   : > { %v1334_v62 = vadd.f32 %v1262_v59, %v468_v57  ;;  %v1265_v63 = vadd.f32 %v2321_v35, %v2225_v60  ;;  %v478_v35 = vld [vmem:[#allocation2 + $0xe0] sm:$0xff]  ;;  %v1385_v60 = vld [vmem:[#allocation2 + $0x8] sm:$0xff] (!%p1988_p0) }
 0x1a2   : > { %1366 = vst [vmem:[#allocation2 + $0x90] sm:$0xff] %v1334_v62  ;;  %v1335_v1 = vadd.f32 %v1265_v63, %v469_v61  ;;  %v2226_v2 = vpop.f32.mrb[40].mxu0  ;;  %v2328_v4 = vpop.f32.mrb[40].mxu1  ;;  %v1386_v61 = vld [vmem:[#allocation2 + $0x10] sm:$0xff] (!%p1988_p0) }
 0x1a3   : > { %v1294_v5 = vadd.f32 %v2328_v4, %v2868_v26  ;;  %v2227_v0 = vpop.f32.mrb[41].mxu0  ;;  %v1285_v7 = vpop.f32.mrb[41].mxu1 }
 0x1a4   : > { %1367 = vst [vmem:[#allocation2 + $0x98] sm:$0xff] %v1335_v1  ;;  %v2228_v8 = vadd.f32 %v2227_v0, %v2226_v2  ;;  %v1286_v9 = vadd.f32 %v2864_v14, %v1285_v7  ;;  %v2229_v10 = vpop.f32.mrb[42].mxu0  ;;  %v2329_v15 = vpop.f32.mrb[42].mxu1  ;;  %v1454_v1 = vmul.f32 (!%p1988_p0), %v1385_v60, %v1385_v60  ;;  %v1455_v2 = vmul.f32 (!%p1988_p0), %v1386_v61, %v1386_v61  ;;  %v1389_v0 = vld [vmem:[#allocation2 + $0x28] sm:$0xff] (!%p1988_p0) }
 0x1a5   : > { %v1342_v16 = vadd.f32 %v1294_v5, %v476_v3  ;;  %v1297_v18 = vadd.f32 %v2329_v15, %v2870_v32  ;;  %v2230_v11 = vpop.f32.mrb[43].mxu0  ;;  %v1288_v21 = vpop.f32.mrb[43].mxu1  ;;  %v1388_v3 = vld [vmem:[#allocation2 + $0x20] sm:$0xff] (!%p1988_p0) }
 0x1a6   : > { %v1270_v22 = vadd.f32 %v2228_v8, %v1269_v52  ;;  %v1340_v23 = vadd.f32 %v1286_v9, %v474_v6  ;;  %v2231_v26 = vadd.f32 %v2230_v11, %v2229_v10  ;;  %v1289_v24 = vadd.f32 %v2866_v20, %v1288_v21  ;;  %v1390_v9 = vld [vmem:[#allocation2 + $0x30] sm:$0xff] (!%p1988_p0)  ;;  %v1392_v15 = vld [vmem:[#allocation2 + $0x40] sm:$0xff] (!%p1988_p0) }
 0x1a7   : > { %1374 = vst [vmem:[#allocation2 + $0xd0] sm:$0xff] %v1342_v16  ;;  %v1343_v25 = vadd.f32 %v1297_v18, %v477_v12  ;;  %v1457_v7 = vmul.f32 (!%p1988_p0), %v1388_v3, %v1388_v3  ;;  %v1391_v12 = vld [vmem:[#allocation2 + $0x38] sm:$0xff] (!%p1988_p0)  ;;  %v1458_v16 = vmul.f32 (!%p1988_p0), %v1389_v0, %v1389_v0  ;;  %v1393_v18 = vld [vmem:[#allocation2 + $0x48] sm:$0xff] (!%p1988_p0) }
 0x1a8   : > { %v1336_v28 = vadd.f32 %v1270_v22, %v470_v17  ;;  %1372 = vst [vmem:[#allocation2 + $0xc0] sm:$0xff] %v1340_v23  ;;  %v1273_v14 = vadd.f32 %v2231_v26, %v1272_v43  ;;  %v1341_v29 = vadd.f32 %v1289_v24, %v475_v13  ;;  %v1459_v13 = vmul.f32 (!%p1988_p0), %v1390_v9, %v1390_v9  ;;  %v2895_v22 = vld [vmem:[#allocation2 + $0x50] sm:$0xff] (!%p1988_p0)  ;;  %v2897_v23 = vld [vmem:[#allocation2 + $0x58] sm:$0xff] (!%p1988_p0)  ;;  %v2899_v26 = vld [vmem:[#allocation2 + $0x60] sm:$0xff] (!%p1988_p0) }
 0x1a9   : > { %1375 = vst [vmem:[#allocation2 + $0xd8] sm:$0xff] %v1343_v25  ;;  %v2901_v24 = vld [vmem:[#allocation2 + $0x68] sm:$0xff] (!%p1988_p0)  ;;  %v2903_v25 = vld [vmem:[#allocation2 + $0x70] sm:$0xff] (!%p1988_p0) }
 0x1aa   : > { %1368 = vst [vmem:[#allocation2 + $0xa0] sm:$0xff] %v1336_v28  ;;  %v1337_v30 = vadd.f32 %v1273_v14, %v471_v27  ;;  %1373 = vst [vmem:[#allocation2 + $0xc8] sm:$0xff] %v1341_v29  ;;  %v2232_v32 = vpop.f32.mrb[44].mxu0  ;;  %v2332_v19 = vpop.f32.mrb[44].mxu1  ;;  %v2905_v27 = vld [vmem:[#allocation2 + $0x78] sm:$0xff] (!%p1988_p0)  ;;  %v1460_v14 = vmul.f32 (!%p1988_p0), %v1391_v12, %v1391_v12  ;;  %v1461_v29 = vmul.f32 (!%p1988_p0), %v1392_v15, %v1392_v15 }
 0x1ab   : > { %v1310_v33 = vadd.f32 %v2332_v19, %v2876_v50  ;;  %v2233_v34 = vpop.f32.mrb[45].mxu0  ;;  %v1301_v36 = vpop.f32.mrb[45].mxu1  ;;  %v2913_v19 = vld [vmem:[#allocation2 + $0x98] sm:$0xff] (!%p1988_p0) }
 0x1ac   : > { %1369 = vst [vmem:[#allocation2 + $0xa8] sm:$0xff] %v1337_v30  ;;  %v2234_v20 = vadd.f32 %v2233_v34, %v2232_v32  ;;  %v1302_v39 = vadd.f32 %v2872_v38, %v1301_v36  ;;  %v2235_v40 = vpop.f32.mrb[46].mxu0  ;;  %v2333_v42 = vpop.f32.mrb[46].mxu1  ;;  %v2907_v30 = vld [vmem:[#allocation2 + $0x80] sm:$0xff] (!%p1988_p0)  ;;  %v2909_v32 = vld [vmem:[#allocation2 + $0x88] sm:$0xff] (!%p1988_p0) }
 0x1ad   : > { %v1346_v45 = vadd.f32 %v1310_v33, %v480_v31  ;;  %v1313_v37 = vadd.f32 %v2333_v42, %v2878_v56  ;;  %v2236_v47 = vpop.f32.mrb[47].mxu0  ;;  %v1304_v51 = vpop.f32.mrb[47].mxu1  ;;  %v2911_v31 = vld [vmem:[#allocation2 + $0x90] sm:$0xff] (!%p1988_p0)  ;;  %v1462_v33 = vmul.f32 (!%p1988_p0), %v1393_v18, %v1393_v18  ;;  %v2068_v42 = vpack.c.bf16 (!%p1988_p0), %v1389_v0, %v1388_v3 }
 0x1ae   : > { %v1278_v52 = vadd.f32 %v2880_v49, %v2234_v20  ;;  %v1344_v50 = vadd.f32 %v1302_v39, %v478_v35  ;;  %v2237_v53 = vadd.f32 %v2236_v47, %v2235_v40  ;;  %v1305_v54 = vadd.f32 %v2874_v44, %v1304_v51  ;;  %1383 = sbr.rel (%p1988_p0) target bundleno = 510 (0x1fe), region = 62  ;;  %v1384_v49 = vld [vmem:[#allocation2] sm:$0xff] (!%p1988_p0)  ;;  %v1387_v44 = vld [vmem:[#allocation2 + $0x18] sm:$0xff] (!%p1988_p0) }
 0x1af   : > { %1378 = vst [vmem:[#allocation2 + $0xf0] sm:$0xff] %v1346_v45  ;;  %v1347_v57 = vadd.f32 %v1313_v37, %v481_v41  ;;  %v1416_v62 = vadd.f32 (!%p1988_p0), %v1385_v60, %v1384_v49  ;;  %v1453_v63 = vmul.f32 (!%p1988_p0), %v1384_v49, %v1384_v49  ;;  %v2058_v35 = vpack.c.bf16 (!%p1988_p0), %v1385_v60, %v1384_v49  ;;  %v2923_v47 = vld [vmem:[#allocation2 + $0xc0] sm:$0xff] (!%p1988_p0) }
 0x1b0   : > { %v1338_v38 = vadd.f32 %v1278_v52, %v472_v46  ;;  %1376 = vst [vmem:[#allocation2 + $0xe0] sm:$0xff] %v1344_v50  ;;  %v1281_v43 = vadd.f32 %v2882_v55, %v2237_v53  ;;  %v1345_v59 = vadd.f32 %v1305_v54, %v479_v48  ;;  %v1456_v55 = vmul.f32 (!%p1988_p0), %v1387_v44, %v1387_v44  ;;  %v2935_v54 = vld [vmem:[#allocation2 + $0xd0] sm:$0xff] (!%p1988_p0) }
 0x1b1   : > { %1379 = vst [vmem:[#allocation2 + $0xf8] sm:$0xff] %v1347_v57  ;;  %v1417_v4 = vadd.f32 (!%p1988_p0), %v1416_v62, %v1386_v61  ;;  %v1485_v5 = vadd.f32 (!%p1988_p0), %v1454_v1, %v1453_v63  ;;  %v2063_v36 = vpack.c.bf16 (!%p1988_p0), %v1387_v44, %v1386_v61  ;;  %v2915_v20 = vld [vmem:[#allocation2 + $0xa0] sm:$0xff] (!%p1988_p0)  ;;  %v2073_v45 = vpack.c.bf16 (!%p1988_p0), %v1391_v12, %v1390_v9  ;;  %v2925_v48 = vld [vmem:[#allocation2 + $0xc8] sm:$0xff] (!%p1988_p0)  ;;  %v2937_v57 = vld [vmem:[#allocation2 + $0xd8] sm:$0xff] (!%p1988_p0) }
 0x1b2   : > { %1370 = vst [vmem:[#allocation2 + $0xb0] sm:$0xff] %v1338_v38  ;;  %v1339_v56 = vadd.f32 %v1281_v43, %v473_v58  ;;  %1377 = vst [vmem:[#allocation2 + $0xe8] sm:$0xff] %v1345_v59  ;;  %v2078_v46 = vpack.c.bf16 (!%p1988_p0), %v1393_v18, %v1392_v15  ;;  %v2083_v52 = vpack.c.bf16 (!%p1988_p0), %v2897_v23, %v2895_v22 }
 0x1b3   : > { %v1418_v6 = vadd.f32 (!%p1988_p0), %v1417_v4, %v1387_v44  ;;  %v1486_v8 = vadd.f32 (!%p1988_p0), %v1485_v5, %v1455_v2  ;;  %v2917_v39 = vld [vmem:[#allocation2 + $0xa8] sm:$0xff] (!%p1988_p0)  ;;  %2059 = vst [vmem:[%s2781_s30] sm:$0xff] (!%p1988_p0), %v2058_v35   ;;  %2135 = vst [vmem:[%s2781_s30 + $0x8] sm:$0xff] (!%p1988_p0), %v2063_v36   ;;  %v2088_v50 = vpack.c.bf16 (!%p1988_p0), %v2901_v24, %v2899_v26 }
 0x1b4   : > { %1371 = vst [vmem:[#allocation2 + $0xb8] sm:$0xff] %v1339_v56  ;;  %v2093_v53 = vpack.c.bf16 (!%p1988_p0), %v2905_v27, %v2903_v25  ;;  %2136 = vst [vmem:[%s2781_s30 + $0x10] sm:$0xff] (!%p1988_p0), %v2068_v42   ;;  %v2098_v43 = vpack.c.bf16 (!%p1988_p0), %v2909_v32, %v2907_v30  ;;  %v2103_v59 = vpack.c.bf16 (!%p1988_p0), %v2913_v19, %v2911_v31 }
 0x1b5   : > { %v1419_v10 = vadd.f32 %v1418_v6, %v1388_v3  ;;  %v1487_v17 = vadd.f32 %v1486_v8, %v1456_v55  ;;  %2137 = vst [vmem:[%s2781_s30 + $0x18] sm:$0xff] %v2073_v45   ;;  %2138 = vst [vmem:[%s2781_s30 + $0x20] sm:$0xff] %v2078_v46   ;;  %v2108_v56 = vpack.c.bf16 %v2917_v39, %v2915_v20 }
 0x1b6   : > { %v2952_v60 = vld [vmem:[#allocation2 + $0xf0] sm:$0xff]  ;;  %2139 = vst [vmem:[%s2781_s30 + $0x28] sm:$0xff] %v2083_v52   ;;  %2140 = vst [vmem:[%s2781_s30 + $0x30] sm:$0xff] %v2088_v50   ;;  %v2118_v63 = vpack.c.bf16 %v2925_v48, %v2923_v47  ;;  %v2123_v1 = vpack.c.bf16 %v2937_v57, %v2935_v54  ;;  %v1463_v55 = vmul.f32 %v2895_v22, %v2895_v22 }
 0x1b7   : > { %v1420_v11 = vadd.f32 %v1419_v10, %v1389_v0  ;;  %v1488_v21 = vadd.f32 %v1487_v17, %v1457_v7  ;;  %v2939_v58 = vld [vmem:[#allocation2 + $0xe0] sm:$0xff]  ;;  %2141 = vst [vmem:[%s2781_s30 + $0x38] sm:$0xff] %v2093_v53   ;;  %2142 = vst [vmem:[%s2781_s30 + $0x40] sm:$0xff] %v2098_v43   ;;  %v1464_v6 = vmul.f32 %v2897_v23, %v2897_v23 }
 0x1b8   : > { %v2954_v61 = vld [vmem:[#allocation2 + $0xf8] sm:$0xff]  ;;  %2143 = vst [vmem:[%s2781_s30 + $0x48] sm:$0xff] %v2103_v59   ;;  %2144 = vst [vmem:[%s2781_s30 + $0x50] sm:$0xff] %v2108_v56  }
 0x1b9   : > { %v1421_v28 = vadd.f32 %v1420_v11, %v1390_v9  ;;  %v1489_v34 = vadd.f32 %v1488_v21, %v1458_v16  ;;  %v2919_v40 = vld [vmem:[#allocation2 + $0xb0] sm:$0xff]  ;;  %v2950_v49 = vld [vmem:[#allocation2 + $0xe8] sm:$0xff]  ;;  %v2133_v4 = vpack.c.bf16 %v2954_v61, %v2952_v60  ;;  %2146 = vst [vmem:[%s2781_s30 + $0x60] sm:$0xff] %v2118_v63   ;;  %2147 = vst [vmem:[%s2781_s30 + $0x68] sm:$0xff] %v2123_v1  }
 0x1ba   : > { %v2128_v3 = vpack.c.bf16 %v2950_v49, %v2939_v58  ;;  %v1465_v9 = vmul.f32 %v2899_v26, %v2899_v26  ;;  %v1468_v21 = vmul.f32 %v2905_v27, %v2905_v27 }
 0x1bb   : > { %v1422_v41 = vadd.f32 %v1421_v28, %v1391_v12  ;;  %v2921_v37 = vld [vmem:[#allocation2 + $0xb8] sm:$0xff]  ;;  %v1490_v51 = vadd.f32 %v1489_v34, %v1459_v13  ;;  %2149 = vst [vmem:[%s2781_s30 + $0x78] sm:$0xff] %v2133_v4  }
 0x1bc   : > { %v2113_v62 = vpack.c.bf16 %v2921_v37, %v2919_v40  ;;  %2148 = vst [vmem:[%s2781_s30 + $0x70] sm:$0xff] %v2128_v3  }
 0x1bd   : > { %v1423_v38 = vadd.f32 %v1422_v41, %v1392_v15  ;;  %v1491_v44 = vadd.f32 %v1490_v51, %v1460_v14  ;;  %v1466_v15 = vmul.f32 %v2901_v24, %v2901_v24 }
 0x1be   : > { %2145 = vst [vmem:[%s2781_s30 + $0x58] sm:$0xff] %v2113_v62  }
 0x1bf   : > { %v1424_v2 = vadd.f32 %v1423_v38, %v1393_v18  ;;  %v1492_v5 = vadd.f32 %v1491_v44, %v1461_v29  ;;  %v1467_v18 = vmul.f32 %v2903_v25, %v2903_v25 }
 0x1c1   : > { %v1425_v0 = vadd.f32 %v1424_v2, %v2895_v22  ;;  %v1493_v7 = vadd.f32 %v1492_v5, %v1462_v33 }
 0x1c3   : > { %v1426_v8 = vadd.f32 %v1425_v0, %v2897_v23  ;;  %v1494_v10 = vadd.f32 %v1493_v7, %v1463_v55 }
 0x1c5   : > { %v1427_v12 = vadd.f32 %v1426_v8, %v2899_v26  ;;  %v1495_v16 = vadd.f32 %v1494_v10, %v1464_v6  ;;  %v1469_v26 = vmul.f32 %v2907_v30, %v2907_v30 }
 0x1c7   : > { %v1428_v17 = vadd.f32 %v1427_v12, %v2901_v24  ;;  %v1496_v11 = vadd.f32 %v1495_v16, %v1465_v9  ;;  %v1470_v24 = vmul.f32 %v2909_v32, %v2909_v32 }
 0x1c9   : > { %v1429_v13 = vadd.f32 %v1428_v17, %v2903_v25  ;;  %v1497_v22 = vadd.f32 %v1496_v11, %v1466_v15  ;;  %v1471_v25 = vmul.f32 %v2911_v31, %v2911_v31 }
 0x1cb   : > { %v1430_v23 = vadd.f32 %v1429_v13, %v2905_v27  ;;  %v1498_v28 = vadd.f32 %v1497_v22, %v1467_v18  ;;  %v1472_v27 = vmul.f32 %v2913_v19, %v2913_v19 }
 0x1cd   : > { %v1431_v14 = vadd.f32 %v1430_v23, %v2907_v30  ;;  %v1499_v29 = vadd.f32 %v1498_v28, %v1468_v21  ;;  %v1473_v30 = vmul.f32 %v2915_v20, %v2915_v20 }
 0x1cf   : > { %v1432_v33 = vadd.f32 %v1431_v14, %v2909_v32  ;;  %v1500_v34 = vadd.f32 %v1499_v29, %v1469_v26  ;;  %v1474_v32 = vmul.f32 %v2917_v39, %v2917_v39 }
 0x1d1   : > { %v1433_v35 = vadd.f32 %v1432_v33, %v2911_v31  ;;  %v1501_v36 = vadd.f32 %v1500_v34, %v1470_v24  ;;  %v1475_v31 = vmul.f32 %v2919_v40, %v2919_v40 }
 0x1d3   : > { %v1434_v41 = vadd.f32 %v1433_v35, %v2913_v19  ;;  %v1502_v42 = vadd.f32 %v1501_v36, %v1471_v25  ;;  %v1476_v19 = vmul.f32 %v2921_v37, %v2921_v37 }
 0x1d5   : > { %v1435_v45 = vadd.f32 %v1434_v41, %v2915_v20  ;;  %v1503_v46 = vadd.f32 %v1502_v42, %v1472_v27  ;;  %v1477_v20 = vmul.f32 %v2923_v47, %v2923_v47 }
 0x1d7   : > { %v1436_v51 = vadd.f32 %v1435_v45, %v2917_v39  ;;  %v1504_v52 = vadd.f32 %v1503_v46, %v1473_v30  ;;  %v1478_v39 = vmul.f32 %v2925_v48, %v2925_v48 }
 0x1d9   : > { %v1437_v50 = vadd.f32 %v1436_v51, %v2919_v40  ;;  %v1505_v53 = vadd.f32 %v1504_v52, %v1474_v32  ;;  %v1479_v40 = vmul.f32 %v2935_v54, %v2935_v54 }
 0x1db   : > { %v1438_v38 = vadd.f32 %v1437_v50, %v2921_v37  ;;  %v1506_v43 = vadd.f32 %v1505_v53, %v1475_v31  ;;  %v1480_v37 = vmul.f32 %v2937_v57, %v2937_v57 }
 0x1dd   : > { %v1439_v59 = vadd.f32 %v1438_v38, %v2923_v47  ;;  %v1507_v56 = vadd.f32 %v1506_v43, %v1476_v19  ;;  %v1481_v47 = vmul.f32 %v2939_v58, %v2939_v58 }
 0x1df   : > { %v1440_v44 = vadd.f32 %v1439_v59, %v2925_v48  ;;  %v1508_v62 = vadd.f32 %v1507_v56, %v1477_v20  ;;  %v1482_v48 = vmul.f32 %v2950_v49, %v2950_v49 }
 0x1e1   : > { %v1441_v63 = vadd.f32 %v1440_v44, %v2935_v54  ;;  %v1509_v1 = vadd.f32 %v1508_v62, %v1478_v39  ;;  %v1483_v54 = vmul.f32 %v2952_v60, %v2952_v60 }
 0x1e3   : > { %v1442_v2 = vadd.f32 %v1441_v63, %v2937_v57  ;;  %v1510_v3 = vadd.f32 %v1509_v1, %v1479_v40  ;;  %v1484_v57 = vmul.f32 %v2954_v61, %v2954_v61 }
 0x1e5   : > { %v1443_v4 = vadd.f32 %v1442_v2, %v2939_v58  ;;  %v1511_v55 = vadd.f32 %v1510_v3, %v1480_v37 }
 0x1e7   : > { %v1444_v5 = vadd.f32 %v1443_v4, %v2950_v49  ;;  %v1512_v0 = vadd.f32 %v1511_v55, %v1481_v47  ;;  %v1522_v49 = vlaneseq }
 0x1e9   : > { %v1445_v6 = vadd.f32 %v1444_v5, %v2952_v60  ;;  %v1513_v7 = vadd.f32 %v1512_v0, %v1482_v48  ;;  %v1523_v21 = vshrl.u32 %v1522_v49, 7 }
 0x1eb   : > { %v1446_v8 = vadd.f32 %v1445_v6, %v2954_v61  ;;  %v1514_v9 = vadd.f32 %v1513_v7, %v1483_v54  ;;  %vm1525_vm0 = vcmp.eq.s32.totalorder %v1523_v21, 1  ;;  %vm1524_vm1 = vcmp.eq.s32.totalorder %v1523_v21, 0 }
 0x1ed   : > { %v1447_v58 = vrot.slane %v1446_v8, 4  ;;  %v1515_v10 = vadd.f32 %v1514_v9, %v1484_v57 }
 0x1ef   : > { %v1448_v12 = vadd.f32 %v1447_v58, %v1446_v8  ;;  %v1516_v15 = vrot.slane %v1515_v10, 4 }
 0x1f1   : > { %v1449_v16 = vrot.slane %v1448_v12, 2  ;;  %v1517_v17 = vadd.f32 %v1516_v15, %v1515_v10 }
 0x1f3   : > { %v1450_v18 = vadd.f32 %v1449_v16, %v1448_v12  ;;  %v1518_v11 = vrot.slane %v1517_v17, 2 }
 0x1f5   : > { %v1451_v13 = vrot.slane %v1450_v18, 1  ;;  %v1519_v60 = vadd.f32 %v1518_v11, %v1517_v17 }
 0x1f7   : > { %v1520_v22 = vrot.slane %v1519_v60, 1  ;;  %v1452_v23 = vadd.f32 %v1451_v13, %v1450_v18 }
 0x1f9   : > { %v1521_v26 = vadd.f32 %v1520_v22, %v1519_v60 }
 0x1fb   : > { %v1526_v61 = vsel %vm1525_vm0, %v1521_v26, 0.0 }
 0x1fc   : > { %v1527_v28 = vsel %vm1524_vm1, %v1452_v23, %v1526_v61 }
 0x1fd   : > { %1528 = vst [vmem:[%s2787_s6] sm:$0xff] %v1527_v28 }
 0x1fe PF: > { %s14_s18 = sadd.s32 1, %s2552_s18   ;;  %s3069_s12 = smov %s2532_s13 }
 0x1ff   : > { %p11_p1 = scmp.ge.s32.totalorder %s14_s18, 8   ;;  %s3070_s13 = smov %s2626_s25 }
 0x200   : > { %s3071_s14 = smov %s2544_s16  ;;  %s3072_s15 = smov %s2548_s17 }
 0x201   : > { %s3073_s16 = smov %s3076_s19  ;;  %s3074_s17 = smov %s3080_s20 }
 0x202   :  { %13 = sbr.rel (!%p11_p1) target bundleno = 4 (0x4), region = 118 }

// kernel: _forward.56
= control target key start
LH: loop header
LB: loop body
LE: loop exit
PB: predicated region body
PF: predicated region fallthrough
CT: control target
= control target key end

     0   :  { %s749_s1 = inlined_call_operand.vmem [shape: bf16[128,128], index: 1, kind: input, shape index: {}]   ;;  %s750_s0 = inlined_call_operand.vmem [shape: bf16[128,128], index: 0, kind: input, shape index: {}]   ;;  %s751_s2 = inlined_call_operand.vmem [shape: bf16[128,128], index: 2, kind: output, shape index: {0}]   ;;  %s752_s3 = inlined_call_operand.vmem [shape: f32[8,128], index: 3, kind: output, shape index: {1}]  }
   0x1   :  { %v638_v0 = vld [vmem:[%s749_s1] sm:$0xff]   ;;  %v639_v1 = vld [vmem:[%s749_s1 + $0x8] sm:$0xff]   ;;  %v640_v2 = vld [vmem:[%s749_s1 + $0x10] sm:$0xff]  }
   0x2   :  { %590 = vmatprep.subr.bf16.mxu0 %v638_v0  ;;  %622 = vmatprep.subr.bf16.mxu1 %v638_v0  ;;  %v641_v3 = vld [vmem:[%s749_s1 + $0x18] sm:$0xff]   ;;  %v646_v4 = vld [vmem:[%s750_s0] sm:$0xff]   ;;  %v643_v7 = vld [vmem:[%s749_s1 + $0x28] sm:$0xff]  }
   0x3   :  { %591 = vmatpush3.bf16.msra.mxu0 %v638_v0  ;;  %630 = vmatpush3.bf16.msra.mxu1 %v638_v0  ;;  %v642_v5 = vld [vmem:[%s749_s1 + $0x20] sm:$0xff]   ;;  %v644_v8 = vld [vmem:[%s749_s1 + $0x30] sm:$0xff]   ;;  %v645_v9 = vld [vmem:[%s749_s1 + $0x38] sm:$0xff]  }
   0x4   :  { %592 = vmatprep.subr.bf16.mxu0 %v639_v1  ;;  %623 = vmatprep.subr.bf16.mxu1 %v639_v1  ;;  %v650_v6 = vld [vmem:[%s750_s0 + $0x20] sm:$0xff]   ;;  %v647_v10 = vld [vmem:[%s750_s0 + $0x8] sm:$0xff]   ;;  %v648_v12 = vld [vmem:[%s750_s0 + $0x10] sm:$0xff]  }
   0x5   :  { %606 = vmatprep.mubr.bf16.mxu0 %v646_v4  ;;  %614 = vmatprep.mubr.bf16.mxu1 %v650_v6  ;;  %v651_v11 = vld [vmem:[%s750_s0 + $0x28] sm:$0xff]   ;;  %v652_v13 = vld [vmem:[%s750_s0 + $0x30] sm:$0xff]   ;;  %v649_v14 = vld [vmem:[%s750_s0 + $0x18] sm:$0xff]  }
   0x6   :  { %v653_v15 = vld [vmem:[%s750_s0 + $0x38] sm:$0xff]  }
   0x7   :  { %593 = vmatpush3.bf16.msra.mxu0 %v639_v1  ;;  %631 = vmatpush3.bf16.msra.mxu1 %v639_v1 }
   0x8   :  { %594 = vmatprep.subr.bf16.mxu0 %v640_v2  ;;  %624 = vmatprep.subr.bf16.mxu1 %v640_v2 }
   0xb   :  { %595 = vmatpush3.bf16.msra.mxu0 %v640_v2  ;;  %632 = vmatpush3.bf16.msra.mxu1 %v640_v2 }
   0xc   :  { %596 = vmatprep.subr.bf16.mxu0 %v641_v3  ;;  %625 = vmatprep.subr.bf16.mxu1 %v641_v3 }
   0xf   :  { %597 = vmatpush3.bf16.msra.mxu0 %v641_v3  ;;  %633 = vmatpush3.bf16.msra.mxu1 %v641_v3 }
  0x10   :  { %598 = vmatprep.subr.bf16.mxu0 %v642_v5  ;;  %626 = vmatprep.subr.bf16.mxu1 %v642_v5 }
  0x13   :  { %599 = vmatpush3.bf16.msra.mxu0 %v642_v5  ;;  %634 = vmatpush3.bf16.msra.mxu1 %v642_v5 }
  0x14   :  { %600 = vmatprep.subr.bf16.mxu0 %v643_v7  ;;  %627 = vmatprep.subr.bf16.mxu1 %v643_v7 }
  0x17   :  { %601 = vmatpush3.bf16.msra.mxu0 %v643_v7  ;;  %635 = vmatpush3.bf16.msra.mxu1 %v643_v7 }
  0x18   :  { %602 = vmatprep.subr.bf16.mxu0 %v644_v8  ;;  %628 = vmatprep.subr.bf16.mxu1 %v644_v8 }
  0x1b   :  { %603 = vmatpush3.bf16.msra.mxu0 %v644_v8  ;;  %636 = vmatpush3.bf16.msra.mxu1 %v644_v8 }
  0x1c   :  { %604 = vmatprep.subr.bf16.mxu0 %v645_v9  ;;  %629 = vmatprep.subr.bf16.mxu1 %v645_v9 }
  0x1f   :  { %605 = vmatpush3.bf16.msra.mxu0 %v645_v9  ;;  %637 = vmatpush3.bf16.msra.mxu1 %v645_v9 }
  0x22   :  { %607 = vmatmul.mubr.bf16.vlgmr.msra.gmra.mrb[0].mxu0 %v647_v10  ;;  %615 = vmatmul.mubr.bf16.vlgmr.msra.gmra.mrb[0].mxu1 %v651_v11 }
  0x23   :  { %610 = vmatprep.mubr.bf16.mxu0 %v648_v12  ;;  %618 = vmatprep.mubr.bf16.mxu1 %v652_v13 }
  0x2a   :  { %611 = vmatmul.mubr.bf16.gmra.mrb[4].mxu0 %v649_v14  ;;  %619 = vmatmul.mubr.bf16.gmra.mrb[4].mxu1 %v653_v15 }
  0xf5   :  { %v608_v16 = vpop.f32.mrb[0].mxu0  ;;  %v616_v17 = vpop.f32.mrb[0].mxu1 }
  0xf6   :  { %v212_v18 = vpop.f32.mrb[1].mxu0  ;;  %v244_v19 = vpop.f32.mrb[1].mxu1  ;;  %v349_v31 = vmul.f32 %v608_v16, %v608_v16  ;;  %v357_v3 = vmul.f32 %v616_v17, %v616_v17 }
  0xf7   :  { %v609_v20 = vpop.f32.mrb[2].mxu0  ;;  %v617_v21 = vpop.f32.mrb[2].mxu1  ;;  %v347_v26 = vmul.f32 %v212_v18, %v212_v18  ;;  %v355_v61 = vmul.f32 %v244_v19, %v244_v19 }
  0xf8   :  { %v535_v22 = vpack.c.bf16 %v609_v20, %v608_v16  ;;  %v215_v23 = vpop.f32.mrb[3].mxu0  ;;  %v555_v24 = vpack.c.bf16 %v617_v21, %v616_v17  ;;  %v247_v25 = vpop.f32.mrb[3].mxu1  ;;  %v350_v34 = vmul.f32 %v609_v20, %v609_v20  ;;  %v358_v6 = vmul.f32 %v617_v21, %v617_v21 }
  0xf9   :  { %v326_v27 = vadd.f32 %v215_v23, %v212_v18  ;;  %v348_v28 = vmul.f32 %v215_v23, %v215_v23  ;;  %v530_v29 = vpack.c.bf16 %v215_v23, %v212_v18  ;;  %v550_v30 = vpack.c.bf16 %v247_v25, %v244_v19 }
  0xfa   :  { %567 = vst [vmem:[%s751_s2 + $0x8] sm:$0xff] %v535_v22   ;;  %571 = vst [vmem:[%s751_s2 + $0x28] sm:$0xff] %v555_v24   ;;  %v356_v2 = vmul.f32 %v247_v25, %v247_v25 }
  0xfb   :  { %v327_v32 = vadd.f32 %v608_v16, %v326_v27  ;;  %v363_v33 = vadd.f32 %v348_v28, %v347_v26  ;;  %531 = vst [vmem:[%s751_s2] sm:$0xff] %v530_v29   ;;  %570 = vst [vmem:[%s751_s2 + $0x20] sm:$0xff] %v550_v30   ;;  %v384_v26 = vlaneseq }
  0xfd   :  { %v364_v35 = vadd.f32 %v363_v33, %v349_v31  ;;  %v612_v36 = vpop.f32.mrb[4].mxu0  ;;  %v328_v37 = vadd.f32 %v609_v20, %v327_v32  ;;  %v620_v38 = vpop.f32.mrb[4].mxu1  ;;  %v385_v30 = vshrl.u32 %v384_v26, 7 }
  0xfe   :  { %v228_v39 = vpop.f32.mrb[5].mxu0  ;;  %v260_v40 = vpop.f32.mrb[5].mxu1  ;;  %v353_v55 = vmul.f32 %v612_v36, %v612_v36  ;;  %v361_v15 = vmul.f32 %v620_v38, %v620_v38 }
  0xff   :  { %v329_v41 = vadd.f32 %v328_v37, %v228_v39  ;;  %v351_v42 = vmul.f32 %v228_v39, %v228_v39  ;;  %v365_v43 = vadd.f32 %v364_v35, %v350_v34  ;;  %v613_v44 = vpop.f32.mrb[6].mxu0  ;;  %v621_v45 = vpop.f32.mrb[6].mxu1  ;;  %v359_v9 = vmul.f32 %v260_v40, %v260_v40 }
 0x100   :  { %v545_v46 = vpack.c.bf16 %v613_v44, %v612_v36  ;;  %v231_v47 = vpop.f32.mrb[7].mxu0  ;;  %v565_v48 = vpack.c.bf16 %v621_v45, %v620_v38  ;;  %v263_v49 = vpop.f32.mrb[7].mxu1  ;;  %v354_v58 = vmul.f32 %v613_v44, %v613_v44  ;;  %vm387_vm0 = vcmp.eq.s32.totalorder %v385_v30, 1 }
 0x101   :  { %v366_v50 = vadd.f32 %v365_v43, %v351_v42  ;;  %v330_v51 = vadd.f32 %v329_v41, %v231_v47  ;;  %v352_v52 = vmul.f32 %v231_v47, %v231_v47  ;;  %v540_v53 = vpack.c.bf16 %v231_v47, %v228_v39 }
 0x102   :  { %569 = vst [vmem:[%s751_s2 + $0x18] sm:$0xff] %v545_v46   ;;  %573 = vst [vmem:[%s751_s2 + $0x38] sm:$0xff] %v565_v48   ;;  %v560_v54 = vpack.c.bf16 %v263_v49, %v260_v40  ;;  %v360_v14 = vmul.f32 %v263_v49, %v263_v49  ;;  %vm386_vm1 = vcmp.eq.s32.totalorder %v385_v30, 0 }
 0x103   :  { %v331_v56 = vadd.f32 %v612_v36, %v330_v51  ;;  %v367_v57 = vadd.f32 %v366_v50, %v352_v52  ;;  %568 = vst [vmem:[%s751_s2 + $0x10] sm:$0xff] %v540_v53  }
 0x104   :  { %572 = vst [vmem:[%s751_s2 + $0x30] sm:$0xff] %v560_v54  }
 0x105   :  { %v368_v59 = vadd.f32 %v367_v57, %v353_v55  ;;  %v332_v60 = vadd.f32 %v613_v44, %v331_v56 }
 0x107   :  { %v333_v62 = vadd.f32 %v332_v60, %v244_v19  ;;  %v369_v63 = vadd.f32 %v368_v59, %v354_v58  ;;  %v362_v19 = vmul.f32 %v621_v45, %v621_v45 }
 0x109   :  { %v370_v0 = vadd.f32 %v369_v63, %v355_v61  ;;  %v334_v1 = vadd.f32 %v333_v62, %v247_v25 }
 0x10b   :  { %v335_v4 = vadd.f32 %v616_v17, %v334_v1  ;;  %v371_v5 = vadd.f32 %v370_v0, %v356_v2 }
 0x10d   :  { %v372_v7 = vadd.f32 %v371_v5, %v357_v3  ;;  %v336_v8 = vadd.f32 %v617_v21, %v335_v4 }
 0x10f   :  { %v337_v10 = vadd.f32 %v336_v8, %v260_v40  ;;  %v373_v11 = vadd.f32 %v372_v7, %v358_v6 }
 0x111   :  { %v374_v12 = vadd.f32 %v373_v11, %v359_v9  ;;  %v338_v13 = vadd.f32 %v337_v10, %v263_v49 }
 0x113   :  { %v339_v16 = vadd.f32 %v620_v38, %v338_v13  ;;  %v375_v18 = vadd.f32 %v374_v12, %v360_v14 }
 0x115   :  { %v340_v20 = vadd.f32 %v621_v45, %v339_v16  ;;  %v376_v22 = vadd.f32 %v375_v18, %v361_v15 }
 0x117   :  { %v341_v23 = vrot.slane %v340_v20, 4  ;;  %v377_v24 = vadd.f32 %v376_v22, %v362_v19 }
 0x119   :  { %v342_v25 = vadd.f32 %v341_v23, %v340_v20  ;;  %v378_v17 = vrot.slane %v377_v24, 4 }
 0x11b   :  { %v343_v27 = vrot.slane %v342_v25, 2  ;;  %v379_v28 = vadd.f32 %v378_v17, %v377_v24 }
 0x11d   :  { %v344_v21 = vadd.f32 %v343_v27, %v342_v25  ;;  %v380_v29 = vrot.slane %v379_v28, 2 }
 0x11f   :  { %v381_v31 = vadd.f32 %v380_v29, %v379_v28  ;;  %v345_v32 = vrot.slane %v344_v21, 1 }
 0x121   :  { %v382_v33 = vrot.slane %v381_v31, 1  ;;  %v346_v35 = vadd.f32 %v345_v32, %v344_v21 }
 0x123   :  { %v383_v34 = vadd.f32 %v382_v33, %v381_v31 }
 0x125   :  { %v388_v36 = vsel %vm387_vm0, %v383_v34, 0.0 }
 0x126   :  { %v389_v37 = vsel %vm386_vm1, %v346_v35, %v388_v36 }
 0x127   :  { %390 = vst [vmem:[%s752_s3] sm:$0xff] %v389_v37 }

// kernel: _forward.57
= control target key start
LH: loop header
LB: loop body
LE: loop exit
PB: predicated region body
PF: predicated region fallthrough
CT: control target
= control target key end

     0   :  { %s370_s0 = inlined_call_operand.vmem [shape: bf16[128,128], index: 0, kind: input, shape index: {}]   ;;  %s371_s1 = inlined_call_operand.vmem [shape: f32[1,128], index: 1, kind: input, shape index: {}]   ;;  %s372_s2 = inlined_call_operand.vmem [shape: f32[1,128], index: 2, kind: input, shape index: {}]   ;;  %s373_s3 = inlined_call_operand.vmem [shape: bf16[128,128], index: 3, kind: output, shape index: {}]  }
   0x1   :  { %v211_v0 = vld [vmem:[%s370_s0] sm:$0xff]   ;;  %v282_v4 = vld [vmem:[%s370_s0 + $0x8] sm:$0xff]   ;;  %v283_v5 = vld [vmem:[%s370_s0 + $0x10] sm:$0xff]  }
   0x2   :  { %v176_v1 = vld [vmem:[%s371_s1] ss:$0 sm:$0xff]  ;;  %v212_v2 = vunpack.c.l.bf16 %v211_v0  ;;  %v213_v3 = vunpack.c.h.bf16 %v211_v0  ;;  %v284_v6 = vld [vmem:[%s370_s0 + $0x18] sm:$0xff]   ;;  %v216_v8 = vunpack.c.l.bf16 %v282_v4  ;;  %v217_v9 = vunpack.c.h.bf16 %v282_v4  ;;  %v286_v25 = vld [vmem:[%s370_s0 + $0x28] sm:$0xff]  }
   0x3   :  { %v177_v7 = vld [vmem:[%s372_s2] ss:$0 sm:$0xff]  ;;  %v220_v10 = vunpack.c.l.bf16 %v283_v5  ;;  %v221_v11 = vunpack.c.h.bf16 %v283_v5  ;;  %v224_v14 = vunpack.c.l.bf16 %v284_v6  ;;  %v225_v15 = vunpack.c.h.bf16 %v284_v6  ;;  %v287_v30 = vld [vmem:[%s370_s0 + $0x30] sm:$0xff]   ;;  %v288_v35 = vld [vmem:[%s370_s0 + $0x38] sm:$0xff]  }
   0x4   :  { %v53_v12 = vmul.f32 %v212_v2, %v176_v1  ;;  %v54_v13 = vmul.f32 %v213_v3, %v176_v1  ;;  %v55_v16 = vmul.f32 %v216_v8, %v176_v1  ;;  %v56_v17 = vmul.f32 %v217_v9, %v176_v1  ;;  %v285_v20 = vld [vmem:[%s370_s0 + $0x20] sm:$0xff]  }
   0x5   :  { %v57_v18 = vmul.f32 %v220_v10, %v176_v1  ;;  %v58_v19 = vmul.f32 %v221_v11, %v176_v1  ;;  %v59_v23 = vmul.f32 %v224_v14, %v176_v1  ;;  %v60_v24 = vmul.f32 %v225_v15, %v176_v1 }
   0x6   :  { %v76_v21 = vadd.f32 %v177_v7, %v53_v12  ;;  %v77_v22 = vadd.f32 %v177_v7, %v54_v13  ;;  %v78_v26 = vadd.f32 %v177_v7, %v55_v16  ;;  %v79_v27 = vadd.f32 %v177_v7, %v56_v17 }
   0x7   :  { %v80_v28 = vadd.f32 %v177_v7, %v57_v18  ;;  %v81_v29 = vadd.f32 %v177_v7, %v58_v19  ;;  %v82_v32 = vadd.f32 %v177_v7, %v59_v23  ;;  %v83_v33 = vadd.f32 %v177_v7, %v60_v24 }
   0x8   :  { %v245_v31 = vpack.c.bf16 %v77_v22, %v76_v21  ;;  %v228_v34 = vunpack.c.l.bf16 %v285_v20  ;;  %v250_v36 = vpack.c.bf16 %v79_v27, %v78_v26  ;;  %v229_v38 = vunpack.c.h.bf16 %v285_v20 }
   0x9   :  { %v255_v37 = vpack.c.bf16 %v81_v29, %v80_v28  ;;  %v232_v39 = vunpack.c.l.bf16 %v286_v25  ;;  %v260_v40 = vpack.c.bf16 %v83_v33, %v82_v32  ;;  %v233_v42 = vunpack.c.h.bf16 %v286_v25 }
   0xa   :  { %246 = vst [vmem:[%s373_s3] sm:$0xff] %v245_v31   ;;  %v61_v41 = vmul.f32 %v228_v34, %v176_v1  ;;  %v236_v43 = vunpack.c.l.bf16 %v287_v30  ;;  %289 = vst [vmem:[%s373_s3 + $0x8] sm:$0xff] %v250_v36   ;;  %v62_v44 = vmul.f32 %v229_v38, %v176_v1  ;;  %v237_v46 = vunpack.c.h.bf16 %v287_v30 }
   0xb   :  { %290 = vst [vmem:[%s373_s3 + $0x10] sm:$0xff] %v255_v37   ;;  %v63_v45 = vmul.f32 %v232_v39, %v176_v1  ;;  %v240_v47 = vunpack.c.l.bf16 %v288_v35  ;;  %291 = vst [vmem:[%s373_s3 + $0x18] sm:$0xff] %v260_v40   ;;  %v64_v49 = vmul.f32 %v233_v42, %v176_v1  ;;  %v241_v51 = vunpack.c.h.bf16 %v288_v35 }
   0xc   :  { %v84_v48 = vadd.f32 %v177_v7, %v61_v41  ;;  %v65_v50 = vmul.f32 %v236_v43, %v176_v1  ;;  %v85_v52 = vadd.f32 %v177_v7, %v62_v44  ;;  %v66_v54 = vmul.f32 %v237_v46, %v176_v1 }
   0xd   :  { %v86_v53 = vadd.f32 %v177_v7, %v63_v45  ;;  %v67_v55 = vmul.f32 %v240_v47, %v176_v1  ;;  %v87_v56 = vadd.f32 %v177_v7, %v64_v49  ;;  %v68_v58 = vmul.f32 %v241_v51, %v176_v1 }
   0xe   :  { %v88_v57 = vadd.f32 %v177_v7, %v65_v50  ;;  %v265_v59 = vpack.c.bf16 %v85_v52, %v84_v48  ;;  %v89_v60 = vadd.f32 %v177_v7, %v66_v54 }
   0xf   :  { %v90_v61 = vadd.f32 %v177_v7, %v67_v55  ;;  %v270_v62 = vpack.c.bf16 %v87_v56, %v86_v53  ;;  %v91_v63 = vadd.f32 %v177_v7, %v68_v58 }
  0x10   :  { %292 = vst [vmem:[%s373_s3 + $0x20] sm:$0xff] %v265_v59   ;;  %v275_v0 = vpack.c.bf16 %v89_v60, %v88_v57 }
  0x11   :  { %293 = vst [vmem:[%s373_s3 + $0x28] sm:$0xff] %v270_v62   ;;  %v280_v2 = vpack.c.bf16 %v91_v63, %v90_v61 }
  0x12   :  { %294 = vst [vmem:[%s373_s3 + $0x30] sm:$0xff] %v275_v0  }
  0x13   :  { %295 = vst [vmem:[%s373_s3 + $0x38] sm:$0xff] %v280_v2  }

// kernel: _forward.55
= control target key start
LH: loop header
LB: loop body
LE: loop exit
PB: predicated region body
PF: predicated region fallthrough
CT: control target
= control target key end

     0   :  { %s422_s0 = inlined_call_operand.vmem [shape: bf16[128,128], index: 0, kind: input, shape index: {}]   ;;  %s423_s1 = inlined_call_operand.vmem [shape: f32[1,128], index: 1, kind: input, shape index: {}]   ;;  %s424_s2 = inlined_call_operand.vmem [shape: f32[1,128], index: 2, kind: input, shape index: {}]   ;;  %s425_s3 = inlined_call_operand.vmem [shape: bf16[128,128], index: 3, kind: output, shape index: {}]  }
   0x1   :  { %v227_v0 = vld [vmem:[%s422_s0] sm:$0xff]   ;;  %v298_v4 = vld [vmem:[%s422_s0 + $0x8] sm:$0xff]   ;;  %v299_v5 = vld [vmem:[%s422_s0 + $0x10] sm:$0xff]  }
   0x2   :  { %v338_v1 = vld [vmem:[%s423_s1] ss:$0 sm:$0xff]  ;;  %v228_v2 = vunpack.c.l.bf16 %v227_v0  ;;  %v229_v3 = vunpack.c.h.bf16 %v227_v0  ;;  %v300_v6 = vld [vmem:[%s422_s0 + $0x18] sm:$0xff]   ;;  %v232_v8 = vunpack.c.l.bf16 %v298_v4  ;;  %v233_v9 = vunpack.c.h.bf16 %v298_v4  ;;  %v302_v33 = vld [vmem:[%s422_s0 + $0x28] sm:$0xff]  }
   0x3   :  { %v352_v7 = vld [vmem:[%s424_s2] ss:$0 sm:$0xff]  ;;  %v236_v10 = vunpack.c.l.bf16 %v299_v5  ;;  %v237_v11 = vunpack.c.h.bf16 %v299_v5  ;;  %v240_v14 = vunpack.c.l.bf16 %v300_v6  ;;  %v241_v15 = vunpack.c.h.bf16 %v300_v6  ;;  %v303_v38 = vld [vmem:[%s422_s0 + $0x30] sm:$0xff]   ;;  %v304_v43 = vld [vmem:[%s422_s0 + $0x38] sm:$0xff]  }
   0x4   :  { %v53_v12 = vmul.f32 %v228_v2, %v338_v1  ;;  %v54_v13 = vmul.f32 %v229_v3, %v338_v1  ;;  %v55_v16 = vmul.f32 %v232_v8, %v338_v1  ;;  %v56_v17 = vmul.f32 %v233_v9, %v338_v1  ;;  %v301_v28 = vld [vmem:[%s422_s0 + $0x20] sm:$0xff]  }
   0x5   :  { %v57_v18 = vmul.f32 %v236_v10, %v338_v1  ;;  %v58_v19 = vmul.f32 %v237_v11, %v338_v1  ;;  %v59_v22 = vmul.f32 %v240_v14, %v338_v1  ;;  %v60_v23 = vmul.f32 %v241_v15, %v338_v1 }
   0x6   :  { %v76_v20 = vadd.f32 %v352_v7, %v53_v12  ;;  %v77_v21 = vadd.f32 %v352_v7, %v54_v13  ;;  %v78_v24 = vadd.f32 %v352_v7, %v55_v16  ;;  %v79_v25 = vadd.f32 %v352_v7, %v56_v17 }
   0x7   :  { %v80_v26 = vadd.f32 %v352_v7, %v57_v18  ;;  %v81_v27 = vadd.f32 %v352_v7, %v58_v19  ;;  %v82_v31 = vadd.f32 %v352_v7, %v59_v22  ;;  %v83_v32 = vadd.f32 %v352_v7, %v60_v23 }
   0x8   :  { %v92_v29 = vmax.f32 %v76_v20, 0.0  ;;  %v93_v30 = vmax.f32 %v77_v21, 0.0  ;;  %v94_v34 = vmax.f32 %v78_v24, 0.0  ;;  %v95_v35 = vmax.f32 %v79_v25, 0.0 }
   0x9   :  { %v96_v36 = vmax.f32 %v80_v26, 0.0  ;;  %v97_v37 = vmax.f32 %v81_v27, 0.0  ;;  %v98_v40 = vmax.f32 %v82_v31, 0.0  ;;  %v99_v41 = vmax.f32 %v83_v32, 0.0 }
   0xa   :  { %v261_v39 = vpack.c.bf16 %v93_v30, %v92_v29  ;;  %v244_v42 = vunpack.c.l.bf16 %v301_v28  ;;  %v266_v44 = vpack.c.bf16 %v95_v35, %v94_v34  ;;  %v245_v46 = vunpack.c.h.bf16 %v301_v28 }
   0xb   :  { %v271_v45 = vpack.c.bf16 %v97_v37, %v96_v36  ;;  %v248_v47 = vunpack.c.l.bf16 %v302_v33  ;;  %v276_v48 = vpack.c.bf16 %v99_v41, %v98_v40  ;;  %v249_v50 = vunpack.c.h.bf16 %v302_v33 }
   0xc   :  { %262 = vst [vmem:[%s425_s3] sm:$0xff] %v261_v39   ;;  %v61_v49 = vmul.f32 %v244_v42, %v338_v1  ;;  %v252_v51 = vunpack.c.l.bf16 %v303_v38  ;;  %305 = vst [vmem:[%s425_s3 + $0x8] sm:$0xff] %v266_v44   ;;  %v62_v52 = vmul.f32 %v245_v46, %v338_v1  ;;  %v253_v54 = vunpack.c.h.bf16 %v303_v38 }
   0xd   :  { %306 = vst [vmem:[%s425_s3 + $0x10] sm:$0xff] %v271_v45   ;;  %v63_v53 = vmul.f32 %v248_v47, %v338_v1  ;;  %v256_v55 = vunpack.c.l.bf16 %v304_v43  ;;  %307 = vst [vmem:[%s425_s3 + $0x18] sm:$0xff] %v276_v48   ;;  %v64_v57 = vmul.f32 %v249_v50, %v338_v1  ;;  %v257_v59 = vunpack.c.h.bf16 %v304_v43 }
   0xe   :  { %v84_v56 = vadd.f32 %v352_v7, %v61_v49  ;;  %v65_v58 = vmul.f32 %v252_v51, %v338_v1  ;;  %v85_v60 = vadd.f32 %v352_v7, %v62_v52  ;;  %v66_v62 = vmul.f32 %v253_v54, %v338_v1 }
   0xf   :  { %v86_v61 = vadd.f32 %v352_v7, %v63_v53  ;;  %v67_v63 = vmul.f32 %v256_v55, %v338_v1  ;;  %v87_v2 = vadd.f32 %v352_v7, %v64_v57  ;;  %v68_v4 = vmul.f32 %v257_v59, %v338_v1 }
  0x10   :  { %v100_v0 = vmax.f32 %v84_v56, 0.0  ;;  %v88_v3 = vadd.f32 %v352_v7, %v65_v58  ;;  %v101_v5 = vmax.f32 %v85_v60, 0.0  ;;  %v89_v8 = vadd.f32 %v352_v7, %v66_v62 }
  0x11   :  { %v102_v6 = vmax.f32 %v86_v61, 0.0  ;;  %v90_v9 = vadd.f32 %v352_v7, %v67_v63  ;;  %v103_v10 = vmax.f32 %v87_v2, 0.0  ;;  %v91_v12 = vadd.f32 %v352_v7, %v68_v4 }
  0x12   :  { %v104_v11 = vmax.f32 %v88_v3, 0.0  ;;  %v281_v13 = vpack.c.bf16 %v101_v5, %v100_v0  ;;  %v105_v14 = vmax.f32 %v89_v8, 0.0 }
  0x13   :  { %v106_v15 = vmax.f32 %v90_v9, 0.0  ;;  %v286_v16 = vpack.c.bf16 %v103_v10, %v102_v6  ;;  %v107_v17 = vmax.f32 %v91_v12, 0.0 }
  0x14   :  { %308 = vst [vmem:[%s425_s3 + $0x20] sm:$0xff] %v281_v13   ;;  %v291_v1 = vpack.c.bf16 %v105_v14, %v104_v11 }
  0x15   :  { %309 = vst [vmem:[%s425_s3 + $0x28] sm:$0xff] %v286_v16   ;;  %v296_v18 = vpack.c.bf16 %v107_v17, %v106_v15 }
  0x16   :  { %310 = vst [vmem:[%s425_s3 + $0x30] sm:$0xff] %v291_v1  }
  0x17   :  { %311 = vst [vmem:[%s425_s3 + $0x38] sm:$0xff] %v296_v18  }

// kernel: _forward.54
= control target key start
LH: loop header
LB: loop body
LE: loop exit
PB: predicated region body
PF: predicated region fallthrough
CT: control target
= control target key end

     0   :  { %s1715_s12 = smov 0   ;;  %s1717_s13 = smov 0   ;;  %s1929_s0 = inlined_call_operand.vmem [shape: bf16[128,1152], index: 0, kind: input, shape index: {}]   ;;  %s1930_s1 = inlined_call_operand.vmem [shape: bf16[1152,128], index: 1, kind: input, shape index: {}]   ;;  %s1931_s2 = inlined_call_operand.vmem [shape: bf16[128,128], index: 2, kind: output, shape index: {0}]   ;;  %s1932_s3 = inlined_call_operand.vmem [shape: f32[8,128], index: 3, kind: output, shape index: {1}]  }
   0x1   :  { %s1719_s14 = smov 0   ;;  %s1721_s15 = smov 0  }
   0x2   :  { %s1723_s16 = smov 0  }
   0x3 LB: > { %s26_s17 = sadd.s32 1, %s1688_s15  ;;  %p49_p1 = scmp.ne.s32.totalorder %s1680_s13, %s1676_s12  ;;  %s1692_s16 = sphi %s1723_s16, %s14_s16   ;;  %s1688_s15 = sphi %s1721_s15, %s1936_s15   ;;  %s1684_s14 = sphi %s1719_s14, %s1935_s14   ;;  %s1680_s13 = sphi %s1717_s13, %s1934_s13   ;;  %s1676_s12 = sphi %s1715_s12, %s1933_s12  }
   0x4   : > { %p27_p0 = scmp.ge.s32.totalorder %s26_s17, 3  ;;  %p50_p2 = scmp.eq.s32.totalorder %s1692_s16, 0 }
   0x5   : > { %s42_s19 = sadd.s32 1, %s1680_s13  ;;  %p1272_p5 = scmp.ge.s32.totalorder %s1692_s16, 3 }
   0x6   : > { %s1938_s17 = smov (%p27_p0, %s26_s17), 0  ;;  %p51_p3 = por %p50_p2, %p49_p1 }
   0x7   : > { %s38_s18 = ssub.s32 %s1688_s15, %s1938_s17  ;;  %159 = sbr.rel (%p1272_p5) target bundleno = 37 (0x25), region = 16 }
   0x8   : > { %p40_p4 = scmp.eq.s32.totalorder %s38_s18, 0 }
   0xa   : > { %s1750_s20 = scalar_select %p40_p4, %s1680_s13, %s42_s19  }
   0xe   : > { %162 = sbr.rel (!%p51_p3) target bundleno = 37 (0x25), region = 20  ;;  %s164_s21 = sand.u32 (%p51_p3), 1, %s1680_s13  }
   0xf   : > { %s1379_s22 = smul.u32 (%p51_p3), 12, %s1688_s15 }
  0x10   : > { %s1555_s23 = smul.u32 (%p51_p3), 192, %s164_s21 }
  0x11   : > { %s1758_s26 = scalar_lea.vmem (%p51_p3), %s1929_s0, %s1379_s22 }
  0x12   : > { %v187_v0 = vld [vmem:[%s1758_s26] sm:$0xff] (%p51_p3)  ;;  %v191_v2 = vld [vmem:[%s1758_s26 + $0x48] sm:$0xff] (%p51_p3)  ;;  %s1763_s27 = scalar_lea.vmem (%p51_p3), [#allocation3], %s1555_s23  ;;  %v195_v4 = vld [vmem:[%s1758_s26 + $0x90] sm:$0xff] (%p51_p3) }
  0x13   : > { %v189_v1 = vld [vmem:[%s1758_s26 + $0x24] sm:$0xff] (%p51_p3)  ;;  %188 = vst [vmem:[%s1763_s27] sm:$0xff] (%p51_p3), %v187_v0  ;;  %192 = vst [vmem:[%s1763_s27 + $0x18] sm:$0xff] (%p51_p3), %v191_v2  ;;  %v193_v3 = vld [vmem:[%s1758_s26 + $0x6c] sm:$0xff] (%p51_p3) }
  0x14   : > { %190 = vst [vmem:[%s1763_s27 + $0xc] sm:$0xff] (%p51_p3), %v189_v1  ;;  %v197_v5 = vld [vmem:[%s1758_s26 + $0xb4] sm:$0xff] (%p51_p3)  ;;  %194 = vst [vmem:[%s1763_s27 + $0x24] sm:$0xff] (%p51_p3), %v193_v3  ;;  %v201_v7 = vld [vmem:[%s1758_s26 + $0xfc] sm:$0xff] (%p51_p3) }
  0x15   : > { %196 = vst [vmem:[%s1763_s27 + $0x30] sm:$0xff] %v195_v4  ;;  %198 = vst [vmem:[%s1763_s27 + $0x3c] sm:$0xff] %v197_v5  ;;  %v199_v6 = vld [vmem:[%s1758_s26 + $0xd8] sm:$0xff]  ;;  %v203_v8 = vld [vmem:[%s1758_s26 + $0x120] sm:$0xff] }
  0x16   : > { %200 = vst [vmem:[%s1763_s27 + $0x48] sm:$0xff] %v199_v6  ;;  %202 = vst [vmem:[%s1763_s27 + $0x54] sm:$0xff] %v201_v7  ;;  %v205_v9 = vld [vmem:[%s1758_s26 + $0x144] sm:$0xff]  ;;  %v209_v11 = vld [vmem:[%s1758_s26 + $0x18c] sm:$0xff] }
  0x17   : > { %204 = vst [vmem:[%s1763_s27 + $0x60] sm:$0xff] %v203_v8  ;;  %v207_v10 = vld [vmem:[%s1758_s26 + $0x168] sm:$0xff]  ;;  %206 = vst [vmem:[%s1763_s27 + $0x6c] sm:$0xff] %v205_v9  ;;  %v211_v12 = vld [vmem:[%s1758_s26 + $0x1b0] sm:$0xff] }
  0x18   : > { %208 = vst [vmem:[%s1763_s27 + $0x78] sm:$0xff] %v207_v10  ;;  %210 = vst [vmem:[%s1763_s27 + $0x84] sm:$0xff] %v209_v11  ;;  %v213_v13 = vld [vmem:[%s1758_s26 + $0x1d4] sm:$0xff]  ;;  %v217_v15 = vld [vmem:[%s1758_s26 + $0x21c] sm:$0xff] }
  0x19   : > { %v215_v14 = vld [vmem:[%s1758_s26 + $0x1f8] sm:$0xff]  ;;  %212 = vst [vmem:[%s1763_s27 + $0x90] sm:$0xff] %v211_v12  ;;  %214 = vst [vmem:[%s1763_s27 + $0x9c] sm:$0xff] %v213_v13  ;;  %v1274_v16 = vld [vmem:[%s1758_s26 + $0x8] sm:$0xf] }
  0x1a   : > { %216 = vst [vmem:[%s1763_s27 + $0xa8] sm:$0xff] %v215_v14  ;;  %v1276_v17 = vld [vmem:[%s1758_s26 + $0x2c] sm:$0xf]  ;;  %218 = vst [vmem:[%s1763_s27 + $0xb4] sm:$0xff] %v217_v15  ;;  %v1278_v18 = vld [vmem:[%s1758_s26 + $0x50] sm:$0xf] }
  0x1b   : > { %1275 = vst [vmem:[%s1763_s27 + $0x8] sm:$0xf] %v1274_v16  ;;  %1277 = vst [vmem:[%s1763_s27 + $0x14] sm:$0xf] %v1276_v17  ;;  %v1280_v19 = vld [vmem:[%s1758_s26 + $0x74] sm:$0xf] }
  0x1c   : > { %v1282_v20 = vld [vmem:[%s1758_s26 + $0x98] sm:$0xf]  ;;  %1279 = vst [vmem:[%s1763_s27 + $0x20] sm:$0xf] %v1278_v18  ;;  %1281 = vst [vmem:[%s1763_s27 + $0x2c] sm:$0xf] %v1280_v19 }
  0x1d   : > { %1283 = vst [vmem:[%s1763_s27 + $0x38] sm:$0xf] %v1282_v20  ;;  %v1284_v21 = vld [vmem:[%s1758_s26 + $0xbc] sm:$0xf]  ;;  %v1286_v22 = vld [vmem:[%s1758_s26 + $0xe0] sm:$0xf] }
  0x1e   : > { %v1288_v23 = vld [vmem:[%s1758_s26 + $0x104] sm:$0xf]  ;;  %1285 = vst [vmem:[%s1763_s27 + $0x44] sm:$0xf] %v1284_v21  ;;  %1287 = vst [vmem:[%s1763_s27 + $0x50] sm:$0xf] %v1286_v22 }
  0x1f   : > { %1289 = vst [vmem:[%s1763_s27 + $0x5c] sm:$0xf] %v1288_v23  ;;  %v1290_v24 = vld [vmem:[%s1758_s26 + $0x128] sm:$0xf]  ;;  %v1292_v25 = vld [vmem:[%s1758_s26 + $0x14c] sm:$0xf] }
  0x20   : > { %v1294_v26 = vld [vmem:[%s1758_s26 + $0x170] sm:$0xf]  ;;  %1291 = vst [vmem:[%s1763_s27 + $0x68] sm:$0xf] %v1290_v24  ;;  %1293 = vst [vmem:[%s1763_s27 + $0x74] sm:$0xf] %v1292_v25 }
  0x21   : > { %1295 = vst [vmem:[%s1763_s27 + $0x80] sm:$0xf] %v1294_v26  ;;  %v1296_v27 = vld [vmem:[%s1758_s26 + $0x194] sm:$0xf]  ;;  %v1298_v28 = vld [vmem:[%s1758_s26 + $0x1b8] sm:$0xf] }
  0x22   : > { %v1300_v29 = vld [vmem:[%s1758_s26 + $0x1dc] sm:$0xf]  ;;  %1297 = vst [vmem:[%s1763_s27 + $0x8c] sm:$0xf] %v1296_v27  ;;  %1299 = vst [vmem:[%s1763_s27 + $0x98] sm:$0xf] %v1298_v28 }
  0x23   : > { %1301 = vst [vmem:[%s1763_s27 + $0xa4] sm:$0xf] %v1300_v29  ;;  %v1302_v30 = vld [vmem:[%s1758_s26 + $0x200] sm:$0xf]  ;;  %v1304_v31 = vld [vmem:[%s1758_s26 + $0x224] sm:$0xf] }
  0x24   : > { %1303 = vst [vmem:[%s1763_s27 + $0xb0] sm:$0xf] %v1302_v30  ;;  %1305 = vst [vmem:[%s1763_s27 + $0xbc] sm:$0xf] %v1304_v31 }
  0x25 PF: > { %p1306_p6 = scmp.ge.s32.totalorder %s1692_s16, 1  ;;  %p274_p7 = scmp.lt.s32.totalorder %s1692_s16, 4 }
  0x27   : > { %p275_p8 = pnand %p1306_p6, %p274_p7 }
  0x28   : > { %s281_s28 = sand.u32 (!%p275_p8), 1, %s1676_s12   ;;  %s324_s29 = smul.u32 (!%p275_p8), 48, %s1684_s14 }
  0x29   : > { %278 = sbr.rel (%p275_p8) target bundleno = 402 (0x192), region = 50  ;;  %p1308_p10 = scmp.ne.s32.totalorder (!%p275_p8), %s1684_s14, 0 }
  0x2a   : > { %s1556_s30 = smul.u32 (!%p275_p8), 192, %s281_s28  ;;  %p325_p9 = scmp.lt.s32.totalorder (!%p275_p8), %s324_s29, 143 }
  0x2c   : > { %s1835_s8 = scalar_lea.vmem (!%p275_p8), [#allocation3], %s1556_s30 }
  0x30   : > { %s1940_s29 = smov (!%p325_p9, %s324_s29), 143  ;;  %353 = sbr.rel (%p1308_p10) target bundleno = 58 (0x3a), region = 58 }
  0x31   : > { %s1307_s4 = sshll.u32 %s1940_s29, 2  ;;  %v1694_v32 = vmov (!%p1308_p10), 0.0  }
  0x32   : > { %s1833_s7 = scalar_lea.vmem %s1930_s1, %s1307_s4  ;;  %354 = vst [vmem:[#allocation2] sm:$0xff] (!%p1308_p10), %v1694_v32  ;;  %355 = vst [vmem:[#allocation2 + $0x8] sm:$0xff] (!%p1308_p10), %v1694_v32 }
  0x33   : > { %356 = vst [vmem:[#allocation2 + $0x10] sm:$0xff] (!%p1308_p10), %v1694_v32  ;;  %357 = vst [vmem:[#allocation2 + $0x18] sm:$0xff] (!%p1308_p10), %v1694_v32 }
  0x34   : > { %358 = vst [vmem:[#allocation2 + $0x20] sm:$0xff] (!%p1308_p10), %v1694_v32  ;;  %359 = vst [vmem:[#allocation2 + $0x28] sm:$0xff] (!%p1308_p10), %v1694_v32 }
  0x35   : > { %360 = vst [vmem:[#allocation2 + $0x30] sm:$0xff] (!%p1308_p10), %v1694_v32  ;;  %361 = vst [vmem:[#allocation2 + $0x38] sm:$0xff] (!%p1308_p10), %v1694_v32 }
  0x36   : > { %362 = vst [vmem:[#allocation2 + $0x40] sm:$0xff] (!%p1308_p10), %v1694_v32  ;;  %363 = vst [vmem:[#allocation2 + $0x48] sm:$0xff] (!%p1308_p10), %v1694_v32 }
  0x37   : > { %364 = vst [vmem:[#allocation2 + $0x50] sm:$0xff] %v1694_v32  ;;  %365 = vst [vmem:[#allocation2 + $0x58] sm:$0xff] %v1694_v32 }
  0x38   : > { %366 = vst [vmem:[#allocation2 + $0x60] sm:$0xff] %v1694_v32  ;;  %367 = vst [vmem:[#allocation2 + $0x68] sm:$0xff] %v1694_v32 }
  0x39   : > { %368 = vst [vmem:[#allocation2 + $0x70] sm:$0xff] %v1694_v32  ;;  %369 = vst [vmem:[#allocation2 + $0x78] sm:$0xff] %v1694_v32 }
  0x3a PF: > { %v1598_v33 = vld [vmem:[%s1833_s7 + $0x40] sm:$0xff]   ;;  %v1601_v36 = vld [vmem:[%s1833_s7 + $0x48] sm:$0xff]   ;;  %v1604_v39 = vld [vmem:[%s1833_s7 + $0x50] sm:$0xff]   ;;  %p1357_p11 = scmp.ne.s32.totalorder %s1684_s14, 2 }
  0x3b   : > { %v1599_v34 = vld [vmem:[%s1833_s7] sm:$0xff]   ;;  %1443 = vmatprep.subr.bf16.mxu0 %v1598_v33  ;;  %v1602_v37 = vld [vmem:[%s1833_s7 + $0x8] sm:$0xff]   ;;  %v1605_v40 = vld [vmem:[%s1833_s7 + $0x10] sm:$0xff]  }
  0x3c   : > { %v1600_v35 = vld [vmem:[%s1833_s7 + $0x80] sm:$0xff]   ;;  %1444 = vmatpush3.bf16.msra.mxu0 %v1599_v34  ;;  %v1603_v38 = vld [vmem:[%s1833_s7 + $0x88] sm:$0xff]   ;;  %v1606_v41 = vld [vmem:[%s1833_s7 + $0x90] sm:$0xff]  }
  0x3d   : > { %1523 = vmatprep.subr.bf16.mxu1 %v1600_v35  ;;  %1445 = vmatprep.subr.bf16.mxu0 %v1601_v36  ;;  %v1607_v42 = vld [vmem:[%s1833_s7 + $0x58] sm:$0xff]   ;;  %v1610_v45 = vld [vmem:[%s1833_s7 + $0x60] sm:$0xff]   ;;  %v1613_v48 = vld [vmem:[%s1833_s7 + $0x68] sm:$0xff]  }
  0x3e   : > { %1524 = vmatpush3.bf16.msra.mxu1 %v1600_v35  ;;  %v1608_v43 = vld [vmem:[%s1833_s7 + $0x18] sm:$0xff]   ;;  %v1612_v46 = vld [vmem:[%s1833_s7 + $0xa0] sm:$0xff]   ;;  %v1615_v49 = vld [vmem:[%s1833_s7 + $0xa8] sm:$0xff]  }
  0x3f   : > { %1525 = vmatprep.subr.bf16.mxu1 %v1603_v38  ;;  %v1609_v44 = vld [vmem:[%s1833_s7 + $0x98] sm:$0xff]   ;;  %v1611_v47 = vld [vmem:[%s1833_s7 + $0x20] sm:$0xff]   ;;  %v1614_v50 = vld [vmem:[%s1833_s7 + $0x28] sm:$0xff]  }
  0x40   : > { %1446 = vmatpush3.bf16.msra.mxu0 %v1602_v37  ;;  %v1616_v51 = vld [vmem:[%s1833_s7 + $0x70] sm:$0xff]   ;;  %v1619_v54 = vld [vmem:[%s1833_s7 + $0x78] sm:$0xff]   ;;  %v1622_v59 = vld [vmem:[%s1835_s8] ss:$12 sps:$4 sm:$0xff]  }
  0x41   : > { %1447 = vmatprep.subr.bf16.mxu0 %v1604_v39  ;;  %v1617_v52 = vld [vmem:[%s1833_s7 + $0x30] sm:$0xff]   ;;  %v1621_v55 = vld [vmem:[%s1833_s7 + $0xb8] sm:$0xff]   ;;  %v1626_v61 = vld [vmem:[%s1835_s8 + $0x20] ss:$12 sps:$4 sm:$0xff]  }
  0x42   : > { %1526 = vmatpush3.bf16.msra.mxu1 %v1603_v38  ;;  %v1618_v53 = vld [vmem:[%s1833_s7 + $0xb0] sm:$0xff]   ;;  %v1620_v58 = vld [vmem:[%s1833_s7 + $0x38] sm:$0xff]   ;;  %v1642_v5 = vld [vmem:[%s1835_s8 + $0x80] ss:$12 sps:$4 sm:$0xff]  }
  0x43   : > { %1527 = vmatprep.subr.bf16.mxu1 %v1606_v41  ;;  %v1624_v56 = vld [vmem:[%s1835_s8 + $0x4] ss:$12 sps:$4 sm:$0xff]   ;;  %v1625_v57 = vld [vmem:[%s1835_s8 + $0x8] ss:$12 sps:$4 sm:$0xff]   ;;  %v1635_v4 = vld [vmem:[%s1835_s8 + $0x4c] ss:$12 sps:$4 sm:$0xff]  }
  0x44   : > { %1448 = vmatpush3.bf16.msra.mxu0 %v1605_v40  ;;  %770 = vmatprep.mubr.bf16.mxu0 %v1624_v56  ;;  %v1627_v60 = vld [vmem:[%s1835_s8 + $0x1c] ss:$12 sps:$4 sm:$0xff]   ;;  %v1633_v62 = vld [vmem:[%s1835_s8 + $0x38] ss:$12 sps:$4 sm:$0xff]   ;;  %v1630_v0 = vld [vmem:[%s1835_s8 + $0x34] ss:$12 sps:$4 sm:$0xff]  }
  0x45   : > { %1449 = vmatprep.subr.bf16.mxu0 %v1607_v42  ;;  %1539 = vmatprep.mubr.bf16.mxu1 %v1625_v57  ;;  %v1629_v63 = vld [vmem:[%s1835_s8 + $0x18] ss:$12 sps:$4 sm:$0xff]   ;;  %v1634_v1 = vld [vmem:[%s1835_s8 + $0x50] ss:$12 sps:$4 sm:$0xff]   ;;  %v1641_v2 = vld [vmem:[%s1835_s8 + $0x68] ss:$12 sps:$4 sm:$0xff]  }
  0x46   : > { %1528 = vmatpush3.bf16.msra.mxu1 %v1606_v41  ;;  %v1632_v3 = vld [vmem:[%s1835_s8 + $0x30] ss:$12 sps:$4 sm:$0xff]   ;;  %v1649_v6 = vld [vmem:[%s1835_s8 + $0x98] ss:$12 sps:$4 sm:$0xff]   ;;  %v1637_v7 = vld [vmem:[%s1835_s8 + $0x48] ss:$12 sps:$4 sm:$0xff]  }
  0x47   : > { %1529 = vmatprep.subr.bf16.mxu1 %v1609_v44  ;;  %v1638_v8 = vld [vmem:[%s1835_s8 + $0x64] ss:$12 sps:$4 sm:$0xff]   ;;  %v1640_v10 = vld [vmem:[%s1835_s8 + $0x60] ss:$12 sps:$4 sm:$0xff]   ;;  %v1643_v11 = vld [vmem:[%s1835_s8 + $0x7c] ss:$12 sps:$4 sm:$0xff]  }
  0x48   : > { %1450 = vmatpush3.bf16.msra.mxu0 %v1608_v43  ;;  %v1650_v9 = vld [vmem:[%s1835_s8 + $0xb0] ss:$12 sps:$4 sm:$0xff]   ;;  %v1645_v12 = vld [vmem:[%s1835_s8 + $0x78] ss:$12 sps:$4 sm:$0xff]   ;;  %v1646_v13 = vld [vmem:[%s1835_s8 + $0x94] ss:$12 sps:$4 sm:$0xff]  }
  0x49   : > { %1451 = vmatprep.subr.bf16.mxu0 %v1610_v45  ;;  %v1648_v14 = vld [vmem:[%s1835_s8 + $0x90] ss:$12 sps:$4 sm:$0xff]   ;;  %v1651_v15 = vld [vmem:[%s1835_s8 + $0xac] ss:$12 sps:$4 sm:$0xff]   ;;  %v1653_v16 = vld [vmem:[%s1835_s8 + $0xa8] ss:$12 sps:$4 sm:$0xff]  }
  0x4a   : > { %1530 = vmatpush3.bf16.msra.mxu1 %v1609_v44  ;;  %v370_v23 = vld [vmem:[#allocation2] sm:$0xff]  ;;  %v371_v28 = vld [vmem:[#allocation2 + $0x8] sm:$0xff]  ;;  %v372_v38 = vld [vmem:[#allocation2 + $0x10] sm:$0xff] }
  0x4b   : > { %1531 = vmatprep.subr.bf16.mxu1 %v1612_v46  ;;  %v373_v44 = vld [vmem:[#allocation2 + $0x18] sm:$0xff] }
  0x4c   : > { %1452 = vmatpush3.bf16.msra.mxu0 %v1611_v47 }
  0x4d   : > { %1453 = vmatprep.subr.bf16.mxu0 %v1613_v48 }
  0x4e   : > { %1532 = vmatpush3.bf16.msra.mxu1 %v1612_v46 }
  0x4f   : > { %1533 = vmatprep.subr.bf16.mxu1 %v1615_v49 }
  0x50   : > { %1454 = vmatpush3.bf16.msra.mxu0 %v1614_v50 }
  0x51   : > { %1455 = vmatprep.subr.bf16.mxu0 %v1616_v51 }
  0x52   : > { %1534 = vmatpush3.bf16.msra.mxu1 %v1615_v49 }
  0x53   : > { %1535 = vmatprep.subr.bf16.mxu1 %v1618_v53 }
  0x54   : > { %1456 = vmatpush3.bf16.msra.mxu0 %v1617_v52 }
  0x55   : > { %1457 = vmatprep.subr.bf16.mxu0 %v1619_v54 }
  0x56   : > { %1536 = vmatpush3.bf16.msra.mxu1 %v1618_v53 }
  0x57   : > { %1537 = vmatprep.subr.bf16.mxu1 %v1621_v55 }
  0x58   : > { %1458 = vmatpush3.bf16.msra.mxu0 %v1620_v58 }
  0x5a   : > { %1538 = vmatpush3.bf16.msra.mxu1 %v1621_v55  ;;  %v374_v55 = vld [vmem:[#allocation2 + $0x20] sm:$0xff] }
  0x5b   : > { %771 = vmatmul.mubr.bf16.vlgmr.msra.gmra.mrb[0].mxu0 %v1622_v59 }
  0x5c   : > { %778 = vmatprep.mubr.bf16.mxu0 %v1627_v60  ;;  %v375_v60 = vld [vmem:[#allocation2 + $0x28] sm:$0xff] }
  0x5d   : > { %1540 = vmatmul.mubr.bf16.vlgmr.msra.gmra.mrb[0].mxu1 %v1626_v61 }
  0x5e   : > { %1543 = vmatprep.mubr.bf16.mxu1 %v1633_v62 }
  0x63   : > { %779 = vmatmul.mubr.bf16.gmra.mrb[4].mxu0 %v1629_v63 }
  0x64   : > { %786 = vmatprep.mubr.bf16.mxu0 %v1630_v0 }
  0x65   : > { %1544 = vmatmul.mubr.bf16.gmra.mrb[4].mxu1 %v1634_v1 }
  0x66   : > { %1547 = vmatprep.mubr.bf16.mxu1 %v1641_v2 }
  0x6b   : > { %787 = vmatmul.mubr.bf16.gmra.mrb[8].mxu0 %v1632_v3 }
  0x6c   : > { %794 = vmatprep.mubr.bf16.mxu0 %v1635_v4 }
  0x6d   : > { %1548 = vmatmul.mubr.bf16.gmra.mrb[8].mxu1 %v1642_v5 }
  0x6e   : > { %1551 = vmatprep.mubr.bf16.mxu1 %v1649_v6  ;;  %v376_v6 = vld [vmem:[#allocation2 + $0x30] sm:$0xff] }
  0x73   : > { %795 = vmatmul.mubr.bf16.gmra.mrb[12].mxu0 %v1637_v7 }
  0x74   : > { %802 = vmatprep.mubr.bf16.mxu0 %v1638_v8 }
  0x75   : > { %1552 = vmatmul.mubr.bf16.gmra.mrb[12].mxu1 %v1650_v9 }
  0x7b   : > { %803 = vmatmul.mubr.bf16.gmra.mrb[16].mxu0 %v1640_v10 }
  0x7c   : > { %810 = vmatprep.mubr.bf16.mxu0 %v1643_v11 }
  0x83   : > { %811 = vmatmul.mubr.bf16.gmra.mrb[20].mxu0 %v1645_v12  ;;  %v377_v12 = vld [vmem:[#allocation2 + $0x38] sm:$0xff] }
  0x84   : > { %818 = vmatprep.mubr.bf16.mxu0 %v1646_v13 }
  0x8b   : > { %819 = vmatmul.mubr.bf16.gmra.mrb[24].mxu0 %v1648_v14 }
  0x8c   : > { %826 = vmatprep.mubr.bf16.mxu0 %v1651_v15 }
  0x93   : > { %827 = vmatmul.mubr.bf16.gmra.mrb[28].mxu0 %v1653_v16 }
 0x12e   : > { %v1459_v17 = vpop.f32.mrb[0].mxu0 }
 0x12f   : > { %v1460_v18 = vpop.f32.mrb[1].mxu0 }
 0x130   : > { %v1461_v19 = vadd.f32 %v1460_v18, %v1459_v17  ;;  %v1462_v20 = vpop.f32.mrb[2].mxu0  ;;  %v1541_v21 = vpop.f32.mrb[0].mxu1 }
 0x131   : > { %v1463_v22 = vpop.f32.mrb[3].mxu0  ;;  %v869_v24 = vpop.f32.mrb[1].mxu1 }
 0x132   : > { %v1464_v25 = vadd.f32 %v1463_v22, %v1462_v20  ;;  %v870_v26 = vadd.f32 %v1461_v19, %v869_v24  ;;  %v1542_v27 = vpop.f32.mrb[2].mxu1  ;;  %v378_v22 = vld [vmem:[#allocation2 + $0x40] sm:$0xff] }
 0x133   : > { %v872_v29 = vpop.f32.mrb[3].mxu1 }
 0x134   : > { %v932_v30 = vadd.f32 %v870_v26, %v370_v23  ;;  %v873_v31 = vadd.f32 %v1464_v25, %v872_v29  ;;  %v379_v25 = vld [vmem:[#allocation2 + $0x48] sm:$0xff] }
 0x136   : > { %948 = vst [vmem:[#allocation2] sm:$0xff] %v932_v30  ;;  %v933_v32 = vadd.f32 %v873_v31, %v371_v28  ;;  %v1465_v33 = vpop.f32.mrb[4].mxu0 }
 0x137   : > { %v1466_v34 = vpop.f32.mrb[5].mxu0 }
 0x138   : > { %949 = vst [vmem:[#allocation2 + $0x8] sm:$0xff] %v933_v32  ;;  %v1467_v35 = vadd.f32 %v1466_v34, %v1465_v33  ;;  %v1468_v36 = vpop.f32.mrb[6].mxu0  ;;  %v1545_v37 = vpop.f32.mrb[4].mxu1  ;;  %v380_v33 = vld [vmem:[#allocation2 + $0x50] sm:$0xff] }
 0x139   : > { %v1469_v39 = vpop.f32.mrb[7].mxu0  ;;  %v885_v40 = vpop.f32.mrb[5].mxu1 }
 0x13a   : > { %v878_v41 = vadd.f32 %v1541_v21, %v1467_v35  ;;  %v1470_v42 = vadd.f32 %v1469_v39, %v1468_v36  ;;  %v1546_v43 = vpop.f32.mrb[6].mxu1 }
 0x13b   : > { %v888_v45 = vpop.f32.mrb[7].mxu1 }
 0x13c   : > { %v934_v46 = vadd.f32 %v878_v41, %v372_v38  ;;  %v881_v47 = vadd.f32 %v1542_v27, %v1470_v42 }
 0x13e   : > { %950 = vst [vmem:[#allocation2 + $0x10] sm:$0xff] %v934_v46  ;;  %v935_v48 = vadd.f32 %v881_v47, %v373_v44  ;;  %v1471_v49 = vpop.f32.mrb[8].mxu0  ;;  %v382_v46 = vld [vmem:[#allocation2 + $0x60] sm:$0xff] }
 0x13f   : > { %v1472_v50 = vpop.f32.mrb[9].mxu0 }
 0x140   : > { %951 = vst [vmem:[#allocation2 + $0x18] sm:$0xff] %v935_v48  ;;  %v1473_v51 = vadd.f32 %v1472_v50, %v1471_v49  ;;  %v1474_v52 = vpop.f32.mrb[10].mxu0  ;;  %v1549_v53 = vpop.f32.mrb[8].mxu1  ;;  %v383_v49 = vld [vmem:[#allocation2 + $0x68] sm:$0xff] }
 0x141   : > { %v1475_v54 = vpop.f32.mrb[11].mxu0  ;;  %v901_v56 = vpop.f32.mrb[9].mxu1 }
 0x142   : > { %v1476_v57 = vadd.f32 %v1475_v54, %v1474_v52  ;;  %v886_v58 = vadd.f32 %v1473_v51, %v885_v40  ;;  %v1550_v59 = vpop.f32.mrb[10].mxu1 }
 0x143   : > { %v904_v61 = vpop.f32.mrb[11].mxu1 }
 0x144   : > { %v936_v62 = vadd.f32 %v886_v58, %v374_v55  ;;  %v889_v63 = vadd.f32 %v1476_v57, %v888_v45  ;;  %v384_v57 = vld [vmem:[#allocation2 + $0x70] sm:$0xff] }
 0x146   : > { %952 = vst [vmem:[#allocation2 + $0x20] sm:$0xff] %v936_v62  ;;  %v937_v0 = vadd.f32 %v889_v63, %v375_v60  ;;  %v1477_v1 = vpop.f32.mrb[12].mxu0 }
 0x147   : > { %v1478_v2 = vpop.f32.mrb[13].mxu0 }
 0x148   : > { %953 = vst [vmem:[#allocation2 + $0x28] sm:$0xff] %v937_v0  ;;  %v1479_v3 = vadd.f32 %v1478_v2, %v1477_v1  ;;  %v1480_v4 = vpop.f32.mrb[14].mxu0  ;;  %v1553_v5 = vpop.f32.mrb[12].mxu1  ;;  %v968_v1 = vld [vmem:[#allocation2] sm:$0xff] (!%p1357_p11)  ;;  %v969_v2 = vld [vmem:[#allocation2 + $0x8] sm:$0xff] (!%p1357_p11) }
 0x149   : > { %v1481_v7 = vpop.f32.mrb[15].mxu0  ;;  %v917_v8 = vpop.f32.mrb[13].mxu1 }
 0x14a   : > { %v894_v9 = vadd.f32 %v1545_v37, %v1479_v3  ;;  %v1482_v10 = vadd.f32 %v1481_v7, %v1480_v4  ;;  %v1554_v11 = vpop.f32.mrb[14].mxu1  ;;  %v381_v37 = vld [vmem:[#allocation2 + $0x58] sm:$0xff]  ;;  %v970_v3 = vld [vmem:[#allocation2 + $0x10] sm:$0xff] (!%p1357_p11)  ;;  %v1005_v7 = vmul.f32 (!%p1357_p11), %v968_v1, %v968_v1 }
 0x14b   : > { %v920_v13 = vpop.f32.mrb[15].mxu1  ;;  %v971_v4 = vld [vmem:[#allocation2 + $0x18] sm:$0xff] (!%p1357_p11) }
 0x14c   : > { %v938_v14 = vadd.f32 %v894_v9, %v376_v6  ;;  %v897_v15 = vadd.f32 %v1546_v43, %v1482_v10  ;;  %v984_v6 = vadd.f32 (!%p1357_p11), %v969_v2, %v968_v1  ;;  %v1007_v9 = vmul.f32 (!%p1357_p11), %v970_v3, %v970_v3 }
 0x14d   : > { %v972_v10 = vld [vmem:[#allocation2 + $0x20] sm:$0xff] (!%p1357_p11) }
 0x14e   : > { %954 = vst [vmem:[#allocation2 + $0x30] sm:$0xff] %v938_v14  ;;  %v939_v16 = vadd.f32 %v897_v15, %v377_v12  ;;  %v1483_v17 = vpop.f32.mrb[16].mxu0  ;;  %v985_v12 = vadd.f32 (!%p1357_p11), %v984_v6, %v970_v3 }
 0x14f   : > { %v1484_v18 = vpop.f32.mrb[17].mxu0 }
 0x150   : > { %955 = vst [vmem:[#allocation2 + $0x38] sm:$0xff] %v939_v16  ;;  %v1485_v19 = vadd.f32 %v1484_v18, %v1483_v17  ;;  %v1486_v20 = vpop.f32.mrb[18].mxu0  ;;  %v986_v15 = vadd.f32 (!%p1357_p11), %v985_v12, %v971_v4  ;;  %v1042_v12 = vlaneseq (!%p1357_p11) }
 0x151   : > { %v1487_v21 = vpop.f32.mrb[19].mxu0 }
 0x152   : > { %v1488_v23 = vadd.f32 %v1487_v21, %v1486_v20  ;;  %v902_v24 = vadd.f32 %v1485_v19, %v901_v56  ;;  %v1009_v19 = vmul.f32 (!%p1357_p11), %v972_v10, %v972_v10 }
 0x154   : > { %v940_v26 = vadd.f32 %v902_v24, %v378_v22  ;;  %v905_v27 = vadd.f32 %v1488_v23, %v904_v61  ;;  %v385_v61 = vld [vmem:[#allocation2 + $0x78] sm:$0xff] }
 0x156   : > { %956 = vst [vmem:[#allocation2 + $0x40] sm:$0xff] %v940_v26  ;;  %v941_v28 = vadd.f32 %v905_v27, %v379_v25  ;;  %v1489_v29 = vpop.f32.mrb[20].mxu0  ;;  %v987_v25 = vadd.f32 (!%p1357_p11), %v986_v15, %v972_v10  ;;  %v1399_v26 = vpack.c.bf16 (!%p1357_p11), %v969_v2, %v968_v1  ;;  %v1404_v27 = vpack.c.bf16 (!%p1357_p11), %v971_v4, %v970_v3 }
 0x157   : > { %v1490_v30 = vpop.f32.mrb[21].mxu0  ;;  %v975_v16 = vld [vmem:[#allocation2 + $0x38] sm:$0xff] (!%p1357_p11) }
 0x158   : > { %957 = vst [vmem:[#allocation2 + $0x48] sm:$0xff] %v941_v28  ;;  %v1491_v31 = vadd.f32 %v1490_v30, %v1489_v29  ;;  %v1492_v32 = vpop.f32.mrb[22].mxu0  ;;  %1400 = vst [vmem:[%s1931_s2] sm:$0xff] (!%p1357_p11), %v1399_v26  }
 0x159   : > { %v1493_v34 = vpop.f32.mrb[23].mxu0  ;;  %1436 = vst [vmem:[%s1931_s2 + $0x8] sm:$0xff] (!%p1357_p11), %v1404_v27  }
 0x15a   : > { %v910_v35 = vadd.f32 %v1549_v53, %v1491_v31  ;;  %v1494_v36 = vadd.f32 %v1493_v34, %v1492_v32 }
 0x15c   : > { %v942_v38 = vadd.f32 %v910_v35, %v380_v33  ;;  %v913_v39 = vadd.f32 %v1550_v59, %v1494_v36 }
 0x15d   : > { %v976_v17 = vld [vmem:[#allocation2 + $0x40] sm:$0xff] (!%p1357_p11) }
 0x15e   : > { %958 = vst [vmem:[#allocation2 + $0x50] sm:$0xff] %v942_v38  ;;  %v943_v40 = vadd.f32 %v913_v39, %v381_v37  ;;  %v1495_v41 = vpop.f32.mrb[24].mxu0 }
 0x15f   : > { %v1496_v42 = vpop.f32.mrb[25].mxu0  ;;  %v977_v18 = vld [vmem:[#allocation2 + $0x48] sm:$0xff] (!%p1357_p11) }
 0x160   : > { %959 = vst [vmem:[#allocation2 + $0x58] sm:$0xff] %v943_v40  ;;  %v1497_v43 = vadd.f32 %v1496_v42, %v1495_v41  ;;  %v1498_v44 = vpop.f32.mrb[26].mxu0  ;;  %v1419_v34 = vpack.c.bf16 (!%p1357_p11), %v977_v18, %v976_v17  ;;  %v1012_v42 = vmul.f32 (!%p1357_p11), %v975_v16, %v975_v16 }
 0x161   : > { %v1499_v45 = vpop.f32.mrb[27].mxu0 }
 0x162   : > { %v1500_v47 = vadd.f32 %v1499_v45, %v1498_v44  ;;  %v918_v48 = vadd.f32 %v1497_v43, %v917_v8  ;;  %v1006_v8 = vmul.f32 (!%p1357_p11), %v969_v2, %v969_v2  ;;  %1439 = vst [vmem:[%s1931_s2 + $0x20] sm:$0xff] (!%p1357_p11), %v1419_v34   ;;  %v1013_v45 = vmul.f32 (!%p1357_p11), %v976_v17, %v976_v17 }
 0x164   : > { %v944_v50 = vadd.f32 %v918_v48, %v382_v46  ;;  %v921_v51 = vadd.f32 %v1500_v47, %v920_v13  ;;  %v1008_v13 = vmul.f32 (!%p1357_p11), %v971_v4, %v971_v4  ;;  %v1021_v14 = vadd.f32 (!%p1357_p11), %v1006_v8, %v1005_v7 }
 0x165   : > { %v978_v22 = vld [vmem:[#allocation2 + $0x50] sm:$0xff] (!%p1357_p11)  ;;  %v1014_v48 = vmul.f32 (!%p1357_p11), %v977_v18, %v977_v18 }
 0x166   : > { %960 = vst [vmem:[#allocation2 + $0x60] sm:$0xff] %v944_v50  ;;  %v945_v52 = vadd.f32 %v921_v51, %v383_v49  ;;  %v1501_v53 = vpop.f32.mrb[28].mxu0  ;;  %v1022_v21 = vadd.f32 (!%p1357_p11), %v1021_v14, %v1007_v9  ;;  %v1015_v51 = vmul.f32 (!%p1357_p11), %v978_v22, %v978_v22 }
 0x167   : > { %v1502_v54 = vpop.f32.mrb[29].mxu0  ;;  %v979_v23 = vld [vmem:[#allocation2 + $0x58] sm:$0xff] (!%p1357_p11) }
 0x168   : > { %961 = vst [vmem:[#allocation2 + $0x68] sm:$0xff] %v945_v52  ;;  %v1503_v55 = vadd.f32 %v1502_v54, %v1501_v53  ;;  %v1504_v56 = vpop.f32.mrb[30].mxu0  ;;  %v1023_v32 = vadd.f32 (!%p1357_p11), %v1022_v21, %v1008_v13  ;;  %v1424_v35 = vpack.c.bf16 (!%p1357_p11), %v979_v23, %v978_v22  ;;  %v1016_v54 = vmul.f32 (!%p1357_p11), %v979_v23, %v979_v23 }
 0x169   : > { %v1505_v58 = vpop.f32.mrb[31].mxu0 }
 0x16a   : > { %v926_v59 = vadd.f32 %v1553_v5, %v1503_v55  ;;  %v1506_v60 = vadd.f32 %v1505_v58, %v1504_v56  ;;  %967 = sbr.rel (%p1357_p11) target bundleno = 402 (0x192), region = 62  ;;  %v973_v5 = vld [vmem:[#allocation2 + $0x28] sm:$0xff] (!%p1357_p11)  ;;  %v1024_v40 = vadd.f32 (!%p1357_p11), %v1023_v32, %v1009_v19  ;;  %1440 = vst [vmem:[%s1931_s2 + $0x28] sm:$0xff] (!%p1357_p11), %v1424_v35  }
 0x16b   : > { %v1010_v20 = vmul.f32 (!%p1357_p11), %v973_v5, %v973_v5  ;;  %v1409_v28 = vpack.c.bf16 (!%p1357_p11), %v973_v5, %v972_v10  ;;  %v988_v36 = vadd.f32 (!%p1357_p11), %v987_v25, %v973_v5 }
 0x16c   : > { %v946_v62 = vadd.f32 %v926_v59, %v384_v57  ;;  %v929_v63 = vadd.f32 %v1554_v11, %v1506_v60  ;;  %v974_v11 = vld [vmem:[#allocation2 + $0x30] sm:$0xff] (!%p1357_p11) }
 0x16d   : > { %v980_v24 = vld [vmem:[#allocation2 + $0x60] sm:$0xff] (!%p1357_p11)  ;;  %v1414_v33 = vpack.c.bf16 (!%p1357_p11), %v975_v16, %v974_v11  ;;  %1437 = vst [vmem:[%s1931_s2 + $0x10] sm:$0xff] (!%p1357_p11), %v1409_v28   ;;  %v1011_v39 = vmul.f32 (!%p1357_p11), %v974_v11, %v974_v11  ;;  %v989_v41 = vadd.f32 (!%p1357_p11), %v988_v36, %v974_v11  ;;  %v1025_v43 = vadd.f32 (!%p1357_p11), %v1024_v40, %v1010_v20 }
 0x16e   : > { %962 = vst [vmem:[#allocation2 + $0x70] sm:$0xff] %v946_v62  ;;  %v947_v0 = vadd.f32 %v929_v63, %v385_v61  ;;  %v1017_v57 = vmul.f32 (!%p1357_p11), %v980_v24, %v980_v24 }
 0x16f   : > { %v981_v29 = vld [vmem:[#allocation2 + $0x68] sm:$0xff] (!%p1357_p11)  ;;  %1438 = vst [vmem:[%s1931_s2 + $0x18] sm:$0xff] (!%p1357_p11), %v1414_v33   ;;  %v990_v44 = vadd.f32 (!%p1357_p11), %v989_v41, %v975_v16  ;;  %v1026_v46 = vadd.f32 (!%p1357_p11), %v1025_v43, %v1011_v39  ;;  %v1043_v16 = vshrl.u32 (!%p1357_p11), %v1042_v12, 7 }
 0x170   : > { %963 = vst [vmem:[#allocation2 + $0x78] sm:$0xff] %v947_v0  ;;  %v1429_v37 = vpack.c.bf16 (!%p1357_p11), %v981_v29, %v980_v24  ;;  %v1018_v60 = vmul.f32 (!%p1357_p11), %v981_v29, %v981_v29 }
 0x171   : > { %v991_v47 = vadd.f32 %v990_v44, %v976_v17  ;;  %v1027_v49 = vadd.f32 %v1026_v46, %v1012_v42  ;;  %vm1045_vm0 = vcmp.eq.s32.totalorder %v1043_v16, 1  ;;  %vm1044_vm1 = vcmp.eq.s32.totalorder %v1043_v16, 0 }
 0x172   : > { %1441 = vst [vmem:[%s1931_s2 + $0x30] sm:$0xff] %v1429_v37  }
 0x173   : > { %v992_v50 = vadd.f32 %v991_v47, %v977_v18  ;;  %v1028_v52 = vadd.f32 %v1027_v49, %v1013_v45 }
 0x175   : > { %v982_v30 = vld [vmem:[#allocation2 + $0x70] sm:$0xff]  ;;  %v993_v53 = vadd.f32 %v992_v50, %v978_v22  ;;  %v1029_v55 = vadd.f32 %v1028_v52, %v1014_v48 }
 0x176   : > { %v1019_v63 = vmul.f32 %v982_v30, %v982_v30 }
 0x177   : > { %v983_v31 = vld [vmem:[#allocation2 + $0x78] sm:$0xff]  ;;  %v994_v56 = vadd.f32 %v993_v53, %v979_v23  ;;  %v1030_v58 = vadd.f32 %v1029_v55, %v1015_v51 }
 0x178   : > { %v1434_v38 = vpack.c.bf16 %v983_v31, %v982_v30  ;;  %v1020_v2 = vmul.f32 %v983_v31, %v983_v31 }
 0x179   : > { %v995_v59 = vadd.f32 %v994_v56, %v980_v24  ;;  %v1031_v61 = vadd.f32 %v1030_v58, %v1016_v54 }
 0x17a   : > { %1442 = vst [vmem:[%s1931_s2 + $0x38] sm:$0xff] %v1434_v38  }
 0x17b   : > { %v996_v62 = vadd.f32 %v995_v59, %v981_v29  ;;  %v1032_v0 = vadd.f32 %v1031_v61, %v1017_v57 }
 0x17d   : > { %v997_v1 = vadd.f32 %v996_v62, %v982_v30  ;;  %v1033_v3 = vadd.f32 %v1032_v0, %v1018_v60 }
 0x17f   : > { %v998_v4 = vadd.f32 %v997_v1, %v983_v31  ;;  %v1034_v6 = vadd.f32 %v1033_v3, %v1019_v63 }
 0x181   : > { %v999_v7 = vrot.slane %v998_v4, 4  ;;  %v1035_v8 = vadd.f32 %v1034_v6, %v1020_v2 }
 0x183   : > { %v1000_v9 = vadd.f32 %v999_v7, %v998_v4  ;;  %v1036_v10 = vrot.slane %v1035_v8, 4 }
 0x185   : > { %v1001_v5 = vrot.slane %v1000_v9, 2  ;;  %v1037_v13 = vadd.f32 %v1036_v10, %v1035_v8 }
 0x187   : > { %v1002_v14 = vadd.f32 %v1001_v5, %v1000_v9  ;;  %v1038_v11 = vrot.slane %v1037_v13, 2 }
 0x189   : > { %v1003_v15 = vrot.slane %v1002_v14, 1  ;;  %v1039_v17 = vadd.f32 %v1038_v11, %v1037_v13 }
 0x18b   : > { %v1040_v18 = vrot.slane %v1039_v17, 1  ;;  %v1004_v19 = vadd.f32 %v1003_v15, %v1002_v14 }
 0x18d   : > { %v1041_v20 = vadd.f32 %v1040_v18, %v1039_v17 }
 0x18f   : > { %v1046_v21 = vsel %vm1045_vm0, %v1041_v20, 0.0 }
 0x190   : > { %v1047_v22 = vsel %vm1044_vm1, %v1004_v19, %v1046_v21 }
 0x191   : > { %1048 = vst [vmem:[%s1932_s3] sm:$0xff] %v1047_v22 }
 0x192 PF: > { %s14_s16 = sadd.s32 1, %s1692_s16   ;;  %s1933_s12 = smov %s1680_s13 }
 0x193   : > { %p11_p12 = scmp.ge.s32.totalorder %s14_s16, 5   ;;  %s1934_s13 = smov %s1750_s20 }
 0x194   : > { %s1935_s14 = smov %s1688_s15  ;;  %s1936_s15 = smov %s1938_s17 }
 0x195   :  { %13 = sbr.rel (!%p11_p12) target bundleno = 3 (0x3), region = 118 }

// kernel: _forward.59
= control target key start
LH: loop header
LB: loop body
LE: loop exit
PB: predicated region body
PF: predicated region fallthrough
CT: control target
= control target key end

     0   :  { %s541_s0 = inlined_call_operand.vmem [shape: bf16[128,128], index: 0, kind: input, shape index: {}]   ;;  %s542_s1 = inlined_call_operand.vmem [shape: bf16[128,128], index: 1, kind: input, shape index: {}]   ;;  %s543_s2 = inlined_call_operand.vmem [shape: f32[1,128], index: 2, kind: input, shape index: {}]   ;;  %s544_s3 = inlined_call_operand.vmem [shape: f32[1,128], index: 3, kind: input, shape index: {}]   ;;  %s545_s4 = inlined_call_operand.vmem [shape: bf16[128,128], index: 4, kind: output, shape index: {}]  }
   0x1   :  { %v278_v0 = vld [vmem:[%s541_s0] sm:$0xff]   ;;  %v381_v5 = vld [vmem:[%s541_s0 + $0x8] sm:$0xff]   ;;  %v382_v12 = vld [vmem:[%s541_s0 + $0x10] sm:$0xff]  }
   0x2   :  { %v433_v1 = vld [vmem:[%s543_s2] ss:$0 sm:$0xff]  ;;  %v279_v2 = vunpack.c.l.bf16 %v278_v0  ;;  %v280_v3 = vunpack.c.h.bf16 %v278_v0  ;;  %v388_v6 = vld [vmem:[%s542_s1 + $0x8] sm:$0xff]   ;;  %v283_v10 = vunpack.c.l.bf16 %v381_v5  ;;  %v284_v11 = vunpack.c.h.bf16 %v381_v5  ;;  %v389_v13 = vld [vmem:[%s542_s1 + $0x10] sm:$0xff]  }
   0x3   :  { %v310_v4 = vld [vmem:[%s542_s1] sm:$0xff]   ;;  %v315_v16 = vunpack.c.l.bf16 %v388_v6  ;;  %v316_v17 = vunpack.c.h.bf16 %v388_v6  ;;  %v287_v20 = vunpack.c.l.bf16 %v382_v12  ;;  %v288_v21 = vunpack.c.h.bf16 %v382_v12  ;;  %v383_v22 = vld [vmem:[%s541_s0 + $0x18] sm:$0xff]   ;;  %v385_v54 = vld [vmem:[%s541_s0 + $0x28] sm:$0xff]  }
   0x4   :  { %v447_v7 = vld [vmem:[%s544_s3] ss:$0 sm:$0xff]  ;;  %v311_v8 = vunpack.c.l.bf16 %v310_v4  ;;  %v312_v9 = vunpack.c.h.bf16 %v310_v4  ;;  %v56_v14 = vmul.f32 %v279_v2, %v433_v1  ;;  %v57_v15 = vmul.f32 %v280_v3, %v433_v1  ;;  %v390_v39 = vld [vmem:[%s542_s1 + $0x18] sm:$0xff]   ;;  %v392_v63 = vld [vmem:[%s542_s1 + $0x28] sm:$0xff]  }
   0x5   :  { %v58_v18 = vmul.f32 %v283_v10, %v433_v1  ;;  %v59_v19 = vmul.f32 %v284_v11, %v433_v1  ;;  %v319_v25 = vunpack.c.l.bf16 %v389_v13  ;;  %v320_v26 = vunpack.c.h.bf16 %v389_v13  ;;  %v384_v48 = vld [vmem:[%s541_s0 + $0x20] sm:$0xff]   ;;  %v386_v5 = vld [vmem:[%s541_s0 + $0x30] sm:$0xff]  }
   0x6   :  { %v79_v23 = vadd.f32 %v447_v7, %v56_v14  ;;  %v80_v24 = vadd.f32 %v447_v7, %v57_v15  ;;  %v60_v29 = vmul.f32 %v287_v20, %v433_v1  ;;  %v61_v30 = vmul.f32 %v288_v21, %v433_v1  ;;  %v391_v49 = vld [vmem:[%s542_s1 + $0x20] sm:$0xff]   ;;  %v393_v11 = vld [vmem:[%s542_s1 + $0x30] sm:$0xff]   ;;  %v387_v20 = vld [vmem:[%s541_s0 + $0x38] sm:$0xff]  }
   0x7   :  { %v81_v27 = vadd.f32 %v447_v7, %v58_v18  ;;  %v82_v28 = vadd.f32 %v447_v7, %v59_v19  ;;  %v291_v33 = vunpack.c.l.bf16 %v383_v22  ;;  %v292_v34 = vunpack.c.h.bf16 %v383_v22 }
   0x8   :  { %v127_v31 = vadd.f32 %v311_v8, %v79_v23  ;;  %v128_v32 = vadd.f32 %v312_v9, %v80_v24  ;;  %v83_v37 = vadd.f32 %v447_v7, %v60_v29  ;;  %v84_v38 = vadd.f32 %v447_v7, %v61_v30 }
   0x9   :  { %v129_v35 = vadd.f32 %v315_v16, %v81_v27  ;;  %v130_v36 = vadd.f32 %v316_v17, %v82_v28  ;;  %v62_v42 = vmul.f32 %v291_v33, %v433_v1  ;;  %v63_v43 = vmul.f32 %v292_v34, %v433_v1  ;;  %v394_v33 = vld [vmem:[%s542_s1 + $0x38] sm:$0xff]  }
   0xa   :  { %v143_v40 = vmax.f32 %v127_v31, 0.0  ;;  %v144_v41 = vmax.f32 %v128_v32, 0.0  ;;  %v131_v46 = vadd.f32 %v319_v25, %v83_v37  ;;  %v132_v47 = vadd.f32 %v320_v26, %v84_v38 }
   0xb   :  { %v145_v44 = vmax.f32 %v129_v35, 0.0  ;;  %v146_v45 = vmax.f32 %v130_v36, 0.0  ;;  %v85_v51 = vadd.f32 %v447_v7, %v62_v42  ;;  %v86_v52 = vadd.f32 %v447_v7, %v63_v43 }
   0xc   :  { %v344_v50 = vpack.c.bf16 %v144_v41, %v143_v40  ;;  %v323_v53 = vunpack.c.l.bf16 %v390_v39  ;;  %v147_v56 = vmax.f32 %v131_v46, 0.0  ;;  %v148_v57 = vmax.f32 %v132_v47, 0.0 }
   0xd   :  { %v349_v55 = vpack.c.bf16 %v146_v45, %v145_v44  ;;  %v324_v58 = vunpack.c.h.bf16 %v390_v39  ;;  %v295_v60 = vunpack.c.l.bf16 %v384_v48  ;;  %v296_v61 = vunpack.c.h.bf16 %v384_v48 }
   0xe   :  { %345 = vst [vmem:[%s545_s4] sm:$0xff] %v344_v50   ;;  %v133_v59 = vadd.f32 %v323_v53, %v85_v51  ;;  %v327_v62 = vunpack.c.l.bf16 %v391_v49  ;;  %v354_v0 = vpack.c.bf16 %v148_v57, %v147_v56  ;;  %v328_v3 = vunpack.c.h.bf16 %v391_v49 }
   0xf   :  { %395 = vst [vmem:[%s545_s4 + $0x8] sm:$0xff] %v349_v55   ;;  %v134_v2 = vadd.f32 %v324_v58, %v86_v52  ;;  %v299_v4 = vunpack.c.l.bf16 %v385_v54  ;;  %v64_v8 = vmul.f32 %v295_v60, %v433_v1  ;;  %v65_v9 = vmul.f32 %v296_v61, %v433_v1 }
  0x10   :  { %v149_v6 = vmax.f32 %v133_v59, 0.0  ;;  %v300_v10 = vunpack.c.h.bf16 %v385_v54  ;;  %396 = vst [vmem:[%s545_s4 + $0x10] sm:$0xff] %v354_v0   ;;  %v331_v14 = vunpack.c.l.bf16 %v392_v63  ;;  %v332_v15 = vunpack.c.h.bf16 %v392_v63 }
  0x11   :  { %v150_v12 = vmax.f32 %v134_v2, 0.0  ;;  %v66_v13 = vmul.f32 %v299_v4, %v433_v1  ;;  %v87_v16 = vadd.f32 %v447_v7, %v64_v8  ;;  %v88_v17 = vadd.f32 %v447_v7, %v65_v9 }
  0x12   :  { %v67_v18 = vmul.f32 %v300_v10, %v433_v1  ;;  %v303_v19 = vunpack.c.l.bf16 %v386_v5  ;;  %v304_v23 = vunpack.c.h.bf16 %v386_v5  ;;  %v335_v24 = vunpack.c.l.bf16 %v393_v11 }
  0x13   :  { %v359_v21 = vpack.c.bf16 %v150_v12, %v149_v6  ;;  %v89_v22 = vadd.f32 %v447_v7, %v66_v13  ;;  %v135_v25 = vadd.f32 %v327_v62, %v87_v16  ;;  %v136_v26 = vadd.f32 %v328_v3, %v88_v17 }
  0x14   :  { %v90_v27 = vadd.f32 %v447_v7, %v67_v18  ;;  %v68_v28 = vmul.f32 %v303_v19, %v433_v1  ;;  %v69_v30 = vmul.f32 %v304_v23, %v433_v1  ;;  %v336_v31 = vunpack.c.h.bf16 %v393_v11 }
  0x15   :  { %397 = vst [vmem:[%s545_s4 + $0x18] sm:$0xff] %v359_v21   ;;  %v137_v29 = vadd.f32 %v331_v14, %v89_v22  ;;  %v307_v32 = vunpack.c.l.bf16 %v387_v20  ;;  %v151_v34 = vmax.f32 %v135_v25, 0.0  ;;  %v152_v35 = vmax.f32 %v136_v26, 0.0 }
  0x16   :  { %v138_v36 = vadd.f32 %v332_v15, %v90_v27  ;;  %v91_v37 = vadd.f32 %v447_v7, %v68_v28  ;;  %v92_v39 = vadd.f32 %v447_v7, %v69_v30  ;;  %v308_v40 = vunpack.c.h.bf16 %v387_v20 }
  0x17   :  { %v153_v38 = vmax.f32 %v137_v29, 0.0  ;;  %v70_v41 = vmul.f32 %v307_v32, %v433_v1  ;;  %v364_v42 = vpack.c.bf16 %v152_v35, %v151_v34  ;;  %v339_v45 = vunpack.c.l.bf16 %v394_v33 }
  0x18   :  { %v154_v43 = vmax.f32 %v138_v36, 0.0  ;;  %v139_v44 = vadd.f32 %v335_v24, %v91_v37  ;;  %v140_v46 = vadd.f32 %v336_v31, %v92_v39  ;;  %v71_v47 = vmul.f32 %v308_v40, %v433_v1 }
  0x19   :  { %v93_v48 = vadd.f32 %v447_v7, %v70_v41  ;;  %v340_v49 = vunpack.c.h.bf16 %v394_v33  ;;  %398 = vst [vmem:[%s545_s4 + $0x20] sm:$0xff] %v364_v42  }
  0x1a   :  { %v369_v50 = vpack.c.bf16 %v154_v43, %v153_v38  ;;  %v155_v51 = vmax.f32 %v139_v44, 0.0  ;;  %v156_v52 = vmax.f32 %v140_v46, 0.0  ;;  %v94_v53 = vadd.f32 %v447_v7, %v71_v47 }
  0x1b   :  { %v141_v54 = vadd.f32 %v339_v45, %v93_v48 }
  0x1c   :  { %399 = vst [vmem:[%s545_s4 + $0x28] sm:$0xff] %v369_v50   ;;  %v374_v55 = vpack.c.bf16 %v156_v52, %v155_v51  ;;  %v142_v56 = vadd.f32 %v340_v49, %v94_v53 }
  0x1d   :  { %v157_v1 = vmax.f32 %v141_v54, 0.0 }
  0x1e   :  { %400 = vst [vmem:[%s545_s4 + $0x30] sm:$0xff] %v374_v55   ;;  %v158_v57 = vmax.f32 %v142_v56, 0.0 }
  0x20   :  { %v379_v58 = vpack.c.bf16 %v158_v57, %v157_v1 }
  0x22   :  { %401 = vst [vmem:[%s545_s4 + $0x38] sm:$0xff] %v379_v58  }

// kernel: _forward.65
= control target key start
LH: loop header
LB: loop body
LE: loop exit
PB: predicated region body
PF: predicated region fallthrough
CT: control target
= control target key end

     0   :  { %v28_v0 = vlaneseq  ;;  %s164_s0 = inlined_call_operand.vmem [shape: bf16[32,256], index: 0, kind: input, shape index: {}]   ;;  %s165_s1 = inlined_call_operand.vmem [shape: f32[1,256], index: 1, kind: input, shape index: {}]   ;;  %s166_s2 = inlined_call_operand.vmem [shape: f32[1,256], index: 2, kind: input, shape index: {}]   ;;  %s167_s3 = inlined_call_operand.vmem [shape: bf16[32,256], index: 3, kind: output, shape index: {}]  }
   0x1   :  { %v14_v1 = vld [vmem:[%s164_s0] sm:$0xff]  ;;  %v15_v3 = vld [vmem:[%s164_s0 + $0x8] sm:$0xff]  ;;  %v16_v4 = vld [vmem:[%s164_s0 + $0x10] sm:$0xff] }
   0x2   :  { %v29_v2 = vshrl.u32 %v28_v0, 7  ;;  %v17_v5 = vld [vmem:[%s164_s0 + $0x18] sm:$0xff]  ;;  %v18_v6 = vunpack.c.l.bf16 %v14_v1  ;;  %v19_v7 = vunpack.c.h.bf16 %v14_v1  ;;  %v26_v8 = vld [vmem:[%s165_s1] sm:$0x3]  ;;  %v20_v12 = vunpack.c.l.bf16 %v15_v3 }
   0x3   :  { %v46_v9 = vld [vmem:[%s166_s2] sm:$0x3]  ;;  %v21_v13 = vunpack.c.h.bf16 %v15_v3  ;;  %v22_v14 = vunpack.c.l.bf16 %v16_v4  ;;  %v23_v15 = vunpack.c.h.bf16 %v16_v4  ;;  %v24_v16 = vunpack.c.l.bf16 %v17_v5 }
   0x4   :  { %v30_v10 = vsub.s32 0, %v29_v2  ;;  %v34_v11 = vsub.s32 1, %v29_v2  ;;  %v25_v17 = vunpack.c.h.bf16 %v17_v5 }
   0x6   :  { %v31_v18 = vrot.slane %v26_v8, %v30_v10  ;;  %v35_v19 = vrot.slane %v26_v8, %v34_v11  ;;  %v51_v20 = vrot.slane %v46_v9, %v30_v10  ;;  %v55_v21 = vrot.slane %v46_v9, %v34_v11 }
   0x8   :  { %v38_v22 = vmul.f32 %v31_v18, %v18_v6  ;;  %v39_v23 = vmul.f32 %v35_v19, %v19_v7  ;;  %v40_v24 = vmul.f32 %v31_v18, %v20_v12  ;;  %v41_v25 = vmul.f32 %v35_v19, %v21_v13 }
   0x9   :  { %v42_v26 = vmul.f32 %v31_v18, %v22_v14  ;;  %v43_v27 = vmul.f32 %v35_v19, %v23_v15  ;;  %v44_v28 = vmul.f32 %v31_v18, %v24_v16  ;;  %v45_v29 = vmul.f32 %v35_v19, %v25_v17 }
   0xa   :  { %v58_v30 = vadd.f32 %v51_v20, %v38_v22  ;;  %v59_v31 = vadd.f32 %v55_v21, %v39_v23  ;;  %v60_v32 = vadd.f32 %v51_v20, %v40_v24  ;;  %v61_v33 = vadd.f32 %v55_v21, %v41_v25 }
   0xb   :  { %v62_v34 = vadd.f32 %v51_v20, %v42_v26  ;;  %v63_v35 = vadd.f32 %v55_v21, %v43_v27  ;;  %v64_v36 = vadd.f32 %v51_v20, %v44_v28  ;;  %v65_v37 = vadd.f32 %v55_v21, %v45_v29 }
   0xc   :  { %v66_v38 = vmax.f32 %v58_v30, 0.0  ;;  %v67_v39 = vmax.f32 %v59_v31, 0.0  ;;  %v68_v40 = vmax.f32 %v60_v32, 0.0  ;;  %v69_v41 = vmax.f32 %v61_v33, 0.0 }
   0xd   :  { %v70_v42 = vmax.f32 %v62_v34, 0.0  ;;  %v71_v43 = vmax.f32 %v63_v35, 0.0  ;;  %v72_v44 = vmax.f32 %v64_v36, 0.0  ;;  %v73_v45 = vmax.f32 %v65_v37, 0.0 }
   0xe   :  { %v110_v46 = vpack.c.bf16 %v67_v39, %v66_v38  ;;  %v111_v47 = vpack.c.bf16 %v69_v41, %v68_v40 }
   0xf   :  { %v112_v48 = vpack.c.bf16 %v71_v43, %v70_v42  ;;  %v113_v49 = vpack.c.bf16 %v73_v45, %v72_v44 }
  0x10   :  { %98 = vst [vmem:[%s167_s3] sm:$0xff] %v110_v46  ;;  %99 = vst [vmem:[%s167_s3 + $0x8] sm:$0xff] %v111_v47 }
  0x11   :  { %100 = vst [vmem:[%s167_s3 + $0x10] sm:$0xff] %v112_v48  ;;  %101 = vst [vmem:[%s167_s3 + $0x18] sm:$0xff] %v113_v49 }

// kernel: _forward.64
= control target key start
LH: loop header
LB: loop body
LE: loop exit
PB: predicated region body
PF: predicated region fallthrough
CT: control target
= control target key end

     0   :  { %s1327_s12 = smov 0   ;;  %s1329_s13 = smov 0   ;;  %s1472_s0 = inlined_call_operand.vmem [shape: bf16[32,1152], index: 0, kind: input, shape index: {}]   ;;  %s1473_s1 = inlined_call_operand.vmem [shape: bf16[1152,256], index: 1, kind: input, shape index: {}]   ;;  %s1474_s2 = inlined_call_operand.vmem [shape: bf16[32,256], index: 2, kind: output, shape index: {0}]   ;;  %s1475_s3 = inlined_call_operand.vmem [shape: f32[8,256], index: 3, kind: output, shape index: {1}]  }
   0x1   :  { %s1331_s14 = smov 0   ;;  %s1333_s15 = smov 0  }
   0x2   :  { %s1335_s16 = smov 0  }
   0x3 LB: > { %s26_s17 = sadd.s32 1, %s1299_s15  ;;  %p49_p1 = scmp.ne.s32.totalorder %s1291_s13, %s1287_s12  ;;  %s1303_s16 = sphi %s1335_s16, %s14_s16   ;;  %s1299_s15 = sphi %s1333_s15, %s1479_s15   ;;  %s1295_s14 = sphi %s1331_s14, %s1478_s14   ;;  %s1291_s13 = sphi %s1329_s13, %s1477_s13   ;;  %s1287_s12 = sphi %s1327_s12, %s1476_s12  }
   0x4   : > { %p27_p0 = scmp.ge.s32.totalorder %s26_s17, 3  ;;  %p50_p2 = scmp.eq.s32.totalorder %s1303_s16, 0 }
   0x5   : > { %s42_s19 = sadd.s32 1, %s1291_s13  ;;  %p1048_p5 = scmp.ge.s32.totalorder %s1303_s16, 3 }
   0x6   : > { %s1481_s17 = smov (%p27_p0, %s26_s17), 0  ;;  %p51_p3 = por %p50_p2, %p49_p1 }
   0x7   : > { %s38_s18 = ssub.s32 %s1299_s15, %s1481_s17  ;;  %159 = sbr.rel (%p1048_p5) target bundleno = 23 (0x17), region = 16 }
   0x8   : > { %p40_p4 = scmp.eq.s32.totalorder %s38_s18, 0 }
   0xa   : > { %s1362_s20 = scalar_select %p40_p4, %s1291_s13, %s42_s19  }
   0xe   : > { %162 = sbr.rel (!%p51_p3) target bundleno = 23 (0x17), region = 20  ;;  %s164_s21 = sand.u32 (%p51_p3), 1, %s1291_s13  }
   0xf   : > { %s1127_s22 = smul.u32 (%p51_p3), 12, %s1299_s15 }
  0x10   : > { %s1141_s23 = smul.u32 (%p51_p3), 48, %s164_s21 }
  0x11   : > { %s172_s26 = scalar_lea.vmem (%p51_p3), %s1472_s0, %s1127_s22 }
  0x12   : > { %v187_v0 = vld [vmem:[%s172_s26] sm:$0xff] (%p51_p3)  ;;  %v191_v2 = vld [vmem:[%s172_s26 + $0x48] sm:$0xff] (%p51_p3)  ;;  %s166_s27 = scalar_lea.vmem (%p51_p3), [#allocation3], %s1141_s23  ;;  %v1054_v6 = vld [vmem:[%s172_s26 + $0x50] sm:$0xf] (%p51_p3) }
  0x13   : > { %v189_v1 = vld [vmem:[%s172_s26 + $0x24] sm:$0xff] (%p51_p3)  ;;  %188 = vst [vmem:[%s166_s27] sm:$0xff] (%p51_p3), %v187_v0  ;;  %192 = vst [vmem:[%s166_s27 + $0x18] sm:$0xff] (%p51_p3), %v191_v2  ;;  %v193_v3 = vld [vmem:[%s172_s26 + $0x6c] sm:$0xff] (%p51_p3) }
  0x14   : > { %190 = vst [vmem:[%s166_s27 + $0xc] sm:$0xff] (%p51_p3), %v189_v1  ;;  %v1050_v4 = vld [vmem:[%s172_s26 + $0x8] sm:$0xf] (%p51_p3)  ;;  %v1052_v5 = vld [vmem:[%s172_s26 + $0x2c] sm:$0xf] (%p51_p3)  ;;  %194 = vst [vmem:[%s166_s27 + $0x24] sm:$0xff] (%p51_p3), %v193_v3 }
  0x15   : > { %1051 = vst [vmem:[%s166_s27 + $0x8] sm:$0xf] %v1050_v4  ;;  %1053 = vst [vmem:[%s166_s27 + $0x14] sm:$0xf] %v1052_v5  ;;  %v1056_v7 = vld [vmem:[%s172_s26 + $0x74] sm:$0xf] }
  0x16   : > { %1055 = vst [vmem:[%s166_s27 + $0x20] sm:$0xf] %v1054_v6  ;;  %1057 = vst [vmem:[%s166_s27 + $0x2c] sm:$0xf] %v1056_v7 }
  0x17 PF: > { %p1058_p6 = scmp.ge.s32.totalorder %s1303_s16, 1  ;;  %p229_p7 = scmp.lt.s32.totalorder %s1303_s16, 4 }
  0x19   : > { %p230_p8 = pnand %p1058_p6, %p229_p7 }
  0x1a   : > { %s236_s28 = sand.u32 (!%p230_p8), 1, %s1287_s12   ;;  %s285_s29 = smul.u32 (!%p230_p8), 48, %s1295_s14 }
  0x1b   : > { %233 = sbr.rel (%p230_p8) target bundleno = 360 (0x168), region = 50  ;;  %p1061_p10 = scmp.ne.s32.totalorder (!%p230_p8), %s1295_s14, 0 }
  0x1c   : > { %s1142_s30 = smul.u32 (!%p230_p8), 48, %s236_s28  ;;  %p287_p9 = scmp.lt.s32.totalorder (!%p230_p8), %s285_s29, 143 }
  0x1e   : > { %s1379_s8 = scalar_lea.vmem (!%p230_p8), [#allocation3], %s1142_s30 }
  0x22   : > { %s1483_s29 = smov (!%p287_p9, %s285_s29), 143  ;;  %323 = sbr.rel (%p1061_p10) target bundleno = 41 (0x29), region = 58 }
  0x23   : > { %s1128_s4 = sshll.u32 %s1483_s29, 3  ;;  %v1305_v8 = vmov (!%p1061_p10), 0.0  }
  0x24   : > { %s1377_s7 = scalar_lea.vmem %s1473_s1, %s1128_s4  ;;  %324 = vst [vmem:[#allocation2] sm:$0xff] (!%p1061_p10), %v1305_v8  ;;  %325 = vst [vmem:[#allocation2 + $0x8] sm:$0xff] (!%p1061_p10), %v1305_v8 }
  0x25   : > { %326 = vst [vmem:[#allocation2 + $0x10] sm:$0xff] (!%p1061_p10), %v1305_v8  ;;  %327 = vst [vmem:[#allocation2 + $0x18] sm:$0xff] (!%p1061_p10), %v1305_v8 }
  0x26   : > { %328 = vst [vmem:[#allocation2 + $0x20] sm:$0xff] (!%p1061_p10), %v1305_v8  ;;  %329 = vst [vmem:[#allocation2 + $0x28] sm:$0xff] (!%p1061_p10), %v1305_v8 }
  0x27   : > { %330 = vst [vmem:[#allocation2 + $0x30] sm:$0xff] (!%p1061_p10), %v1305_v8  ;;  %331 = vst [vmem:[#allocation2 + $0x38] sm:$0xff] (!%p1061_p10), %v1305_v8 }
  0x29 PF: > { %v1185_v9 = vld [vmem:[%s1377_s7 + $0x4] ss:$8 sps:$4 sm:$0xff]   ;;  %v1187_v10 = vld [vmem:[%s1377_s7] ss:$8 sps:$4 sm:$0xff]   ;;  %v1306_v11 = vmov 0   ;;  %p1116_p11 = scmp.ne.s32.totalorder %s1295_s14, 2 }
  0x2a   : > { %753 = vmatprep.mubr.bf16.mxu0 %v1306_v11  ;;  %668 = vmatprep.subr.bf16.mxu1 %v1185_v9  ;;  %v1188_v12 = vld [vmem:[%s1377_s7 + $0x14] ss:$8 sps:$4 sm:$0xff]   ;;  %v1190_v13 = vld [vmem:[%s1377_s7 + $0x10] ss:$8 sps:$4 sm:$0xff]   ;;  %v1191_v14 = vld [vmem:[%s1377_s7 + $0x24] ss:$8 sps:$4 sm:$0xff]  }
  0x2b   : > { %669 = vmatpush1.bf16.msra.mxu1 %v1187_v10  ;;  %v1193_v15 = vld [vmem:[%s1377_s7 + $0x20] ss:$8 sps:$4 sm:$0xff]   ;;  %v1194_v16 = vld [vmem:[%s1377_s7 + $0x34] ss:$8 sps:$4 sm:$0xff]   ;;  %v1196_v17 = vld [vmem:[%s1377_s7 + $0x30] ss:$8 sps:$4 sm:$0xff]  }
  0x2c   : > { %670 = vmatprep.subr.bf16.mxu1 %v1188_v12  ;;  %v1209_v18 = vld [vmem:[%s1377_s7 + $0x104] ss:$8 sps:$4 sm:$0xff]   ;;  %v1211_v19 = vld [vmem:[%s1377_s7 + $0x100] ss:$8 sps:$4 sm:$0xff]   ;;  %v1215_v21 = vld [vmem:[%s1377_s7 + $0x114] ss:$8 sps:$4 sm:$0xff]  }
  0x2d   : > { %v1197_v20 = vld [vmem:[%s1377_s7 + $0x44] ss:$8 sps:$4 sm:$0xff]   ;;  %721 = vmatprep.subr.bf16.mxu0 %v1209_v18  ;;  %v1217_v22 = vld [vmem:[%s1377_s7 + $0x110] ss:$8 sps:$4 sm:$0xff]   ;;  %v1199_v23 = vld [vmem:[%s1377_s7 + $0x40] ss:$8 sps:$4 sm:$0xff]  }
  0x2e   : > { %722 = vmatpush1.bf16.msra.mxu0 %v1211_v19  ;;  %v1200_v24 = vld [vmem:[%s1377_s7 + $0x54] ss:$8 sps:$4 sm:$0xff]   ;;  %v1221_v25 = vld [vmem:[%s1377_s7 + $0x124] ss:$8 sps:$4 sm:$0xff]   ;;  %v1223_v26 = vld [vmem:[%s1377_s7 + $0x120] ss:$8 sps:$4 sm:$0xff]  }
  0x2f   : > { %671 = vmatpush1.bf16.msra.mxu1 %v1190_v13  ;;  %723 = vmatprep.subr.bf16.mxu0 %v1215_v21  ;;  %v1202_v27 = vld [vmem:[%s1377_s7 + $0x50] ss:$8 sps:$4 sm:$0xff]   ;;  %v1227_v28 = vld [vmem:[%s1377_s7 + $0x134] ss:$8 sps:$4 sm:$0xff]   ;;  %v1203_v29 = vld [vmem:[%s1377_s7 + $0x64] ss:$8 sps:$4 sm:$0xff]  }
  0x30   : > { %672 = vmatprep.subr.bf16.mxu1 %v1191_v14  ;;  %v1229_v30 = vld [vmem:[%s1377_s7 + $0x130] ss:$8 sps:$4 sm:$0xff]   ;;  %v1205_v31 = vld [vmem:[%s1377_s7 + $0x60] ss:$8 sps:$4 sm:$0xff]   ;;  %v1233_v32 = vld [vmem:[%s1377_s7 + $0x144] ss:$8 sps:$4 sm:$0xff]  }
  0x31   : > { %v1206_v33 = vld [vmem:[%s1377_s7 + $0x74] ss:$8 sps:$4 sm:$0xff]   ;;  %v1235_v34 = vld [vmem:[%s1377_s7 + $0x140] ss:$8 sps:$4 sm:$0xff]   ;;  %v1208_v35 = vld [vmem:[%s1377_s7 + $0x70] ss:$8 sps:$4 sm:$0xff]  }
  0x32   : > { %724 = vmatpush1.bf16.msra.mxu0 %v1217_v22  ;;  %v1239_v36 = vld [vmem:[%s1377_s7 + $0x154] ss:$8 sps:$4 sm:$0xff]   ;;  %v1212_v37 = vld [vmem:[%s1377_s7 + $0x84] ss:$8 sps:$4 sm:$0xff]   ;;  %v1241_v38 = vld [vmem:[%s1377_s7 + $0x150] ss:$8 sps:$4 sm:$0xff]  }
  0x33   : > { %673 = vmatpush1.bf16.msra.mxu1 %v1193_v15  ;;  %725 = vmatprep.subr.bf16.mxu0 %v1221_v25  ;;  %v1214_v39 = vld [vmem:[%s1377_s7 + $0x80] ss:$8 sps:$4 sm:$0xff]   ;;  %v1245_v40 = vld [vmem:[%s1377_s7 + $0x164] ss:$8 sps:$4 sm:$0xff]   ;;  %v1218_v41 = vld [vmem:[%s1377_s7 + $0x94] ss:$8 sps:$4 sm:$0xff]  }
  0x34   : > { %674 = vmatprep.subr.bf16.mxu1 %v1194_v16  ;;  %v1220_v42 = vld [vmem:[%s1377_s7 + $0x90] ss:$8 sps:$4 sm:$0xff]   ;;  %v1247_v43 = vld [vmem:[%s1377_s7 + $0x160] ss:$8 sps:$4 sm:$0xff]   ;;  %v1251_v45 = vld [vmem:[%s1377_s7 + $0x174] ss:$8 sps:$4 sm:$0xff]  }
  0x35   : > { %v1260_v44 = vld [vmem:[%s1379_s8 + $0x4] ss:$12 sps:$4 sm:$0xff]   ;;  %v1257_v50 = vld [vmem:[%s1379_s8 + $0x8] ss:$12 sps:$4 sm:$0xff]   ;;  %v1261_v55 = vld [vmem:[%s1379_s8 + $0x20] ss:$12 sps:$4 sm:$0xff]  }
  0x36   : > { %726 = vmatpush1.bf16.msra.mxu0 %v1223_v26  ;;  %v1224_v46 = vld [vmem:[%s1377_s7 + $0xa4] ss:$8 sps:$4 sm:$0xff]   ;;  %700 = vmatprep.mubr.bf16.mxu1 %v1260_v44  ;;  %v1253_v47 = vld [vmem:[%s1377_s7 + $0x170] ss:$8 sps:$4 sm:$0xff]   ;;  %v1226_v48 = vld [vmem:[%s1377_s7 + $0xa0] ss:$8 sps:$4 sm:$0xff]  }
  0x37   : > { %675 = vmatpush1.bf16.msra.mxu1 %v1196_v17  ;;  %727 = vmatprep.subr.bf16.mxu0 %v1227_v28  ;;  %v1230_v49 = vld [vmem:[%s1377_s7 + $0xb4] ss:$8 sps:$4 sm:$0xff]   ;;  %v1232_v51 = vld [vmem:[%s1377_s7 + $0xb0] ss:$8 sps:$4 sm:$0xff]   ;;  %v1236_v52 = vld [vmem:[%s1377_s7 + $0xc4] ss:$8 sps:$4 sm:$0xff]  }
  0x38   : > { %676 = vmatprep.subr.bf16.mxu1 %v1197_v20  ;;  %v1238_v53 = vld [vmem:[%s1377_s7 + $0xc0] ss:$8 sps:$4 sm:$0xff]   ;;  %v1242_v54 = vld [vmem:[%s1377_s7 + $0xd4] ss:$8 sps:$4 sm:$0xff]   ;;  %v1244_v56 = vld [vmem:[%s1377_s7 + $0xd0] ss:$8 sps:$4 sm:$0xff]  }
  0x39   : > { %v1248_v57 = vld [vmem:[%s1377_s7 + $0xe4] ss:$8 sps:$4 sm:$0xff]   ;;  %v1250_v58 = vld [vmem:[%s1377_s7 + $0xe0] ss:$8 sps:$4 sm:$0xff]   ;;  %v1254_v59 = vld [vmem:[%s1377_s7 + $0xf4] ss:$8 sps:$4 sm:$0xff]  }
  0x3a   : > { %728 = vmatpush1.bf16.msra.mxu0 %v1229_v30  ;;  %v1256_v60 = vld [vmem:[%s1377_s7 + $0xf0] ss:$8 sps:$4 sm:$0xff]   ;;  %v332_v8 = vld [vmem:[#allocation2] sm:$0xff] }
  0x3b   : > { %677 = vmatpush1.bf16.msra.mxu1 %v1199_v23  ;;  %729 = vmatprep.subr.bf16.mxu0 %v1233_v32  ;;  %v1258_v61 = vld [vmem:[%s1379_s8] ss:$12 sps:$4 sm:$0xff]   ;;  %v1262_v62 = vld [vmem:[%s1379_s8 + $0x1c] ss:$12 sps:$4 sm:$0xff]   ;;  %v1264_v63 = vld [vmem:[%s1379_s8 + $0x18] ss:$12 sps:$4 sm:$0xff]  }
  0x3c   : > { %678 = vmatprep.subr.bf16.mxu1 %v1200_v24  ;;  %v334_v14 = vld [vmem:[#allocation2 + $0x10] sm:$0xff]  ;;  %v335_v18 = vld [vmem:[#allocation2 + $0x18] sm:$0xff]  ;;  %v336_v24 = vld [vmem:[#allocation2 + $0x20] sm:$0xff] }
  0x3d   : > { %v338_v30 = vld [vmem:[#allocation2 + $0x30] sm:$0xff] }
  0x3e   : > { %730 = vmatpush1.bf16.msra.mxu0 %v1235_v34  ;;  %v339_v34 = vld [vmem:[#allocation2 + $0x38] sm:$0xff] }
  0x3f   : > { %679 = vmatpush1.bf16.msra.mxu1 %v1202_v27  ;;  %731 = vmatprep.subr.bf16.mxu0 %v1239_v36  ;;  %v337_v27 = vld [vmem:[#allocation2 + $0x28] sm:$0xff] }
  0x40   : > { %680 = vmatprep.subr.bf16.mxu1 %v1203_v29 }
  0x42   : > { %732 = vmatpush1.bf16.msra.mxu0 %v1241_v38 }
  0x43   : > { %681 = vmatpush1.bf16.msra.mxu1 %v1205_v31  ;;  %733 = vmatprep.subr.bf16.mxu0 %v1245_v40 }
  0x44   : > { %682 = vmatprep.subr.bf16.mxu1 %v1206_v33 }
  0x46   : > { %734 = vmatpush1.bf16.msra.mxu0 %v1247_v43 }
  0x47   : > { %683 = vmatpush1.bf16.msra.mxu1 %v1208_v35  ;;  %735 = vmatprep.subr.bf16.mxu0 %v1251_v45 }
  0x48   : > { %684 = vmatprep.subr.bf16.mxu1 %v1212_v37 }
  0x4a   : > { %736 = vmatpush1.bf16.msra.mxu0 %v1253_v47 }
  0x4b   : > { %685 = vmatpush1.bf16.msra.mxu1 %v1214_v39 }
  0x4c   : > { %686 = vmatprep.subr.bf16.mxu1 %v1218_v41 }
  0x4d   : > { %754 = vmatmul.mubr.bf16.vlgmr.msra.gmra.mrb[0].mxu0 %v1257_v50 }
  0x4e   : > { %763 = vmatprep.mubr.bf16.mxu0 %v1306_v11  ;;  %v333_v11 = vld [vmem:[#allocation2 + $0x8] sm:$0xff] }
  0x4f   : > { %687 = vmatpush1.bf16.msra.mxu1 %v1220_v42 }
  0x50   : > { %688 = vmatprep.subr.bf16.mxu1 %v1224_v46 }
  0x53   : > { %689 = vmatpush1.bf16.msra.mxu1 %v1226_v48 }
  0x54   : > { %690 = vmatprep.subr.bf16.mxu1 %v1230_v49 }
  0x55   : > { %764 = vmatmul.mubr.bf16.gmra.mrb[4].mxu0 %v1261_v55 }
  0x57   : > { %691 = vmatpush1.bf16.msra.mxu1 %v1232_v51 }
  0x58   : > { %692 = vmatprep.subr.bf16.mxu1 %v1236_v52 }
  0x5b   : > { %693 = vmatpush1.bf16.msra.mxu1 %v1238_v53 }
  0x5c   : > { %694 = vmatprep.subr.bf16.mxu1 %v1242_v54 }
  0x5f   : > { %695 = vmatpush1.bf16.msra.mxu1 %v1244_v56 }
  0x60   : > { %696 = vmatprep.subr.bf16.mxu1 %v1248_v57 }
  0x63   : > { %697 = vmatpush1.bf16.msra.mxu1 %v1250_v58 }
  0x64   : > { %698 = vmatprep.subr.bf16.mxu1 %v1254_v59 }
  0x67   : > { %699 = vmatpush1.bf16.msra.mxu1 %v1256_v60 }
  0x6a   : > { %701 = vmatmul.mubr.bf16.vlgmr.msra.gmra.mrb[0].mxu1 %v1258_v61 }
  0x6b   : > { %710 = vmatprep.mubr.bf16.mxu1 %v1262_v62 }
  0x72   : > { %711 = vmatmul.mubr.bf16.gmra.mrb[4].mxu1 %v1264_v63 }
 0x120   : > { %v755_v0 = vpop.f32.mrb[0].mxu0 }
 0x121   : > { %v757_v1 = vpop.f32.mrb[1].mxu0 }
 0x122   : > { %v759_v2 = vpop.f32.mrb[2].mxu0 }
 0x123   : > { %v761_v3 = vpop.f32.mrb[3].mxu0 }
 0x128   : > { %v765_v4 = vpop.f32.mrb[4].mxu0 }
 0x129   : > { %v767_v5 = vpop.f32.mrb[5].mxu0 }
 0x12a   : > { %v769_v6 = vpop.f32.mrb[6].mxu0 }
 0x12b   : > { %v771_v7 = vpop.f32.mrb[7].mxu0 }
 0x13d   : > { %v702_v9 = vpop.f32.mrb[0].mxu1 }
 0x13e   : > { %v756_v10 = vadd.f32 %v755_v0, %v702_v9  ;;  %v704_v12 = vpop.f32.mrb[1].mxu1 }
 0x13f   : > { %v758_v13 = vadd.f32 %v757_v1, %v704_v12  ;;  %v706_v15 = vpop.f32.mrb[2].mxu1  ;;  %v846_v12 = vlaneseq (!%p1116_p11) }
 0x140   : > { %v774_v16 = vadd.f32 %v756_v10, %v332_v8  ;;  %v760_v17 = vadd.f32 %v759_v2, %v706_v15  ;;  %v708_v19 = vpop.f32.mrb[3].mxu1 }
 0x141   : > { %v775_v20 = vadd.f32 %v758_v13, %v333_v11  ;;  %v762_v21 = vadd.f32 %v761_v3, %v708_v19 }
 0x142   : > { %782 = vst [vmem:[#allocation2] sm:$0xff] %v774_v16  ;;  %v776_v22 = vadd.f32 %v760_v17, %v334_v14 }
 0x143   : > { %783 = vst [vmem:[#allocation2 + $0x8] sm:$0xff] %v775_v20  ;;  %v777_v23 = vadd.f32 %v762_v21, %v335_v18  ;;  %v847_v21 = vshrl.u32 (!%p1116_p11), %v846_v12, 7 }
 0x144   : > { %784 = vst [vmem:[#allocation2 + $0x10] sm:$0xff] %v776_v22 }
 0x145   : > { %785 = vst [vmem:[#allocation2 + $0x18] sm:$0xff] %v777_v23  ;;  %v712_v25 = vpop.f32.mrb[4].mxu1  ;;  %vm849_vm0 = vcmp.eq.s32.totalorder (!%p1116_p11), %v847_v21, 1  ;;  %vm848_vm1 = vcmp.eq.s32.totalorder (!%p1116_p11), %v847_v21, 0 }
 0x146   : > { %v766_v26 = vadd.f32 %v765_v4, %v712_v25  ;;  %v714_v28 = vpop.f32.mrb[5].mxu1 }
 0x147   : > { %v768_v29 = vadd.f32 %v767_v5, %v714_v28  ;;  %v716_v31 = vpop.f32.mrb[6].mxu1  ;;  %793 = sbr.rel (%p1116_p11) target bundleno = 360 (0x168), region = 62 }
 0x148   : > { %v778_v32 = vadd.f32 %v766_v26, %v336_v24  ;;  %v770_v33 = vadd.f32 %v769_v6, %v716_v31  ;;  %v718_v35 = vpop.f32.mrb[7].mxu1 }
 0x149   : > { %v779_v36 = vadd.f32 %v768_v29, %v337_v27  ;;  %v772_v37 = vadd.f32 %v771_v7, %v718_v35  ;;  %v794_v40 = vld [vmem:[#allocation2] sm:$0xff] (!%p1116_p11) }
 0x14a   : > { %786 = vst [vmem:[#allocation2 + $0x20] sm:$0xff] %v778_v32  ;;  %v780_v38 = vadd.f32 %v770_v33, %v338_v30  ;;  %v820_v45 = vmul.f32 (!%p1116_p11), %v794_v40, %v794_v40  ;;  %v795_v48 = vld [vmem:[#allocation2 + $0x8] sm:$0xff] (!%p1116_p11) }
 0x14b   : > { %787 = vst [vmem:[#allocation2 + $0x28] sm:$0xff] %v779_v36  ;;  %v781_v39 = vadd.f32 %v772_v37, %v339_v34  ;;  %v796_v41 = vld [vmem:[#allocation2 + $0x10] sm:$0xff] (!%p1116_p11)  ;;  %v821_v54 = vmul.f32 (!%p1116_p11), %v795_v48, %v795_v48  ;;  %v1129_v0 = vpack.c.bf16 (!%p1116_p11), %v795_v48, %v794_v40 }
 0x14c   : > { %788 = vst [vmem:[#allocation2 + $0x30] sm:$0xff] %v780_v38  ;;  %v802_v44 = vadd.f32 (!%p1116_p11), %v796_v41, %v794_v40  ;;  %v822_v46 = vmul.f32 (!%p1116_p11), %v796_v41, %v796_v41  ;;  %v797_v49 = vld [vmem:[#allocation2 + $0x18] sm:$0xff] (!%p1116_p11) }
 0x14d   : > { %789 = vst [vmem:[#allocation2 + $0x38] sm:$0xff] %v781_v39  ;;  %v811_v53 = vadd.f32 (!%p1116_p11), %v797_v49, %v795_v48  ;;  %v823_v57 = vmul.f32 (!%p1116_p11), %v797_v49, %v797_v49  ;;  %v1130_v2 = vpack.c.bf16 (!%p1116_p11), %v797_v49, %v796_v41  ;;  %880 = vst [vmem:[%s1474_s2] sm:$0xff] (!%p1116_p11), %v1129_v0 }
 0x14e   : > { %v828_v56 = vadd.f32 %v822_v46, %v820_v45 }
 0x14f   : > { %v837_v63 = vadd.f32 %v823_v57, %v821_v54  ;;  %881 = vst [vmem:[%s1474_s2 + $0x8] sm:$0xff] %v1130_v2 }
 0x151   : > { %v798_v42 = vld [vmem:[#allocation2 + $0x20] sm:$0xff] }
 0x152   : > { %v824_v47 = vmul.f32 %v798_v42, %v798_v42  ;;  %v799_v51 = vld [vmem:[#allocation2 + $0x28] sm:$0xff]  ;;  %v803_v55 = vadd.f32 %v802_v44, %v798_v42 }
 0x153   : > { %v800_v43 = vld [vmem:[#allocation2 + $0x30] sm:$0xff]  ;;  %v825_v58 = vmul.f32 %v799_v51, %v799_v51  ;;  %v812_v59 = vadd.f32 %v811_v53, %v799_v51  ;;  %v1131_v3 = vpack.c.bf16 %v799_v51, %v798_v42 }
 0x154   : > { %v826_v50 = vmul.f32 %v800_v43, %v800_v43  ;;  %v801_v52 = vld [vmem:[#allocation2 + $0x38] sm:$0xff]  ;;  %v804_v61 = vadd.f32 %v803_v55, %v800_v43  ;;  %v829_v62 = vadd.f32 %v828_v56, %v824_v47 }
 0x155   : > { %v827_v60 = vmul.f32 %v801_v52, %v801_v52  ;;  %v813_v1 = vadd.f32 %v812_v59, %v801_v52  ;;  %v1132_v4 = vpack.c.bf16 %v801_v52, %v800_v43  ;;  %v838_v7 = vadd.f32 %v837_v63, %v825_v58  ;;  %882 = vst [vmem:[%s1474_s2 + $0x10] sm:$0xff] %v1131_v3 }
 0x156   : > { %v805_v5 = vrot.slane %v804_v61, 4  ;;  %v830_v6 = vadd.f32 %v829_v62, %v826_v50 }
 0x157   : > { %v814_v8 = vrot.slane %v813_v1, 4  ;;  %883 = vst [vmem:[%s1474_s2 + $0x18] sm:$0xff] %v1132_v4  ;;  %v839_v11 = vadd.f32 %v838_v7, %v827_v60 }
 0x158   : > { %v806_v9 = vadd.f32 %v805_v5, %v804_v61  ;;  %v831_v10 = vrot.slane %v830_v6, 4 }
 0x159   : > { %v815_v13 = vadd.f32 %v814_v8, %v813_v1  ;;  %v840_v16 = vrot.slane %v839_v11, 4 }
 0x15a   : > { %v807_v14 = vrot.slane %v806_v9, 2  ;;  %v832_v15 = vadd.f32 %v831_v10, %v830_v6 }
 0x15b   : > { %v816_v17 = vrot.slane %v815_v13, 2  ;;  %v841_v20 = vadd.f32 %v840_v16, %v839_v11 }
 0x15c   : > { %v808_v18 = vadd.f32 %v807_v14, %v806_v9  ;;  %v833_v19 = vrot.slane %v832_v15, 2 }
 0x15d   : > { %v817_v22 = vadd.f32 %v816_v17, %v815_v13  ;;  %v842_v25 = vrot.slane %v841_v20, 2 }
 0x15e   : > { %v809_v23 = vrot.slane %v808_v18, 1  ;;  %v834_v24 = vadd.f32 %v833_v19, %v832_v15 }
 0x15f   : > { %v818_v26 = vrot.slane %v817_v22, 1  ;;  %v843_v28 = vadd.f32 %v842_v25, %v841_v20 }
 0x160   : > { %v835_v27 = vrot.slane %v834_v24, 1  ;;  %v810_v29 = vadd.f32 %v809_v23, %v808_v18 }
 0x161   : > { %v844_v31 = vrot.slane %v843_v28, 1  ;;  %v819_v32 = vadd.f32 %v818_v26, %v817_v22 }
 0x162   : > { %v836_v30 = vadd.f32 %v835_v27, %v834_v24 }
 0x163   : > { %v845_v34 = vadd.f32 %v844_v31, %v843_v28 }
 0x164   : > { %v850_v33 = vsel %vm849_vm0, %v836_v30, 0.0 }
 0x165   : > { %v852_v35 = vsel %vm848_vm1, %v810_v29, %v850_v33  ;;  %v851_v36 = vsel %vm849_vm0, %v845_v34, 0.0 }
 0x166   : > { %854 = vst [vmem:[%s1475_s3] sm:$0xff] %v852_v35  ;;  %v853_v37 = vsel %vm848_vm1, %v819_v32, %v851_v36 }
 0x167   : > { %855 = vst [vmem:[%s1475_s3 + $0x8] sm:$0xff] %v853_v37 }
 0x168 PF: > { %s14_s16 = sadd.s32 1, %s1303_s16   ;;  %s1476_s12 = smov %s1291_s13 }
 0x169   : > { %p11_p12 = scmp.ge.s32.totalorder %s14_s16, 5   ;;  %s1477_s13 = smov %s1362_s20 }
 0x16a   : > { %s1478_s14 = smov %s1299_s15  ;;  %s1479_s15 = smov %s1481_s17 }
 0x16b   :  { %13 = sbr.rel (!%p11_p12) target bundleno = 3 (0x3), region = 118 }

// kernel: _forward.68
= control target key start
LH: loop header
LB: loop body
LE: loop exit
PB: predicated region body
PF: predicated region fallthrough
CT: control target
= control target key end

     0   :  { %s1327_s12 = smov 0   ;;  %s1329_s13 = smov 0   ;;  %s1472_s0 = inlined_call_operand.vmem [shape: bf16[32,2304], index: 0, kind: input, shape index: {}]   ;;  %s1473_s1 = inlined_call_operand.vmem [shape: bf16[2304,256], index: 1, kind: input, shape index: {}]   ;;  %s1474_s2 = inlined_call_operand.vmem [shape: bf16[32,256], index: 2, kind: output, shape index: {0}]   ;;  %s1475_s3 = inlined_call_operand.vmem [shape: f32[8,256], index: 3, kind: output, shape index: {1}]  }
   0x1   :  { %s1331_s14 = smov 0   ;;  %s1333_s15 = smov 0  }
   0x2   :  { %s1335_s16 = smov 0  }
   0x3 LB: > { %s26_s17 = sadd.s32 1, %s1299_s15  ;;  %p49_p1 = scmp.ne.s32.totalorder %s1291_s13, %s1287_s12  ;;  %s1303_s16 = sphi %s1335_s16, %s14_s16   ;;  %s1299_s15 = sphi %s1333_s15, %s1479_s15   ;;  %s1295_s14 = sphi %s1331_s14, %s1478_s14   ;;  %s1291_s13 = sphi %s1329_s13, %s1477_s13   ;;  %s1287_s12 = sphi %s1327_s12, %s1476_s12  }
   0x4   : > { %p27_p0 = scmp.ge.s32.totalorder %s26_s17, 6  ;;  %p50_p2 = scmp.eq.s32.totalorder %s1303_s16, 0 }
   0x5   : > { %s42_s19 = sadd.s32 1, %s1291_s13  ;;  %p1048_p5 = scmp.ge.s32.totalorder %s1303_s16, 6 }
   0x6   : > { %s1481_s17 = smov (%p27_p0, %s26_s17), 0  ;;  %p51_p3 = por %p50_p2, %p49_p1 }
   0x7   : > { %s38_s18 = ssub.s32 %s1299_s15, %s1481_s17  ;;  %159 = sbr.rel (%p1048_p5) target bundleno = 23 (0x17), region = 16 }
   0x8   : > { %p40_p4 = scmp.eq.s32.totalorder %s38_s18, 0 }
   0xa   : > { %s1362_s20 = scalar_select %p40_p4, %s1291_s13, %s42_s19  }
   0xe   : > { %162 = sbr.rel (!%p51_p3) target bundleno = 23 (0x17), region = 20  ;;  %s164_s21 = sand.u32 (%p51_p3), 1, %s1291_s13  }
   0xf   : > { %s1127_s22 = smul.u32 (%p51_p3), 12, %s1299_s15 }
  0x10   : > { %s1141_s23 = smul.u32 (%p51_p3), 48, %s164_s21 }
  0x11   : > { %s172_s26 = scalar_lea.vmem (%p51_p3), %s1472_s0, %s1127_s22 }
  0x12   : > { %v187_v0 = vld [vmem:[%s172_s26] sm:$0xff] (%p51_p3)  ;;  %v189_v1 = vld [vmem:[%s172_s26 + $0x48] sm:$0xff] (%p51_p3)  ;;  %v191_v2 = vld [vmem:[%s172_s26 + $0x90] sm:$0xff] (%p51_p3)  ;;  %s166_s27 = scalar_lea.vmem (%p51_p3), [#allocation3], %s1141_s23 }
  0x13   : > { %188 = vst [vmem:[%s166_s27] sm:$0xff] (%p51_p3), %v187_v0  ;;  %190 = vst [vmem:[%s166_s27 + $0xc] sm:$0xff] (%p51_p3), %v189_v1  ;;  %v193_v3 = vld [vmem:[%s172_s26 + $0xd8] sm:$0xff] (%p51_p3)  ;;  %v1050_v4 = vld [vmem:[%s172_s26 + $0x8] sm:$0xf] (%p51_p3) }
  0x14   : > { %192 = vst [vmem:[%s166_s27 + $0x18] sm:$0xff] (%p51_p3), %v191_v2  ;;  %v1052_v5 = vld [vmem:[%s172_s26 + $0x50] sm:$0xf] (%p51_p3)  ;;  %194 = vst [vmem:[%s166_s27 + $0x24] sm:$0xff] (%p51_p3), %v193_v3  ;;  %v1054_v6 = vld [vmem:[%s172_s26 + $0x98] sm:$0xf] (%p51_p3) }
  0x15   : > { %1051 = vst [vmem:[%s166_s27 + $0x8] sm:$0xf] %v1050_v4  ;;  %1053 = vst [vmem:[%s166_s27 + $0x14] sm:$0xf] %v1052_v5  ;;  %v1056_v7 = vld [vmem:[%s172_s26 + $0xe0] sm:$0xf] }
  0x16   : > { %1055 = vst [vmem:[%s166_s27 + $0x20] sm:$0xf] %v1054_v6  ;;  %1057 = vst [vmem:[%s166_s27 + $0x2c] sm:$0xf] %v1056_v7 }
  0x17 PF: > { %p1058_p6 = scmp.ge.s32.totalorder %s1303_s16, 1  ;;  %p229_p7 = scmp.lt.s32.totalorder %s1303_s16, 7 }
  0x19   : > { %p230_p8 = pnand %p1058_p6, %p229_p7 }
  0x1a   : > { %s236_s28 = sand.u32 (!%p230_p8), 1, %s1287_s12   ;;  %s285_s29 = smul.u32 (!%p230_p8), 48, %s1295_s14 }
  0x1b   : > { %233 = sbr.rel (%p230_p8) target bundleno = 360 (0x168), region = 50  ;;  %p1061_p10 = scmp.ne.s32.totalorder (!%p230_p8), %s1295_s14, 0 }
  0x1c   : > { %s1142_s30 = smul.u32 (!%p230_p8), 48, %s236_s28  ;;  %p287_p9 = scmp.lt.s32.totalorder (!%p230_p8), %s285_s29, 287 }
  0x1e   : > { %s1379_s8 = scalar_lea.vmem (!%p230_p8), [#allocation3], %s1142_s30 }
  0x22   : > { %s1483_s29 = smov (!%p287_p9, %s285_s29), 287  ;;  %323 = sbr.rel (%p1061_p10) target bundleno = 41 (0x29), region = 58 }
  0x23   : > { %s1128_s4 = sshll.u32 %s1483_s29, 3  ;;  %v1305_v8 = vmov (!%p1061_p10), 0.0  }
  0x24   : > { %s1377_s7 = scalar_lea.vmem %s1473_s1, %s1128_s4  ;;  %324 = vst [vmem:[#allocation2] sm:$0xff] (!%p1061_p10), %v1305_v8  ;;  %325 = vst [vmem:[#allocation2 + $0x8] sm:$0xff] (!%p1061_p10), %v1305_v8 }
  0x25   : > { %326 = vst [vmem:[#allocation2 + $0x10] sm:$0xff] (!%p1061_p10), %v1305_v8  ;;  %327 = vst [vmem:[#allocation2 + $0x18] sm:$0xff] (!%p1061_p10), %v1305_v8 }
  0x26   : > { %328 = vst [vmem:[#allocation2 + $0x20] sm:$0xff] (!%p1061_p10), %v1305_v8  ;;  %329 = vst [vmem:[#allocation2 + $0x28] sm:$0xff] (!%p1061_p10), %v1305_v8 }
  0x27   : > { %330 = vst [vmem:[#allocation2 + $0x30] sm:$0xff] (!%p1061_p10), %v1305_v8  ;;  %331 = vst [vmem:[#allocation2 + $0x38] sm:$0xff] (!%p1061_p10), %v1305_v8 }
  0x29 PF: > { %v1185_v9 = vld [vmem:[%s1377_s7 + $0x4] ss:$8 sps:$4 sm:$0xff]   ;;  %v1187_v10 = vld [vmem:[%s1377_s7] ss:$8 sps:$4 sm:$0xff]   ;;  %v1306_v11 = vmov 0   ;;  %p1116_p11 = scmp.ne.s32.totalorder %s1295_s14, 5 }
  0x2a   : > { %753 = vmatprep.mubr.bf16.mxu0 %v1306_v11  ;;  %668 = vmatprep.subr.bf16.mxu1 %v1185_v9  ;;  %v1188_v12 = vld [vmem:[%s1377_s7 + $0x14] ss:$8 sps:$4 sm:$0xff]   ;;  %v1190_v13 = vld [vmem:[%s1377_s7 + $0x10] ss:$8 sps:$4 sm:$0xff]   ;;  %v1191_v14 = vld [vmem:[%s1377_s7 + $0x24] ss:$8 sps:$4 sm:$0xff]  }
  0x2b   : > { %669 = vmatpush1.bf16.msra.mxu1 %v1187_v10  ;;  %v1193_v15 = vld [vmem:[%s1377_s7 + $0x20] ss:$8 sps:$4 sm:$0xff]   ;;  %v1194_v16 = vld [vmem:[%s1377_s7 + $0x34] ss:$8 sps:$4 sm:$0xff]   ;;  %v1196_v17 = vld [vmem:[%s1377_s7 + $0x30] ss:$8 sps:$4 sm:$0xff]  }
  0x2c   : > { %670 = vmatprep.subr.bf16.mxu1 %v1188_v12  ;;  %v1209_v18 = vld [vmem:[%s1377_s7 + $0x104] ss:$8 sps:$4 sm:$0xff]   ;;  %v1211_v19 = vld [vmem:[%s1377_s7 + $0x100] ss:$8 sps:$4 sm:$0xff]   ;;  %v1215_v21 = vld [vmem:[%s1377_s7 + $0x114] ss:$8 sps:$4 sm:$0xff]  }
  0x2d   : > { %v1197_v20 = vld [vmem:[%s1377_s7 + $0x44] ss:$8 sps:$4 sm:$0xff]   ;;  %721 = vmatprep.subr.bf16.mxu0 %v1209_v18  ;;  %v1217_v22 = vld [vmem:[%s1377_s7 + $0x110] ss:$8 sps:$4 sm:$0xff]   ;;  %v1199_v23 = vld [vmem:[%s1377_s7 + $0x40] ss:$8 sps:$4 sm:$0xff]  }
  0x2e   : > { %722 = vmatpush1.bf16.msra.mxu0 %v1211_v19  ;;  %v1200_v24 = vld [vmem:[%s1377_s7 + $0x54] ss:$8 sps:$4 sm:$0xff]   ;;  %v1221_v25 = vld [vmem:[%s1377_s7 + $0x124] ss:$8 sps:$4 sm:$0xff]   ;;  %v1223_v26 = vld [vmem:[%s1377_s7 + $0x120] ss:$8 sps:$4 sm:$0xff]  }
  0x2f   : > { %671 = vmatpush1.bf16.msra.mxu1 %v1190_v13  ;;  %723 = vmatprep.subr.bf16.mxu0 %v1215_v21  ;;  %v1202_v27 = vld [vmem:[%s1377_s7 + $0x50] ss:$8 sps:$4 sm:$0xff]   ;;  %v1227_v28 = vld [vmem:[%s1377_s7 + $0x134] ss:$8 sps:$4 sm:$0xff]   ;;  %v1203_v29 = vld [vmem:[%s1377_s7 + $0x64] ss:$8 sps:$4 sm:$0xff]  }
  0x30   : > { %672 = vmatprep.subr.bf16.mxu1 %v1191_v14  ;;  %v1229_v30 = vld [vmem:[%s1377_s7 + $0x130] ss:$8 sps:$4 sm:$0xff]   ;;  %v1205_v31 = vld [vmem:[%s1377_s7 + $0x60] ss:$8 sps:$4 sm:$0xff]   ;;  %v1233_v32 = vld [vmem:[%s1377_s7 + $0x144] ss:$8 sps:$4 sm:$0xff]  }
  0x31   : > { %v1206_v33 = vld [vmem:[%s1377_s7 + $0x74] ss:$8 sps:$4 sm:$0xff]   ;;  %v1235_v34 = vld [vmem:[%s1377_s7 + $0x140] ss:$8 sps:$4 sm:$0xff]   ;;  %v1208_v35 = vld [vmem:[%s1377_s7 + $0x70] ss:$8 sps:$4 sm:$0xff]  }
  0x32   : > { %724 = vmatpush1.bf16.msra.mxu0 %v1217_v22  ;;  %v1239_v36 = vld [vmem:[%s1377_s7 + $0x154] ss:$8 sps:$4 sm:$0xff]   ;;  %v1212_v37 = vld [vmem:[%s1377_s7 + $0x84] ss:$8 sps:$4 sm:$0xff]   ;;  %v1241_v38 = vld [vmem:[%s1377_s7 + $0x150] ss:$8 sps:$4 sm:$0xff]  }
  0x33   : > { %673 = vmatpush1.bf16.msra.mxu1 %v1193_v15  ;;  %725 = vmatprep.subr.bf16.mxu0 %v1221_v25  ;;  %v1214_v39 = vld [vmem:[%s1377_s7 + $0x80] ss:$8 sps:$4 sm:$0xff]   ;;  %v1245_v40 = vld [vmem:[%s1377_s7 + $0x164] ss:$8 sps:$4 sm:$0xff]   ;;  %v1218_v41 = vld [vmem:[%s1377_s7 + $0x94] ss:$8 sps:$4 sm:$0xff]  }
  0x34   : > { %674 = vmatprep.subr.bf16.mxu1 %v1194_v16  ;;  %v1220_v42 = vld [vmem:[%s1377_s7 + $0x90] ss:$8 sps:$4 sm:$0xff]   ;;  %v1247_v43 = vld [vmem:[%s1377_s7 + $0x160] ss:$8 sps:$4 sm:$0xff]   ;;  %v1251_v45 = vld [vmem:[%s1377_s7 + $0x174] ss:$8 sps:$4 sm:$0xff]  }
  0x35   : > { %v1260_v44 = vld [vmem:[%s1379_s8 + $0x4] ss:$12 sps:$4 sm:$0xff]   ;;  %v1257_v50 = vld [vmem:[%s1379_s8 + $0x8] ss:$12 sps:$4 sm:$0xff]   ;;  %v1261_v55 = vld [vmem:[%s1379_s8 + $0x20] ss:$12 sps:$4 sm:$0xff]  }
  0x36   : > { %726 = vmatpush1.bf16.msra.mxu0 %v1223_v26  ;;  %v1224_v46 = vld [vmem:[%s1377_s7 + $0xa4] ss:$8 sps:$4 sm:$0xff]   ;;  %700 = vmatprep.mubr.bf16.mxu1 %v1260_v44  ;;  %v1253_v47 = vld [vmem:[%s1377_s7 + $0x170] ss:$8 sps:$4 sm:$0xff]   ;;  %v1226_v48 = vld [vmem:[%s1377_s7 + $0xa0] ss:$8 sps:$4 sm:$0xff]  }
  0x37   : > { %675 = vmatpush1.bf16.msra.mxu1 %v1196_v17  ;;  %727 = vmatprep.subr.bf16.mxu0 %v1227_v28  ;;  %v1230_v49 = vld [vmem:[%s1377_s7 + $0xb4] ss:$8 sps:$4 sm:$0xff]   ;;  %v1232_v51 = vld [vmem:[%s1377_s7 + $0xb0] ss:$8 sps:$4 sm:$0xff]   ;;  %v1236_v52 = vld [vmem:[%s1377_s7 + $0xc4] ss:$8 sps:$4 sm:$0xff]  }
  0x38   : > { %676 = vmatprep.subr.bf16.mxu1 %v1197_v20  ;;  %v1238_v53 = vld [vmem:[%s1377_s7 + $0xc0] ss:$8 sps:$4 sm:$0xff]   ;;  %v1242_v54 = vld [vmem:[%s1377_s7 + $0xd4] ss:$8 sps:$4 sm:$0xff]   ;;  %v1244_v56 = vld [vmem:[%s1377_s7 + $0xd0] ss:$8 sps:$4 sm:$0xff]  }
  0x39   : > { %v1248_v57 = vld [vmem:[%s1377_s7 + $0xe4] ss:$8 sps:$4 sm:$0xff]   ;;  %v1250_v58 = vld [vmem:[%s1377_s7 + $0xe0] ss:$8 sps:$4 sm:$0xff]   ;;  %v1254_v59 = vld [vmem:[%s1377_s7 + $0xf4] ss:$8 sps:$4 sm:$0xff]  }
  0x3a   : > { %728 = vmatpush1.bf16.msra.mxu0 %v1229_v30  ;;  %v1256_v60 = vld [vmem:[%s1377_s7 + $0xf0] ss:$8 sps:$4 sm:$0xff]   ;;  %v332_v8 = vld [vmem:[#allocation2] sm:$0xff] }
  0x3b   : > { %677 = vmatpush1.bf16.msra.mxu1 %v1199_v23  ;;  %729 = vmatprep.subr.bf16.mxu0 %v1233_v32  ;;  %v1258_v61 = vld [vmem:[%s1379_s8] ss:$12 sps:$4 sm:$0xff]   ;;  %v1262_v62 = vld [vmem:[%s1379_s8 + $0x1c] ss:$12 sps:$4 sm:$0xff]   ;;  %v1264_v63 = vld [vmem:[%s1379_s8 + $0x18] ss:$12 sps:$4 sm:$0xff]  }
  0x3c   : > { %678 = vmatprep.subr.bf16.mxu1 %v1200_v24  ;;  %v334_v14 = vld [vmem:[#allocation2 + $0x10] sm:$0xff]  ;;  %v335_v18 = vld [vmem:[#allocation2 + $0x18] sm:$0xff]  ;;  %v336_v24 = vld [vmem:[#allocation2 + $0x20] sm:$0xff] }
  0x3d   : > { %v338_v30 = vld [vmem:[#allocation2 + $0x30] sm:$0xff] }
  0x3e   : > { %730 = vmatpush1.bf16.msra.mxu0 %v1235_v34  ;;  %v339_v34 = vld [vmem:[#allocation2 + $0x38] sm:$0xff] }
  0x3f   : > { %679 = vmatpush1.bf16.msra.mxu1 %v1202_v27  ;;  %731 = vmatprep.subr.bf16.mxu0 %v1239_v36  ;;  %v337_v27 = vld [vmem:[#allocation2 + $0x28] sm:$0xff] }
  0x40   : > { %680 = vmatprep.subr.bf16.mxu1 %v1203_v29 }
  0x42   : > { %732 = vmatpush1.bf16.msra.mxu0 %v1241_v38 }
  0x43   : > { %681 = vmatpush1.bf16.msra.mxu1 %v1205_v31  ;;  %733 = vmatprep.subr.bf16.mxu0 %v1245_v40 }
  0x44   : > { %682 = vmatprep.subr.bf16.mxu1 %v1206_v33 }
  0x46   : > { %734 = vmatpush1.bf16.msra.mxu0 %v1247_v43 }
  0x47   : > { %683 = vmatpush1.bf16.msra.mxu1 %v1208_v35  ;;  %735 = vmatprep.subr.bf16.mxu0 %v1251_v45 }
  0x48   : > { %684 = vmatprep.subr.bf16.mxu1 %v1212_v37 }
  0x4a   : > { %736 = vmatpush1.bf16.msra.mxu0 %v1253_v47 }
  0x4b   : > { %685 = vmatpush1.bf16.msra.mxu1 %v1214_v39 }
  0x4c   : > { %686 = vmatprep.subr.bf16.mxu1 %v1218_v41 }
  0x4d   : > { %754 = vmatmul.mubr.bf16.vlgmr.msra.gmra.mrb[0].mxu0 %v1257_v50 }
  0x4e   : > { %763 = vmatprep.mubr.bf16.mxu0 %v1306_v11  ;;  %v333_v11 = vld [vmem:[#allocation2 + $0x8] sm:$0xff] }
  0x4f   : > { %687 = vmatpush1.bf16.msra.mxu1 %v1220_v42 }
  0x50   : > { %688 = vmatprep.subr.bf16.mxu1 %v1224_v46 }
  0x53   : > { %689 = vmatpush1.bf16.msra.mxu1 %v1226_v48 }
  0x54   : > { %690 = vmatprep.subr.bf16.mxu1 %v1230_v49 }
  0x55   : > { %764 = vmatmul.mubr.bf16.gmra.mrb[4].mxu0 %v1261_v55 }
  0x57   : > { %691 = vmatpush1.bf16.msra.mxu1 %v1232_v51 }
  0x58   : > { %692 = vmatprep.subr.bf16.mxu1 %v1236_v52 }
  0x5b   : > { %693 = vmatpush1.bf16.msra.mxu1 %v1238_v53 }
  0x5c   : > { %694 = vmatprep.subr.bf16.mxu1 %v1242_v54 }
  0x5f   : > { %695 = vmatpush1.bf16.msra.mxu1 %v1244_v56 }
  0x60   : > { %696 = vmatprep.subr.bf16.mxu1 %v1248_v57 }
  0x63   : > { %697 = vmatpush1.bf16.msra.mxu1 %v1250_v58 }
  0x64   : > { %698 = vmatprep.subr.bf16.mxu1 %v1254_v59 }
  0x67   : > { %699 = vmatpush1.bf16.msra.mxu1 %v1256_v60 }
  0x6a   : > { %701 = vmatmul.mubr.bf16.vlgmr.msra.gmra.mrb[0].mxu1 %v1258_v61 }
  0x6b   : > { %710 = vmatprep.mubr.bf16.mxu1 %v1262_v62 }
  0x72   : > { %711 = vmatmul.mubr.bf16.gmra.mrb[4].mxu1 %v1264_v63 }
 0x120   : > { %v755_v0 = vpop.f32.mrb[0].mxu0 }
 0x121   : > { %v757_v1 = vpop.f32.mrb[1].mxu0 }
 0x122   : > { %v759_v2 = vpop.f32.mrb[2].mxu0 }
 0x123   : > { %v761_v3 = vpop.f32.mrb[3].mxu0 }
 0x128   : > { %v765_v4 = vpop.f32.mrb[4].mxu0 }
 0x129   : > { %v767_v5 = vpop.f32.mrb[5].mxu0 }
 0x12a   : > { %v769_v6 = vpop.f32.mrb[6].mxu0 }
 0x12b   : > { %v771_v7 = vpop.f32.mrb[7].mxu0 }
 0x13d   : > { %v702_v9 = vpop.f32.mrb[0].mxu1 }
 0x13e   : > { %v756_v10 = vadd.f32 %v755_v0, %v702_v9  ;;  %v704_v12 = vpop.f32.mrb[1].mxu1 }
 0x13f   : > { %v758_v13 = vadd.f32 %v757_v1, %v704_v12  ;;  %v706_v15 = vpop.f32.mrb[2].mxu1  ;;  %v846_v12 = vlaneseq (!%p1116_p11) }
 0x140   : > { %v774_v16 = vadd.f32 %v756_v10, %v332_v8  ;;  %v760_v17 = vadd.f32 %v759_v2, %v706_v15  ;;  %v708_v19 = vpop.f32.mrb[3].mxu1 }
 0x141   : > { %v775_v20 = vadd.f32 %v758_v13, %v333_v11  ;;  %v762_v21 = vadd.f32 %v761_v3, %v708_v19 }
 0x142   : > { %782 = vst [vmem:[#allocation2] sm:$0xff] %v774_v16  ;;  %v776_v22 = vadd.f32 %v760_v17, %v334_v14 }
 0x143   : > { %783 = vst [vmem:[#allocation2 + $0x8] sm:$0xff] %v775_v20  ;;  %v777_v23 = vadd.f32 %v762_v21, %v335_v18  ;;  %v847_v21 = vshrl.u32 (!%p1116_p11), %v846_v12, 7 }
 0x144   : > { %784 = vst [vmem:[#allocation2 + $0x10] sm:$0xff] %v776_v22 }
 0x145   : > { %785 = vst [vmem:[#allocation2 + $0x18] sm:$0xff] %v777_v23  ;;  %v712_v25 = vpop.f32.mrb[4].mxu1  ;;  %vm849_vm0 = vcmp.eq.s32.totalorder (!%p1116_p11), %v847_v21, 1  ;;  %vm848_vm1 = vcmp.eq.s32.totalorder (!%p1116_p11), %v847_v21, 0 }
 0x146   : > { %v766_v26 = vadd.f32 %v765_v4, %v712_v25  ;;  %v714_v28 = vpop.f32.mrb[5].mxu1 }
 0x147   : > { %v768_v29 = vadd.f32 %v767_v5, %v714_v28  ;;  %v716_v31 = vpop.f32.mrb[6].mxu1  ;;  %793 = sbr.rel (%p1116_p11) target bundleno = 360 (0x168), region = 62 }
 0x148   : > { %v778_v32 = vadd.f32 %v766_v26, %v336_v24  ;;  %v770_v33 = vadd.f32 %v769_v6, %v716_v31  ;;  %v718_v35 = vpop.f32.mrb[7].mxu1 }
 0x149   : > { %v779_v36 = vadd.f32 %v768_v29, %v337_v27  ;;  %v772_v37 = vadd.f32 %v771_v7, %v718_v35  ;;  %v794_v40 = vld [vmem:[#allocation2] sm:$0xff] (!%p1116_p11) }
 0x14a   : > { %786 = vst [vmem:[#allocation2 + $0x20] sm:$0xff] %v778_v32  ;;  %v780_v38 = vadd.f32 %v770_v33, %v338_v30  ;;  %v820_v45 = vmul.f32 (!%p1116_p11), %v794_v40, %v794_v40  ;;  %v795_v48 = vld [vmem:[#allocation2 + $0x8] sm:$0xff] (!%p1116_p11) }
 0x14b   : > { %787 = vst [vmem:[#allocation2 + $0x28] sm:$0xff] %v779_v36  ;;  %v781_v39 = vadd.f32 %v772_v37, %v339_v34  ;;  %v796_v41 = vld [vmem:[#allocation2 + $0x10] sm:$0xff] (!%p1116_p11)  ;;  %v821_v54 = vmul.f32 (!%p1116_p11), %v795_v48, %v795_v48  ;;  %v1129_v0 = vpack.c.bf16 (!%p1116_p11), %v795_v48, %v794_v40 }
 0x14c   : > { %788 = vst [vmem:[#allocation2 + $0x30] sm:$0xff] %v780_v38  ;;  %v802_v44 = vadd.f32 (!%p1116_p11), %v796_v41, %v794_v40  ;;  %v822_v46 = vmul.f32 (!%p1116_p11), %v796_v41, %v796_v41  ;;  %v797_v49 = vld [vmem:[#allocation2 + $0x18] sm:$0xff] (!%p1116_p11) }
 0x14d   : > { %789 = vst [vmem:[#allocation2 + $0x38] sm:$0xff] %v781_v39  ;;  %v811_v53 = vadd.f32 (!%p1116_p11), %v797_v49, %v795_v48  ;;  %v823_v57 = vmul.f32 (!%p1116_p11), %v797_v49, %v797_v49  ;;  %v1130_v2 = vpack.c.bf16 (!%p1116_p11), %v797_v49, %v796_v41  ;;  %880 = vst [vmem:[%s1474_s2] sm:$0xff] (!%p1116_p11), %v1129_v0 }
 0x14e   : > { %v828_v56 = vadd.f32 %v822_v46, %v820_v45 }
 0x14f   : > { %v837_v63 = vadd.f32 %v823_v57, %v821_v54  ;;  %881 = vst [vmem:[%s1474_s2 + $0x8] sm:$0xff] %v1130_v2 }
 0x151   : > { %v798_v42 = vld [vmem:[#allocation2 + $0x20] sm:$0xff] }
 0x152   : > { %v824_v47 = vmul.f32 %v798_v42, %v798_v42  ;;  %v799_v51 = vld [vmem:[#allocation2 + $0x28] sm:$0xff]  ;;  %v803_v55 = vadd.f32 %v802_v44, %v798_v42 }
 0x153   : > { %v800_v43 = vld [vmem:[#allocation2 + $0x30] sm:$0xff]  ;;  %v825_v58 = vmul.f32 %v799_v51, %v799_v51  ;;  %v812_v59 = vadd.f32 %v811_v53, %v799_v51  ;;  %v1131_v3 = vpack.c.bf16 %v799_v51, %v798_v42 }
 0x154   : > { %v826_v50 = vmul.f32 %v800_v43, %v800_v43  ;;  %v801_v52 = vld [vmem:[#allocation2 + $0x38] sm:$0xff]  ;;  %v804_v61 = vadd.f32 %v803_v55, %v800_v43  ;;  %v829_v62 = vadd.f32 %v828_v56, %v824_v47 }
 0x155   : > { %v827_v60 = vmul.f32 %v801_v52, %v801_v52  ;;  %v813_v1 = vadd.f32 %v812_v59, %v801_v52  ;;  %v1132_v4 = vpack.c.bf16 %v801_v52, %v800_v43  ;;  %v838_v7 = vadd.f32 %v837_v63, %v825_v58  ;;  %882 = vst [vmem:[%s1474_s2 + $0x10] sm:$0xff] %v1131_v3 }
 0x156   : > { %v805_v5 = vrot.slane %v804_v61, 4  ;;  %v830_v6 = vadd.f32 %v829_v62, %v826_v50 }
 0x157   : > { %v814_v8 = vrot.slane %v813_v1, 4  ;;  %883 = vst [vmem:[%s1474_s2 + $0x18] sm:$0xff] %v1132_v4  ;;  %v839_v11 = vadd.f32 %v838_v7, %v827_v60 }
 0x158   : > { %v806_v9 = vadd.f32 %v805_v5, %v804_v61  ;;  %v831_v10 = vrot.slane %v830_v6, 4 }
 0x159   : > { %v815_v13 = vadd.f32 %v814_v8, %v813_v1  ;;  %v840_v16 = vrot.slane %v839_v11, 4 }
 0x15a   : > { %v807_v14 = vrot.slane %v806_v9, 2  ;;  %v832_v15 = vadd.f32 %v831_v10, %v830_v6 }
 0x15b   : > { %v816_v17 = vrot.slane %v815_v13, 2  ;;  %v841_v20 = vadd.f32 %v840_v16, %v839_v11 }
 0x15c   : > { %v808_v18 = vadd.f32 %v807_v14, %v806_v9  ;;  %v833_v19 = vrot.slane %v832_v15, 2 }
 0x15d   : > { %v817_v22 = vadd.f32 %v816_v17, %v815_v13  ;;  %v842_v25 = vrot.slane %v841_v20, 2 }
 0x15e   : > { %v809_v23 = vrot.slane %v808_v18, 1  ;;  %v834_v24 = vadd.f32 %v833_v19, %v832_v15 }
 0x15f   : > { %v818_v26 = vrot.slane %v817_v22, 1  ;;  %v843_v28 = vadd.f32 %v842_v25, %v841_v20 }
 0x160   : > { %v835_v27 = vrot.slane %v834_v24, 1  ;;  %v810_v29 = vadd.f32 %v809_v23, %v808_v18 }
 0x161   : > { %v844_v31 = vrot.slane %v843_v28, 1  ;;  %v819_v32 = vadd.f32 %v818_v26, %v817_v22 }
 0x162   : > { %v836_v30 = vadd.f32 %v835_v27, %v834_v24 }
 0x163   : > { %v845_v34 = vadd.f32 %v844_v31, %v843_v28 }
 0x164   : > { %v850_v33 = vsel %vm849_vm0, %v836_v30, 0.0 }
 0x165   : > { %v852_v35 = vsel %vm848_vm1, %v810_v29, %v850_v33  ;;  %v851_v36 = vsel %vm849_vm0, %v845_v34, 0.0 }
 0x166   : > { %854 = vst [vmem:[%s1475_s3] sm:$0xff] %v852_v35  ;;  %v853_v37 = vsel %vm848_vm1, %v819_v32, %v851_v36 }
 0x167   : > { %855 = vst [vmem:[%s1475_s3 + $0x8] sm:$0xff] %v853_v37 }
 0x168 PF: > { %s14_s16 = sadd.s32 1, %s1303_s16   ;;  %s1476_s12 = smov %s1291_s13 }
 0x169   : > { %p11_p12 = scmp.ge.s32.totalorder %s14_s16, 8   ;;  %s1477_s13 = smov %s1362_s20 }
 0x16a   : > { %s1478_s14 = smov %s1299_s15  ;;  %s1479_s15 = smov %s1481_s17 }
 0x16b   :  { %13 = sbr.rel (!%p11_p12) target bundleno = 3 (0x3), region = 118 }

// kernel: _forward.67
= control target key start
LH: loop header
LB: loop body
LE: loop exit
PB: predicated region body
PF: predicated region fallthrough
CT: control target
= control target key end

     0   :  { %v28_v0 = vlaneseq  ;;  %s156_s0 = inlined_call_operand.vmem [shape: bf16[32,256], index: 0, kind: input, shape index: {}]   ;;  %s157_s1 = inlined_call_operand.vmem [shape: f32[1,256], index: 1, kind: input, shape index: {}]   ;;  %s158_s2 = inlined_call_operand.vmem [shape: f32[1,256], index: 2, kind: input, shape index: {}]   ;;  %s159_s3 = inlined_call_operand.vmem [shape: bf16[32,256], index: 3, kind: output, shape index: {}]  }
   0x1   :  { %v14_v1 = vld [vmem:[%s156_s0] sm:$0xff]  ;;  %v15_v3 = vld [vmem:[%s156_s0 + $0x8] sm:$0xff]  ;;  %v16_v4 = vld [vmem:[%s156_s0 + $0x10] sm:$0xff] }
   0x2   :  { %v29_v2 = vshrl.u32 %v28_v0, 7  ;;  %v17_v5 = vld [vmem:[%s156_s0 + $0x18] sm:$0xff]  ;;  %v18_v6 = vunpack.c.l.bf16 %v14_v1  ;;  %v19_v7 = vunpack.c.h.bf16 %v14_v1  ;;  %v26_v8 = vld [vmem:[%s157_s1] sm:$0x3]  ;;  %v20_v12 = vunpack.c.l.bf16 %v15_v3 }
   0x3   :  { %v46_v9 = vld [vmem:[%s158_s2] sm:$0x3]  ;;  %v21_v13 = vunpack.c.h.bf16 %v15_v3  ;;  %v22_v14 = vunpack.c.l.bf16 %v16_v4  ;;  %v23_v15 = vunpack.c.h.bf16 %v16_v4  ;;  %v24_v16 = vunpack.c.l.bf16 %v17_v5 }
   0x4   :  { %v30_v10 = vsub.s32 0, %v29_v2  ;;  %v34_v11 = vsub.s32 1, %v29_v2  ;;  %v25_v17 = vunpack.c.h.bf16 %v17_v5 }
   0x6   :  { %v31_v18 = vrot.slane %v26_v8, %v30_v10  ;;  %v35_v19 = vrot.slane %v26_v8, %v34_v11  ;;  %v51_v20 = vrot.slane %v46_v9, %v30_v10  ;;  %v55_v21 = vrot.slane %v46_v9, %v34_v11 }
   0x8   :  { %v38_v22 = vmul.f32 %v31_v18, %v18_v6  ;;  %v39_v23 = vmul.f32 %v35_v19, %v19_v7  ;;  %v40_v24 = vmul.f32 %v31_v18, %v20_v12  ;;  %v41_v25 = vmul.f32 %v35_v19, %v21_v13 }
   0x9   :  { %v42_v26 = vmul.f32 %v31_v18, %v22_v14  ;;  %v43_v27 = vmul.f32 %v35_v19, %v23_v15  ;;  %v44_v28 = vmul.f32 %v31_v18, %v24_v16  ;;  %v45_v29 = vmul.f32 %v35_v19, %v25_v17 }
   0xa   :  { %v58_v30 = vadd.f32 %v51_v20, %v38_v22  ;;  %v59_v31 = vadd.f32 %v55_v21, %v39_v23  ;;  %v60_v32 = vadd.f32 %v51_v20, %v40_v24  ;;  %v61_v33 = vadd.f32 %v55_v21, %v41_v25 }
   0xb   :  { %v62_v34 = vadd.f32 %v51_v20, %v42_v26  ;;  %v63_v35 = vadd.f32 %v55_v21, %v43_v27  ;;  %v64_v36 = vadd.f32 %v51_v20, %v44_v28  ;;  %v65_v37 = vadd.f32 %v55_v21, %v45_v29 }
   0xc   :  { %v102_v38 = vpack.c.bf16 %v59_v31, %v58_v30  ;;  %v103_v39 = vpack.c.bf16 %v61_v33, %v60_v32 }
   0xd   :  { %v104_v40 = vpack.c.bf16 %v63_v35, %v62_v34  ;;  %v105_v41 = vpack.c.bf16 %v65_v37, %v64_v36 }
   0xe   :  { %90 = vst [vmem:[%s159_s3] sm:$0xff] %v102_v38  ;;  %91 = vst [vmem:[%s159_s3 + $0x8] sm:$0xff] %v103_v39 }
   0xf   :  { %92 = vst [vmem:[%s159_s3 + $0x10] sm:$0xff] %v104_v40  ;;  %93 = vst [vmem:[%s159_s3 + $0x18] sm:$0xff] %v105_v41 }

// kernel: _forward.66
= control target key start
LH: loop header
LB: loop body
LE: loop exit
PB: predicated region body
PF: predicated region fallthrough
CT: control target
= control target key end

     0   :  { %v385_v1 = vmov 0   ;;  %v270_v57 = vlaneseq  ;;  %s478_s1 = inlined_call_operand.vmem [shape: bf16[128,256], index: 1, kind: input, shape index: {}]   ;;  %s479_s0 = inlined_call_operand.vmem [shape: bf16[32,128], index: 0, kind: input, shape index: {}]   ;;  %s480_s2 = inlined_call_operand.vmem [shape: bf16[32,256], index: 2, kind: output, shape index: {0}]   ;;  %s481_s3 = inlined_call_operand.vmem [shape: f32[8,256], index: 3, kind: output, shape index: {1}]  }
   0x1   :  { %v359_v0 = vld [vmem:[%s478_s1 + $0x4] ss:$8 sps:$4 sm:$0xff]   ;;  %178 = vmatprep.mubr.bf16.mxu0 %v385_v1  ;;  %188 = vmatprep.mubr.bf16.mxu1 %v385_v1  ;;  %v361_v2 = vld [vmem:[%s478_s1] ss:$8 sps:$4 sm:$0xff]   ;;  %v362_v3 = vld [vmem:[%s478_s1 + $0x14] ss:$8 sps:$4 sm:$0xff]  }
   0x2   :  { %146 = vmatprep.subr.bf16.mxu0 %v359_v0  ;;  %342 = vmatprep.subr.bf16.mxu1 %v359_v0  ;;  %v364_v4 = vld [vmem:[%s478_s1 + $0x10] ss:$8 sps:$4 sm:$0xff]   ;;  %v365_v5 = vld [vmem:[%s478_s1 + $0x24] ss:$8 sps:$4 sm:$0xff]   ;;  %v367_v6 = vld [vmem:[%s478_s1 + $0x20] ss:$8 sps:$4 sm:$0xff]  }
   0x3   :  { %147 = vmatpush1.bf16.msra.mxu0 %v361_v2  ;;  %350 = vmatpush1.bf16.msra.mxu1 %v361_v2  ;;  %v368_v7 = vld [vmem:[%s478_s1 + $0x34] ss:$8 sps:$4 sm:$0xff]   ;;  %v370_v8 = vld [vmem:[%s478_s1 + $0x30] ss:$8 sps:$4 sm:$0xff]   ;;  %v371_v9 = vld [vmem:[%s478_s1 + $0x44] ss:$8 sps:$4 sm:$0xff]  }
   0x4   :  { %148 = vmatprep.subr.bf16.mxu0 %v362_v3  ;;  %343 = vmatprep.subr.bf16.mxu1 %v362_v3  ;;  %v373_v10 = vld [vmem:[%s478_s1 + $0x40] ss:$8 sps:$4 sm:$0xff]   ;;  %v374_v11 = vld [vmem:[%s478_s1 + $0x54] ss:$8 sps:$4 sm:$0xff]   ;;  %v376_v12 = vld [vmem:[%s478_s1 + $0x50] ss:$8 sps:$4 sm:$0xff]  }
   0x5   :  { %v377_v13 = vld [vmem:[%s478_s1 + $0x64] ss:$8 sps:$4 sm:$0xff]   ;;  %v379_v14 = vld [vmem:[%s478_s1 + $0x60] ss:$8 sps:$4 sm:$0xff]   ;;  %v380_v15 = vld [vmem:[%s478_s1 + $0x74] ss:$8 sps:$4 sm:$0xff]  }
   0x6   :  { %v382_v16 = vld [vmem:[%s478_s1 + $0x70] ss:$8 sps:$4 sm:$0xff]   ;;  %v383_v17 = vld [vmem:[%s479_s0] sm:$0xff]   ;;  %v384_v18 = vld [vmem:[%s479_s0 + $0x8] sm:$0xff]   ;;  %v271_v2 = vshrl.u32 %v270_v57, 7 }
   0x7   :  { %149 = vmatpush1.bf16.msra.mxu0 %v364_v4  ;;  %351 = vmatpush1.bf16.msra.mxu1 %v364_v4 }
   0x8   :  { %150 = vmatprep.subr.bf16.mxu0 %v365_v5  ;;  %344 = vmatprep.subr.bf16.mxu1 %v365_v5  ;;  %vm273_vm0 = vcmp.eq.s32.totalorder %v271_v2, 1  ;;  %vm272_vm1 = vcmp.eq.s32.totalorder %v271_v2, 0 }
   0xb   :  { %151 = vmatpush1.bf16.msra.mxu0 %v367_v6  ;;  %352 = vmatpush1.bf16.msra.mxu1 %v367_v6 }
   0xc   :  { %152 = vmatprep.subr.bf16.mxu0 %v368_v7  ;;  %345 = vmatprep.subr.bf16.mxu1 %v368_v7 }
   0xf   :  { %153 = vmatpush1.bf16.msra.mxu0 %v370_v8  ;;  %353 = vmatpush1.bf16.msra.mxu1 %v370_v8 }
  0x10   :  { %154 = vmatprep.subr.bf16.mxu0 %v371_v9  ;;  %346 = vmatprep.subr.bf16.mxu1 %v371_v9 }
  0x13   :  { %155 = vmatpush1.bf16.msra.mxu0 %v373_v10  ;;  %354 = vmatpush1.bf16.msra.mxu1 %v373_v10 }
  0x14   :  { %156 = vmatprep.subr.bf16.mxu0 %v374_v11  ;;  %347 = vmatprep.subr.bf16.mxu1 %v374_v11 }
  0x17   :  { %157 = vmatpush1.bf16.msra.mxu0 %v376_v12  ;;  %355 = vmatpush1.bf16.msra.mxu1 %v376_v12 }
  0x18   :  { %158 = vmatprep.subr.bf16.mxu0 %v377_v13  ;;  %348 = vmatprep.subr.bf16.mxu1 %v377_v13 }
  0x1b   :  { %159 = vmatpush1.bf16.msra.mxu0 %v379_v14  ;;  %356 = vmatpush1.bf16.msra.mxu1 %v379_v14 }
  0x1c   :  { %160 = vmatprep.subr.bf16.mxu0 %v380_v15  ;;  %349 = vmatprep.subr.bf16.mxu1 %v380_v15 }
  0x1f   :  { %161 = vmatpush1.bf16.msra.mxu0 %v382_v16  ;;  %357 = vmatpush1.bf16.msra.mxu1 %v382_v16 }
  0x22   :  { %179 = vmatmul.mubr.bf16.vlgmr.msra.gmra.mrb[0].mxu0 %v383_v17  ;;  %189 = vmatmul.mubr.bf16.vlgmr.msra.gmra.mrb[0].mxu1 %v384_v18 }
  0xf5   :  { %v180_v19 = vpop.f32.mrb[0].mxu0  ;;  %v190_v20 = vpop.f32.mrb[0].mxu1 }
  0xf6   :  { %v182_v21 = vpop.f32.mrb[1].mxu0  ;;  %v192_v22 = vpop.f32.mrb[1].mxu1  ;;  %v244_v23 = vmul.f32 %v180_v19, %v180_v19  ;;  %v248_v29 = vmul.f32 %v190_v20, %v190_v20 }
  0xf7   :  { %v338_v24 = vpack.c.bf16 %v182_v21, %v180_v19  ;;  %v184_v25 = vpop.f32.mrb[2].mxu0  ;;  %v340_v26 = vpack.c.bf16 %v192_v22, %v190_v20  ;;  %v194_v27 = vpop.f32.mrb[2].mxu1  ;;  %v245_v28 = vmul.f32 %v182_v21, %v182_v21  ;;  %v249_v34 = vmul.f32 %v192_v22, %v192_v22 }
  0xf8   :  { %v226_v30 = vadd.f32 %v184_v25, %v180_v19  ;;  %v246_v31 = vmul.f32 %v184_v25, %v184_v25  ;;  %v186_v32 = vpop.f32.mrb[3].mxu0  ;;  %v196_v33 = vpop.f32.mrb[3].mxu1  ;;  %v250_v44 = vmul.f32 %v194_v27, %v194_v27 }
  0xf9   :  { %304 = vst [vmem:[%s480_s2] sm:$0xff] %v338_v24  ;;  %306 = vst [vmem:[%s480_s2 + $0x10] sm:$0xff] %v340_v26  ;;  %v235_v35 = vadd.f32 %v186_v32, %v182_v21  ;;  %v247_v36 = vmul.f32 %v186_v32, %v186_v32  ;;  %v339_v37 = vpack.c.bf16 %v186_v32, %v184_v25 }
  0xfa   :  { %v252_v38 = vadd.f32 %v246_v31, %v244_v23  ;;  %v227_v39 = vadd.f32 %v226_v30, %v190_v20  ;;  %v341_v40 = vpack.c.bf16 %v196_v33, %v194_v27  ;;  %v251_v47 = vmul.f32 %v196_v33, %v196_v33 }
  0xfb   :  { %v261_v41 = vadd.f32 %v247_v36, %v245_v28  ;;  %305 = vst [vmem:[%s480_s2 + $0x8] sm:$0xff] %v339_v37  ;;  %v236_v42 = vadd.f32 %v235_v35, %v192_v22 }
  0xfc   :  { %v228_v43 = vadd.f32 %v227_v39, %v194_v27  ;;  %v253_v45 = vadd.f32 %v252_v38, %v248_v29  ;;  %307 = vst [vmem:[%s480_s2 + $0x18] sm:$0xff] %v341_v40 }
  0xfd   :  { %v237_v46 = vadd.f32 %v236_v42, %v196_v33  ;;  %v262_v48 = vadd.f32 %v261_v41, %v249_v34 }
  0xfe   :  { %v229_v49 = vrot.slane %v228_v43, 4  ;;  %v254_v50 = vadd.f32 %v253_v45, %v250_v44 }
  0xff   :  { %v238_v51 = vrot.slane %v237_v46, 4  ;;  %v263_v52 = vadd.f32 %v262_v48, %v251_v47 }
 0x100   :  { %v230_v53 = vadd.f32 %v229_v49, %v228_v43  ;;  %v255_v54 = vrot.slane %v254_v50, 4 }
 0x101   :  { %v239_v55 = vadd.f32 %v238_v51, %v237_v46  ;;  %v264_v56 = vrot.slane %v263_v52, 4 }
 0x102   :  { %v231_v58 = vrot.slane %v230_v53, 2  ;;  %v256_v59 = vadd.f32 %v255_v54, %v254_v50 }
 0x103   :  { %v240_v60 = vrot.slane %v239_v55, 2  ;;  %v265_v61 = vadd.f32 %v264_v56, %v263_v52 }
 0x104   :  { %v232_v62 = vadd.f32 %v231_v58, %v230_v53  ;;  %v257_v63 = vrot.slane %v256_v59, 2 }
 0x105   :  { %v241_v0 = vadd.f32 %v240_v60, %v239_v55  ;;  %v266_v1 = vrot.slane %v265_v61, 2 }
 0x106   :  { %v258_v3 = vadd.f32 %v257_v63, %v256_v59  ;;  %v233_v4 = vrot.slane %v232_v62, 1 }
 0x107   :  { %v267_v5 = vadd.f32 %v266_v1, %v265_v61  ;;  %v242_v7 = vrot.slane %v241_v0, 1 }
 0x108   :  { %v259_v6 = vrot.slane %v258_v3, 1  ;;  %v234_v10 = vadd.f32 %v233_v4, %v232_v62 }
 0x109   :  { %v268_v8 = vrot.slane %v267_v5, 1  ;;  %v243_v12 = vadd.f32 %v242_v7, %v241_v0 }
 0x10a   :  { %v260_v9 = vadd.f32 %v259_v6, %v258_v3 }
 0x10b   :  { %v269_v11 = vadd.f32 %v268_v8, %v267_v5 }
 0x10c   :  { %v274_v13 = vsel %vm273_vm0, %v260_v9, 0.0 }
 0x10d   :  { %v275_v14 = vsel %vm273_vm0, %v269_v11, 0.0  ;;  %v276_v15 = vsel %vm272_vm1, %v234_v10, %v274_v13 }
 0x10e   :  { %v277_v16 = vsel %vm272_vm1, %v243_v12, %v275_v14  ;;  %278 = vst [vmem:[%s481_s3] sm:$0xff] %v276_v15 }
 0x10f   :  { %279 = vst [vmem:[%s481_s3 + $0x8] sm:$0xff] %v277_v16 }

// kernel: _forward.69
= control target key start
LH: loop header
LB: loop body
LE: loop exit
PB: predicated region body
PF: predicated region fallthrough
CT: control target
= control target key end

     0   :  { %v31_v0 = vlaneseq  ;;  %s204_s0 = inlined_call_operand.vmem [shape: bf16[32,256], index: 0, kind: input, shape index: {}]   ;;  %s205_s1 = inlined_call_operand.vmem [shape: bf16[32,256], index: 1, kind: input, shape index: {}]   ;;  %s206_s2 = inlined_call_operand.vmem [shape: f32[1,256], index: 2, kind: input, shape index: {}]   ;;  %s207_s3 = inlined_call_operand.vmem [shape: f32[1,256], index: 3, kind: input, shape index: {}]   ;;  %s208_s4 = inlined_call_operand.vmem [shape: bf16[32,256], index: 4, kind: output, shape index: {}]  }
   0x1   :  { %v17_v1 = vld [vmem:[%s204_s0] sm:$0xff]  ;;  %v18_v7 = vld [vmem:[%s204_s0 + $0x8] sm:$0xff]  ;;  %v19_v14 = vld [vmem:[%s204_s0 + $0x10] sm:$0xff] }
   0x2   :  { %v29_v2 = vld [vmem:[%s206_s2] sm:$0x3]  ;;  %v21_v3 = vunpack.c.l.bf16 %v17_v1  ;;  %v22_v4 = vunpack.c.h.bf16 %v17_v1  ;;  %v32_v5 = vshrl.u32 %v31_v0, 7  ;;  %v70_v8 = vld [vmem:[%s205_s1 + $0x8] sm:$0xff]  ;;  %v23_v12 = vunpack.c.l.bf16 %v18_v7  ;;  %v71_v15 = vld [vmem:[%s205_s1 + $0x10] sm:$0xff] }
   0x3   :  { %v69_v6 = vld [vmem:[%s205_s1] sm:$0xff]  ;;  %v24_v13 = vunpack.c.h.bf16 %v18_v7  ;;  %v75_v18 = vunpack.c.l.bf16 %v70_v8  ;;  %v76_v19 = vunpack.c.h.bf16 %v70_v8  ;;  %v20_v20 = vld [vmem:[%s204_s0 + $0x18] sm:$0xff]  ;;  %v25_v22 = vunpack.c.l.bf16 %v19_v14 }
   0x4   :  { %v49_v9 = vld [vmem:[%s207_s3] sm:$0x3]  ;;  %v73_v10 = vunpack.c.l.bf16 %v69_v6  ;;  %v74_v11 = vunpack.c.h.bf16 %v69_v6  ;;  %v33_v16 = vsub.s32 0, %v32_v5  ;;  %v37_v17 = vsub.s32 1, %v32_v5  ;;  %v72_v21 = vld [vmem:[%s205_s1 + $0x18] sm:$0xff] }
   0x5   :  { %v26_v23 = vunpack.c.h.bf16 %v19_v14  ;;  %v77_v24 = vunpack.c.l.bf16 %v71_v15  ;;  %v78_v25 = vunpack.c.h.bf16 %v71_v15  ;;  %v27_v30 = vunpack.c.l.bf16 %v20_v20 }
   0x6   :  { %v34_v26 = vrot.slane %v29_v2, %v33_v16  ;;  %v38_v27 = vrot.slane %v29_v2, %v37_v17  ;;  %v54_v28 = vrot.slane %v49_v9, %v33_v16  ;;  %v58_v29 = vrot.slane %v49_v9, %v37_v17 }
   0x7   :  { %v28_v31 = vunpack.c.h.bf16 %v20_v20  ;;  %v79_v32 = vunpack.c.l.bf16 %v72_v21  ;;  %v80_v33 = vunpack.c.h.bf16 %v72_v21 }
   0x8   :  { %v41_v34 = vmul.f32 %v34_v26, %v21_v3  ;;  %v42_v35 = vmul.f32 %v38_v27, %v22_v4  ;;  %v43_v36 = vmul.f32 %v34_v26, %v23_v12  ;;  %v44_v37 = vmul.f32 %v38_v27, %v24_v13 }
   0x9   :  { %v45_v38 = vmul.f32 %v34_v26, %v25_v22  ;;  %v46_v39 = vmul.f32 %v38_v27, %v26_v23  ;;  %v47_v40 = vmul.f32 %v34_v26, %v27_v30  ;;  %v48_v41 = vmul.f32 %v38_v27, %v28_v31 }
   0xa   :  { %v61_v42 = vadd.f32 %v54_v28, %v41_v34  ;;  %v62_v43 = vadd.f32 %v58_v29, %v42_v35  ;;  %v63_v44 = vadd.f32 %v54_v28, %v43_v36  ;;  %v64_v45 = vadd.f32 %v58_v29, %v44_v37 }
   0xb   :  { %v65_v46 = vadd.f32 %v54_v28, %v45_v38  ;;  %v66_v47 = vadd.f32 %v58_v29, %v46_v39  ;;  %v67_v48 = vadd.f32 %v54_v28, %v47_v40  ;;  %v68_v49 = vadd.f32 %v58_v29, %v48_v41 }
   0xc   :  { %v81_v50 = vadd.f32 %v73_v10, %v61_v42  ;;  %v82_v51 = vadd.f32 %v74_v11, %v62_v43  ;;  %v83_v52 = vadd.f32 %v75_v18, %v63_v44  ;;  %v84_v53 = vadd.f32 %v76_v19, %v64_v45 }
   0xd   :  { %v85_v54 = vadd.f32 %v77_v24, %v65_v46  ;;  %v86_v55 = vadd.f32 %v78_v25, %v66_v47  ;;  %v87_v56 = vadd.f32 %v79_v32, %v67_v48  ;;  %v88_v57 = vadd.f32 %v80_v33, %v68_v49 }
   0xe   :  { %v89_v58 = vmax.f32 %v81_v50, 0.0  ;;  %v90_v59 = vmax.f32 %v82_v51, 0.0  ;;  %v91_v60 = vmax.f32 %v83_v52, 0.0  ;;  %v92_v61 = vmax.f32 %v84_v53, 0.0 }
   0xf   :  { %v93_v62 = vmax.f32 %v85_v54, 0.0  ;;  %v94_v63 = vmax.f32 %v86_v55, 0.0  ;;  %v95_v0 = vmax.f32 %v87_v56, 0.0  ;;  %v96_v1 = vmax.f32 %v88_v57, 0.0 }
  0x10   :  { %v133_v2 = vpack.c.bf16 %v90_v59, %v89_v58  ;;  %v134_v3 = vpack.c.bf16 %v92_v61, %v91_v60 }
  0x11   :  { %v135_v4 = vpack.c.bf16 %v94_v63, %v93_v62  ;;  %v136_v5 = vpack.c.bf16 %v96_v1, %v95_v0 }
  0x12   :  { %121 = vst [vmem:[%s208_s4] sm:$0xff] %v133_v2  ;;  %122 = vst [vmem:[%s208_s4 + $0x8] sm:$0xff] %v134_v3 }
  0x13   :  { %123 = vst [vmem:[%s208_s4 + $0x10] sm:$0xff] %v135_v4  ;;  %124 = vst [vmem:[%s208_s4 + $0x18] sm:$0xff] %v136_v5 }

// kernel: _forward.74
= control target key start
LH: loop header
LB: loop body
LE: loop exit
PB: predicated region body
PF: predicated region fallthrough
CT: control target
= control target key end

     0   :  { %s1640_s12 = smov 0   ;;  %s1642_s13 = smov 0   ;;  %s1829_s0 = inlined_call_operand.vmem [shape: bf16[8,2304], index: 0, kind: input, shape index: {}]   ;;  %s1830_s1 = inlined_call_operand.vmem [shape: bf16[2304,512], index: 1, kind: input, shape index: {}]   ;;  %s1831_s2 = inlined_call_operand.vmem [shape: bf16[8,512], index: 2, kind: output, shape index: {0}]   ;;  %s1832_s3 = inlined_call_operand.vmem [shape: f32[8,512], index: 3, kind: output, shape index: {1}]  }
   0x1   :  { %s1644_s14 = smov 0  }
   0x2 LB: > { %s26_s15 = sadd.s32 1, %s1612_s13  ;;  %p1305_p0 = scmp.ge.s32.totalorder %s1616_s14, 1  ;;  %s1616_s14 = sphi %s1644_s14, %s14_s14   ;;  %s1612_s13 = sphi %s1642_s13, %s1834_s13   ;;  %s1608_s12 = sphi %s1640_s12, %s1833_s12  }
   0x3   : > { %p27_p1 = scmp.ge.s32.totalorder %s26_s15, 6  ;;  %p189_p2 = scmp.lt.s32.totalorder %s1616_s14, 7 }
   0x5   : > { %s1836_s15 = smov (%p27_p1, %s26_s15), 0  ;;  %p190_p3 = pnand %p1305_p0, %p189_p2 }
   0x6   : > { %s240_s16 = smul.u32 (!%p190_p3), 3, %s1608_s12  ;;  %p1309_p6 = scmp.ne.s32.totalorder (!%p190_p3), %s1608_s12, 0 }
   0x7   : > { %193 = sbr.rel (%p190_p3) target bundleno = 364 (0x16c), region = 28 }
   0x8   : > { %s250_s17 = smul.u32 (!%p190_p3), 48, %s1608_s12  ;;  %p243_p4 = scmp.lt.s32.totalorder (!%p190_p3), %s240_s16, 17 }
   0xa   : > { %p252_p5 = scmp.lt.s32.totalorder (!%p190_p3), %s250_s17, 287 }
   0xe   : > { %s1838_s16 = smov (!%p243_p4, %s240_s16), 17  ;;  %s1840_s17 = smov (!%p252_p5, %s250_s17), 287 }
   0xf   : > { %s1306_s18 = sshll.u32 %s1838_s16, 2  ;;  %s1418_s22 = sshll.u32 %s1840_s17, 4  ;;  %v1618_v0 = vmov (!%p1309_p6), 0.0  }
  0x10   : > { %s1665_s21 = scalar_lea.vmem %s1829_s0, %s1306_s18  ;;  %s1670_s25 = scalar_lea.vmem %s1830_s1, %s1418_s22  ;;  %287 = vst [vmem:[#allocation2] sm:$0xff] (!%p1309_p6), %v1618_v0  ;;  %288 = vst [vmem:[#allocation2 + $0x8] sm:$0xff] (!%p1309_p6), %v1618_v0 }
  0x11   : > { %286 = sbr.rel (%p1309_p6) target bundleno = 24 (0x18), region = 32  ;;  %289 = vst [vmem:[#allocation2 + $0x10] sm:$0xff] (!%p1309_p6), %v1618_v0  ;;  %290 = vst [vmem:[#allocation2 + $0x18] sm:$0xff] (!%p1309_p6), %v1618_v0 }
  0x18 PF: > { %v1447_v1 = vld [vmem:[%s1670_s25 + $0x4] ss:$16 sps:$4 sm:$0xff]   ;;  %v1619_v3 = vmov 0   ;;  %v1451_v4 = vld [vmem:[%s1670_s25] ss:$16 sps:$4 sm:$0xff]   ;;  %p1409_p7 = scmp.ne.s32.totalorder %s1608_s12, 5 }
  0x19   : > { %v1449_v2 = vld [vmem:[%s1670_s25 + $0x204] ss:$16 sps:$4 sm:$0xff]   ;;  %957 = vmatprep.mubr.bf16.mxu1 %v1619_v3  ;;  %884 = vmatprep.subr.bf16.mxu0 %v1447_v1  ;;  %v1452_v5 = vld [vmem:[%s1670_s25 + $0x200] ss:$16 sps:$4 sm:$0xff]   ;;  %v1500_v35 = vld [vmem:[%s1670_s25 + $0xc] ss:$16 sps:$4 sm:$0xff]  }
  0x1a   : > { %925 = vmatprep.subr.bf16.mxu1 %v1449_v2  ;;  %v1453_v6 = vld [vmem:[%s1670_s25 + $0x24] ss:$16 sps:$4 sm:$0xff]   ;;  %885 = vmatpush1.bf16.msra.mxu0 %v1451_v4  ;;  %v1457_v8 = vld [vmem:[%s1670_s25 + $0x20] ss:$16 sps:$4 sm:$0xff]   ;;  %v1709_v36 = vld [vmem:[%s1665_s21 + $0x8] ss:$0 sps:$4 sm:$0xff]  }
  0x1b   : > { %926 = vmatpush1.bf16.msra.mxu1 %v1452_v5  ;;  %v1455_v7 = vld [vmem:[%s1670_s25 + $0x224] ss:$16 sps:$4 sm:$0xff]   ;;  %886 = vmatprep.subr.bf16.mxu0 %v1453_v6  ;;  %v1458_v9 = vld [vmem:[%s1670_s25 + $0x220] ss:$16 sps:$4 sm:$0xff]   ;;  %v1498_v37 = vld [vmem:[%s1670_s25 + $0x8] ss:$16 sps:$4 sm:$0xff]  }
  0x1c   : > { %927 = vmatprep.subr.bf16.mxu1 %v1455_v7  ;;  %v1459_v10 = vld [vmem:[%s1670_s25 + $0x44] ss:$16 sps:$4 sm:$0xff]   ;;  %v1463_v12 = vld [vmem:[%s1670_s25 + $0x40] ss:$16 sps:$4 sm:$0xff]   ;;  %v1506_v40 = vld [vmem:[%s1670_s25 + $0x2c] ss:$16 sps:$4 sm:$0xff]  }
  0x1d   : > { %v1461_v11 = vld [vmem:[%s1670_s25 + $0x244] ss:$16 sps:$4 sm:$0xff]   ;;  %v1464_v13 = vld [vmem:[%s1670_s25 + $0x240] ss:$16 sps:$4 sm:$0xff]   ;;  %v1504_v41 = vld [vmem:[%s1670_s25 + $0x28] ss:$16 sps:$4 sm:$0xff]  }
  0x1e   : > { %887 = vmatpush1.bf16.msra.mxu0 %v1457_v8  ;;  %v1465_v14 = vld [vmem:[%s1670_s25 + $0x64] ss:$16 sps:$4 sm:$0xff]   ;;  %v1469_v16 = vld [vmem:[%s1670_s25 + $0x60] ss:$16 sps:$4 sm:$0xff]   ;;  %v1512_v44 = vld [vmem:[%s1670_s25 + $0x4c] ss:$16 sps:$4 sm:$0xff]  }
  0x1f   : > { %928 = vmatpush1.bf16.msra.mxu1 %v1458_v9  ;;  %888 = vmatprep.subr.bf16.mxu0 %v1459_v10  ;;  %v1467_v15 = vld [vmem:[%s1670_s25 + $0x264] ss:$16 sps:$4 sm:$0xff]   ;;  %v1470_v17 = vld [vmem:[%s1670_s25 + $0x260] ss:$16 sps:$4 sm:$0xff]   ;;  %v1510_v45 = vld [vmem:[%s1670_s25 + $0x48] ss:$16 sps:$4 sm:$0xff]  }
  0x20   : > { %929 = vmatprep.subr.bf16.mxu1 %v1461_v11  ;;  %v1471_v18 = vld [vmem:[%s1670_s25 + $0x84] ss:$16 sps:$4 sm:$0xff]   ;;  %v1475_v20 = vld [vmem:[%s1670_s25 + $0x80] ss:$16 sps:$4 sm:$0xff]   ;;  %v1518_v48 = vld [vmem:[%s1670_s25 + $0x6c] ss:$16 sps:$4 sm:$0xff]  }
  0x21   : > { %v1473_v19 = vld [vmem:[%s1670_s25 + $0x284] ss:$16 sps:$4 sm:$0xff]   ;;  %v1476_v21 = vld [vmem:[%s1670_s25 + $0x280] ss:$16 sps:$4 sm:$0xff]   ;;  %v1516_v49 = vld [vmem:[%s1670_s25 + $0x68] ss:$16 sps:$4 sm:$0xff]  }
  0x22   : > { %889 = vmatpush1.bf16.msra.mxu0 %v1463_v12  ;;  %v1477_v22 = vld [vmem:[%s1670_s25 + $0xa4] ss:$16 sps:$4 sm:$0xff]   ;;  %v1481_v24 = vld [vmem:[%s1670_s25 + $0xa0] ss:$16 sps:$4 sm:$0xff]   ;;  %v1524_v54 = vld [vmem:[%s1670_s25 + $0x8c] ss:$16 sps:$4 sm:$0xff]  }
  0x23   : > { %930 = vmatpush1.bf16.msra.mxu1 %v1464_v13  ;;  %890 = vmatprep.subr.bf16.mxu0 %v1465_v14  ;;  %v1479_v23 = vld [vmem:[%s1670_s25 + $0x2a4] ss:$16 sps:$4 sm:$0xff]   ;;  %v1482_v25 = vld [vmem:[%s1670_s25 + $0x2a0] ss:$16 sps:$4 sm:$0xff]   ;;  %v1522_v55 = vld [vmem:[%s1670_s25 + $0x88] ss:$16 sps:$4 sm:$0xff]  }
  0x24   : > { %931 = vmatprep.subr.bf16.mxu1 %v1467_v15  ;;  %v1483_v26 = vld [vmem:[%s1670_s25 + $0xc4] ss:$16 sps:$4 sm:$0xff]   ;;  %v1487_v28 = vld [vmem:[%s1670_s25 + $0xc0] ss:$16 sps:$4 sm:$0xff]   ;;  %v1530_v58 = vld [vmem:[%s1670_s25 + $0xac] ss:$16 sps:$4 sm:$0xff]  }
  0x25   : > { %v1485_v27 = vld [vmem:[%s1670_s25 + $0x2c4] ss:$16 sps:$4 sm:$0xff]   ;;  %v1488_v29 = vld [vmem:[%s1670_s25 + $0x2c0] ss:$16 sps:$4 sm:$0xff]   ;;  %v1528_v59 = vld [vmem:[%s1670_s25 + $0xa8] ss:$16 sps:$4 sm:$0xff]  }
  0x26   : > { %891 = vmatpush1.bf16.msra.mxu0 %v1469_v16  ;;  %v1489_v30 = vld [vmem:[%s1670_s25 + $0xe4] ss:$16 sps:$4 sm:$0xff]   ;;  %v1493_v32 = vld [vmem:[%s1670_s25 + $0xe0] ss:$16 sps:$4 sm:$0xff]   ;;  %v1536_v62 = vld [vmem:[%s1670_s25 + $0xcc] ss:$16 sps:$4 sm:$0xff]  }
  0x27   : > { %932 = vmatpush1.bf16.msra.mxu1 %v1470_v17  ;;  %892 = vmatprep.subr.bf16.mxu0 %v1471_v18  ;;  %v1491_v31 = vld [vmem:[%s1670_s25 + $0x2e4] ss:$16 sps:$4 sm:$0xff]   ;;  %v1494_v33 = vld [vmem:[%s1670_s25 + $0x2e0] ss:$16 sps:$4 sm:$0xff]   ;;  %v1534_v63 = vld [vmem:[%s1670_s25 + $0xc8] ss:$16 sps:$4 sm:$0xff]  }
  0x28   : > { %933 = vmatprep.subr.bf16.mxu1 %v1473_v19  ;;  %v1495_v34 = vld [vmem:[%s1670_s25 + $0x104] ss:$16 sps:$4 sm:$0xff]   ;;  %v1501_v38 = vld [vmem:[%s1670_s25 + $0x100] ss:$16 sps:$4 sm:$0xff]   ;;  %v1542_v2 = vld [vmem:[%s1670_s25 + $0xec] ss:$16 sps:$4 sm:$0xff]  }
  0x29   : > { %v1502_v39 = vld [vmem:[%s1670_s25 + $0x124] ss:$16 sps:$4 sm:$0xff]   ;;  %v1507_v42 = vld [vmem:[%s1670_s25 + $0x120] ss:$16 sps:$4 sm:$0xff]   ;;  %v1540_v4 = vld [vmem:[%s1670_s25 + $0xe8] ss:$16 sps:$4 sm:$0xff]  }
  0x2a   : > { %893 = vmatpush1.bf16.msra.mxu0 %v1475_v20  ;;  %v1508_v43 = vld [vmem:[%s1670_s25 + $0x144] ss:$16 sps:$4 sm:$0xff]   ;;  %v1513_v46 = vld [vmem:[%s1670_s25 + $0x140] ss:$16 sps:$4 sm:$0xff]   ;;  %v1548_v6 = vld [vmem:[%s1670_s25 + $0x10c] ss:$16 sps:$4 sm:$0xff]  }
  0x2b   : > { %934 = vmatpush1.bf16.msra.mxu1 %v1476_v21  ;;  %894 = vmatprep.subr.bf16.mxu0 %v1477_v22  ;;  %v1514_v47 = vld [vmem:[%s1670_s25 + $0x164] ss:$16 sps:$4 sm:$0xff]   ;;  %v1519_v51 = vld [vmem:[%s1670_s25 + $0x160] ss:$16 sps:$4 sm:$0xff]   ;;  %v1551_v7 = vld [vmem:[%s1670_s25 + $0x20c] ss:$16 sps:$4 sm:$0xff]  }
  0x2c   : > { %935 = vmatprep.subr.bf16.mxu1 %v1479_v23  ;;  %v295_v50 = vld [vmem:[%s1665_s21] sm:$0xff]  ;;  %v1546_v9 = vld [vmem:[%s1670_s25 + $0x108] ss:$16 sps:$4 sm:$0xff]   ;;  %v1554_v11 = vld [vmem:[%s1670_s25 + $0x12c] ss:$16 sps:$4 sm:$0xff]  }
  0x2d   : > { %v1520_v52 = vld [vmem:[%s1670_s25 + $0x184] ss:$16 sps:$4 sm:$0xff]   ;;  %v1311_v53 = vcombine.high %v295_v50, %v295_v50  ;;  %v1525_v56 = vld [vmem:[%s1670_s25 + $0x180] ss:$16 sps:$4 sm:$0xff]   ;;  %v1745_v8 = vcombine.low %v295_v50, %v295_v50  ;;  %v1549_v10 = vld [vmem:[%s1670_s25 + $0x208] ss:$16 sps:$4 sm:$0xff]  }
  0x2e   : > { %895 = vmatpush1.bf16.msra.mxu0 %v1481_v24  ;;  %v1526_v57 = vld [vmem:[%s1670_s25 + $0x1a4] ss:$16 sps:$4 sm:$0xff]   ;;  %v1531_v60 = vld [vmem:[%s1670_s25 + $0x1a0] ss:$16 sps:$4 sm:$0xff]   ;;  %v1557_v12 = vld [vmem:[%s1670_s25 + $0x22c] ss:$16 sps:$4 sm:$0xff]  }
  0x2f   : > { %936 = vmatpush1.bf16.msra.mxu1 %v1482_v25  ;;  %896 = vmatprep.subr.bf16.mxu0 %v1483_v26  ;;  %v1532_v61 = vld [vmem:[%s1670_s25 + $0x1c4] ss:$16 sps:$4 sm:$0xff]   ;;  %v1537_v0 = vld [vmem:[%s1670_s25 + $0x1c0] ss:$16 sps:$4 sm:$0xff]   ;;  %v1552_v13 = vld [vmem:[%s1670_s25 + $0x128] ss:$16 sps:$4 sm:$0xff]  }
  0x30   : > { %937 = vmatprep.subr.bf16.mxu1 %v1485_v27  ;;  %916 = vmatprep.mubr.bf16.mxu0 %v1311_v53  ;;  %v1538_v1 = vld [vmem:[%s1670_s25 + $0x1e4] ss:$16 sps:$4 sm:$0xff]   ;;  %v1543_v5 = vld [vmem:[%s1670_s25 + $0x1e0] ss:$16 sps:$4 sm:$0xff]   ;;  %v1555_v14 = vld [vmem:[%s1670_s25 + $0x228] ss:$16 sps:$4 sm:$0xff]  }
  0x31   : > { %v1560_v15 = vld [vmem:[%s1670_s25 + $0x14c] ss:$16 sps:$4 sm:$0xff]   ;;  %v1558_v17 = vld [vmem:[%s1670_s25 + $0x148] ss:$16 sps:$4 sm:$0xff]  }
  0x32   : > { %897 = vmatpush1.bf16.msra.mxu0 %v1487_v28  ;;  %v1563_v16 = vld [vmem:[%s1670_s25 + $0x24c] ss:$16 sps:$4 sm:$0xff]   ;;  %v1561_v18 = vld [vmem:[%s1670_s25 + $0x248] ss:$16 sps:$4 sm:$0xff]  }
  0x33   : > { %938 = vmatpush1.bf16.msra.mxu1 %v1488_v29  ;;  %898 = vmatprep.subr.bf16.mxu0 %v1489_v30  ;;  %v1566_v19 = vld [vmem:[%s1670_s25 + $0x16c] ss:$16 sps:$4 sm:$0xff]   ;;  %v1564_v21 = vld [vmem:[%s1670_s25 + $0x168] ss:$16 sps:$4 sm:$0xff]  }
  0x34   : > { %939 = vmatprep.subr.bf16.mxu1 %v1491_v31  ;;  %v1569_v20 = vld [vmem:[%s1670_s25 + $0x26c] ss:$16 sps:$4 sm:$0xff]   ;;  %v1567_v22 = vld [vmem:[%s1670_s25 + $0x268] ss:$16 sps:$4 sm:$0xff]  }
  0x35   : > { %v1575_v23 = vld [vmem:[%s1670_s25 + $0x28c] ss:$16 sps:$4 sm:$0xff]   ;;  %v1570_v24 = vld [vmem:[%s1670_s25 + $0x188] ss:$16 sps:$4 sm:$0xff]  }
  0x36   : > { %899 = vmatpush1.bf16.msra.mxu0 %v1493_v32  ;;  %v1573_v25 = vld [vmem:[%s1670_s25 + $0x288] ss:$16 sps:$4 sm:$0xff]   ;;  %v1578_v26 = vld [vmem:[%s1670_s25 + $0x1ac] ss:$16 sps:$4 sm:$0xff]  }
  0x37   : > { %940 = vmatpush1.bf16.msra.mxu1 %v1494_v33  ;;  %900 = vmatprep.subr.bf16.mxu0 %v1495_v34  ;;  %v1581_v27 = vld [vmem:[%s1670_s25 + $0x2ac] ss:$16 sps:$4 sm:$0xff]   ;;  %v1576_v28 = vld [vmem:[%s1670_s25 + $0x1a8] ss:$16 sps:$4 sm:$0xff]  }
  0x38   : > { %966 = vmatprep.subr.bf16.mxu1 %v1500_v35  ;;  %v1579_v29 = vld [vmem:[%s1670_s25 + $0x2a8] ss:$16 sps:$4 sm:$0xff]   ;;  %v1584_v30 = vld [vmem:[%s1670_s25 + $0x1cc] ss:$16 sps:$4 sm:$0xff]  }
  0x39   : > { %v1587_v31 = vld [vmem:[%s1670_s25 + $0x2cc] ss:$16 sps:$4 sm:$0xff]   ;;  %v1582_v32 = vld [vmem:[%s1670_s25 + $0x1c8] ss:$16 sps:$4 sm:$0xff]  }
  0x3a   : > { %958 = vmatmul.mubr.bf16.vlgmr.msra.gmra.mrb[0].mxu1 %v1709_v36  ;;  %901 = vmatpush1.bf16.msra.mxu0 %v1501_v38  ;;  %v1585_v33 = vld [vmem:[%s1670_s25 + $0x2c8] ss:$16 sps:$4 sm:$0xff]   ;;  %v1590_v34 = vld [vmem:[%s1670_s25 + $0x1ec] ss:$16 sps:$4 sm:$0xff]  }
  0x3b   : > { %967 = vmatpush1.bf16.msra.mxu1 %v1498_v37  ;;  %902 = vmatprep.subr.bf16.mxu0 %v1502_v39  ;;  %v1593_v35 = vld [vmem:[%s1670_s25 + $0x2ec] ss:$16 sps:$4 sm:$0xff]   ;;  %v1588_v37 = vld [vmem:[%s1670_s25 + $0x1e8] ss:$16 sps:$4 sm:$0xff]  }
  0x3c   : > { %968 = vmatprep.subr.bf16.mxu1 %v1506_v40  ;;  %998 = vmatprep.mubr.bf16.mxu1 %v1311_v53  ;;  %v1591_v38 = vld [vmem:[%s1670_s25 + $0x2e8] ss:$16 sps:$4 sm:$0xff]  }
  0x3e   : > { %903 = vmatpush1.bf16.msra.mxu0 %v1507_v42 }
  0x3f   : > { %969 = vmatpush1.bf16.msra.mxu1 %v1504_v41  ;;  %904 = vmatprep.subr.bf16.mxu0 %v1508_v43  ;;  %v291_v43 = vld [vmem:[#allocation2] sm:$0xff] }
  0x40   : > { %970 = vmatprep.subr.bf16.mxu1 %v1512_v44 }
  0x42   : > { %905 = vmatpush1.bf16.msra.mxu0 %v1513_v46  ;;  %v292_v46 = vld [vmem:[#allocation2 + $0x8] sm:$0xff] }
  0x43   : > { %971 = vmatpush1.bf16.msra.mxu1 %v1510_v45  ;;  %906 = vmatprep.subr.bf16.mxu0 %v1514_v47 }
  0x44   : > { %972 = vmatprep.subr.bf16.mxu1 %v1518_v48 }
  0x46   : > { %907 = vmatpush1.bf16.msra.mxu0 %v1519_v51 }
  0x47   : > { %973 = vmatpush1.bf16.msra.mxu1 %v1516_v49  ;;  %908 = vmatprep.subr.bf16.mxu0 %v1520_v52 }
  0x48   : > { %974 = vmatprep.subr.bf16.mxu1 %v1524_v54  ;;  %v293_v54 = vld [vmem:[#allocation2 + $0x10] sm:$0xff] }
  0x4a   : > { %909 = vmatpush1.bf16.msra.mxu0 %v1525_v56 }
  0x4b   : > { %975 = vmatpush1.bf16.msra.mxu1 %v1522_v55  ;;  %910 = vmatprep.subr.bf16.mxu0 %v1526_v57  ;;  %v294_v57 = vld [vmem:[#allocation2 + $0x18] sm:$0xff] }
  0x4c   : > { %976 = vmatprep.subr.bf16.mxu1 %v1530_v58 }
  0x4e   : > { %911 = vmatpush1.bf16.msra.mxu0 %v1531_v60 }
  0x4f   : > { %977 = vmatpush1.bf16.msra.mxu1 %v1528_v59  ;;  %912 = vmatprep.subr.bf16.mxu0 %v1532_v61 }
  0x50   : > { %978 = vmatprep.subr.bf16.mxu1 %v1536_v62 }
  0x52   : > { %913 = vmatpush1.bf16.msra.mxu0 %v1537_v0 }
  0x53   : > { %979 = vmatpush1.bf16.msra.mxu1 %v1534_v63  ;;  %914 = vmatprep.subr.bf16.mxu0 %v1538_v1 }
  0x54   : > { %980 = vmatprep.subr.bf16.mxu1 %v1542_v2 }
  0x56   : > { %915 = vmatpush1.bf16.msra.mxu0 %v1543_v5 }
  0x57   : > { %981 = vmatpush1.bf16.msra.mxu1 %v1540_v4  ;;  %1007 = vmatprep.subr.bf16.mxu0 %v1551_v7  ;;  %v1116_v4 = vlaneseq (!%p1409_p7) }
  0x58   : > { %982 = vmatprep.subr.bf16.mxu1 %v1548_v6 }
  0x59   : > { %917 = vmatmul.mubr.bf16.vlgmr.msra.gmra.mrb[0].mxu0 %v1745_v8 }
  0x5a   : > { %1008 = vmatpush1.bf16.msra.mxu0 %v1549_v10  ;;  %1039 = vmatprep.mubr.bf16.mxu0 %v1619_v3  ;;  %v1572_v3 = vld [vmem:[%s1670_s25 + $0x18c] ss:$16 sps:$4 sm:$0xff]  }
  0x5b   : > { %983 = vmatpush1.bf16.msra.mxu1 %v1546_v9  ;;  %1009 = vmatprep.subr.bf16.mxu0 %v1557_v12  ;;  %v1782_v12 = vshrl.u32 (!%p1409_p7), %v1116_v4, 7 }
  0x5c   : > { %984 = vmatprep.subr.bf16.mxu1 %v1554_v11 }
  0x5d   : > { %vm1119_vm0 = vcmp.eq.s32.totalorder (!%p1409_p7), %v1782_v12, 1  ;;  %vm1118_vm1 = vcmp.eq.s32.totalorder (!%p1409_p7), %v1782_v12, 0 }
  0x5e   : > { %1010 = vmatpush1.bf16.msra.mxu0 %v1555_v14 }
  0x5f   : > { %985 = vmatpush1.bf16.msra.mxu1 %v1552_v13  ;;  %1011 = vmatprep.subr.bf16.mxu0 %v1563_v16 }
  0x60   : > { %986 = vmatprep.subr.bf16.mxu1 %v1560_v15 }
  0x62   : > { %1012 = vmatpush1.bf16.msra.mxu0 %v1561_v18 }
  0x63   : > { %987 = vmatpush1.bf16.msra.mxu1 %v1558_v17  ;;  %1013 = vmatprep.subr.bf16.mxu0 %v1569_v20 }
  0x64   : > { %988 = vmatprep.subr.bf16.mxu1 %v1566_v19 }
  0x66   : > { %1014 = vmatpush1.bf16.msra.mxu0 %v1567_v22 }
  0x67   : > { %989 = vmatpush1.bf16.msra.mxu1 %v1564_v21  ;;  %1015 = vmatprep.subr.bf16.mxu0 %v1575_v23 }
  0x68   : > { %990 = vmatprep.subr.bf16.mxu1 %v1572_v3 }
  0x6a   : > { %1016 = vmatpush1.bf16.msra.mxu0 %v1573_v25 }
  0x6b   : > { %991 = vmatpush1.bf16.msra.mxu1 %v1570_v24  ;;  %1017 = vmatprep.subr.bf16.mxu0 %v1581_v27 }
  0x6c   : > { %992 = vmatprep.subr.bf16.mxu1 %v1578_v26 }
  0x6e   : > { %1018 = vmatpush1.bf16.msra.mxu0 %v1579_v29 }
  0x6f   : > { %993 = vmatpush1.bf16.msra.mxu1 %v1576_v28  ;;  %1019 = vmatprep.subr.bf16.mxu0 %v1587_v31 }
  0x70   : > { %994 = vmatprep.subr.bf16.mxu1 %v1584_v30 }
  0x72   : > { %1020 = vmatpush1.bf16.msra.mxu0 %v1585_v33 }
  0x73   : > { %995 = vmatpush1.bf16.msra.mxu1 %v1582_v32  ;;  %1021 = vmatprep.subr.bf16.mxu0 %v1593_v35 }
  0x74   : > { %996 = vmatprep.subr.bf16.mxu1 %v1590_v34 }
  0x76   : > { %1022 = vmatpush1.bf16.msra.mxu0 %v1591_v38 }
  0x77   : > { %997 = vmatpush1.bf16.msra.mxu1 %v1588_v37 }
  0x79   : > { %1040 = vmatmul.mubr.bf16.vlgmr.msra.gmra.mrb[4].mxu0 %v1709_v36 }
  0x7a   : > { %999 = vmatmul.mubr.bf16.vlgmr.msra.gmra.mrb[4].mxu1 %v1745_v8 }
 0x10d   : > { %v959_v39 = vpop.f32.mrb[0].mxu1 }
 0x10e   : > { %v961_v40 = vpop.f32.mrb[1].mxu1 }
 0x10f   : > { %v963_v41 = vpop.f32.mrb[2].mxu1 }
 0x110   : > { %v964_v42 = vpop.f32.mrb[3].mxu1 }
 0x12c   : > { %v918_v44 = vpop.f32.mrb[0].mxu0 }
 0x12d   : > { %v960_v45 = vadd.f32 %v959_v39, %v918_v44  ;;  %v920_v47 = vpop.f32.mrb[1].mxu0 }
 0x12e   : > { %v962_v48 = vadd.f32 %v961_v40, %v920_v47  ;;  %v922_v49 = vpop.f32.mrb[2].mxu0 }
 0x12f   : > { %v1048_v50 = vadd.f32 %v960_v45, %v291_v43  ;;  %v923_v51 = vpop.f32.mrb[3].mxu0 }
 0x130   : > { %v1049_v52 = vadd.f32 %v962_v48, %v292_v46 }
 0x131   : > { %1052 = vst [vmem:[#allocation2] sm:$0xff] %v1048_v50 }
 0x132   : > { %1053 = vst [vmem:[#allocation2 + $0x8] sm:$0xff] %v1049_v52 }
 0x138   : > { %v1060_v2 = vld [vmem:[#allocation2] sm:$0xff] (!%p1409_p7) }
 0x139   : > { %v1061_v5 = vld [vmem:[#allocation2 + $0x8] sm:$0xff] (!%p1409_p7)  ;;  %v1064_v7 = vrot.slane (!%p1409_p7), %v1060_v2, 4  ;;  %v1088_v8 = vmul.f32 (!%p1409_p7), %v1060_v2, %v1060_v2 }
 0x13a   : > { %v1070_v9 = vrot.slane (!%p1409_p7), %v1061_v5, 4  ;;  %v1089_v10 = vmul.f32 (!%p1409_p7), %v1061_v5, %v1061_v5 }
 0x13b   : > { %v1065_v16 = vadd.f32 (!%p1409_p7), %v1064_v7, %v1060_v2  ;;  %v1092_v17 = vrot.slane (!%p1409_p7), %v1088_v8, 4 }
 0x13c   : > { %v1071_v18 = vadd.f32 (!%p1409_p7), %v1070_v9, %v1061_v5  ;;  %v1098_v19 = vrot.slane (!%p1409_p7), %v1089_v10, 4 }
 0x13d   : > { %v1066_v22 = vrot.slane (!%p1409_p7), %v1065_v16, 2  ;;  %v1093_v3 = vadd.f32 (!%p1409_p7), %v1092_v17, %v1088_v8 }
 0x13e   : > { %v1072_v23 = vrot.slane (!%p1409_p7), %v1071_v18, 2  ;;  %v1099_v24 = vadd.f32 (!%p1409_p7), %v1098_v19, %v1089_v10 }
 0x13f   : > { %v1067_v29 = vadd.f32 (!%p1409_p7), %v1066_v22, %v1065_v16  ;;  %v1094_v30 = vrot.slane (!%p1409_p7), %v1093_v3, 2 }
 0x140   : > { %v1073_v31 = vadd.f32 (!%p1409_p7), %v1072_v23, %v1071_v18  ;;  %v1100_v32 = vrot.slane (!%p1409_p7), %v1099_v24, 2 }
 0x141   : > { %v1068_v38 = vrot.slane (!%p1409_p7), %v1067_v29, 1  ;;  %v1095_v39 = vadd.f32 (!%p1409_p7), %v1094_v30, %v1093_v3 }
 0x142   : > { %v1074_v40 = vrot.slane (!%p1409_p7), %v1073_v31, 1  ;;  %v1101_v41 = vadd.f32 (!%p1409_p7), %v1100_v32, %v1099_v24 }
 0x143   : > { %v1069_v46 = vadd.f32 (!%p1409_p7), %v1068_v38, %v1067_v29  ;;  %v1096_v47 = vrot.slane (!%p1409_p7), %v1095_v39, 1 }
 0x144   : > { %v1075_v48 = vadd.f32 (!%p1409_p7), %v1074_v40, %v1073_v31  ;;  %v1102_v49 = vrot.slane (!%p1409_p7), %v1101_v41, 1 }
 0x14c   : > { %v1041_v55 = vpop.f32.mrb[4].mxu0 }
 0x14d   : > { %v1000_v53 = vpop.f32.mrb[4].mxu1  ;;  %v1043_v58 = vpop.f32.mrb[5].mxu0  ;;  %1059 = sbr.rel (%p1409_p7) target bundleno = 364 (0x16c), region = 36 }
 0x14e   : > { %v1042_v36 = vadd.f32 %v1041_v55, %v1000_v53  ;;  %v1002_v56 = vpop.f32.mrb[5].mxu1  ;;  %v1045_v61 = vpop.f32.mrb[6].mxu0  ;;  %v1103_v55 = vadd.f32 (!%p1409_p7), %v1102_v49, %v1101_v41 }
 0x14f   : > { %v1044_v59 = vadd.f32 %v1043_v58, %v1002_v56  ;;  %v1004_v60 = vpop.f32.mrb[6].mxu1  ;;  %v1046_v0 = vpop.f32.mrb[7].mxu0 }
 0x150   : > { %v1050_v62 = vadd.f32 %v1042_v36, %v293_v54  ;;  %v1005_v63 = vpop.f32.mrb[7].mxu1  ;;  %v1097_v54 = vadd.f32 (!%p1409_p7), %v1096_v47, %v1095_v39  ;;  %v1419_v36 = vpack.c.bf16 (!%p1409_p7), %v1061_v5, %v1060_v2  ;;  %v1121_v60 = vsel (!%p1409_p7), %vm1119_vm0, %v1103_v55, 0.0 }
 0x151   : > { %v1051_v1 = vadd.f32 %v1044_v59, %v294_v57 }
 0x152   : > { %1054 = vst [vmem:[#allocation2 + $0x10] sm:$0xff] %v1050_v62  ;;  %v1120_v59 = vsel (!%p1409_p7), %vm1119_vm0, %v1097_v54, 0.0  ;;  %1148 = vst [vmem:[%s1831_s2] sm:$0xff] (!%p1409_p7), %v1419_v36  ;;  %v1125_v62 = vsel (!%p1409_p7), %vm1118_vm1, %v1075_v48, %v1121_v60 }
 0x153   : > { %1055 = vst [vmem:[#allocation2 + $0x18] sm:$0xff] %v1051_v1  ;;  %v1124_v61 = vsel (!%p1409_p7), %vm1118_vm1, %v1069_v46, %v1120_v59  ;;  %1129 = vst [vmem:[%s1832_s3 + $0x8] sm:$0xff] (!%p1409_p7), %v1125_v62 }
 0x154   : > { %1128 = vst [vmem:[%s1832_s3] sm:$0xff] %v1124_v61 }
 0x159   : > { %v1062_v6 = vld [vmem:[#allocation2 + $0x10] sm:$0xff] }
 0x15a   : > { %v1063_v11 = vld [vmem:[#allocation2 + $0x18] sm:$0xff]  ;;  %v1076_v13 = vrot.slane %v1062_v6, 4  ;;  %v1090_v14 = vmul.f32 %v1062_v6, %v1062_v6 }
 0x15b   : > { %v1082_v15 = vrot.slane %v1063_v11, 4  ;;  %v1091_v28 = vmul.f32 %v1063_v11, %v1063_v11  ;;  %v1420_v56 = vpack.c.bf16 %v1063_v11, %v1062_v6 }
 0x15c   : > { %v1077_v20 = vadd.f32 %v1076_v13, %v1062_v6  ;;  %v1104_v21 = vrot.slane %v1090_v14, 4 }
 0x15d   : > { %v1083_v27 = vadd.f32 %v1082_v15, %v1063_v11  ;;  %v1110_v37 = vrot.slane %v1091_v28, 4  ;;  %1149 = vst [vmem:[%s1831_s2 + $0x8] sm:$0xff] %v1420_v56 }
 0x15e   : > { %v1078_v25 = vrot.slane %v1077_v20, 2  ;;  %v1105_v26 = vadd.f32 %v1104_v21, %v1090_v14 }
 0x15f   : > { %v1084_v35 = vrot.slane %v1083_v27, 2  ;;  %v1111_v45 = vadd.f32 %v1110_v37, %v1091_v28 }
 0x160   : > { %v1079_v33 = vadd.f32 %v1078_v25, %v1077_v20  ;;  %v1106_v34 = vrot.slane %v1105_v26, 2 }
 0x161   : > { %v1085_v44 = vadd.f32 %v1084_v35, %v1083_v27  ;;  %v1112_v53 = vrot.slane %v1111_v45, 2 }
 0x162   : > { %v1080_v42 = vrot.slane %v1079_v33, 1  ;;  %v1107_v43 = vadd.f32 %v1106_v34, %v1105_v26 }
 0x163   : > { %v1086_v52 = vrot.slane %v1085_v44, 1  ;;  %v1113_v58 = vadd.f32 %v1112_v53, %v1111_v45 }
 0x164   : > { %v1081_v50 = vadd.f32 %v1080_v42, %v1079_v33  ;;  %v1108_v51 = vrot.slane %v1107_v43, 1 }
 0x165   : > { %v1114_v0 = vrot.slane %v1113_v58, 1  ;;  %v1087_v2 = vadd.f32 %v1086_v52, %v1085_v44 }
 0x166   : > { %v1109_v57 = vadd.f32 %v1108_v51, %v1107_v43 }
 0x167   : > { %v1115_v4 = vadd.f32 %v1114_v0, %v1113_v58 }
 0x168   : > { %v1122_v63 = vsel %vm1119_vm0, %v1109_v57, 0.0 }
 0x169   : > { %v1126_v1 = vsel %vm1118_vm1, %v1081_v50, %v1122_v63  ;;  %v1123_v5 = vsel %vm1119_vm0, %v1115_v4, 0.0 }
 0x16a   : > { %1130 = vst [vmem:[%s1832_s3 + $0x10] sm:$0xff] %v1126_v1  ;;  %v1127_v6 = vsel %vm1118_vm1, %v1087_v2, %v1123_v5 }
 0x16b   : > { %1131 = vst [vmem:[%s1832_s3 + $0x18] sm:$0xff] %v1127_v6 }
 0x16c PF: > { %s14_s14 = sadd.s32 1, %s1616_s14   ;;  %s1833_s12 = smov %s1612_s13 }
 0x16d   : > { %p11_p8 = scmp.ge.s32.totalorder %s14_s14, 8   ;;  %s1834_s13 = smov %s1836_s15 }
 0x16f   :  { %13 = sbr.rel (!%p11_p8) target bundleno = 2 (0x2), region = 81 }

// kernel: _forward.75
= control target key start
LH: loop header
LB: loop body
LE: loop exit
PB: predicated region body
PF: predicated region fallthrough
CT: control target
= control target key end

     0   :  { %v22_v0 = vlaneseq  ;;  %s140_s0 = inlined_call_operand.vmem [shape: bf16[8,512], index: 0, kind: input, shape index: {}]   ;;  %s141_s1 = inlined_call_operand.vmem [shape: f32[1,512], index: 1, kind: input, shape index: {}]   ;;  %s142_s2 = inlined_call_operand.vmem [shape: f32[1,512], index: 2, kind: input, shape index: {}]   ;;  %s143_s3 = inlined_call_operand.vmem [shape: bf16[8,512], index: 3, kind: output, shape index: {}]  }
   0x1   :  { %v14_v1 = vld [vmem:[%s140_s0] sm:$0xff]  ;;  %v15_v3 = vld [vmem:[%s140_s0 + $0x8] sm:$0xff] }
   0x2   :  { %v23_v2 = vshrl.u32 %v22_v0, 7  ;;  %v16_v4 = vunpack.c.l.bf16 %v14_v1  ;;  %v17_v5 = vunpack.c.h.bf16 %v14_v1  ;;  %v20_v6 = vld [vmem:[%s141_s1] sm:$0xf]  ;;  %v18_v12 = vunpack.c.l.bf16 %v15_v3 }
   0x3   :  { %v46_v7 = vld [vmem:[%s142_s2] sm:$0xf]  ;;  %v19_v13 = vunpack.c.h.bf16 %v15_v3 }
   0x4   :  { %v24_v8 = vsub.s32 0, %v23_v2  ;;  %v28_v9 = vsub.s32 1, %v23_v2  ;;  %v32_v10 = vsub.s32 2, %v23_v2  ;;  %v36_v11 = vsub.s32 3, %v23_v2 }
   0x6   :  { %v25_v14 = vrot.slane %v20_v6, %v24_v8  ;;  %v29_v15 = vrot.slane %v20_v6, %v28_v9  ;;  %v51_v16 = vrot.slane %v46_v7, %v24_v8  ;;  %v55_v17 = vrot.slane %v46_v7, %v28_v9 }
   0x7   :  { %v33_v18 = vrot.slane %v20_v6, %v32_v10  ;;  %v37_v19 = vrot.slane %v20_v6, %v36_v11  ;;  %v59_v20 = vrot.slane %v46_v7, %v32_v10  ;;  %v63_v21 = vrot.slane %v46_v7, %v36_v11 }
   0x8   :  { %v42_v22 = vmul.f32 %v25_v14, %v16_v4  ;;  %v43_v23 = vmul.f32 %v29_v15, %v17_v5 }
   0x9   :  { %v44_v24 = vmul.f32 %v33_v18, %v18_v12  ;;  %v45_v25 = vmul.f32 %v37_v19, %v19_v13 }
   0xa   :  { %v68_v26 = vadd.f32 %v51_v16, %v42_v22  ;;  %v69_v27 = vadd.f32 %v55_v17, %v43_v23 }
   0xb   :  { %v70_v28 = vadd.f32 %v59_v20, %v44_v24  ;;  %v71_v29 = vadd.f32 %v63_v21, %v45_v25 }
   0xc   :  { %v72_v30 = vmax.f32 %v68_v26, 0.0  ;;  %v73_v31 = vmax.f32 %v69_v27, 0.0 }
   0xd   :  { %v74_v32 = vmax.f32 %v70_v28, 0.0  ;;  %v75_v33 = vmax.f32 %v71_v29, 0.0 }
   0xe   :  { %v100_v34 = vpack.c.bf16 %v73_v31, %v72_v30 }
   0xf   :  { %v101_v35 = vpack.c.bf16 %v75_v33, %v74_v32 }
  0x10   :  { %92 = vst [vmem:[%s143_s3] sm:$0xff] %v100_v34 }
  0x11   :  { %93 = vst [vmem:[%s143_s3 + $0x8] sm:$0xff] %v101_v35 }

// kernel: _forward.78
= control target key start
LH: loop header
LB: loop body
LE: loop exit
PB: predicated region body
PF: predicated region fallthrough
CT: control target
= control target key end

     0   :  { %s1916_s12 = smov 0   ;;  %s1918_s13 = smov 0   ;;  %s2139_s0 = inlined_call_operand.vmem [shape: bf16[8,4608], index: 0, kind: input, shape index: {}]   ;;  %s2140_s1 = inlined_call_operand.vmem [shape: bf16[4608,512], index: 1, kind: input, shape index: {}]   ;;  %s2141_s2 = inlined_call_operand.vmem [shape: bf16[8,512], index: 2, kind: output, shape index: {0}]   ;;  %s2142_s3 = inlined_call_operand.vmem [shape: f32[8,512], index: 3, kind: output, shape index: {1}]  }
   0x1   :  { %s1920_s14 = smov 0  }
   0x2 LB: > { %s26_s15 = sadd.s32 1, %s1889_s13  ;;  %p1499_p0 = scmp.ge.s32.totalorder %s1893_s14, 1  ;;  %s1893_s14 = sphi %s1920_s14, %s14_s14   ;;  %s1889_s13 = sphi %s1918_s13, %s2144_s13   ;;  %s1885_s12 = sphi %s1916_s12, %s2143_s12  }
   0x3   : > { %p27_p1 = scmp.ge.s32.totalorder %s26_s15, 9  ;;  %p189_p2 = scmp.lt.s32.totalorder %s1893_s14, 10 }
   0x5   : > { %s2146_s15 = smov (%p27_p1, %s26_s15), 0  ;;  %p190_p3 = pnand %p1499_p0, %p189_p2 }
   0x6   : > { %s1500_s16 = sshll.u32 (!%p190_p3), %s1885_s12, 2  ;;  %s1502_s17 = sshll.u32 (!%p190_p3), %s1885_s12, 6 }
   0x7   : > { %193 = sbr.rel (%p190_p3) target bundleno = 396 (0x18c), region = 28  ;;  %p243_p4 = scmp.lt.s32.totalorder (!%p190_p3), %s1500_s16, 35 }
   0x8   : > { %p252_p5 = scmp.lt.s32.totalorder (!%p190_p3), %s1502_s17, 575  ;;  %p1505_p6 = scmp.ne.s32.totalorder (!%p190_p3), %s1885_s12, 0 }
   0xe   : > { %s2148_s16 = smov (!%p243_p4, %s1500_s16), 35  ;;  %s2150_s17 = smov (!%p252_p5, %s1502_s17), 575 }
   0xf   : > { %s1501_s18 = sshll.u32 %s2148_s16, 2  ;;  %s1647_s22 = sshll.u32 %s2150_s17, 4  ;;  %v1895_v0 = vmov (!%p1505_p6), 0.0  }
  0x10   : > { %s1941_s21 = scalar_lea.vmem %s2139_s0, %s1501_s18  ;;  %s1946_s25 = scalar_lea.vmem %s2140_s1, %s1647_s22  ;;  %286 = vst [vmem:[#allocation2] sm:$0xff] (!%p1505_p6), %v1895_v0  ;;  %287 = vst [vmem:[#allocation2 + $0x8] sm:$0xff] (!%p1505_p6), %v1895_v0 }
  0x11   : > { %285 = sbr.rel (%p1505_p6) target bundleno = 24 (0x18), region = 32  ;;  %288 = vst [vmem:[#allocation2 + $0x10] sm:$0xff] (!%p1505_p6), %v1895_v0  ;;  %289 = vst [vmem:[#allocation2 + $0x18] sm:$0xff] (!%p1505_p6), %v1895_v0 }
  0x18 PF: > { %v1675_v1 = vld [vmem:[%s1946_s25 + $0x4] ss:$16 sps:$4 sm:$0xff]   ;;  %v1679_v3 = vld [vmem:[%s1946_s25] ss:$16 sps:$4 sm:$0xff]   ;;  %v295_v49 = vld [vmem:[%s1941_s21 + $0x8] sm:$0xff]  ;;  %p1638_p7 = scmp.ne.s32.totalorder %s1885_s12, 8 }
  0x19   : > { %v1677_v2 = vld [vmem:[%s1946_s25 + $0x204] ss:$16 sps:$4 sm:$0xff]   ;;  %1078 = vmatprep.subr.bf16.mxu0 %v1675_v1  ;;  %v1680_v4 = vld [vmem:[%s1946_s25 + $0x200] ss:$16 sps:$4 sm:$0xff]   ;;  %v1509_v52 = vcombine.high %v295_v49, %v295_v49 }
  0x1a   : > { %1119 = vmatprep.subr.bf16.mxu1 %v1677_v2  ;;  %v1681_v5 = vld [vmem:[%s1946_s25 + $0x24] ss:$16 sps:$4 sm:$0xff]   ;;  %1079 = vmatpush1.bf16.msra.mxu0 %v1679_v3  ;;  %v1685_v7 = vld [vmem:[%s1946_s25 + $0x20] ss:$16 sps:$4 sm:$0xff]  }
  0x1b   : > { %1120 = vmatpush1.bf16.msra.mxu1 %v1680_v4  ;;  %v1683_v6 = vld [vmem:[%s1946_s25 + $0x224] ss:$16 sps:$4 sm:$0xff]   ;;  %1080 = vmatprep.subr.bf16.mxu0 %v1681_v5  ;;  %v1686_v8 = vld [vmem:[%s1946_s25 + $0x220] ss:$16 sps:$4 sm:$0xff]   ;;  %v1777_v5 = vld [vmem:[%s1946_s25 + $0xc] ss:$16 sps:$4 sm:$0xff]  }
  0x1c   : > { %1121 = vmatprep.subr.bf16.mxu1 %v1683_v6  ;;  %v1687_v9 = vld [vmem:[%s1946_s25 + $0x44] ss:$16 sps:$4 sm:$0xff]   ;;  %v1691_v11 = vld [vmem:[%s1946_s25 + $0x40] ss:$16 sps:$4 sm:$0xff]   ;;  %1151 = vmatprep.mubr.bf16.mxu1 %v1509_v52  ;;  %v1780_v6 = vld [vmem:[%s1946_s25 + $0x20c] ss:$16 sps:$4 sm:$0xff]  }
  0x1d   : > { %v1689_v10 = vld [vmem:[%s1946_s25 + $0x244] ss:$16 sps:$4 sm:$0xff]   ;;  %v1692_v12 = vld [vmem:[%s1946_s25 + $0x240] ss:$16 sps:$4 sm:$0xff]  }
  0x1e   : > { %1081 = vmatpush1.bf16.msra.mxu0 %v1685_v7  ;;  %v1693_v13 = vld [vmem:[%s1946_s25 + $0x64] ss:$16 sps:$4 sm:$0xff]   ;;  %v1697_v15 = vld [vmem:[%s1946_s25 + $0x60] ss:$16 sps:$4 sm:$0xff]  }
  0x1f   : > { %1122 = vmatpush1.bf16.msra.mxu1 %v1686_v8  ;;  %1082 = vmatprep.subr.bf16.mxu0 %v1687_v9  ;;  %v1695_v14 = vld [vmem:[%s1946_s25 + $0x264] ss:$16 sps:$4 sm:$0xff]   ;;  %v1698_v16 = vld [vmem:[%s1946_s25 + $0x260] ss:$16 sps:$4 sm:$0xff]   ;;  %v2022_v8 = vcombine.low %v295_v49, %v295_v49  ;;  %v1775_v9 = vld [vmem:[%s1946_s25 + $0x8] ss:$16 sps:$4 sm:$0xff]  }
  0x20   : > { %1123 = vmatprep.subr.bf16.mxu1 %v1689_v10  ;;  %v1699_v17 = vld [vmem:[%s1946_s25 + $0x84] ss:$16 sps:$4 sm:$0xff]   ;;  %v1703_v19 = vld [vmem:[%s1946_s25 + $0x80] ss:$16 sps:$4 sm:$0xff]   ;;  %v1778_v10 = vld [vmem:[%s1946_s25 + $0x208] ss:$16 sps:$4 sm:$0xff]  }
  0x21   : > { %v1701_v18 = vld [vmem:[%s1946_s25 + $0x284] ss:$16 sps:$4 sm:$0xff]   ;;  %v1704_v20 = vld [vmem:[%s1946_s25 + $0x280] ss:$16 sps:$4 sm:$0xff]   ;;  %v1835_v49 = vld [vmem:[%s1946_s25 + $0x148] ss:$16 sps:$4 sm:$0xff]  }
  0x22   : > { %1083 = vmatpush1.bf16.msra.mxu0 %v1691_v11  ;;  %v1705_v21 = vld [vmem:[%s1946_s25 + $0xa4] ss:$16 sps:$4 sm:$0xff]   ;;  %v1709_v23 = vld [vmem:[%s1946_s25 + $0xa0] ss:$16 sps:$4 sm:$0xff]   ;;  %v1783_v11 = vld [vmem:[%s1946_s25 + $0x2c] ss:$16 sps:$4 sm:$0xff]  }
  0x23   : > { %1124 = vmatpush1.bf16.msra.mxu1 %v1692_v12  ;;  %1084 = vmatprep.subr.bf16.mxu0 %v1693_v13  ;;  %v1707_v22 = vld [vmem:[%s1946_s25 + $0x2a4] ss:$16 sps:$4 sm:$0xff]   ;;  %v1710_v24 = vld [vmem:[%s1946_s25 + $0x2a0] ss:$16 sps:$4 sm:$0xff]   ;;  %v1786_v12 = vld [vmem:[%s1946_s25 + $0x22c] ss:$16 sps:$4 sm:$0xff]  }
  0x24   : > { %1125 = vmatprep.subr.bf16.mxu1 %v1695_v14  ;;  %v1711_v25 = vld [vmem:[%s1946_s25 + $0xc4] ss:$16 sps:$4 sm:$0xff]   ;;  %v1715_v27 = vld [vmem:[%s1946_s25 + $0xc0] ss:$16 sps:$4 sm:$0xff]   ;;  %v1781_v13 = vld [vmem:[%s1946_s25 + $0x28] ss:$16 sps:$4 sm:$0xff]  }
  0x25   : > { %v1713_v26 = vld [vmem:[%s1946_s25 + $0x2c4] ss:$16 sps:$4 sm:$0xff]   ;;  %v1716_v28 = vld [vmem:[%s1946_s25 + $0x2c0] ss:$16 sps:$4 sm:$0xff]   ;;  %v1784_v14 = vld [vmem:[%s1946_s25 + $0x228] ss:$16 sps:$4 sm:$0xff]  }
  0x26   : > { %1085 = vmatpush1.bf16.msra.mxu0 %v1697_v15  ;;  %v1717_v29 = vld [vmem:[%s1946_s25 + $0xe4] ss:$16 sps:$4 sm:$0xff]   ;;  %v1721_v31 = vld [vmem:[%s1946_s25 + $0xe0] ss:$16 sps:$4 sm:$0xff]   ;;  %v1789_v15 = vld [vmem:[%s1946_s25 + $0x4c] ss:$16 sps:$4 sm:$0xff]  }
  0x27   : > { %1126 = vmatpush1.bf16.msra.mxu1 %v1698_v16  ;;  %1086 = vmatprep.subr.bf16.mxu0 %v1699_v17  ;;  %v1719_v30 = vld [vmem:[%s1946_s25 + $0x2e4] ss:$16 sps:$4 sm:$0xff]   ;;  %v1722_v32 = vld [vmem:[%s1946_s25 + $0x2e0] ss:$16 sps:$4 sm:$0xff]   ;;  %v1792_v16 = vld [vmem:[%s1946_s25 + $0x24c] ss:$16 sps:$4 sm:$0xff]  }
  0x28   : > { %1127 = vmatprep.subr.bf16.mxu1 %v1701_v18  ;;  %v1723_v33 = vld [vmem:[%s1946_s25 + $0x104] ss:$16 sps:$4 sm:$0xff]   ;;  %v1727_v35 = vld [vmem:[%s1946_s25 + $0x100] ss:$16 sps:$4 sm:$0xff]   ;;  %v1787_v17 = vld [vmem:[%s1946_s25 + $0x48] ss:$16 sps:$4 sm:$0xff]  }
  0x29   : > { %v1725_v34 = vld [vmem:[%s1946_s25 + $0x304] ss:$16 sps:$4 sm:$0xff]   ;;  %v1728_v36 = vld [vmem:[%s1946_s25 + $0x300] ss:$16 sps:$4 sm:$0xff]   ;;  %v1790_v18 = vld [vmem:[%s1946_s25 + $0x248] ss:$16 sps:$4 sm:$0xff]  }
  0x2a   : > { %1087 = vmatpush1.bf16.msra.mxu0 %v1703_v19  ;;  %v1729_v37 = vld [vmem:[%s1946_s25 + $0x124] ss:$16 sps:$4 sm:$0xff]   ;;  %v1733_v39 = vld [vmem:[%s1946_s25 + $0x120] ss:$16 sps:$4 sm:$0xff]   ;;  %v1795_v19 = vld [vmem:[%s1946_s25 + $0x6c] ss:$16 sps:$4 sm:$0xff]  }
  0x2b   : > { %1128 = vmatpush1.bf16.msra.mxu1 %v1704_v20  ;;  %1088 = vmatprep.subr.bf16.mxu0 %v1705_v21  ;;  %v1731_v38 = vld [vmem:[%s1946_s25 + $0x324] ss:$16 sps:$4 sm:$0xff]   ;;  %v1734_v40 = vld [vmem:[%s1946_s25 + $0x320] ss:$16 sps:$4 sm:$0xff]   ;;  %v1798_v20 = vld [vmem:[%s1946_s25 + $0x26c] ss:$16 sps:$4 sm:$0xff]  }
  0x2c   : > { %1129 = vmatprep.subr.bf16.mxu1 %v1707_v22  ;;  %v1735_v41 = vld [vmem:[%s1946_s25 + $0x144] ss:$16 sps:$4 sm:$0xff]   ;;  %v1739_v43 = vld [vmem:[%s1946_s25 + $0x140] ss:$16 sps:$4 sm:$0xff]   ;;  %v1793_v21 = vld [vmem:[%s1946_s25 + $0x68] ss:$16 sps:$4 sm:$0xff]  }
  0x2d   : > { %v1737_v42 = vld [vmem:[%s1946_s25 + $0x344] ss:$16 sps:$4 sm:$0xff]   ;;  %v1740_v44 = vld [vmem:[%s1946_s25 + $0x340] ss:$16 sps:$4 sm:$0xff]   ;;  %v1796_v22 = vld [vmem:[%s1946_s25 + $0x268] ss:$16 sps:$4 sm:$0xff]  }
  0x2e   : > { %1089 = vmatpush1.bf16.msra.mxu0 %v1709_v23  ;;  %v1741_v45 = vld [vmem:[%s1946_s25 + $0x164] ss:$16 sps:$4 sm:$0xff]   ;;  %v1745_v50 = vld [vmem:[%s1946_s25 + $0x160] ss:$16 sps:$4 sm:$0xff]   ;;  %v1801_v23 = vld [vmem:[%s1946_s25 + $0x8c] ss:$16 sps:$4 sm:$0xff]  }
  0x2f   : > { %1130 = vmatpush1.bf16.msra.mxu1 %v1710_v24  ;;  %1090 = vmatprep.subr.bf16.mxu0 %v1711_v25  ;;  %v1743_v46 = vld [vmem:[%s1946_s25 + $0x364] ss:$16 sps:$4 sm:$0xff]   ;;  %v1746_v51 = vld [vmem:[%s1946_s25 + $0x360] ss:$16 sps:$4 sm:$0xff]   ;;  %v1804_v24 = vld [vmem:[%s1946_s25 + $0x28c] ss:$16 sps:$4 sm:$0xff]  }
  0x30   : > { %1131 = vmatprep.subr.bf16.mxu1 %v1713_v26  ;;  %v294_v47 = vld [vmem:[%s1941_s21] sm:$0xff]  ;;  %v1799_v25 = vld [vmem:[%s1946_s25 + $0x88] ss:$16 sps:$4 sm:$0xff]  }
  0x31   : > { %v1996_v48 = vcombine.high %v294_v47, %v294_v47  ;;  %v1747_v53 = vld [vmem:[%s1946_s25 + $0x184] ss:$16 sps:$4 sm:$0xff]   ;;  %v1751_v55 = vld [vmem:[%s1946_s25 + $0x180] ss:$16 sps:$4 sm:$0xff]   ;;  %v2020_v7 = vcombine.low %v294_v47, %v294_v47  ;;  %v1802_v26 = vld [vmem:[%s1946_s25 + $0x288] ss:$16 sps:$4 sm:$0xff]  }
  0x32   : > { %1091 = vmatpush1.bf16.msra.mxu0 %v1715_v27  ;;  %v1749_v54 = vld [vmem:[%s1946_s25 + $0x384] ss:$16 sps:$4 sm:$0xff]   ;;  %v1752_v56 = vld [vmem:[%s1946_s25 + $0x380] ss:$16 sps:$4 sm:$0xff]   ;;  %v1807_v27 = vld [vmem:[%s1946_s25 + $0xac] ss:$16 sps:$4 sm:$0xff]  }
  0x33   : > { %1132 = vmatpush1.bf16.msra.mxu1 %v1716_v28  ;;  %1092 = vmatprep.subr.bf16.mxu0 %v1717_v29  ;;  %v1753_v57 = vld [vmem:[%s1946_s25 + $0x1a4] ss:$16 sps:$4 sm:$0xff]   ;;  %v1757_v59 = vld [vmem:[%s1946_s25 + $0x1a0] ss:$16 sps:$4 sm:$0xff]   ;;  %v1810_v28 = vld [vmem:[%s1946_s25 + $0x2ac] ss:$16 sps:$4 sm:$0xff]  }
  0x34   : > { %1133 = vmatprep.subr.bf16.mxu1 %v1719_v30  ;;  %1110 = vmatprep.mubr.bf16.mxu0 %v1996_v48  ;;  %v1755_v58 = vld [vmem:[%s1946_s25 + $0x3a4] ss:$16 sps:$4 sm:$0xff]   ;;  %v1758_v60 = vld [vmem:[%s1946_s25 + $0x3a0] ss:$16 sps:$4 sm:$0xff]   ;;  %v1805_v29 = vld [vmem:[%s1946_s25 + $0xa8] ss:$16 sps:$4 sm:$0xff]  }
  0x35   : > { %v1759_v61 = vld [vmem:[%s1946_s25 + $0x1c4] ss:$16 sps:$4 sm:$0xff]   ;;  %v1763_v63 = vld [vmem:[%s1946_s25 + $0x1c0] ss:$16 sps:$4 sm:$0xff]   ;;  %v1808_v30 = vld [vmem:[%s1946_s25 + $0x2a8] ss:$16 sps:$4 sm:$0xff]  }
  0x36   : > { %1093 = vmatpush1.bf16.msra.mxu0 %v1721_v31  ;;  %v1761_v62 = vld [vmem:[%s1946_s25 + $0x3c4] ss:$16 sps:$4 sm:$0xff]   ;;  %v1764_v0 = vld [vmem:[%s1946_s25 + $0x3c0] ss:$16 sps:$4 sm:$0xff]   ;;  %v1813_v31 = vld [vmem:[%s1946_s25 + $0xcc] ss:$16 sps:$4 sm:$0xff]  }
  0x37   : > { %1134 = vmatpush1.bf16.msra.mxu1 %v1722_v32  ;;  %1094 = vmatprep.subr.bf16.mxu0 %v1723_v33  ;;  %v1765_v1 = vld [vmem:[%s1946_s25 + $0x1e4] ss:$16 sps:$4 sm:$0xff]   ;;  %v1769_v3 = vld [vmem:[%s1946_s25 + $0x1e0] ss:$16 sps:$4 sm:$0xff]   ;;  %v1816_v32 = vld [vmem:[%s1946_s25 + $0x2cc] ss:$16 sps:$4 sm:$0xff]  }
  0x38   : > { %1135 = vmatprep.subr.bf16.mxu1 %v1725_v34  ;;  %v1767_v2 = vld [vmem:[%s1946_s25 + $0x3e4] ss:$16 sps:$4 sm:$0xff]   ;;  %v1770_v4 = vld [vmem:[%s1946_s25 + $0x3e0] ss:$16 sps:$4 sm:$0xff]   ;;  %v1811_v33 = vld [vmem:[%s1946_s25 + $0xc8] ss:$16 sps:$4 sm:$0xff]  }
  0x39   : > { %v1814_v34 = vld [vmem:[%s1946_s25 + $0x2c8] ss:$16 sps:$4 sm:$0xff]   ;;  %v1837_v47 = vld [vmem:[%s1946_s25 + $0x14c] ss:$16 sps:$4 sm:$0xff]  }
  0x3a   : > { %1095 = vmatpush1.bf16.msra.mxu0 %v1727_v35  ;;  %v1819_v35 = vld [vmem:[%s1946_s25 + $0xec] ss:$16 sps:$4 sm:$0xff]  }
  0x3b   : > { %1136 = vmatpush1.bf16.msra.mxu1 %v1728_v36  ;;  %1096 = vmatprep.subr.bf16.mxu0 %v1729_v37  ;;  %v1822_v36 = vld [vmem:[%s1946_s25 + $0x2ec] ss:$16 sps:$4 sm:$0xff]   ;;  %v1817_v37 = vld [vmem:[%s1946_s25 + $0xe8] ss:$16 sps:$4 sm:$0xff]  }
  0x3c   : > { %1137 = vmatprep.subr.bf16.mxu1 %v1731_v38  ;;  %v1820_v38 = vld [vmem:[%s1946_s25 + $0x2e8] ss:$16 sps:$4 sm:$0xff]  }
  0x3e   : > { %1097 = vmatpush1.bf16.msra.mxu0 %v1733_v39  ;;  %v1825_v39 = vld [vmem:[%s1946_s25 + $0x10c] ss:$16 sps:$4 sm:$0xff]  }
  0x3f   : > { %1138 = vmatpush1.bf16.msra.mxu1 %v1734_v40  ;;  %1098 = vmatprep.subr.bf16.mxu0 %v1735_v41  ;;  %v1828_v40 = vld [vmem:[%s1946_s25 + $0x30c] ss:$16 sps:$4 sm:$0xff]   ;;  %v1823_v41 = vld [vmem:[%s1946_s25 + $0x108] ss:$16 sps:$4 sm:$0xff]  }
  0x40   : > { %1139 = vmatprep.subr.bf16.mxu1 %v1737_v42  ;;  %v1826_v42 = vld [vmem:[%s1946_s25 + $0x308] ss:$16 sps:$4 sm:$0xff]  }
  0x42   : > { %1099 = vmatpush1.bf16.msra.mxu0 %v1739_v43  ;;  %v1831_v43 = vld [vmem:[%s1946_s25 + $0x12c] ss:$16 sps:$4 sm:$0xff]  }
  0x43   : > { %1140 = vmatpush1.bf16.msra.mxu1 %v1740_v44  ;;  %1100 = vmatprep.subr.bf16.mxu0 %v1741_v45  ;;  %v1834_v44 = vld [vmem:[%s1946_s25 + $0x32c] ss:$16 sps:$4 sm:$0xff]   ;;  %v1829_v45 = vld [vmem:[%s1946_s25 + $0x128] ss:$16 sps:$4 sm:$0xff]  }
  0x44   : > { %1141 = vmatprep.subr.bf16.mxu1 %v1743_v46  ;;  %v1832_v46 = vld [vmem:[%s1946_s25 + $0x328] ss:$16 sps:$4 sm:$0xff]  }
  0x46   : > { %1101 = vmatpush1.bf16.msra.mxu0 %v1745_v50  ;;  %v1838_v50 = vld [vmem:[%s1946_s25 + $0x348] ss:$16 sps:$4 sm:$0xff]  }
  0x47   : > { %1142 = vmatpush1.bf16.msra.mxu1 %v1746_v51  ;;  %1102 = vmatprep.subr.bf16.mxu0 %v1747_v53  ;;  %v1843_v51 = vld [vmem:[%s1946_s25 + $0x16c] ss:$16 sps:$4 sm:$0xff]   ;;  %v1841_v53 = vld [vmem:[%s1946_s25 + $0x168] ss:$16 sps:$4 sm:$0xff]  }
  0x48   : > { %1143 = vmatprep.subr.bf16.mxu1 %v1749_v54  ;;  %v1844_v54 = vld [vmem:[%s1946_s25 + $0x368] ss:$16 sps:$4 sm:$0xff]  }
  0x4a   : > { %1103 = vmatpush1.bf16.msra.mxu0 %v1751_v55  ;;  %v1849_v55 = vld [vmem:[%s1946_s25 + $0x18c] ss:$16 sps:$4 sm:$0xff]  }
  0x4b   : > { %1144 = vmatpush1.bf16.msra.mxu1 %v1752_v56  ;;  %1104 = vmatprep.subr.bf16.mxu0 %v1753_v57  ;;  %v1852_v56 = vld [vmem:[%s1946_s25 + $0x38c] ss:$16 sps:$4 sm:$0xff]   ;;  %v1847_v57 = vld [vmem:[%s1946_s25 + $0x188] ss:$16 sps:$4 sm:$0xff]  }
  0x4c   : > { %1145 = vmatprep.subr.bf16.mxu1 %v1755_v58  ;;  %v1850_v58 = vld [vmem:[%s1946_s25 + $0x388] ss:$16 sps:$4 sm:$0xff]  }
  0x4e   : > { %1105 = vmatpush1.bf16.msra.mxu0 %v1757_v59  ;;  %v1855_v59 = vld [vmem:[%s1946_s25 + $0x1ac] ss:$16 sps:$4 sm:$0xff]  }
  0x4f   : > { %1146 = vmatpush1.bf16.msra.mxu1 %v1758_v60  ;;  %1106 = vmatprep.subr.bf16.mxu0 %v1759_v61  ;;  %v1858_v60 = vld [vmem:[%s1946_s25 + $0x3ac] ss:$16 sps:$4 sm:$0xff]   ;;  %v1853_v61 = vld [vmem:[%s1946_s25 + $0x1a8] ss:$16 sps:$4 sm:$0xff]  }
  0x50   : > { %1147 = vmatprep.subr.bf16.mxu1 %v1761_v62  ;;  %v1856_v62 = vld [vmem:[%s1946_s25 + $0x3a8] ss:$16 sps:$4 sm:$0xff]  }
  0x52   : > { %1107 = vmatpush1.bf16.msra.mxu0 %v1763_v63  ;;  %v1861_v63 = vld [vmem:[%s1946_s25 + $0x1cc] ss:$16 sps:$4 sm:$0xff]  }
  0x53   : > { %1148 = vmatpush1.bf16.msra.mxu1 %v1764_v0  ;;  %1108 = vmatprep.subr.bf16.mxu0 %v1765_v1  ;;  %v1864_v0 = vld [vmem:[%s1946_s25 + $0x3cc] ss:$16 sps:$4 sm:$0xff]   ;;  %v1859_v1 = vld [vmem:[%s1946_s25 + $0x1c8] ss:$16 sps:$4 sm:$0xff]  }
  0x54   : > { %1149 = vmatprep.subr.bf16.mxu1 %v1767_v2  ;;  %v1862_v2 = vld [vmem:[%s1946_s25 + $0x3c8] ss:$16 sps:$4 sm:$0xff]  }
  0x56   : > { %1109 = vmatpush1.bf16.msra.mxu0 %v1769_v3  ;;  %v1867_v3 = vld [vmem:[%s1946_s25 + $0x1ec] ss:$16 sps:$4 sm:$0xff]  }
  0x57   : > { %1150 = vmatpush1.bf16.msra.mxu1 %v1770_v4  ;;  %1160 = vmatprep.subr.bf16.mxu0 %v1777_v5  ;;  %v1870_v4 = vld [vmem:[%s1946_s25 + $0x3ec] ss:$16 sps:$4 sm:$0xff]   ;;  %v1865_v5 = vld [vmem:[%s1946_s25 + $0x1e8] ss:$16 sps:$4 sm:$0xff]  }
  0x58   : > { %1201 = vmatprep.subr.bf16.mxu1 %v1780_v6  ;;  %v1868_v6 = vld [vmem:[%s1946_s25 + $0x3e8] ss:$16 sps:$4 sm:$0xff]  }
  0x59   : > { %1111 = vmatmul.mubr.bf16.vlgmr.msra.gmra.mrb[0].mxu0 %v2020_v7 }
  0x5a   : > { %1152 = vmatmul.mubr.bf16.vlgmr.msra.gmra.mrb[0].mxu1 %v2022_v8  ;;  %1161 = vmatpush1.bf16.msra.mxu0 %v1775_v9 }
  0x5b   : > { %1202 = vmatpush1.bf16.msra.mxu1 %v1778_v10  ;;  %1162 = vmatprep.subr.bf16.mxu0 %v1783_v11  ;;  %v290_v10 = vld [vmem:[#allocation2] sm:$0xff] }
  0x5c   : > { %1203 = vmatprep.subr.bf16.mxu1 %v1786_v12  ;;  %1192 = vmatprep.mubr.bf16.mxu0 %v1996_v48  ;;  %v1840_v48 = vld [vmem:[%s1946_s25 + $0x34c] ss:$16 sps:$4 sm:$0xff]  }
  0x5d   : > { %1233 = vmatprep.mubr.bf16.mxu1 %v1509_v52  ;;  %v1846_v52 = vld [vmem:[%s1946_s25 + $0x36c] ss:$16 sps:$4 sm:$0xff]  }
  0x5e   : > { %1163 = vmatpush1.bf16.msra.mxu0 %v1781_v13 }
  0x5f   : > { %1204 = vmatpush1.bf16.msra.mxu1 %v1784_v14  ;;  %1164 = vmatprep.subr.bf16.mxu0 %v1789_v15  ;;  %v291_v14 = vld [vmem:[#allocation2 + $0x8] sm:$0xff] }
  0x60   : > { %1205 = vmatprep.subr.bf16.mxu1 %v1792_v16 }
  0x62   : > { %1165 = vmatpush1.bf16.msra.mxu0 %v1787_v17 }
  0x63   : > { %1206 = vmatpush1.bf16.msra.mxu1 %v1790_v18  ;;  %1166 = vmatprep.subr.bf16.mxu0 %v1795_v19 }
  0x64   : > { %1207 = vmatprep.subr.bf16.mxu1 %v1798_v20 }
  0x66   : > { %1167 = vmatpush1.bf16.msra.mxu0 %v1793_v21 }
  0x67   : > { %1208 = vmatpush1.bf16.msra.mxu1 %v1796_v22  ;;  %1168 = vmatprep.subr.bf16.mxu0 %v1801_v23 }
  0x68   : > { %1209 = vmatprep.subr.bf16.mxu1 %v1804_v24 }
  0x6a   : > { %1169 = vmatpush1.bf16.msra.mxu0 %v1799_v25 }
  0x6b   : > { %1210 = vmatpush1.bf16.msra.mxu1 %v1802_v26  ;;  %1170 = vmatprep.subr.bf16.mxu0 %v1807_v27  ;;  %v293_v26 = vld [vmem:[#allocation2 + $0x18] sm:$0xff] }
  0x6c   : > { %1211 = vmatprep.subr.bf16.mxu1 %v1810_v28 }
  0x6e   : > { %1171 = vmatpush1.bf16.msra.mxu0 %v1805_v29 }
  0x6f   : > { %1212 = vmatpush1.bf16.msra.mxu1 %v1808_v30  ;;  %1172 = vmatprep.subr.bf16.mxu0 %v1813_v31 }
  0x70   : > { %1213 = vmatprep.subr.bf16.mxu1 %v1816_v32 }
  0x72   : > { %1173 = vmatpush1.bf16.msra.mxu0 %v1811_v33 }
  0x73   : > { %1214 = vmatpush1.bf16.msra.mxu1 %v1814_v34  ;;  %1174 = vmatprep.subr.bf16.mxu0 %v1819_v35 }
  0x74   : > { %1215 = vmatprep.subr.bf16.mxu1 %v1822_v36  ;;  %v1310_v36 = vlaneseq (!%p1638_p7) }
  0x76   : > { %1175 = vmatpush1.bf16.msra.mxu0 %v1817_v37 }
  0x77   : > { %1216 = vmatpush1.bf16.msra.mxu1 %v1820_v38  ;;  %1176 = vmatprep.subr.bf16.mxu0 %v1825_v39 }
  0x78   : > { %1217 = vmatprep.subr.bf16.mxu1 %v1828_v40 }
  0x7a   : > { %1177 = vmatpush1.bf16.msra.mxu0 %v1823_v41 }
  0x7b   : > { %1218 = vmatpush1.bf16.msra.mxu1 %v1826_v42  ;;  %1178 = vmatprep.subr.bf16.mxu0 %v1831_v43 }
  0x7c   : > { %1219 = vmatprep.subr.bf16.mxu1 %v1834_v44  ;;  %v2092_v44 = vshrl.u32 (!%p1638_p7), %v1310_v36, 7 }
  0x7e   : > { %1179 = vmatpush1.bf16.msra.mxu0 %v1829_v45  ;;  %vm1313_vm0 = vcmp.eq.s32.totalorder (!%p1638_p7), %v2092_v44, 1  ;;  %vm1312_vm1 = vcmp.eq.s32.totalorder (!%p1638_p7), %v2092_v44, 0 }
  0x7f   : > { %1220 = vmatpush1.bf16.msra.mxu1 %v1832_v46  ;;  %1180 = vmatprep.subr.bf16.mxu0 %v1837_v47 }
  0x80   : > { %1221 = vmatprep.subr.bf16.mxu1 %v1840_v48 }
  0x82   : > { %1181 = vmatpush1.bf16.msra.mxu0 %v1835_v49 }
  0x83   : > { %1222 = vmatpush1.bf16.msra.mxu1 %v1838_v50  ;;  %1182 = vmatprep.subr.bf16.mxu0 %v1843_v51 }
  0x84   : > { %1223 = vmatprep.subr.bf16.mxu1 %v1846_v52 }
  0x86   : > { %1183 = vmatpush1.bf16.msra.mxu0 %v1841_v53 }
  0x87   : > { %1224 = vmatpush1.bf16.msra.mxu1 %v1844_v54  ;;  %1184 = vmatprep.subr.bf16.mxu0 %v1849_v55 }
  0x88   : > { %1225 = vmatprep.subr.bf16.mxu1 %v1852_v56 }
  0x8a   : > { %1185 = vmatpush1.bf16.msra.mxu0 %v1847_v57 }
  0x8b   : > { %1226 = vmatpush1.bf16.msra.mxu1 %v1850_v58  ;;  %1186 = vmatprep.subr.bf16.mxu0 %v1855_v59 }
  0x8c   : > { %1227 = vmatprep.subr.bf16.mxu1 %v1858_v60 }
  0x8e   : > { %1187 = vmatpush1.bf16.msra.mxu0 %v1853_v61 }
  0x8f   : > { %1228 = vmatpush1.bf16.msra.mxu1 %v1856_v62  ;;  %1188 = vmatprep.subr.bf16.mxu0 %v1861_v63 }
  0x90   : > { %1229 = vmatprep.subr.bf16.mxu1 %v1864_v0 }
  0x92   : > { %1189 = vmatpush1.bf16.msra.mxu0 %v1859_v1 }
  0x93   : > { %1230 = vmatpush1.bf16.msra.mxu1 %v1862_v2  ;;  %1190 = vmatprep.subr.bf16.mxu0 %v1867_v3 }
  0x94   : > { %1231 = vmatprep.subr.bf16.mxu1 %v1870_v4 }
  0x96   : > { %1191 = vmatpush1.bf16.msra.mxu0 %v1865_v5 }
  0x97   : > { %1232 = vmatpush1.bf16.msra.mxu1 %v1868_v6 }
  0x99   : > { %1193 = vmatmul.mubr.bf16.vlgmr.msra.gmra.mrb[4].mxu0 %v2020_v7  ;;  %v292_v7 = vld [vmem:[#allocation2 + $0x10] sm:$0xff] }
  0x9a   : > { %1234 = vmatmul.mubr.bf16.vlgmr.msra.gmra.mrb[4].mxu1 %v2022_v8 }
 0x12c   : > { %v1112_v9 = vpop.f32.mrb[0].mxu0 }
 0x12d   : > { %v1153_v11 = vpop.f32.mrb[0].mxu1  ;;  %v1114_v13 = vpop.f32.mrb[1].mxu0 }
 0x12e   : > { %v1154_v12 = vadd.f32 %v1153_v11, %v1112_v9  ;;  %v1155_v15 = vpop.f32.mrb[1].mxu1  ;;  %v1116_v17 = vpop.f32.mrb[2].mxu0 }
 0x12f   : > { %v1156_v16 = vadd.f32 %v1155_v15, %v1114_v13  ;;  %v1157_v18 = vpop.f32.mrb[2].mxu1  ;;  %v1117_v20 = vpop.f32.mrb[3].mxu0 }
 0x130   : > { %v1242_v19 = vadd.f32 %v1154_v12, %v290_v10  ;;  %v1158_v21 = vpop.f32.mrb[3].mxu1 }
 0x131   : > { %v1243_v22 = vadd.f32 %v1156_v16, %v291_v14 }
 0x132   : > { %1246 = vst [vmem:[#allocation2] sm:$0xff] %v1242_v19 }
 0x133   : > { %1247 = vst [vmem:[#allocation2 + $0x8] sm:$0xff] %v1243_v22 }
 0x139   : > { %v1254_v35 = vld [vmem:[#allocation2] sm:$0xff] (!%p1638_p7) }
 0x13a   : > { %v1255_v37 = vld [vmem:[#allocation2 + $0x8] sm:$0xff] (!%p1638_p7)  ;;  %v1258_v39 = vrot.slane (!%p1638_p7), %v1254_v35, 4  ;;  %v1282_v40 = vmul.f32 (!%p1638_p7), %v1254_v35, %v1254_v35 }
 0x13b   : > { %v1264_v41 = vrot.slane (!%p1638_p7), %v1255_v37, 4  ;;  %v1283_v42 = vmul.f32 (!%p1638_p7), %v1255_v37, %v1255_v37 }
 0x13c   : > { %v1259_v48 = vadd.f32 (!%p1638_p7), %v1258_v39, %v1254_v35  ;;  %v1286_v49 = vrot.slane (!%p1638_p7), %v1282_v40, 4 }
 0x13d   : > { %v1265_v50 = vadd.f32 (!%p1638_p7), %v1264_v41, %v1255_v37  ;;  %v1292_v51 = vrot.slane (!%p1638_p7), %v1283_v42, 4 }
 0x13e   : > { %v1260_v54 = vrot.slane (!%p1638_p7), %v1259_v48, 2  ;;  %v1287_v55 = vadd.f32 (!%p1638_p7), %v1286_v49, %v1282_v40 }
 0x13f   : > { %v1266_v56 = vrot.slane (!%p1638_p7), %v1265_v50, 2  ;;  %v1293_v57 = vadd.f32 (!%p1638_p7), %v1292_v51, %v1283_v42 }
 0x140   : > { %v1261_v62 = vadd.f32 (!%p1638_p7), %v1260_v54, %v1259_v48  ;;  %v1288_v63 = vrot.slane (!%p1638_p7), %v1287_v55, 2 }
 0x141   : > { %v1267_v0 = vadd.f32 (!%p1638_p7), %v1266_v56, %v1265_v50  ;;  %v1294_v1 = vrot.slane (!%p1638_p7), %v1293_v57, 2 }
 0x142   : > { %v1262_v6 = vrot.slane (!%p1638_p7), %v1261_v62, 1  ;;  %v1289_v9 = vadd.f32 (!%p1638_p7), %v1288_v63, %v1287_v55 }
 0x143   : > { %v1268_v10 = vrot.slane (!%p1638_p7), %v1267_v0, 1  ;;  %v1295_v11 = vadd.f32 (!%p1638_p7), %v1294_v1, %v1293_v57 }
 0x144   : > { %v1263_v16 = vadd.f32 (!%p1638_p7), %v1262_v6, %v1261_v62  ;;  %v1290_v17 = vrot.slane (!%p1638_p7), %v1289_v9, 1 }
 0x145   : > { %v1269_v18 = vadd.f32 (!%p1638_p7), %v1268_v10, %v1267_v0  ;;  %v1296_v19 = vrot.slane (!%p1638_p7), %v1295_v11, 1 }
 0x16c   : > { %v1194_v23 = vpop.f32.mrb[4].mxu0 }
 0x16d   : > { %v1235_v24 = vpop.f32.mrb[4].mxu1  ;;  %v1196_v25 = vpop.f32.mrb[5].mxu0  ;;  %1253 = sbr.rel (%p1638_p7) target bundleno = 396 (0x18c), region = 36 }
 0x16e   : > { %v1236_v8 = vadd.f32 %v1235_v24, %v1194_v23  ;;  %v1237_v27 = vpop.f32.mrb[5].mxu1  ;;  %v1198_v29 = vpop.f32.mrb[6].mxu0  ;;  %v1297_v24 = vadd.f32 (!%p1638_p7), %v1296_v19, %v1295_v11 }
 0x16f   : > { %v1238_v28 = vadd.f32 %v1237_v27, %v1196_v25  ;;  %v1239_v30 = vpop.f32.mrb[6].mxu1  ;;  %v1199_v32 = vpop.f32.mrb[7].mxu0 }
 0x170   : > { %v1244_v31 = vadd.f32 %v1236_v8, %v292_v7  ;;  %v1240_v33 = vpop.f32.mrb[7].mxu1  ;;  %v1291_v7 = vadd.f32 (!%p1638_p7), %v1290_v17, %v1289_v9  ;;  %v1648_v8 = vpack.c.bf16 (!%p1638_p7), %v1255_v37, %v1254_v35  ;;  %v1315_v29 = vsel (!%p1638_p7), %vm1313_vm0, %v1297_v24, 0.0 }
 0x171   : > { %v1245_v34 = vadd.f32 %v1238_v28, %v293_v26 }
 0x172   : > { %1248 = vst [vmem:[#allocation2 + $0x10] sm:$0xff] %v1244_v31  ;;  %v1314_v28 = vsel (!%p1638_p7), %vm1313_vm0, %v1291_v7, 0.0  ;;  %1342 = vst [vmem:[%s2141_s2] sm:$0xff] (!%p1638_p7), %v1648_v8  ;;  %v1319_v31 = vsel (!%p1638_p7), %vm1312_vm1, %v1269_v18, %v1315_v29 }
 0x173   : > { %1249 = vst [vmem:[#allocation2 + $0x18] sm:$0xff] %v1245_v34  ;;  %v1318_v30 = vsel (!%p1638_p7), %vm1312_vm1, %v1263_v16, %v1314_v28  ;;  %1323 = vst [vmem:[%s2142_s3 + $0x8] sm:$0xff] (!%p1638_p7), %v1319_v31 }
 0x174   : > { %1322 = vst [vmem:[%s2142_s3] sm:$0xff] %v1318_v30 }
 0x179   : > { %v1256_v38 = vld [vmem:[#allocation2 + $0x10] sm:$0xff] }
 0x17a   : > { %v1257_v43 = vld [vmem:[#allocation2 + $0x18] sm:$0xff]  ;;  %v1270_v45 = vrot.slane %v1256_v38, 4  ;;  %v1284_v46 = vmul.f32 %v1256_v38, %v1256_v38 }
 0x17b   : > { %v1276_v47 = vrot.slane %v1257_v43, 4  ;;  %v1285_v61 = vmul.f32 %v1257_v43, %v1257_v43  ;;  %v1649_v25 = vpack.c.bf16 %v1257_v43, %v1256_v38 }
 0x17c   : > { %v1271_v52 = vadd.f32 %v1270_v45, %v1256_v38  ;;  %v1298_v53 = vrot.slane %v1284_v46, 4 }
 0x17d   : > { %v1277_v60 = vadd.f32 %v1276_v47, %v1257_v43  ;;  %v1304_v5 = vrot.slane %v1285_v61, 4  ;;  %1343 = vst [vmem:[%s2141_s2 + $0x8] sm:$0xff] %v1649_v25 }
 0x17e   : > { %v1272_v58 = vrot.slane %v1271_v52, 2  ;;  %v1299_v59 = vadd.f32 %v1298_v53, %v1284_v46 }
 0x17f   : > { %v1278_v4 = vrot.slane %v1277_v60, 2  ;;  %v1305_v15 = vadd.f32 %v1304_v5, %v1285_v61 }
 0x180   : > { %v1273_v2 = vadd.f32 %v1272_v58, %v1271_v52  ;;  %v1300_v3 = vrot.slane %v1299_v59, 2 }
 0x181   : > { %v1279_v14 = vadd.f32 %v1278_v4, %v1277_v60  ;;  %v1306_v23 = vrot.slane %v1305_v15, 2 }
 0x182   : > { %v1274_v12 = vrot.slane %v1273_v2, 1  ;;  %v1301_v13 = vadd.f32 %v1300_v3, %v1299_v59 }
 0x183   : > { %v1280_v22 = vrot.slane %v1279_v14, 1  ;;  %v1307_v27 = vadd.f32 %v1306_v23, %v1305_v15 }
 0x184   : > { %v1275_v20 = vadd.f32 %v1274_v12, %v1273_v2  ;;  %v1302_v21 = vrot.slane %v1301_v13, 1 }
 0x185   : > { %v1308_v33 = vrot.slane %v1307_v27, 1  ;;  %v1281_v35 = vadd.f32 %v1280_v22, %v1279_v14 }
 0x186   : > { %v1303_v26 = vadd.f32 %v1302_v21, %v1301_v13 }
 0x187   : > { %v1309_v36 = vadd.f32 %v1308_v33, %v1307_v27 }
 0x188   : > { %v1316_v32 = vsel %vm1313_vm0, %v1303_v26, 0.0 }
 0x189   : > { %v1320_v34 = vsel %vm1312_vm1, %v1275_v20, %v1316_v32  ;;  %v1317_v37 = vsel %vm1313_vm0, %v1309_v36, 0.0 }
 0x18a   : > { %1324 = vst [vmem:[%s2142_s3 + $0x10] sm:$0xff] %v1320_v34  ;;  %v1321_v38 = vsel %vm1312_vm1, %v1281_v35, %v1317_v37 }
 0x18b   : > { %1325 = vst [vmem:[%s2142_s3 + $0x18] sm:$0xff] %v1321_v38 }
 0x18c PF: > { %s14_s14 = sadd.s32 1, %s1893_s14   ;;  %s2143_s12 = smov %s1889_s13 }
 0x18d   : > { %p11_p8 = scmp.ge.s32.totalorder %s14_s14, 11   ;;  %s2144_s13 = smov %s2146_s15 }
 0x18f   :  { %13 = sbr.rel (!%p11_p8) target bundleno = 2 (0x2), region = 81 }

// kernel: _forward.76
= control target key start
LH: loop header
LB: loop body
LE: loop exit
PB: predicated region body
PF: predicated region fallthrough
CT: control target
= control target key end

     0   :  { %s1024_s1 = inlined_call_operand.vmem [shape: bf16[256,512], index: 1, kind: input, shape index: {}]   ;;  %s1025_s0 = inlined_call_operand.vmem [shape: bf16[8,256], index: 0, kind: input, shape index: {}]   ;;  %s1026_s2 = inlined_call_operand.vmem [shape: bf16[8,512], index: 2, kind: output, shape index: {0}]   ;;  %s1027_s3 = inlined_call_operand.vmem [shape: f32[8,512], index: 3, kind: output, shape index: {1}]  }
   0x1   :  { %v678_v0 = vld [vmem:[%s1024_s1 + $0x4] ss:$16 sps:$4 sm:$0xff]   ;;  %v680_v1 = vld [vmem:[%s1024_s1 + $0xc] ss:$16 sps:$4 sm:$0xff]   ;;  %v682_v2 = vld [vmem:[%s1024_s1] ss:$16 sps:$4 sm:$0xff]  }
   0x2   :  { %417 = vmatprep.subr.bf16.mxu0 %v678_v0  ;;  %v683_v3 = vld [vmem:[%s1024_s1 + $0x8] ss:$16 sps:$4 sm:$0xff]   ;;  %458 = vmatprep.subr.bf16.mxu1 %v680_v1  ;;  %v684_v4 = vld [vmem:[%s1024_s1 + $0x24] ss:$16 sps:$4 sm:$0xff]   ;;  %v686_v5 = vld [vmem:[%s1024_s1 + $0x2c] ss:$16 sps:$4 sm:$0xff]  }
   0x3   :  { %418 = vmatpush1.bf16.msra.mxu0 %v682_v2  ;;  %459 = vmatpush1.bf16.msra.mxu1 %v683_v3  ;;  %v688_v6 = vld [vmem:[%s1024_s1 + $0x20] ss:$16 sps:$4 sm:$0xff]   ;;  %v689_v7 = vld [vmem:[%s1024_s1 + $0x28] ss:$16 sps:$4 sm:$0xff]   ;;  %v690_v8 = vld [vmem:[%s1024_s1 + $0x44] ss:$16 sps:$4 sm:$0xff]  }
   0x4   :  { %419 = vmatprep.subr.bf16.mxu0 %v684_v4  ;;  %460 = vmatprep.subr.bf16.mxu1 %v686_v5  ;;  %v692_v9 = vld [vmem:[%s1024_s1 + $0x4c] ss:$16 sps:$4 sm:$0xff]   ;;  %v694_v10 = vld [vmem:[%s1024_s1 + $0x40] ss:$16 sps:$4 sm:$0xff]   ;;  %v695_v11 = vld [vmem:[%s1024_s1 + $0x48] ss:$16 sps:$4 sm:$0xff]   ;;  %v566_v4 = vlaneseq }
   0x5   :  { %v696_v12 = vld [vmem:[%s1024_s1 + $0x64] ss:$16 sps:$4 sm:$0xff]   ;;  %v698_v13 = vld [vmem:[%s1024_s1 + $0x6c] ss:$16 sps:$4 sm:$0xff]   ;;  %v700_v14 = vld [vmem:[%s1024_s1 + $0x60] ss:$16 sps:$4 sm:$0xff]  }
   0x6   :  { %v701_v15 = vld [vmem:[%s1024_s1 + $0x68] ss:$16 sps:$4 sm:$0xff]   ;;  %v702_v16 = vld [vmem:[%s1024_s1 + $0x84] ss:$16 sps:$4 sm:$0xff]   ;;  %v704_v17 = vld [vmem:[%s1024_s1 + $0x8c] ss:$16 sps:$4 sm:$0xff]  }
   0x7   :  { %420 = vmatpush1.bf16.msra.mxu0 %v688_v6  ;;  %461 = vmatpush1.bf16.msra.mxu1 %v689_v7  ;;  %v706_v18 = vld [vmem:[%s1024_s1 + $0x80] ss:$16 sps:$4 sm:$0xff]   ;;  %v707_v19 = vld [vmem:[%s1024_s1 + $0x88] ss:$16 sps:$4 sm:$0xff]   ;;  %v708_v20 = vld [vmem:[%s1024_s1 + $0xa4] ss:$16 sps:$4 sm:$0xff]  }
   0x8   :  { %421 = vmatprep.subr.bf16.mxu0 %v690_v8  ;;  %462 = vmatprep.subr.bf16.mxu1 %v692_v9  ;;  %v710_v21 = vld [vmem:[%s1024_s1 + $0xac] ss:$16 sps:$4 sm:$0xff]   ;;  %v712_v22 = vld [vmem:[%s1024_s1 + $0xa0] ss:$16 sps:$4 sm:$0xff]   ;;  %v713_v23 = vld [vmem:[%s1024_s1 + $0xa8] ss:$16 sps:$4 sm:$0xff]  }
   0x9   :  { %v714_v24 = vld [vmem:[%s1024_s1 + $0xc4] ss:$16 sps:$4 sm:$0xff]   ;;  %v716_v25 = vld [vmem:[%s1024_s1 + $0xcc] ss:$16 sps:$4 sm:$0xff]   ;;  %v718_v26 = vld [vmem:[%s1024_s1 + $0xc0] ss:$16 sps:$4 sm:$0xff]  }
   0xa   :  { %v719_v27 = vld [vmem:[%s1024_s1 + $0xc8] ss:$16 sps:$4 sm:$0xff]   ;;  %v720_v28 = vld [vmem:[%s1024_s1 + $0xe4] ss:$16 sps:$4 sm:$0xff]   ;;  %v722_v29 = vld [vmem:[%s1024_s1 + $0xec] ss:$16 sps:$4 sm:$0xff]  }
   0xb   :  { %422 = vmatpush1.bf16.msra.mxu0 %v694_v10  ;;  %463 = vmatpush1.bf16.msra.mxu1 %v695_v11  ;;  %v724_v30 = vld [vmem:[%s1024_s1 + $0xe0] ss:$16 sps:$4 sm:$0xff]   ;;  %v725_v31 = vld [vmem:[%s1024_s1 + $0xe8] ss:$16 sps:$4 sm:$0xff]   ;;  %v726_v32 = vld [vmem:[%s1024_s1 + $0x104] ss:$16 sps:$4 sm:$0xff]  }
   0xc   :  { %423 = vmatprep.subr.bf16.mxu0 %v696_v12  ;;  %464 = vmatprep.subr.bf16.mxu1 %v698_v13  ;;  %v728_v33 = vld [vmem:[%s1024_s1 + $0x10c] ss:$16 sps:$4 sm:$0xff]   ;;  %v730_v34 = vld [vmem:[%s1024_s1 + $0x100] ss:$16 sps:$4 sm:$0xff]   ;;  %v731_v35 = vld [vmem:[%s1024_s1 + $0x108] ss:$16 sps:$4 sm:$0xff]  }
   0xd   :  { %v732_v36 = vld [vmem:[%s1024_s1 + $0x124] ss:$16 sps:$4 sm:$0xff]   ;;  %v734_v37 = vld [vmem:[%s1024_s1 + $0x12c] ss:$16 sps:$4 sm:$0xff]   ;;  %v736_v38 = vld [vmem:[%s1024_s1 + $0x120] ss:$16 sps:$4 sm:$0xff]  }
   0xe   :  { %v737_v39 = vld [vmem:[%s1024_s1 + $0x128] ss:$16 sps:$4 sm:$0xff]   ;;  %v738_v40 = vld [vmem:[%s1024_s1 + $0x144] ss:$16 sps:$4 sm:$0xff]   ;;  %v740_v41 = vld [vmem:[%s1024_s1 + $0x14c] ss:$16 sps:$4 sm:$0xff]  }
   0xf   :  { %424 = vmatpush1.bf16.msra.mxu0 %v700_v14  ;;  %465 = vmatpush1.bf16.msra.mxu1 %v701_v15  ;;  %v742_v42 = vld [vmem:[%s1024_s1 + $0x140] ss:$16 sps:$4 sm:$0xff]   ;;  %v743_v43 = vld [vmem:[%s1024_s1 + $0x148] ss:$16 sps:$4 sm:$0xff]   ;;  %v744_v44 = vld [vmem:[%s1024_s1 + $0x164] ss:$16 sps:$4 sm:$0xff]  }
  0x10   :  { %425 = vmatprep.subr.bf16.mxu0 %v702_v16  ;;  %466 = vmatprep.subr.bf16.mxu1 %v704_v17  ;;  %v746_v45 = vld [vmem:[%s1024_s1 + $0x16c] ss:$16 sps:$4 sm:$0xff]   ;;  %v25_v46 = vld [vmem:[%s1025_s0] sm:$0xff]  ;;  %v749_v49 = vld [vmem:[%s1024_s1 + $0x168] ss:$16 sps:$4 sm:$0xff]  }
  0x11   :  { %v609_v47 = vcombine.high %v25_v46, %v25_v46  ;;  %v748_v48 = vld [vmem:[%s1024_s1 + $0x160] ss:$16 sps:$4 sm:$0xff]   ;;  %v750_v50 = vld [vmem:[%s1024_s1 + $0x184] ss:$16 sps:$4 sm:$0xff]   ;;  %v752_v51 = vld [vmem:[%s1024_s1 + $0x18c] ss:$16 sps:$4 sm:$0xff]   ;;  %v608_v2 = vcombine.low %v25_v46, %v25_v46 }
  0x12   :  { %v754_v52 = vld [vmem:[%s1024_s1 + $0x180] ss:$16 sps:$4 sm:$0xff]   ;;  %v755_v53 = vld [vmem:[%s1024_s1 + $0x188] ss:$16 sps:$4 sm:$0xff]   ;;  %v756_v54 = vld [vmem:[%s1024_s1 + $0x1a4] ss:$16 sps:$4 sm:$0xff]  }
  0x13   :  { %426 = vmatpush1.bf16.msra.mxu0 %v706_v18  ;;  %467 = vmatpush1.bf16.msra.mxu1 %v707_v19  ;;  %v758_v55 = vld [vmem:[%s1024_s1 + $0x1ac] ss:$16 sps:$4 sm:$0xff]   ;;  %v760_v56 = vld [vmem:[%s1024_s1 + $0x1a0] ss:$16 sps:$4 sm:$0xff]   ;;  %v761_v57 = vld [vmem:[%s1024_s1 + $0x1a8] ss:$16 sps:$4 sm:$0xff]  }
  0x14   :  { %427 = vmatprep.subr.bf16.mxu0 %v708_v20  ;;  %468 = vmatprep.subr.bf16.mxu1 %v710_v21  ;;  %v762_v58 = vld [vmem:[%s1024_s1 + $0x1c4] ss:$16 sps:$4 sm:$0xff]   ;;  %v764_v59 = vld [vmem:[%s1024_s1 + $0x1cc] ss:$16 sps:$4 sm:$0xff]   ;;  %v766_v60 = vld [vmem:[%s1024_s1 + $0x1c0] ss:$16 sps:$4 sm:$0xff]  }
  0x15   :  { %449 = vmatprep.mubr.bf16.mxu0 %v609_v47  ;;  %490 = vmatprep.mubr.bf16.mxu1 %v609_v47  ;;  %v767_v61 = vld [vmem:[%s1024_s1 + $0x1c8] ss:$16 sps:$4 sm:$0xff]   ;;  %v768_v62 = vld [vmem:[%s1024_s1 + $0x1e4] ss:$16 sps:$4 sm:$0xff]   ;;  %v770_v63 = vld [vmem:[%s1024_s1 + $0x1ec] ss:$16 sps:$4 sm:$0xff]  }
  0x16   :  { %v772_v0 = vld [vmem:[%s1024_s1 + $0x1e0] ss:$16 sps:$4 sm:$0xff]   ;;  %v773_v1 = vld [vmem:[%s1024_s1 + $0x1e8] ss:$16 sps:$4 sm:$0xff]  }
  0x17   :  { %428 = vmatpush1.bf16.msra.mxu0 %v712_v22  ;;  %469 = vmatpush1.bf16.msra.mxu1 %v713_v23 }
  0x18   :  { %429 = vmatprep.subr.bf16.mxu0 %v714_v24  ;;  %470 = vmatprep.subr.bf16.mxu1 %v716_v25 }
  0x1b   :  { %430 = vmatpush1.bf16.msra.mxu0 %v718_v26  ;;  %471 = vmatpush1.bf16.msra.mxu1 %v719_v27 }
  0x1c   :  { %431 = vmatprep.subr.bf16.mxu0 %v720_v28  ;;  %472 = vmatprep.subr.bf16.mxu1 %v722_v29 }
  0x1f   :  { %432 = vmatpush1.bf16.msra.mxu0 %v724_v30  ;;  %473 = vmatpush1.bf16.msra.mxu1 %v725_v31 }
  0x20   :  { %433 = vmatprep.subr.bf16.mxu0 %v726_v32  ;;  %474 = vmatprep.subr.bf16.mxu1 %v728_v33 }
  0x23   :  { %434 = vmatpush1.bf16.msra.mxu0 %v730_v34  ;;  %475 = vmatpush1.bf16.msra.mxu1 %v731_v35 }
  0x24   :  { %435 = vmatprep.subr.bf16.mxu0 %v732_v36  ;;  %476 = vmatprep.subr.bf16.mxu1 %v734_v37 }
  0x27   :  { %436 = vmatpush1.bf16.msra.mxu0 %v736_v38  ;;  %477 = vmatpush1.bf16.msra.mxu1 %v737_v39 }
  0x28   :  { %437 = vmatprep.subr.bf16.mxu0 %v738_v40  ;;  %478 = vmatprep.subr.bf16.mxu1 %v740_v41  ;;  %v567_v40 = vshrl.u32 %v566_v4, 7 }
  0x2a   :  { %vm568_vm0 = vcmp.eq.s32.totalorder %v567_v40, 0  ;;  %vm569_vm1 = vcmp.eq.s32.totalorder %v567_v40, 1 }
  0x2b   :  { %438 = vmatpush1.bf16.msra.mxu0 %v742_v42  ;;  %479 = vmatpush1.bf16.msra.mxu1 %v743_v43 }
  0x2c   :  { %439 = vmatprep.subr.bf16.mxu0 %v744_v44  ;;  %480 = vmatprep.subr.bf16.mxu1 %v746_v45 }
  0x2f   :  { %440 = vmatpush1.bf16.msra.mxu0 %v748_v48  ;;  %481 = vmatpush1.bf16.msra.mxu1 %v749_v49 }
  0x30   :  { %441 = vmatprep.subr.bf16.mxu0 %v750_v50  ;;  %482 = vmatprep.subr.bf16.mxu1 %v752_v51 }
  0x33   :  { %442 = vmatpush1.bf16.msra.mxu0 %v754_v52  ;;  %483 = vmatpush1.bf16.msra.mxu1 %v755_v53 }
  0x34   :  { %443 = vmatprep.subr.bf16.mxu0 %v756_v54  ;;  %484 = vmatprep.subr.bf16.mxu1 %v758_v55 }
  0x37   :  { %444 = vmatpush1.bf16.msra.mxu0 %v760_v56  ;;  %485 = vmatpush1.bf16.msra.mxu1 %v761_v57 }
  0x38   :  { %445 = vmatprep.subr.bf16.mxu0 %v762_v58  ;;  %486 = vmatprep.subr.bf16.mxu1 %v764_v59 }
  0x3b   :  { %446 = vmatpush1.bf16.msra.mxu0 %v766_v60  ;;  %487 = vmatpush1.bf16.msra.mxu1 %v767_v61 }
  0x3c   :  { %447 = vmatprep.subr.bf16.mxu0 %v768_v62  ;;  %488 = vmatprep.subr.bf16.mxu1 %v770_v63 }
  0x3f   :  { %448 = vmatpush1.bf16.msra.mxu0 %v772_v0  ;;  %489 = vmatpush1.bf16.msra.mxu1 %v773_v1 }
  0x42   :  { %450 = vmatmul.mubr.bf16.vlgmr.msra.gmra.mrb[0].mxu0 %v608_v2  ;;  %491 = vmatmul.mubr.bf16.vlgmr.msra.gmra.mrb[0].mxu1 %v608_v2 }
 0x115   :  { %v451_v3 = vpop.f32.mrb[0].mxu0  ;;  %v991_v5 = vpop.f32.mrb[0].mxu1 }
 0x116   :  { %v514_v6 = vrot.slane %v451_v3, 4  ;;  %v538_v7 = vmul.f32 %v451_v3, %v451_v3  ;;  %v526_v8 = vrot.slane %v991_v5, 4  ;;  %v540_v9 = vmul.f32 %v991_v5, %v991_v5  ;;  %v453_v10 = vpop.f32.mrb[1].mxu0  ;;  %v494_v11 = vpop.f32.mrb[1].mxu1 }
 0x117   :  { %v520_v12 = vrot.slane %v453_v10, 4  ;;  %v539_v13 = vmul.f32 %v453_v10, %v453_v10  ;;  %v676_v14 = vpack.c.bf16 %v453_v10, %v451_v3  ;;  %v532_v15 = vrot.slane %v494_v11, 4  ;;  %v455_v16 = vpop.f32.mrb[2].mxu0  ;;  %v496_v17 = vpop.f32.mrb[2].mxu1 }
 0x118   :  { %v515_v18 = vadd.f32 %v514_v6, %v451_v3  ;;  %v542_v19 = vrot.slane %v538_v7, 4  ;;  %v527_v20 = vadd.f32 %v526_v8, %v991_v5  ;;  %v554_v21 = vrot.slane %v540_v9, 4  ;;  %v456_v22 = vpop.f32.mrb[3].mxu0  ;;  %v497_v23 = vpop.f32.mrb[3].mxu1 }
 0x119   :  { %v521_v24 = vadd.f32 %v520_v12, %v453_v10  ;;  %v548_v25 = vrot.slane %v539_v13, 4  ;;  %598 = vst [vmem:[%s1026_s2] sm:$0xff] %v676_v14  ;;  %v533_v26 = vadd.f32 %v532_v15, %v494_v11  ;;  %v541_v27 = vmul.f32 %v494_v11, %v494_v11 }
 0x11a   :  { %v516_v28 = vrot.slane %v515_v18, 2  ;;  %v543_v29 = vadd.f32 %v542_v19, %v538_v7  ;;  %v528_v30 = vrot.slane %v527_v20, 2  ;;  %v555_v31 = vadd.f32 %v554_v21, %v540_v9 }
 0x11b   :  { %v522_v32 = vrot.slane %v521_v24, 2  ;;  %v549_v33 = vadd.f32 %v548_v25, %v539_v13  ;;  %v534_v34 = vrot.slane %v533_v26, 2  ;;  %v560_v35 = vrot.slane %v541_v27, 4 }
 0x11c   :  { %v517_v36 = vadd.f32 %v516_v28, %v515_v18  ;;  %v544_v37 = vrot.slane %v543_v29, 2  ;;  %v529_v38 = vadd.f32 %v528_v30, %v527_v20  ;;  %v556_v39 = vrot.slane %v555_v31, 2 }
 0x11d   :  { %v523_v41 = vadd.f32 %v522_v32, %v521_v24  ;;  %v550_v42 = vrot.slane %v549_v33, 2  ;;  %v561_v43 = vadd.f32 %v560_v35, %v541_v27  ;;  %v535_v46 = vadd.f32 %v534_v34, %v533_v26 }
 0x11e   :  { %v545_v44 = vadd.f32 %v544_v37, %v543_v29  ;;  %v557_v45 = vadd.f32 %v556_v39, %v555_v31  ;;  %v518_v47 = vrot.slane %v517_v36, 1  ;;  %v530_v48 = vrot.slane %v529_v38, 1 }
 0x11f   :  { %v551_v49 = vadd.f32 %v550_v42, %v549_v33  ;;  %v562_v50 = vrot.slane %v561_v43, 2  ;;  %v524_v53 = vrot.slane %v523_v41, 1  ;;  %v536_v58 = vrot.slane %v535_v46, 1 }
 0x120   :  { %v546_v51 = vrot.slane %v545_v44, 1  ;;  %v558_v52 = vrot.slane %v557_v45, 1  ;;  %v677_v59 = vpack.c.bf16 %v494_v11, %v991_v5  ;;  %v519_v60 = vadd.f32 %v518_v47, %v517_v36 }
 0x121   :  { %v552_v54 = vrot.slane %v551_v49, 1  ;;  %v563_v55 = vadd.f32 %v562_v50, %v561_v43  ;;  %v531_v61 = vadd.f32 %v530_v48, %v529_v38  ;;  %v525_v2 = vadd.f32 %v524_v53, %v523_v41 }
 0x122   :  { %v547_v56 = vadd.f32 %v546_v51, %v545_v44  ;;  %v559_v57 = vadd.f32 %v558_v52, %v557_v45  ;;  %599 = vst [vmem:[%s1026_s2 + $0x8] sm:$0xff] %v677_v59  ;;  %v537_v8 = vadd.f32 %v536_v58, %v535_v46 }
 0x123   :  { %v553_v62 = vadd.f32 %v552_v54, %v551_v49  ;;  %v564_v63 = vrot.slane %v563_v55, 1 }
 0x124   :  { %v570_v0 = vsel %vm569_vm1, %v547_v56, 0.0  ;;  %v572_v1 = vsel %vm569_vm1, %v559_v57, 0.0 }
 0x125   :  { %v574_v3 = vsel %vm568_vm0, %v519_v60, %v570_v0  ;;  %v576_v4 = vsel %vm568_vm0, %v531_v61, %v572_v1  ;;  %v571_v6 = vsel %vm569_vm1, %v553_v62, 0.0  ;;  %v565_v5 = vadd.f32 %v564_v63, %v563_v55 }
 0x126   :  { %578 = vst [vmem:[%s1027_s3] sm:$0xff] %v574_v3  ;;  %580 = vst [vmem:[%s1027_s3 + $0x10] sm:$0xff] %v576_v4  ;;  %v575_v7 = vsel %vm568_vm0, %v525_v2, %v571_v6 }
 0x127   :  { %579 = vst [vmem:[%s1027_s3 + $0x8] sm:$0xff] %v575_v7  ;;  %v573_v9 = vsel %vm569_vm1, %v565_v5, 0.0 }
 0x128   :  { %v577_v10 = vsel %vm568_vm0, %v537_v8, %v573_v9 }
 0x129   :  { %581 = vst [vmem:[%s1027_s3 + $0x18] sm:$0xff] %v577_v10 }

// kernel: _forward.77
= control target key start
LH: loop header
LB: loop body
LE: loop exit
PB: predicated region body
PF: predicated region fallthrough
CT: control target
= control target key end

     0   :  { %v22_v0 = vlaneseq  ;;  %s136_s0 = inlined_call_operand.vmem [shape: bf16[8,512], index: 0, kind: input, shape index: {}]   ;;  %s137_s1 = inlined_call_operand.vmem [shape: f32[1,512], index: 1, kind: input, shape index: {}]   ;;  %s138_s2 = inlined_call_operand.vmem [shape: f32[1,512], index: 2, kind: input, shape index: {}]   ;;  %s139_s3 = inlined_call_operand.vmem [shape: bf16[8,512], index: 3, kind: output, shape index: {}]  }
   0x1   :  { %v14_v1 = vld [vmem:[%s136_s0] sm:$0xff]  ;;  %v15_v3 = vld [vmem:[%s136_s0 + $0x8] sm:$0xff] }
   0x2   :  { %v23_v2 = vshrl.u32 %v22_v0, 7  ;;  %v16_v4 = vunpack.c.l.bf16 %v14_v1  ;;  %v17_v5 = vunpack.c.h.bf16 %v14_v1  ;;  %v20_v6 = vld [vmem:[%s137_s1] sm:$0xf]  ;;  %v18_v12 = vunpack.c.l.bf16 %v15_v3 }
   0x3   :  { %v46_v7 = vld [vmem:[%s138_s2] sm:$0xf]  ;;  %v19_v13 = vunpack.c.h.bf16 %v15_v3 }
   0x4   :  { %v24_v8 = vsub.s32 0, %v23_v2  ;;  %v28_v9 = vsub.s32 1, %v23_v2  ;;  %v32_v10 = vsub.s32 2, %v23_v2  ;;  %v36_v11 = vsub.s32 3, %v23_v2 }
   0x6   :  { %v25_v14 = vrot.slane %v20_v6, %v24_v8  ;;  %v29_v15 = vrot.slane %v20_v6, %v28_v9  ;;  %v51_v16 = vrot.slane %v46_v7, %v24_v8  ;;  %v55_v17 = vrot.slane %v46_v7, %v28_v9 }
   0x7   :  { %v33_v18 = vrot.slane %v20_v6, %v32_v10  ;;  %v37_v19 = vrot.slane %v20_v6, %v36_v11  ;;  %v59_v20 = vrot.slane %v46_v7, %v32_v10  ;;  %v63_v21 = vrot.slane %v46_v7, %v36_v11 }
   0x8   :  { %v42_v22 = vmul.f32 %v25_v14, %v16_v4  ;;  %v43_v23 = vmul.f32 %v29_v15, %v17_v5 }
   0x9   :  { %v44_v24 = vmul.f32 %v33_v18, %v18_v12  ;;  %v45_v25 = vmul.f32 %v37_v19, %v19_v13 }
   0xa   :  { %v68_v26 = vadd.f32 %v51_v16, %v42_v22  ;;  %v69_v27 = vadd.f32 %v55_v17, %v43_v23 }
   0xb   :  { %v70_v28 = vadd.f32 %v59_v20, %v44_v24  ;;  %v71_v29 = vadd.f32 %v63_v21, %v45_v25 }
   0xc   :  { %v96_v30 = vpack.c.bf16 %v69_v27, %v68_v26 }
   0xd   :  { %v97_v31 = vpack.c.bf16 %v71_v29, %v70_v28 }
   0xe   :  { %88 = vst [vmem:[%s139_s3] sm:$0xff] %v96_v30 }
   0xf   :  { %89 = vst [vmem:[%s139_s3 + $0x8] sm:$0xff] %v97_v31 }

// kernel: _forward.79
= control target key start
LH: loop header
LB: loop body
LE: loop exit
PB: predicated region body
PF: predicated region fallthrough
CT: control target
= control target key end

     0   :  { %v25_v0 = vlaneseq  ;;  %s164_s0 = inlined_call_operand.vmem [shape: bf16[8,512], index: 0, kind: input, shape index: {}]   ;;  %s165_s2 = inlined_call_operand.vmem [shape: f32[1,512], index: 2, kind: input, shape index: {}]   ;;  %s166_s3 = inlined_call_operand.vmem [shape: f32[1,512], index: 3, kind: input, shape index: {}]   ;;  %s167_s1 = inlined_call_operand.vmem [shape: bf16[8,512], index: 1, kind: input, shape index: {}]   ;;  %s168_s4 = inlined_call_operand.vmem [shape: bf16[8,512], index: 4, kind: output, shape index: {}]  }
   0x1   :  { %v17_v1 = vld [vmem:[%s164_s0] sm:$0xff]  ;;  %v18_v3 = vld [vmem:[%s164_s0 + $0x8] sm:$0xff] }
   0x2   :  { %v26_v2 = vshrl.u32 %v25_v0, 7  ;;  %v19_v4 = vunpack.c.l.bf16 %v17_v1  ;;  %v20_v5 = vunpack.c.h.bf16 %v17_v1  ;;  %v23_v6 = vld [vmem:[%s165_s2] sm:$0xf]  ;;  %v21_v13 = vunpack.c.l.bf16 %v18_v3  ;;  %v76_v19 = vld [vmem:[%s167_s1 + $0x8] sm:$0xff] }
   0x3   :  { %v49_v7 = vld [vmem:[%s166_s3] sm:$0xf]  ;;  %v22_v14 = vunpack.c.h.bf16 %v18_v3  ;;  %v79_v30 = vunpack.c.l.bf16 %v76_v19  ;;  %v80_v31 = vunpack.c.h.bf16 %v76_v19 }
   0x4   :  { %v27_v8 = vsub.s32 0, %v26_v2  ;;  %v31_v9 = vsub.s32 1, %v26_v2  ;;  %v35_v10 = vsub.s32 2, %v26_v2  ;;  %v39_v11 = vsub.s32 3, %v26_v2  ;;  %v75_v12 = vld [vmem:[%s167_s1] sm:$0xff] }
   0x5   :  { %v77_v26 = vunpack.c.l.bf16 %v75_v12  ;;  %v78_v27 = vunpack.c.h.bf16 %v75_v12 }
   0x6   :  { %v28_v15 = vrot.slane %v23_v6, %v27_v8  ;;  %v32_v16 = vrot.slane %v23_v6, %v31_v9  ;;  %v54_v17 = vrot.slane %v49_v7, %v27_v8  ;;  %v58_v18 = vrot.slane %v49_v7, %v31_v9 }
   0x7   :  { %v36_v20 = vrot.slane %v23_v6, %v35_v10  ;;  %v40_v21 = vrot.slane %v23_v6, %v39_v11  ;;  %v62_v22 = vrot.slane %v49_v7, %v35_v10  ;;  %v66_v23 = vrot.slane %v49_v7, %v39_v11 }
   0x8   :  { %v45_v24 = vmul.f32 %v28_v15, %v19_v4  ;;  %v46_v25 = vmul.f32 %v32_v16, %v20_v5 }
   0x9   :  { %v47_v28 = vmul.f32 %v36_v20, %v21_v13  ;;  %v48_v29 = vmul.f32 %v40_v21, %v22_v14 }
   0xa   :  { %v71_v32 = vadd.f32 %v54_v17, %v45_v24  ;;  %v72_v33 = vadd.f32 %v58_v18, %v46_v25 }
   0xb   :  { %v73_v34 = vadd.f32 %v62_v22, %v47_v28  ;;  %v74_v35 = vadd.f32 %v66_v23, %v48_v29 }
   0xc   :  { %v81_v36 = vadd.f32 %v77_v26, %v71_v32  ;;  %v82_v37 = vadd.f32 %v78_v27, %v72_v33 }
   0xd   :  { %v83_v38 = vadd.f32 %v79_v30, %v73_v34  ;;  %v84_v39 = vadd.f32 %v80_v31, %v74_v35 }
   0xe   :  { %v85_v40 = vmax.f32 %v81_v36, 0.0  ;;  %v86_v41 = vmax.f32 %v82_v37, 0.0 }
   0xf   :  { %v87_v42 = vmax.f32 %v83_v38, 0.0  ;;  %v88_v43 = vmax.f32 %v84_v39, 0.0 }
  0x10   :  { %v113_v44 = vpack.c.bf16 %v86_v41, %v85_v40 }
  0x11   :  { %v114_v45 = vpack.c.bf16 %v88_v43, %v87_v42 }
  0x12   :  { %105 = vst [vmem:[%s168_s4] sm:$0xff] %v113_v44 }
  0x13   :  { %106 = vst [vmem:[%s168_s4 + $0x8] sm:$0xff] %v114_v45 }

// kernel: _forward.84
= control target key start
LH: loop header
LB: loop body
LE: loop exit
PB: predicated region body
PF: predicated region fallthrough
CT: control target
= control target key end

     0   :  { %v104_v0 = vlaneseq  ;;  %vm26_vm0 = vcmask 1043456   ;;  %v153_v3 = vmov 1983009808   ;;  %vm138_vm1 = vcmask 1041409   ;;  %s189_s0 = inlined_call_operand.vmem [shape: bf16[2,4,512], index: 0, kind: input, shape index: {}]   ;;  %s190_s1 = inlined_call_operand.vmem [shape: f32[2,512], index: 1, kind: output, shape index: {}]  }
   0x1   :  { %v8_v1 = vld [vmem:[%s189_s0] sm:$0xff]  ;;  %v9_v2 = vld [vmem:[%s189_s0 + $0x8] sm:$0xff]  ;;  %v170_v4 = vunpack.c.l.s4 %v153_v3  ;;  %vm140_vm2 = vcmask 1043459   ;;  %vm142_vm3 = vcmask 1045509   ;;  %vm144_vm4 = vcmask 1047559  }
   0x2   :  { %v10_v5 = vunpack.c.l.bf16 %v8_v1  ;;  %v11_v6 = vunpack.c.h.bf16 %v8_v1  ;;  %v12_v7 = vunpack.c.l.bf16 %v9_v2  ;;  %v13_v8 = vunpack.c.h.bf16 %v9_v2 }
   0x3   :  { %v103_v9 = vunpack.c.0.s8 %v170_v4  ;;  %v173_v10 = vshrl.u32 %v104_v0, 7 }
   0x4   :  { %v18_v11 = vcombine.high %v10_v5, %v10_v5  ;;  %v19_v12 = vcombine.high %v11_v6, %v11_v6  ;;  %v20_v13 = vcombine.high %v12_v7, %v12_v7  ;;  %v21_v14 = vcombine.high %v13_v8, %v13_v8 }
   0x5   :  { %v27_v15 = vsel %vm26_vm0, %v10_v5, 0.0  ;;  %v41_v16 = vsel %vm26_vm0, %v11_v6, 0.0  ;;  %v55_v17 = vsel %vm26_vm0, %v12_v7, 0.0  ;;  %v69_v18 = vsel %vm26_vm0, %v13_v8, 0.0 }
   0x6   :  { %v28_v19 = vrot.slane %v27_v15, 4  ;;  %v34_v20 = vsel %vm26_vm0, %v18_v11, 0.0  ;;  %v42_v21 = vrot.slane %v41_v16, 4  ;;  %v48_v22 = vsel %vm26_vm0, %v19_v12, 0.0 }
   0x7   :  { %v35_v23 = vrot.slane %v34_v20, 4  ;;  %v49_v24 = vrot.slane %v48_v22, 4  ;;  %v56_v25 = vrot.slane %v55_v17, 4  ;;  %v62_v26 = vsel %vm26_vm0, %v20_v13, 0.0 }
   0x8   :  { %v29_v27 = vadd.f32 %v28_v19, %v27_v15  ;;  %v43_v28 = vadd.f32 %v42_v21, %v41_v16  ;;  %v63_v29 = vrot.slane %v62_v26, 4  ;;  %v70_v30 = vrot.slane %v69_v18, 4 }
   0x9   :  { %v36_v31 = vadd.f32 %v35_v23, %v34_v20  ;;  %v50_v32 = vadd.f32 %v49_v24, %v48_v22  ;;  %v57_v33 = vadd.f32 %v56_v25, %v55_v17  ;;  %v76_v34 = vsel %vm26_vm0, %v21_v14, 0.0 }
   0xa   :  { %v30_v35 = vrot.slane %v29_v27, 2  ;;  %v44_v36 = vrot.slane %v43_v28, 2  ;;  %v64_v37 = vadd.f32 %v63_v29, %v62_v26  ;;  %v71_v38 = vadd.f32 %v70_v30, %v69_v18 }
   0xb   :  { %v37_v39 = vrot.slane %v36_v31, 2  ;;  %v51_v40 = vrot.slane %v50_v32, 2  ;;  %v58_v41 = vrot.slane %v57_v33, 2  ;;  %v77_v42 = vrot.slane %v76_v34, 4 }
   0xc   :  { %v31_v43 = vadd.f32 %v30_v35, %v29_v27  ;;  %v45_v44 = vadd.f32 %v44_v36, %v43_v28  ;;  %v65_v45 = vrot.slane %v64_v37, 2  ;;  %v72_v46 = vrot.slane %v71_v38, 2 }
   0xd   :  { %v38_v47 = vadd.f32 %v37_v39, %v36_v31  ;;  %v52_v48 = vadd.f32 %v51_v40, %v50_v32  ;;  %v59_v49 = vadd.f32 %v58_v41, %v57_v33  ;;  %v78_v50 = vadd.f32 %v77_v42, %v76_v34 }
   0xe   :  { %v32_v51 = vrot.slane %v31_v43, 1  ;;  %v46_v52 = vrot.slane %v45_v44, 1  ;;  %v66_v53 = vadd.f32 %v65_v45, %v64_v37  ;;  %v73_v54 = vadd.f32 %v72_v46, %v71_v38 }
   0xf   :  { %v39_v55 = vrot.slane %v38_v47, 1  ;;  %v53_v56 = vrot.slane %v52_v48, 1  ;;  %v60_v57 = vrot.slane %v59_v49, 1  ;;  %v79_v58 = vrot.slane %v78_v50, 2 }
  0x10   :  { %v33_v59 = vadd.f32 %v32_v51, %v31_v43  ;;  %v47_v60 = vadd.f32 %v46_v52, %v45_v44  ;;  %v67_v61 = vrot.slane %v66_v53, 1  ;;  %v74_v62 = vrot.slane %v73_v54, 1 }
  0x11   :  { %v40_v63 = vadd.f32 %v39_v55, %v38_v47  ;;  %v54_v0 = vadd.f32 %v53_v56, %v52_v48  ;;  %v61_v1 = vadd.f32 %v60_v57, %v59_v49  ;;  %v80_v2 = vadd.f32 %v79_v58, %v78_v50 }
  0x12   :  { %v68_v3 = vadd.f32 %v67_v61, %v66_v53  ;;  %v75_v5 = vadd.f32 %v74_v62, %v73_v54  ;;  %v83_v6 = vmul.f32 0.25, %v33_v59  ;;  %v85_v7 = vmul.f32 0.25, %v47_v60 }
  0x13   :  { %v81_v8 = vrot.slane %v80_v2, 1  ;;  %v84_v11 = vmul.f32 0.25, %v40_v63  ;;  %v86_v12 = vmul.f32 0.25, %v54_v0  ;;  %v87_v13 = vmul.f32 0.25, %v61_v1 }
  0x14   :  { %v88_v14 = vmul.f32 0.25, %v68_v3  ;;  %v89_v15 = vmul.f32 0.25, %v75_v5  ;;  %v106_v19 = vsub.s32 %v103_v9, %v173_v10 }
  0x15   :  { %v82_v16 = vadd.f32 %v81_v8, %v80_v2  ;;  %v99_v17 = vcombine.low %v83_v6, %v84_v11  ;;  %v100_v18 = vcombine.low %v85_v7, %v86_v12 }
  0x16   :  { %v116_v20 = vcombine.low %v87_v13, %v88_v14 }
  0x17   :  { %v90_v21 = vmul.f32 0.25, %v82_v16  ;;  %v107_v22 = vrot.slane %v99_v17, %v106_v19  ;;  %v114_v23 = vrot.slane %v100_v18, %v106_v19 }
  0x18   :  { %v124_v25 = vrot.slane %v116_v20, %v106_v19 }
  0x19   :  { %v117_v24 = vcombine.low %v89_v15, %v90_v21  ;;  %v115_v27 = vcombine.low %v107_v22, %v114_v23 }
  0x1b   :  { %v131_v26 = vrot.slane %v117_v24, %v106_v19 }
  0x1d   :  { %v132_v28 = vcombine.low %v124_v25, %v131_v26 }
  0x1f   :  { %v137_v29 = vrot.slane %v132_v28, 7 }
  0x21   :  { %v139_v30 = vsel %vm138_vm1, %v137_v29, %v115_v27 }
  0x22   :  { %v141_v31 = vsel %vm140_vm2, %v137_v29, %v139_v30 }
  0x23   :  { %v143_v32 = vsel %vm142_vm3, %v137_v29, %v141_v31 }
  0x24   :  { %v145_v33 = vsel %vm144_vm4, %v137_v29, %v143_v32 }
  0x25   :  { %147 = vst [vmem:[%s190_s1] sm:$0xff] %v145_v33 }

// kernel: _forward.85
= control target key start
LH: loop header
LB: loop body
LE: loop exit
PB: predicated region body
PF: predicated region fallthrough
CT: control target
= control target key end

     0   :  { %s638_s1 = inlined_call_operand.vmem [shape: bf16[512,128], index: 1, kind: input, shape index: {}]   ;;  %s639_s0 = inlined_call_operand.vmem [shape: bf16[8,512], index: 0, kind: input, shape index: {}]   ;;  %s640_s2 = inlined_call_operand.vmem [shape: f32[1,128], index: 2, kind: input, shape index: {}]   ;;  %s641_s3 = inlined_call_operand.vmem [shape: f32[8,128], index: 3, kind: output, shape index: {}]  }
   0x1   :  { %v474_v0 = vld [vmem:[%s638_s1 + $0x40] sm:$0xff]   ;;  %v478_v4 = vld [vmem:[%s638_s1 + $0x48] sm:$0xff]   ;;  %v482_v8 = vld [vmem:[%s638_s1 + $0x50] sm:$0xff]  }
   0x2   :  { %v475_v1 = vld [vmem:[%s638_s1 + $0xc0] sm:$0xff]   ;;  %430 = vmatprep.subr.bf16.mxu0 %v474_v0  ;;  %v479_v5 = vld [vmem:[%s638_s1 + $0xc8] sm:$0xff]   ;;  %v483_v9 = vld [vmem:[%s638_s1 + $0xd0] sm:$0xff]  }
   0x3   :  { %v476_v2 = vld [vmem:[%s638_s1] sm:$0xff]   ;;  %452 = vmatprep.subr.bf16.mxu1 %v475_v1  ;;  %v480_v6 = vld [vmem:[%s638_s1 + $0x8] sm:$0xff]   ;;  %v484_v10 = vld [vmem:[%s638_s1 + $0x10] sm:$0xff]  }
   0x4   :  { %v477_v3 = vld [vmem:[%s638_s1 + $0x80] sm:$0xff]   ;;  %431 = vmatpush3.bf16.msra.mxu0 %v476_v2  ;;  %v481_v7 = vld [vmem:[%s638_s1 + $0x88] sm:$0xff]   ;;  %v485_v11 = vld [vmem:[%s638_s1 + $0x90] sm:$0xff]  }
   0x5   :  { %453 = vmatpush3.bf16.msra.mxu1 %v477_v3  ;;  %432 = vmatprep.subr.bf16.mxu0 %v478_v4  ;;  %v486_v12 = vld [vmem:[%s638_s1 + $0x58] sm:$0xff]   ;;  %v490_v16 = vld [vmem:[%s638_s1 + $0x60] sm:$0xff]   ;;  %v494_v20 = vld [vmem:[%s638_s1 + $0x68] sm:$0xff]  }
   0x6   :  { %454 = vmatprep.subr.bf16.mxu1 %v479_v5  ;;  %v487_v13 = vld [vmem:[%s638_s1 + $0xd8] sm:$0xff]   ;;  %v491_v17 = vld [vmem:[%s638_s1 + $0xe0] sm:$0xff]   ;;  %v495_v21 = vld [vmem:[%s638_s1 + $0xe8] sm:$0xff]  }
   0x7   :  { %v488_v14 = vld [vmem:[%s638_s1 + $0x18] sm:$0xff]   ;;  %v492_v18 = vld [vmem:[%s638_s1 + $0x20] sm:$0xff]   ;;  %v496_v22 = vld [vmem:[%s638_s1 + $0x28] sm:$0xff]  }
   0x8   :  { %433 = vmatpush3.bf16.msra.mxu0 %v480_v6  ;;  %v489_v15 = vld [vmem:[%s638_s1 + $0x98] sm:$0xff]   ;;  %v493_v19 = vld [vmem:[%s638_s1 + $0xa0] sm:$0xff]   ;;  %v497_v23 = vld [vmem:[%s638_s1 + $0xa8] sm:$0xff]  }
   0x9   :  { %455 = vmatpush3.bf16.msra.mxu1 %v481_v7  ;;  %434 = vmatprep.subr.bf16.mxu0 %v482_v8  ;;  %v498_v24 = vld [vmem:[%s638_s1 + $0x70] sm:$0xff]   ;;  %v502_v28 = vld [vmem:[%s638_s1 + $0x78] sm:$0xff]   ;;  %v21_v32 = vld [vmem:[%s639_s0] sm:$0xff] }
   0xa   :  { %456 = vmatprep.subr.bf16.mxu1 %v483_v9  ;;  %v499_v25 = vld [vmem:[%s638_s1 + $0xf0] sm:$0xff]   ;;  %v503_v29 = vld [vmem:[%s638_s1 + $0xf8] sm:$0xff]   ;;  %v22_v33 = vld [vmem:[%s639_s0 + $0x8] sm:$0xff]  ;;  %v393_v34 = vcombine.low %v21_v32, %v21_v32  ;;  %v394_v35 = vcombine.high %v21_v32, %v21_v32 }
   0xb   :  { %v500_v26 = vld [vmem:[%s638_s1 + $0x30] sm:$0xff]   ;;  %v504_v30 = vld [vmem:[%s638_s1 + $0x38] sm:$0xff]   ;;  %v395_v36 = vcombine.low %v22_v33, %v22_v33  ;;  %v396_v37 = vcombine.high %v22_v33, %v22_v33  ;;  %v429_v46 = vld [vmem:[%s640_s2] ss:$0 sm:$0xff] }
   0xc   :  { %435 = vmatpush3.bf16.msra.mxu0 %v484_v10  ;;  %v501_v27 = vld [vmem:[%s638_s1 + $0xb0] sm:$0xff]   ;;  %v505_v31 = vld [vmem:[%s638_s1 + $0xb8] sm:$0xff]   ;;  %325 = vmatprep.mubr.bf16.mxu0 %v394_v35 }
   0xd   :  { %457 = vmatpush3.bf16.msra.mxu1 %v485_v11  ;;  %436 = vmatprep.subr.bf16.mxu0 %v486_v12 }
   0xe   :  { %458 = vmatprep.subr.bf16.mxu1 %v487_v13  ;;  %365 = vmatprep.mubr.bf16.mxu1 %v396_v37 }
  0x10   :  { %437 = vmatpush3.bf16.msra.mxu0 %v488_v14 }
  0x11   :  { %459 = vmatpush3.bf16.msra.mxu1 %v489_v15  ;;  %438 = vmatprep.subr.bf16.mxu0 %v490_v16 }
  0x12   :  { %460 = vmatprep.subr.bf16.mxu1 %v491_v17 }
  0x14   :  { %439 = vmatpush3.bf16.msra.mxu0 %v492_v18 }
  0x15   :  { %461 = vmatpush3.bf16.msra.mxu1 %v493_v19  ;;  %440 = vmatprep.subr.bf16.mxu0 %v494_v20 }
  0x16   :  { %462 = vmatprep.subr.bf16.mxu1 %v495_v21 }
  0x18   :  { %441 = vmatpush3.bf16.msra.mxu0 %v496_v22 }
  0x19   :  { %463 = vmatpush3.bf16.msra.mxu1 %v497_v23  ;;  %442 = vmatprep.subr.bf16.mxu0 %v498_v24 }
  0x1a   :  { %464 = vmatprep.subr.bf16.mxu1 %v499_v25 }
  0x1c   :  { %443 = vmatpush3.bf16.msra.mxu0 %v500_v26 }
  0x1d   :  { %465 = vmatpush3.bf16.msra.mxu1 %v501_v27  ;;  %444 = vmatprep.subr.bf16.mxu0 %v502_v28 }
  0x1e   :  { %466 = vmatprep.subr.bf16.mxu1 %v503_v29 }
  0x20   :  { %445 = vmatpush3.bf16.msra.mxu0 %v504_v30 }
  0x21   :  { %467 = vmatpush3.bf16.msra.mxu1 %v505_v31 }
  0x23   :  { %326 = vmatmul.mubr.bf16.vlgmr.msra.gmra.mrb[0].mxu0 %v393_v34 }
  0x24   :  { %366 = vmatmul.mubr.bf16.vlgmr.msra.gmra.mrb[0].mxu1 %v395_v36 }
  0xf6   :  { %v446_v38 = vpop.f32.mrb[0].mxu0 }
  0xf7   :  { %v468_v39 = vpop.f32.mrb[0].mxu1  ;;  %v447_v40 = vpop.f32.mrb[1].mxu0 }
  0xf8   :  { %v469_v41 = vpop.f32.mrb[1].mxu1  ;;  %v448_v42 = vadd.f32 %v447_v40, %v446_v38  ;;  %v449_v44 = vpop.f32.mrb[2].mxu0 }
  0xf9   :  { %v470_v43 = vadd.f32 %v469_v41, %v468_v39  ;;  %v471_v45 = vpop.f32.mrb[2].mxu1  ;;  %v450_v47 = vpop.f32.mrb[3].mxu0 }
  0xfa   :  { %v472_v48 = vpop.f32.mrb[3].mxu1 }
  0xfb   :  { %v368_v49 = vadd.f32 %v470_v43, %v448_v42 }
  0xfd   :  { %v386_v50 = vadd.f32 %v429_v46, %v368_v49 }
  0xff   :  { %v387_v51 = vmax.f32 %v386_v50, 0.0 }
 0x101   :  { %388 = vst [vmem:[%s641_s3] sm:$0xff] %v387_v51 }

// kernel: _forward.86
= control target key start
LH: loop header
LB: loop body
LE: loop exit
PB: predicated region body
PF: predicated region fallthrough
CT: control target
= control target key end

     0   :  { %v436_v1 = vmov 0   ;;  %v319_v34 = vlaneseq  ;;  %s571_s1 = inlined_call_operand.vmem [shape: bf16[128,512], index: 1, kind: input, shape index: {}]   ;;  %s572_s0 = inlined_call_operand.vmem [shape: bf16[8,128], index: 0, kind: input, shape index: {}]   ;;  %s573_s2 = inlined_call_operand.vmem [shape: f32[1,512], index: 2, kind: input, shape index: {}]   ;;  %s574_s3 = inlined_call_operand.vmem [shape: f32[8,512], index: 3, kind: output, shape index: {}]  }
   0x1   :  { %v388_v0 = vld [vmem:[%s571_s1 + $0x4] ss:$16 sps:$4 sm:$0xff]   ;;  %252 = vmatprep.mubr.bf16.mxu0 %v436_v1  ;;  %293 = vmatprep.mubr.bf16.mxu1 %v436_v1  ;;  %v390_v2 = vld [vmem:[%s571_s1 + $0xc] ss:$16 sps:$4 sm:$0xff]   ;;  %v392_v3 = vld [vmem:[%s571_s1] ss:$16 sps:$4 sm:$0xff]  }
   0x2   :  { %220 = vmatprep.subr.bf16.mxu0 %v388_v0  ;;  %v393_v4 = vld [vmem:[%s571_s1 + $0x8] ss:$16 sps:$4 sm:$0xff]   ;;  %261 = vmatprep.subr.bf16.mxu1 %v390_v2  ;;  %v394_v5 = vld [vmem:[%s571_s1 + $0x24] ss:$16 sps:$4 sm:$0xff]   ;;  %v396_v6 = vld [vmem:[%s571_s1 + $0x2c] ss:$16 sps:$4 sm:$0xff]  }
   0x3   :  { %221 = vmatpush1.bf16.msra.mxu0 %v392_v3  ;;  %262 = vmatpush1.bf16.msra.mxu1 %v393_v4  ;;  %v398_v7 = vld [vmem:[%s571_s1 + $0x20] ss:$16 sps:$4 sm:$0xff]   ;;  %v399_v8 = vld [vmem:[%s571_s1 + $0x28] ss:$16 sps:$4 sm:$0xff]   ;;  %v400_v9 = vld [vmem:[%s571_s1 + $0x44] ss:$16 sps:$4 sm:$0xff]  }
   0x4   :  { %222 = vmatprep.subr.bf16.mxu0 %v394_v5  ;;  %263 = vmatprep.subr.bf16.mxu1 %v396_v6  ;;  %v402_v10 = vld [vmem:[%s571_s1 + $0x4c] ss:$16 sps:$4 sm:$0xff]   ;;  %v404_v11 = vld [vmem:[%s571_s1 + $0x40] ss:$16 sps:$4 sm:$0xff]   ;;  %v405_v12 = vld [vmem:[%s571_s1 + $0x48] ss:$16 sps:$4 sm:$0xff]  }
   0x5   :  { %v406_v13 = vld [vmem:[%s571_s1 + $0x64] ss:$16 sps:$4 sm:$0xff]   ;;  %v408_v14 = vld [vmem:[%s571_s1 + $0x6c] ss:$16 sps:$4 sm:$0xff]   ;;  %v410_v15 = vld [vmem:[%s571_s1 + $0x60] ss:$16 sps:$4 sm:$0xff]  }
   0x6   :  { %v411_v16 = vld [vmem:[%s571_s1 + $0x68] ss:$16 sps:$4 sm:$0xff]   ;;  %v412_v17 = vld [vmem:[%s571_s1 + $0x84] ss:$16 sps:$4 sm:$0xff]   ;;  %v414_v18 = vld [vmem:[%s571_s1 + $0x8c] ss:$16 sps:$4 sm:$0xff]  }
   0x7   :  { %223 = vmatpush1.bf16.msra.mxu0 %v398_v7  ;;  %264 = vmatpush1.bf16.msra.mxu1 %v399_v8  ;;  %v416_v19 = vld [vmem:[%s571_s1 + $0x80] ss:$16 sps:$4 sm:$0xff]   ;;  %v417_v20 = vld [vmem:[%s571_s1 + $0x88] ss:$16 sps:$4 sm:$0xff]   ;;  %v418_v21 = vld [vmem:[%s571_s1 + $0xa4] ss:$16 sps:$4 sm:$0xff]  }
   0x8   :  { %224 = vmatprep.subr.bf16.mxu0 %v400_v9  ;;  %265 = vmatprep.subr.bf16.mxu1 %v402_v10  ;;  %v420_v22 = vld [vmem:[%s571_s1 + $0xac] ss:$16 sps:$4 sm:$0xff]   ;;  %v422_v23 = vld [vmem:[%s571_s1 + $0xa0] ss:$16 sps:$4 sm:$0xff]   ;;  %v423_v24 = vld [vmem:[%s571_s1 + $0xa8] ss:$16 sps:$4 sm:$0xff]  }
   0x9   :  { %v424_v25 = vld [vmem:[%s571_s1 + $0xc4] ss:$16 sps:$4 sm:$0xff]   ;;  %v426_v26 = vld [vmem:[%s571_s1 + $0xcc] ss:$16 sps:$4 sm:$0xff]   ;;  %v428_v27 = vld [vmem:[%s571_s1 + $0xc0] ss:$16 sps:$4 sm:$0xff]  }
   0xa   :  { %v429_v28 = vld [vmem:[%s571_s1 + $0xc8] ss:$16 sps:$4 sm:$0xff]   ;;  %v430_v29 = vld [vmem:[%s571_s1 + $0xe4] ss:$16 sps:$4 sm:$0xff]   ;;  %v432_v30 = vld [vmem:[%s571_s1 + $0xec] ss:$16 sps:$4 sm:$0xff]  }
   0xb   :  { %225 = vmatpush1.bf16.msra.mxu0 %v404_v11  ;;  %266 = vmatpush1.bf16.msra.mxu1 %v405_v12  ;;  %v434_v31 = vld [vmem:[%s571_s1 + $0xe0] ss:$16 sps:$4 sm:$0xff]   ;;  %v435_v32 = vld [vmem:[%s571_s1 + $0xe8] ss:$16 sps:$4 sm:$0xff]   ;;  %v320_v35 = vshrl.u32 %v319_v34, 7 }
   0xc   :  { %226 = vmatprep.subr.bf16.mxu0 %v406_v13  ;;  %267 = vmatprep.subr.bf16.mxu1 %v408_v14  ;;  %v27_v33 = vld [vmem:[%s572_s0] sm:$0xf] }
   0xd   :  { %v321_v36 = vsub.s32 0, %v320_v35  ;;  %v329_v37 = vsub.s32 2, %v320_v35  ;;  %v317_v38 = vld [vmem:[%s573_s2] sm:$0xf]  ;;  %v325_v39 = vsub.s32 1, %v320_v35  ;;  %v333_v40 = vsub.s32 3, %v320_v35 }
   0xf   :  { %227 = vmatpush1.bf16.msra.mxu0 %v410_v15  ;;  %268 = vmatpush1.bf16.msra.mxu1 %v411_v16  ;;  %v322_v41 = vrot.slane %v317_v38, %v321_v36  ;;  %v330_v42 = vrot.slane %v317_v38, %v329_v37  ;;  %v326_v43 = vrot.slane %v317_v38, %v325_v39 }
  0x10   :  { %228 = vmatprep.subr.bf16.mxu0 %v412_v17  ;;  %269 = vmatprep.subr.bf16.mxu1 %v414_v18  ;;  %v334_v44 = vrot.slane %v317_v38, %v333_v40 }
  0x13   :  { %229 = vmatpush1.bf16.msra.mxu0 %v416_v19  ;;  %270 = vmatpush1.bf16.msra.mxu1 %v417_v20 }
  0x14   :  { %230 = vmatprep.subr.bf16.mxu0 %v418_v21  ;;  %271 = vmatprep.subr.bf16.mxu1 %v420_v22 }
  0x17   :  { %231 = vmatpush1.bf16.msra.mxu0 %v422_v23  ;;  %272 = vmatpush1.bf16.msra.mxu1 %v423_v24 }
  0x18   :  { %232 = vmatprep.subr.bf16.mxu0 %v424_v25  ;;  %273 = vmatprep.subr.bf16.mxu1 %v426_v26 }
  0x1b   :  { %233 = vmatpush1.bf16.msra.mxu0 %v428_v27  ;;  %274 = vmatpush1.bf16.msra.mxu1 %v429_v28 }
  0x1c   :  { %234 = vmatprep.subr.bf16.mxu0 %v430_v29  ;;  %275 = vmatprep.subr.bf16.mxu1 %v432_v30 }
  0x1f   :  { %235 = vmatpush1.bf16.msra.mxu0 %v434_v31  ;;  %276 = vmatpush1.bf16.msra.mxu1 %v435_v32 }
  0x22   :  { %253 = vmatmul.mubr.bf16.vlgmr.msra.gmra.mrb[0].mxu0 %v27_v33  ;;  %294 = vmatmul.mubr.bf16.vlgmr.msra.gmra.mrb[0].mxu1 %v27_v33 }
  0xf5   :  { %v254_v45 = vpop.f32.mrb[0].mxu0  ;;  %v295_v46 = vpop.f32.mrb[0].mxu1 }
  0xf6   :  { %v339_v47 = vadd.f32 %v322_v41, %v254_v45  ;;  %v341_v48 = vadd.f32 %v330_v42, %v295_v46  ;;  %v256_v49 = vpop.f32.mrb[1].mxu0  ;;  %v297_v50 = vpop.f32.mrb[1].mxu1 }
  0xf7   :  { %v340_v51 = vadd.f32 %v326_v43, %v256_v49  ;;  %v342_v52 = vadd.f32 %v334_v44, %v297_v50  ;;  %v258_v53 = vpop.f32.mrb[2].mxu0  ;;  %v299_v54 = vpop.f32.mrb[2].mxu1 }
  0xf8   :  { %v343_v55 = vmax.f32 %v339_v47, 0.0  ;;  %v345_v56 = vmax.f32 %v341_v48, 0.0  ;;  %v259_v57 = vpop.f32.mrb[3].mxu0  ;;  %v300_v58 = vpop.f32.mrb[3].mxu1 }
  0xf9   :  { %v344_v59 = vmax.f32 %v340_v51, 0.0  ;;  %v346_v60 = vmax.f32 %v342_v52, 0.0 }
  0xfa   :  { %347 = vst [vmem:[%s574_s3] sm:$0xff] %v343_v55  ;;  %349 = vst [vmem:[%s574_s3 + $0x10] sm:$0xff] %v345_v56 }
  0xfb   :  { %348 = vst [vmem:[%s574_s3 + $0x8] sm:$0xff] %v344_v59  ;;  %350 = vst [vmem:[%s574_s3 + $0x18] sm:$0xff] %v346_v60 }

// kernel: _forward.87
= control target key start
LH: loop header
LB: loop body
LE: loop exit
PB: predicated region body
PF: predicated region fallthrough
CT: control target
= control target key end

     0   :  { %s637_s1 = inlined_call_operand.vmem [shape: bf16[512,128], index: 1, kind: input, shape index: {}]   ;;  %s638_s0 = inlined_call_operand.vmem [shape: bf16[8,512], index: 0, kind: input, shape index: {}]   ;;  %s639_s2 = inlined_call_operand.vmem [shape: f32[1,128], index: 2, kind: input, shape index: {}]   ;;  %s640_s3 = inlined_call_operand.vmem [shape: f32[8,128], index: 3, kind: output, shape index: {}]  }
   0x1   :  { %v473_v0 = vld [vmem:[%s637_s1 + $0x40] sm:$0xff]   ;;  %v477_v4 = vld [vmem:[%s637_s1 + $0x48] sm:$0xff]   ;;  %v481_v8 = vld [vmem:[%s637_s1 + $0x50] sm:$0xff]  }
   0x2   :  { %v474_v1 = vld [vmem:[%s637_s1 + $0xc0] sm:$0xff]   ;;  %429 = vmatprep.subr.bf16.mxu0 %v473_v0  ;;  %v478_v5 = vld [vmem:[%s637_s1 + $0xc8] sm:$0xff]   ;;  %v482_v9 = vld [vmem:[%s637_s1 + $0xd0] sm:$0xff]  }
   0x3   :  { %v475_v2 = vld [vmem:[%s637_s1] sm:$0xff]   ;;  %451 = vmatprep.subr.bf16.mxu1 %v474_v1  ;;  %v479_v6 = vld [vmem:[%s637_s1 + $0x8] sm:$0xff]   ;;  %v483_v10 = vld [vmem:[%s637_s1 + $0x10] sm:$0xff]  }
   0x4   :  { %v476_v3 = vld [vmem:[%s637_s1 + $0x80] sm:$0xff]   ;;  %430 = vmatpush3.bf16.msra.mxu0 %v475_v2  ;;  %v480_v7 = vld [vmem:[%s637_s1 + $0x88] sm:$0xff]   ;;  %v484_v11 = vld [vmem:[%s637_s1 + $0x90] sm:$0xff]  }
   0x5   :  { %452 = vmatpush3.bf16.msra.mxu1 %v476_v3  ;;  %431 = vmatprep.subr.bf16.mxu0 %v477_v4  ;;  %v485_v12 = vld [vmem:[%s637_s1 + $0x58] sm:$0xff]   ;;  %v489_v16 = vld [vmem:[%s637_s1 + $0x60] sm:$0xff]   ;;  %v493_v20 = vld [vmem:[%s637_s1 + $0x68] sm:$0xff]  }
   0x6   :  { %453 = vmatprep.subr.bf16.mxu1 %v478_v5  ;;  %v486_v13 = vld [vmem:[%s637_s1 + $0xd8] sm:$0xff]   ;;  %v490_v17 = vld [vmem:[%s637_s1 + $0xe0] sm:$0xff]   ;;  %v494_v21 = vld [vmem:[%s637_s1 + $0xe8] sm:$0xff]  }
   0x7   :  { %v487_v14 = vld [vmem:[%s637_s1 + $0x18] sm:$0xff]   ;;  %v491_v18 = vld [vmem:[%s637_s1 + $0x20] sm:$0xff]   ;;  %v495_v22 = vld [vmem:[%s637_s1 + $0x28] sm:$0xff]  }
   0x8   :  { %432 = vmatpush3.bf16.msra.mxu0 %v479_v6  ;;  %v488_v15 = vld [vmem:[%s637_s1 + $0x98] sm:$0xff]   ;;  %v492_v19 = vld [vmem:[%s637_s1 + $0xa0] sm:$0xff]   ;;  %v496_v23 = vld [vmem:[%s637_s1 + $0xa8] sm:$0xff]  }
   0x9   :  { %454 = vmatpush3.bf16.msra.mxu1 %v480_v7  ;;  %433 = vmatprep.subr.bf16.mxu0 %v481_v8  ;;  %v497_v24 = vld [vmem:[%s637_s1 + $0x70] sm:$0xff]   ;;  %v501_v28 = vld [vmem:[%s637_s1 + $0x78] sm:$0xff]   ;;  %v21_v32 = vld [vmem:[%s638_s0] sm:$0xff] }
   0xa   :  { %455 = vmatprep.subr.bf16.mxu1 %v482_v9  ;;  %v498_v25 = vld [vmem:[%s637_s1 + $0xf0] sm:$0xff]   ;;  %v502_v29 = vld [vmem:[%s637_s1 + $0xf8] sm:$0xff]   ;;  %v22_v33 = vld [vmem:[%s638_s0 + $0x8] sm:$0xff]  ;;  %v392_v34 = vcombine.low %v21_v32, %v21_v32  ;;  %v393_v35 = vcombine.high %v21_v32, %v21_v32 }
   0xb   :  { %v499_v26 = vld [vmem:[%s637_s1 + $0x30] sm:$0xff]   ;;  %v503_v30 = vld [vmem:[%s637_s1 + $0x38] sm:$0xff]   ;;  %v394_v36 = vcombine.low %v22_v33, %v22_v33  ;;  %v395_v37 = vcombine.high %v22_v33, %v22_v33  ;;  %v428_v46 = vld [vmem:[%s639_s2] ss:$0 sm:$0xff] }
   0xc   :  { %434 = vmatpush3.bf16.msra.mxu0 %v483_v10  ;;  %v500_v27 = vld [vmem:[%s637_s1 + $0xb0] sm:$0xff]   ;;  %v504_v31 = vld [vmem:[%s637_s1 + $0xb8] sm:$0xff]   ;;  %325 = vmatprep.mubr.bf16.mxu0 %v393_v35 }
   0xd   :  { %456 = vmatpush3.bf16.msra.mxu1 %v484_v11  ;;  %435 = vmatprep.subr.bf16.mxu0 %v485_v12 }
   0xe   :  { %457 = vmatprep.subr.bf16.mxu1 %v486_v13  ;;  %365 = vmatprep.mubr.bf16.mxu1 %v395_v37 }
  0x10   :  { %436 = vmatpush3.bf16.msra.mxu0 %v487_v14 }
  0x11   :  { %458 = vmatpush3.bf16.msra.mxu1 %v488_v15  ;;  %437 = vmatprep.subr.bf16.mxu0 %v489_v16 }
  0x12   :  { %459 = vmatprep.subr.bf16.mxu1 %v490_v17 }
  0x14   :  { %438 = vmatpush3.bf16.msra.mxu0 %v491_v18 }
  0x15   :  { %460 = vmatpush3.bf16.msra.mxu1 %v492_v19  ;;  %439 = vmatprep.subr.bf16.mxu0 %v493_v20 }
  0x16   :  { %461 = vmatprep.subr.bf16.mxu1 %v494_v21 }
  0x18   :  { %440 = vmatpush3.bf16.msra.mxu0 %v495_v22 }
  0x19   :  { %462 = vmatpush3.bf16.msra.mxu1 %v496_v23  ;;  %441 = vmatprep.subr.bf16.mxu0 %v497_v24 }
  0x1a   :  { %463 = vmatprep.subr.bf16.mxu1 %v498_v25 }
  0x1c   :  { %442 = vmatpush3.bf16.msra.mxu0 %v499_v26 }
  0x1d   :  { %464 = vmatpush3.bf16.msra.mxu1 %v500_v27  ;;  %443 = vmatprep.subr.bf16.mxu0 %v501_v28 }
  0x1e   :  { %465 = vmatprep.subr.bf16.mxu1 %v502_v29 }
  0x20   :  { %444 = vmatpush3.bf16.msra.mxu0 %v503_v30 }
  0x21   :  { %466 = vmatpush3.bf16.msra.mxu1 %v504_v31 }
  0x23   :  { %326 = vmatmul.mubr.bf16.vlgmr.msra.gmra.mrb[0].mxu0 %v392_v34 }
  0x24   :  { %366 = vmatmul.mubr.bf16.vlgmr.msra.gmra.mrb[0].mxu1 %v394_v36 }
  0xf6   :  { %v445_v38 = vpop.f32.mrb[0].mxu0 }
  0xf7   :  { %v467_v39 = vpop.f32.mrb[0].mxu1  ;;  %v446_v40 = vpop.f32.mrb[1].mxu0 }
  0xf8   :  { %v468_v41 = vpop.f32.mrb[1].mxu1  ;;  %v447_v42 = vadd.f32 %v446_v40, %v445_v38  ;;  %v448_v44 = vpop.f32.mrb[2].mxu0 }
  0xf9   :  { %v469_v43 = vadd.f32 %v468_v41, %v467_v39  ;;  %v470_v45 = vpop.f32.mrb[2].mxu1  ;;  %v449_v47 = vpop.f32.mrb[3].mxu0 }
  0xfa   :  { %v471_v48 = vpop.f32.mrb[3].mxu1 }
  0xfb   :  { %v368_v49 = vadd.f32 %v469_v43, %v447_v42 }
  0xfd   :  { %v386_v50 = vadd.f32 %v428_v46, %v368_v49 }
  0xff   :  { %387 = vst [vmem:[%s640_s3] sm:$0xff] %v386_v50 }

</bundles_post_ra>
